<compile_context>
chip_gen: v5e
topology: v5e:2x2
jax: 0.10.0
libtpu: 0.0.40
codegen_flags: <defaults>
</compile_context>

<pallas_src>
import functools

import jax
import jax.numpy as jnp
from jax.experimental import pallas as pl
from jax.experimental.pallas import tpu as pltpu


# ---------------------------------------------------------------------------
# Logical (PyTorch) dims and padded (TPU-aligned) dims.
# ---------------------------------------------------------------------------
D_IN, H1, H2, D_OUT = 28 * 28, 1000, 2000, 10


def _round_up(n, m):
    return ((n + m - 1) // m) * m


def _cdiv(a, b):
    return -(-a // b)


D_IN_P = _round_up(D_IN, 128)    # 896
H1_P = _round_up(H1, 128)        # 1024
H2_P = _round_up(H2, 128)        # 2048
D_OUT_P = _round_up(D_OUT, 128)  # 128


# ---------------------------------------------------------------------------
# Kernel: one batch tile of the full 3-layer MLP.  Weights are VMEM-resident
# (constant index_map, single-buffered); matmul inputs bf16, accumulation /
# bias / ReLU f32.
# ---------------------------------------------------------------------------
def lora_mlp_kernel(x_ref, w1_ref, b1_ref, w2_ref, b2_ref, w3_ref, b3_ref,
                    o_ref):
    x = x_ref[...]  # already bf16 (cast fused into the wrapper pad)

    h1 = jnp.dot(x, w1_ref[...], preferred_element_type=jnp.float32)
    h1 = jnp.maximum(h1 + b1_ref[...], 0.0).astype(jnp.bfloat16)

    h2 = jnp.dot(h1, w2_ref[...], preferred_element_type=jnp.float32)
    h2 = jnp.maximum(h2 + b2_ref[...], 0.0).astype(jnp.bfloat16)

    o_ref[...] = (jnp.dot(h2, w3_ref[...], preferred_element_type=jnp.float32)
                  + b3_ref[...])


# ---------------------------------------------------------------------------
# Parameter prep (done once): zero-pad to aligned shapes, cast weights to bf16.
# ---------------------------------------------------------------------------
def _pad_to(x, shape):
    return jnp.pad(x, [(0, s - d) for d, s in zip(x.shape, shape)])


def init_params(key, hidden_size=H1, hidden_size_2=H2):
    """nn.Linear-style init, weights stored (in_features, out_features), f32."""
    dims = [(D_IN, hidden_size), (hidden_size, hidden_size_2),
            (hidden_size_2, D_OUT)]
    params = []
    for fan_in, fan_out in dims:
        key, kw, kb = jax.random.split(key, 3)
        bound = 1.0 / jnp.sqrt(float(fan_in))
        w = jax.random.uniform(kw, (fan_in, fan_out), jnp.float32,
                               minval=-bound, maxval=bound)
        b = jax.random.uniform(kb, (1, fan_out), jnp.float32,
                               minval=-bound, maxval=bound)
        params.extend([w, b])
    return tuple(params)


def prepare_params(params):
    w1, b1, w2, b2, w3, b3 = params
    return (
        _pad_to(w1, (D_IN_P, H1_P)).astype(jnp.bfloat16),
        _pad_to(b1, (1, H1_P)).astype(jnp.float32),
        _pad_to(w2, (H1_P, H2_P)).astype(jnp.bfloat16),
        _pad_to(b2, (1, H2_P)).astype(jnp.float32),
        _pad_to(w3, (H2_P, D_OUT_P)).astype(jnp.bfloat16),
        _pad_to(b3, (1, D_OUT_P)).astype(jnp.float32),
    )


# ---------------------------------------------------------------------------
# Forward pass: batch-tiled pallas_call.
# ---------------------------------------------------------------------------
@functools.partial(jax.jit, static_argnames=("tile_b", "vmem_limit_bytes"))
def lora_net_forward(img, prepared_params, *, tile_b=512,
                     vmem_limit_bytes=32 << 20):
    """img: (B, 1, 28, 28) float32 NCHW.  Returns logits (B, 10) float32."""
    w1, b1, w2, b2, w3, b3 = prepared_params
    B = img.shape[0]

    # img.view(-1, 784) -> bf16, then pad batch + feature dims on the bf16 copy
    # (single cheap copy; halves x HBM/VMEM traffic vs f32).
    x = img.reshape(B, D_IN).astype(jnp.bfloat16)

    # Adaptive batch tile: don't pad a tiny batch to a full tile, and keep the
    # tile count even when >1 so v7x megacore ("parallel") uses both cores.
    tile = max(8, min(tile_b, _round_up(B, 8)))
    num_tiles = _cdiv(B, tile)
    if num_tiles > 1 and num_tiles % 2 == 1:
        tile = _round_up(_cdiv(B, num_tiles + 1), 8)
        num_tiles = _cdiv(B, tile)
    padded_b = num_tiles * tile

    x = jnp.pad(x, ((0, padded_b - B), (0, D_IN_P - D_IN)))
    grid = (num_tiles,)

    # Weight / bias blocks map to (0, 0) every step and are single-buffered:
    # fetched once, VMEM-resident across batch tiles.  x / out tiles walk the
    # batch with the default double-buffered pipeline.
    const2d = lambda i: (0, 0)
    resident = dict(pipeline_mode=pl.Buffered(1))
    in_specs = [
        pl.BlockSpec((tile, D_IN_P), lambda i: (i, 0)),            # x tile
        pl.BlockSpec((D_IN_P, H1_P), const2d, **resident),         # w1
        pl.BlockSpec((1, H1_P), const2d, **resident),              # b1
        pl.BlockSpec((H1_P, H2_P), const2d, **resident),           # w2
        pl.BlockSpec((1, H2_P), const2d, **resident),              # b2
        pl.BlockSpec((H2_P, D_OUT_P), const2d, **resident),        # w3
        pl.BlockSpec((1, D_OUT_P), const2d, **resident),           # b3
    ]
    out_specs = pl.BlockSpec((tile, D_OUT_P), lambda i: (i, 0))

    weight_elems = D_IN_P * H1_P + H1_P * H2_P + H2_P * D_OUT_P
    flops = 2 * padded_b * weight_elems
    weight_bytes = 2 * weight_elems                       # bf16 weights
    bias_bytes = 4 * (H1_P + H2_P + D_OUT_P)              # f32 biases
    io_bytes = 2 * padded_b * D_IN_P + 4 * padded_b * D_OUT_P  # bf16 in, f32 out
    cost = pl.CostEstimate(flops=flops, transcendentals=0,
                           bytes_accessed=weight_bytes + bias_bytes + io_bytes)

    out = pl.pallas_call(
        lora_mlp_kernel,
        out_shape=jax.ShapeDtypeStruct((padded_b, D_OUT_P), jnp.float32),
        grid=grid,
        in_specs=in_specs,
        out_specs=out_specs,
        compiler_params=pltpu.CompilerParams(
            dimension_semantics=("parallel",),
            vmem_limit_bytes=vmem_limit_bytes,
        ),
        cost_estimate=cost,
    )(x, w1, b1, w2, b2, w3, b3)

    return out[:B, :D_OUT]


# ---------------------------------------------------------------------------
# Pure-JAX reference with identical numerics (bf16 matmul inputs, f32 acc).
# ---------------------------------------------------------------------------
def reference_forward(img, prepared_params):
    w1, b1, w2, b2, w3, b3 = prepared_params
    B = img.shape[0]
    x = img.reshape(B, D_IN).astype(jnp.bfloat16)
    x = jnp.pad(x, ((0, 0), (0, D_IN_P - D_IN)))
    h1 = jnp.maximum(
        jnp.dot(x, w1, preferred_element_type=jnp.float32) + b1, 0.0
    ).astype(jnp.bfloat16)
    h2 = jnp.maximum(
        jnp.dot(h1, w2, preferred_element_type=jnp.float32) + b2, 0.0
    ).astype(jnp.bfloat16)
    out = jnp.dot(h2, w3, preferred_element_type=jnp.float32) + b3
    return out[:, :D_OUT]


if __name__ == "__main__":
    key = jax.random.PRNGKey(0)
    k_params, k_img = jax.random.split(key)

    params = init_params(k_params, hidden_size=H1, hidden_size_2=H2)
    prepared = prepare_params(params)

    img = jax.random.normal(k_img, (8, 1, 28, 28), jnp.float32)  # NCHW batch=8

    out = lora_net_forward(img, prepared)
    out = jax.block_until_ready(out)

    ref = reference_forward(img, prepared)
    assert out.shape == (8, 10)
    assert jnp.allclose(out, ref, atol=2e-2, rtol=2e-2), "mismatch vs reference"

    print("KERNEL_OK")
</pallas_src>

<mosaic_0001>
module attributes {stable_mosaic.version = 11 : i64} {
  func.func @lora_mlp_kernel(%arg0: i32, %arg1: memref<8x896xbf16, #tpu.memory_space<vmem>>, %arg2: memref<896x1024xbf16, #tpu.memory_space<vmem>>, %arg3: memref<1x1024xf32, #tpu.memory_space<vmem>>, %arg4: memref<1024x2048xbf16, #tpu.memory_space<vmem>>, %arg5: memref<1x2048xf32, #tpu.memory_space<vmem>>, %arg6: memref<2048x128xbf16, #tpu.memory_space<vmem>>, %arg7: memref<1x128xf32, #tpu.memory_space<vmem>>, %arg8: memref<8x128xf32, #tpu.memory_space<vmem>>) attributes {dimension_semantics = [#tpu.dimension_semantics<parallel>], iteration_bounds = array<i64: 1>, scalar_prefetch = 0 : i64, scratch_operands = 0 : i64, tpu.core_type = #tpu.core_type<tc>, window_params = [{transform_indices = @transform_0, window_bounds = array<i64: 8, 896>}, {pipeline_mode = #tpu.pipeline_mode<synchronous>, transform_indices = @transform_1, window_bounds = array<i64: 896, 1024>}, {pipeline_mode = #tpu.pipeline_mode<synchronous>, transform_indices = @transform_2, window_bounds = array<i64: 1, 1024>}, {pipeline_mode = #tpu.pipeline_mode<synchronous>, transform_indices = @transform_3, window_bounds = array<i64: 1024, 2048>}, {pipeline_mode = #tpu.pipeline_mode<synchronous>, transform_indices = @transform_4, window_bounds = array<i64: 1, 2048>}, {pipeline_mode = #tpu.pipeline_mode<synchronous>, transform_indices = @transform_5, window_bounds = array<i64: 2048, 128>}, {pipeline_mode = #tpu.pipeline_mode<synchronous>, transform_indices = @transform_6, window_bounds = array<i64: 1, 128>}, {transform_indices = @transform_7, window_bounds = array<i64: 8, 128>}]} {
    %c0 = arith.constant 0 : index
    %c0_0 = arith.constant 0 : index
    %0 = vector.load %arg1[%c0, %c0_0] : memref<8x896xbf16, #tpu.memory_space<vmem>>, vector<8x896xbf16>
    %c0_1 = arith.constant 0 : index
    %c0_2 = arith.constant 0 : index
    %1 = vector.load %arg2[%c0_1, %c0_2] : memref<896x1024xbf16, #tpu.memory_space<vmem>>, vector<896x1024xbf16>
    %cst = arith.constant dense<0.000000e+00> : vector<8x1024xf32>
    %2 = tpu.matmul %0, %1, %cst {dimension_numbers = #tpu.dot_dimension_numbers<[1], [0], [0], [1], [0, 0, 1, 1], [], []>} : vector<8x896xbf16>, vector<896x1024xbf16>, vector<8x1024xf32> -> vector<8x1024xf32>
    %c0_3 = arith.constant 0 : index
    %c0_4 = arith.constant 0 : index
    %3 = vector.load %arg3[%c0_3, %c0_4] : memref<1x1024xf32, #tpu.memory_space<vmem>>, vector<1x1024xf32>
    %4 = vector.broadcast %3 : vector<1x1024xf32> to vector<8x1024xf32>
    %5 = arith.addf %2, %4 : vector<8x1024xf32>
    %cst_5 = arith.constant 0.000000e+00 : f32
    %6 = vector.broadcast %cst_5 : f32 to vector<8x1024xf32>
    %7 = arith.maximumf %5, %6 : vector<8x1024xf32>
    %8 = arith.truncf %7 : vector<8x1024xf32> to vector<8x1024xbf16>
    %c0_6 = arith.constant 0 : index
    %c0_7 = arith.constant 0 : index
    %9 = vector.load %arg4[%c0_6, %c0_7] : memref<1024x2048xbf16, #tpu.memory_space<vmem>>, vector<1024x2048xbf16>
    %cst_8 = arith.constant dense<0.000000e+00> : vector<8x2048xf32>
    %10 = tpu.matmul %8, %9, %cst_8 {dimension_numbers = #tpu.dot_dimension_numbers<[1], [0], [0], [1], [0, 0, 1, 1], [], []>} : vector<8x1024xbf16>, vector<1024x2048xbf16>, vector<8x2048xf32> -> vector<8x2048xf32>
    %c0_9 = arith.constant 0 : index
    %c0_10 = arith.constant 0 : index
    %11 = vector.load %arg5[%c0_9, %c0_10] : memref<1x2048xf32, #tpu.memory_space<vmem>>, vector<1x2048xf32>
    %12 = vector.broadcast %11 : vector<1x2048xf32> to vector<8x2048xf32>
    %13 = arith.addf %10, %12 : vector<8x2048xf32>
    %cst_11 = arith.constant 0.000000e+00 : f32
    %14 = vector.broadcast %cst_11 : f32 to vector<8x2048xf32>
    %15 = arith.maximumf %13, %14 : vector<8x2048xf32>
    %16 = arith.truncf %15 : vector<8x2048xf32> to vector<8x2048xbf16>
    %c0_12 = arith.constant 0 : index
    %c0_13 = arith.constant 0 : index
    %17 = vector.load %arg6[%c0_12, %c0_13] : memref<2048x128xbf16, #tpu.memory_space<vmem>>, vector<2048x128xbf16>
    %cst_14 = arith.constant dense<0.000000e+00> : vector<8x128xf32>
    %18 = tpu.matmul %16, %17, %cst_14 {dimension_numbers = #tpu.dot_dimension_numbers<[1], [0], [0], [1], [0, 0, 1, 1], [], []>} : vector<8x2048xbf16>, vector<2048x128xbf16>, vector<8x128xf32> -> vector<8x128xf32>
    %c0_15 = arith.constant 0 : index
    %c0_16 = arith.constant 0 : index
    %19 = vector.load %arg7[%c0_15, %c0_16] : memref<1x128xf32, #tpu.memory_space<vmem>>, vector<1x128xf32>
    %20 = vector.broadcast %19 : vector<1x128xf32> to vector<8x128xf32>
    %21 = arith.addf %18, %20 : vector<8x128xf32>
    %c0_17 = arith.constant 0 : index
    %c0_18 = arith.constant 0 : index
    %22 = vector.load %arg8[%c0_17, %c0_18] : memref<8x128xf32, #tpu.memory_space<vmem>>, vector<8x128xf32>
    tpu.vector_store %arg8[%c0_17, %c0_18], %21 {strides = array<i32>} : memref<8x128xf32, #tpu.memory_space<vmem>>, vector<8x128xf32>,
    return
  }
  func.func @transform_0(%arg0: i32) -> (i32, i32) {
    %c0_i32 = arith.constant 0 : i32
    %c0_i32_0 = arith.constant 0 : i32
    return %arg0, %c0_i32 : i32, i32
  }
  func.func @transform_1(%arg0: i32) -> (i32, i32) {
    %c0_i32 = arith.constant 0 : i32
    %c0_i32_0 = arith.constant 0 : i32
    %c0_i32_1 = arith.constant 0 : i32
    return %c0_i32, %c0_i32_0 : i32, i32
  }
  func.func @transform_2(%arg0: i32) -> (i32, i32) {
    %c0_i32 = arith.constant 0 : i32
    %c0_i32_0 = arith.constant 0 : i32
    %c0_i32_1 = arith.constant 0 : i32
    return %c0_i32, %c0_i32_0 : i32, i32
  }
  func.func @transform_3(%arg0: i32) -> (i32, i32) {
    %c0_i32 = arith.constant 0 : i32
    %c0_i32_0 = arith.constant 0 : i32
    %c0_i32_1 = arith.constant 0 : i32
    return %c0_i32, %c0_i32_0 : i32, i32
  }
  func.func @transform_4(%arg0: i32) -> (i32, i32) {
    %c0_i32 = arith.constant 0 : i32
    %c0_i32_0 = arith.constant 0 : i32
    %c0_i32_1 = arith.constant 0 : i32
    return %c0_i32, %c0_i32_0 : i32, i32
  }
  func.func @transform_5(%arg0: i32) -> (i32, i32) {
    %c0_i32 = arith.constant 0 : i32
    %c0_i32_0 = arith.constant 0 : i32
    %c0_i32_1 = arith.constant 0 : i32
    return %c0_i32, %c0_i32_0 : i32, i32
  }
  func.func @transform_6(%arg0: i32) -> (i32, i32) {
    %c0_i32 = arith.constant 0 : i32
    %c0_i32_0 = arith.constant 0 : i32
    %c0_i32_1 = arith.constant 0 : i32
    return %c0_i32, %c0_i32_0 : i32, i32
  }
  func.func @transform_7(%arg0: i32) -> (i32, i32) {
    %c0_i32 = arith.constant 0 : i32
    %c0_i32_0 = arith.constant 0 : i32
    return %arg0, %c0_i32 : i32, i32
  }
}

</mosaic_0001>

<bundles_post_ra>
// kernel: lora_net_forward.1
= control target key start
LH: loop header
LB: loop body
LE: loop exit
PB: predicated region body
PF: predicated region fallthrough
CT: control target
= control target key end

     0   :  { %12 = vsyncpa [#allocation3], 0  ;;  %s21646_s0 = inlined_call_operand.vmem [shape: bf16[8,896], index: 0, kind: input, shape index: {}]   ;;  %s21647_s1 = inlined_call_operand.hbm [shape: bf16[896,1024], index: 1, kind: input, shape index: {}]   ;;  %s21648_s2 = inlined_call_operand.hbm [shape: f32[1,1024], index: 2, kind: input, shape index: {}]   ;;  %s21649_s3 = inlined_call_operand.hbm [shape: bf16[1024,2048], index: 3, kind: input, shape index: {}]   ;;  %s21650_s4 = inlined_call_operand.hbm [shape: f32[1,2048], index: 4, kind: input, shape index: {}]   ;;  %s21651_s5 = inlined_call_operand.hbm [shape: bf16[2048,128], index: 5, kind: input, shape index: {}]   ;;  %s21652_s6 = inlined_call_operand.hbm [shape: f32[1,128], index: 6, kind: input, shape index: {}]   ;;  %s21653_s7 = inlined_call_operand.hbm [shape: f32[8,128], index: 7, kind: output, shape index: {}]  }
   0x1   :  { %13 = vsyncpa [#allocation6], 0 }
   0x2   :  { %14 = vsyncpa [#allocation9], 0 }
   0x3   :  { %15 = vsyncpa [#allocation12], 0  ;;  %s37_s26 = sshll.u32 %s21648_s2, 4  ;;  %s38_s26 = int_to_ptr.hbm [resolvable:$true] %s37_s26 }
   0x4   :  { %16 = vsyncpa [#allocation4], 0  ;;  %s20926_s27 = smov [#allocation5]   ;;  %s61_s8 = sshll.u32 %s21650_s4, 4  ;;  %s62_s8 = int_to_ptr.hbm [resolvable:$true] %s61_s8 }
   0x5   :  { %s39_s28 = sshll.u32 %s20926_s27, 4  ;;  %s20927_s9 = smov [#allocation8]   ;;  %s40_s28 = int_to_ptr.vmem [resolvable:$true] %s39_s28 }
   0x6   :  { %42 = dma.hbm_to_vmem [thread:$0]  %s38_s26, 128, %s40_s28, [#allocation6]  }
   0x7   :  { %s63_s10 = sshll.u32 %s20927_s9, 4  ;;  %s23_s13 = sshll.u32 %s21647_s1, 4  ;;  %s64_s10 = int_to_ptr.vmem [resolvable:$true] %s63_s10  ;;  %s24_s13 = int_to_ptr.hbm [resolvable:$true] %s23_s13 }
   0x8   :  { %66 = dma.hbm_to_vmem [thread:$0]  %s62_s8, 256, %s64_s10, [#allocation9]  }
   0x9   :  { %s20928_s2 = smov [#allocation2]   ;;  %s47_s17 = sshll.u32 %s21649_s3, 4  ;;  %s48_s17 = int_to_ptr.hbm [resolvable:$true] %s47_s17 }
   0xa   :  { %s25_s14 = sshll.u32 %s20928_s2, 4  ;;  %s20929_s18 = smov 512   ;;  %s26_s14 = int_to_ptr.vmem [resolvable:$true] %s25_s14 }
   0xb   :  { %s20930_s4 = smov 32   ;;  %s20931_s19 = smov [#allocation7]  }
   0xc   :  { %31 = dma.hbm_to_vmem [thread:$0]  %s24_s13, 57344, %s26_s14, [#allocation3], %s20929_s18, %s20929_s18, %s20930_s4  }
   0xd   :  { %s49_s20 = sshll.u32 %s20931_s19, 4  ;;  %s20932_s21 = smov 1024   ;;  %s50_s20 = int_to_ptr.vmem [resolvable:$true] %s49_s20 }
   0xe   :  { %s20933_s22 = smov 64   ;;  %s71_s24 = sshll.u32 %s21651_s5, 4  ;;  %s72_s24 = int_to_ptr.hbm [resolvable:$true] %s71_s24 }
   0xf   :  { %55 = dma.hbm_to_vmem [thread:$0]  %s48_s17, 131072, %s50_s20, [#allocation6], %s20932_s21, %s20932_s21, %s20933_s22  }
  0x10   :  { %s20934_s25 = smov [#allocation10]   ;;  %s20935_s27 = smov 4  }
  0x11   :  { %s73_s26 = sshll.u32 %s20934_s25, 4  ;;  %s85_s29 = sshll.u32 %s21652_s6, 4  ;;  %s74_s26 = int_to_ptr.vmem [resolvable:$true] %s73_s26  ;;  %s86_s29 = int_to_ptr.hbm [resolvable:$true] %s85_s29 }
  0x12   :  { %79 = dma.hbm_to_vmem [thread:$0]  %s72_s24, 16384, %s74_s26, [#allocation9], %s20933_s22, %s20933_s22, %s20935_s27  }
  0x13   :  { %s20936_s30 = smov [#allocation11]  }
  0x14   :  { %s87_s8 = sshll.u32 %s20936_s30, 4  ;;  %s88_s8 = int_to_ptr.vmem [resolvable:$true] %s87_s8 }
  0x15   :  { %90 = dma.hbm_to_vmem [thread:$0]  %s86_s29, 16, %s88_s8, [#allocation12]  }
  0x16   :  { %20916 = dma.done.wait [#allocation3], 57344  }
  0x17   :  { %20917 = vsyncadd [#allocation3], 4294909952 }
  0x18   :  { %20918 = dma.done.wait [#allocation6], 131200  }
  0x19   :  { %20919 = vsyncadd [#allocation6], 4294836096 }
  0x1a   :  { %20920 = dma.done.wait [#allocation9], 16640  }
  0x1b   :  { %20921 = vsyncadd [#allocation9], 4294950656 }
  0x1c   :  { %20922 = dma.done.wait [#allocation12], 16  }
  0x1d   :  { %20923 = vsyncadd [#allocation12], 4294967280  ;;  %v12953_v0 = vld [vmem:[#allocation2 + $0x1c0] sm:$0xf]  ;;  %s12714_s17 = sshll.u32 %s21653_s7, 4  ;;  %s12715_s17 = int_to_ptr.hbm [resolvable:$true] %s12714_s17 }
  0x1e   :  { %v19187_v1 = vld [vmem:[#allocation2 + $0x1dc] sm:$0xf0] }
  0x1f   :  { %v13209_v2 = vld [vmem:[#allocation2 + $0x3c0] sm:$0xf]  ;;  %v12954_v3 = vor.u32 %v19187_v1, %v12953_v0 }
  0x20   :  { %v19251_v4 = vld [vmem:[#allocation2 + $0x3dc] sm:$0xf0] }
  0x21   :  { %v13465_v5 = vld [vmem:[#allocation2 + $0x5c0] sm:$0xf]  ;;  %v13210_v7 = vor.u32 %v19251_v4, %v13209_v2  ;;  %2850 = vmatpush.bf16.msra.mxu0 %v12954_v3 }
  0x22   :  { %v19315_v6 = vld [vmem:[#allocation2 + $0x5dc] sm:$0xf0] }
  0x23   :  { %v13466_v8 = vor.u32 %v19315_v6, %v13465_v5  ;;  %v13721_v9 = vld [vmem:[#allocation2 + $0x7c0] sm:$0xf]  ;;  %2863 = vmatpush.bf16.msra.mxu1 %v13210_v7 }
  0x24   :  { %v19379_v10 = vld [vmem:[#allocation2 + $0x7dc] sm:$0xf0] }
  0x25   :  { %v12921_v11 = vld [vmem:[#allocation2 + $0x180] sm:$0xf]  ;;  %v13722_v12 = vor.u32 %v19379_v10, %v13721_v9  ;;  %2876 = vmatpush.bf16.msra.mxu2 %v13466_v8 }
  0x26   :  { %v19179_v13 = vld [vmem:[#allocation2 + $0x19c] sm:$0xf0] }
  0x27   :  { %v13177_v14 = vld [vmem:[#allocation2 + $0x380] sm:$0xf]  ;;  %v12922_v16 = vor.u32 %v19179_v13, %v12921_v11  ;;  %2889 = vmatpush.bf16.msra.mxu3 %v13722_v12 }
  0x28   :  { %v19243_v15 = vld [vmem:[#allocation2 + $0x39c] sm:$0xf0] }
  0x29   :  { %v13178_v17 = vor.u32 %v19243_v15, %v13177_v14  ;;  %v13433_v18 = vld [vmem:[#allocation2 + $0x580] sm:$0xf]  ;;  %2851 = vmatpush.bf16.msra.mxu0 %v12922_v16 }
  0x2a   :  { %v19307_v19 = vld [vmem:[#allocation2 + $0x59c] sm:$0xf0] }
  0x2b   :  { %v13689_v20 = vld [vmem:[#allocation2 + $0x780] sm:$0xf]  ;;  %v13434_v21 = vor.u32 %v19307_v19, %v13433_v18  ;;  %2864 = vmatpush.bf16.msra.mxu1 %v13178_v17 }
  0x2c   :  { %v19371_v22 = vld [vmem:[#allocation2 + $0x79c] sm:$0xf0] }
  0x2d   :  { %v12889_v23 = vld [vmem:[#allocation2 + $0x140] sm:$0xf]  ;;  %v13690_v25 = vor.u32 %v19371_v22, %v13689_v20  ;;  %2877 = vmatpush.bf16.msra.mxu2 %v13434_v21 }
  0x2e   :  { %v19171_v24 = vld [vmem:[#allocation2 + $0x15c] sm:$0xf0] }
  0x2f   :  { %v13145_v26 = vld [vmem:[#allocation2 + $0x340] sm:$0xf]  ;;  %v12890_v29 = vor.u32 %v19171_v24, %v12889_v23  ;;  %2890 = vmatpush.bf16.msra.mxu3 %v13690_v25 }
  0x30   :  { %v19235_v27 = vld [vmem:[#allocation2 + $0x35c] sm:$0xf0] }
  0x31   :  { %v13401_v28 = vld [vmem:[#allocation2 + $0x540] sm:$0xf]  ;;  %v13146_v33 = vor.u32 %v19235_v27, %v13145_v26  ;;  %2852 = vmatpush.bf16.msra.mxu0 %v12890_v29 }
  0x32   :  { %v19299_v30 = vld [vmem:[#allocation2 + $0x55c] sm:$0xf0] }
  0x33   :  { %v13657_v31 = vld [vmem:[#allocation2 + $0x740] sm:$0xf]  ;;  %v13402_v34 = vor.u32 %v19299_v30, %v13401_v28  ;;  %2865 = vmatpush.bf16.msra.mxu1 %v13146_v33 }
  0x34   :  { %v19363_v32 = vld [vmem:[#allocation2 + $0x75c] sm:$0xf0] }
  0x35   :  { %v12857_v35 = vld [vmem:[#allocation2 + $0x100] sm:$0xf]  ;;  %v13658_v38 = vor.u32 %v19363_v32, %v13657_v31  ;;  %2878 = vmatpush.bf16.msra.mxu2 %v13402_v34 }
  0x36   :  { %v19163_v36 = vld [vmem:[#allocation2 + $0x11c] sm:$0xf0] }
  0x37   :  { %v13113_v37 = vld [vmem:[#allocation2 + $0x300] sm:$0xf]  ;;  %v12858_v44 = vor.u32 %v19163_v36, %v12857_v35  ;;  %2891 = vmatpush.bf16.msra.mxu3 %v13658_v38  ;;  %v12955_v38 = vld [vmem:[#allocation2 + $0x1e0] sm:$0xf0] }
  0x38   :  { %v19227_v39 = vld [vmem:[#allocation2 + $0x31c] sm:$0xf0] }
  0x39   :  { %v13369_v40 = vld [vmem:[#allocation2 + $0x500] sm:$0xf]  ;;  %v13114_v45 = vor.u32 %v19227_v39, %v13113_v37  ;;  %2853 = vmatpush.bf16.msra.mxu0 %v12858_v44  ;;  %v19183_v37 = vld [vmem:[#allocation2 + $0x1c4] sm:$0xf] }
  0x3a   :  { %v19291_v41 = vld [vmem:[#allocation2 + $0x51c] sm:$0xf0] }
  0x3b   :  { %v13625_v42 = vld [vmem:[#allocation2 + $0x700] sm:$0xf]  ;;  %v13370_v46 = vor.u32 %v19291_v41, %v13369_v40  ;;  %2866 = vmatpush.bf16.msra.mxu1 %v13114_v45 }
  0x3c   :  { %v19355_v43 = vld [vmem:[#allocation2 + $0x71c] sm:$0xf0] }
  0x3d   :  { %v12825_v47 = vld [vmem:[#allocation2 + $0xc0] sm:$0xf]  ;;  %v13626_v50 = vor.u32 %v19355_v43, %v13625_v42  ;;  %2879 = vmatpush.bf16.msra.mxu2 %v13370_v46  ;;  %v12958_v46 = vor.u32 %v19183_v37, %v12955_v38 }
  0x3e   :  { %v19155_v48 = vld [vmem:[#allocation2 + $0xdc] sm:$0xf0] }
  0x3f   :  { %v13081_v49 = vld [vmem:[#allocation2 + $0x2c0] sm:$0xf]  ;;  %v12826_v56 = vor.u32 %v19155_v48, %v12825_v47  ;;  %2892 = vmatpush.bf16.msra.mxu3 %v13626_v50  ;;  %v19175_v50 = vld [vmem:[#allocation2 + $0x184] sm:$0xf] }
  0x40   :  { %v19219_v51 = vld [vmem:[#allocation2 + $0x2dc] sm:$0xf0] }
  0x41   :  { %v13337_v52 = vld [vmem:[#allocation2 + $0x4c0] sm:$0xf]  ;;  %v13082_v57 = vor.u32 %v19219_v51, %v13081_v49  ;;  %2854 = vmatpush.bf16.msra.mxu0 %v12826_v56  ;;  %v12923_v51 = vld [vmem:[#allocation2 + $0x1a0] sm:$0xf0] }
  0x42   :  { %v19283_v53 = vld [vmem:[#allocation2 + $0x4dc] sm:$0xf0] }
  0x43   :  { %v13593_v54 = vld [vmem:[#allocation2 + $0x6c0] sm:$0xf]  ;;  %v13338_v58 = vor.u32 %v19283_v53, %v13337_v52  ;;  %2867 = vmatpush.bf16.msra.mxu1 %v13082_v57 }
  0x44   :  { %v19347_v55 = vld [vmem:[#allocation2 + $0x6dc] sm:$0xf0] }
  0x45   :  { %v12793_v59 = vld [vmem:[#allocation2 + $0x80] sm:$0xf]  ;;  %v13594_v62 = vor.u32 %v19347_v55, %v13593_v54  ;;  %2880 = vmatpush.bf16.msra.mxu2 %v13338_v58 }
  0x46   :  { %v19147_v60 = vld [vmem:[#allocation2 + $0x9c] sm:$0xf0] }
  0x47   :  { %v13049_v61 = vld [vmem:[#allocation2 + $0x280] sm:$0xf]  ;;  %v12794_v4 = vor.u32 %v19147_v60, %v12793_v59  ;;  %2893 = vmatpush.bf16.msra.mxu3 %v13594_v62  ;;  %v12926_v59 = vor.u32 %v19175_v50, %v12923_v51  ;;  %v19167_v62 = vld [vmem:[#allocation2 + $0x144] sm:$0xf] }
  0x48   :  { %v19211_v63 = vld [vmem:[#allocation2 + $0x29c] sm:$0xf0] }
  0x49   :  { %v13305_v0 = vld [vmem:[#allocation2 + $0x480] sm:$0xf]  ;;  %v13050_v5 = vor.u32 %v19211_v63, %v13049_v61  ;;  %2855 = vmatpush.bf16.msra.mxu0 %v12794_v4  ;;  %v12891_v63 = vld [vmem:[#allocation2 + $0x160] sm:$0xf0] }
  0x4a   :  { %v19275_v1 = vld [vmem:[#allocation2 + $0x49c] sm:$0xf0] }
  0x4b   :  { %v13561_v2 = vld [vmem:[#allocation2 + $0x680] sm:$0xf]  ;;  %v13306_v6 = vor.u32 %v19275_v1, %v13305_v0  ;;  %2868 = vmatpush.bf16.msra.mxu1 %v13050_v5 }
  0x4c   :  { %v19339_v3 = vld [vmem:[#allocation2 + $0x69c] sm:$0xf0] }
  0x4d   :  { %v12761_v7 = vld [vmem:[#allocation2 + $0x40] sm:$0xf]  ;;  %v13562_v10 = vor.u32 %v19339_v3, %v13561_v2  ;;  %2881 = vmatpush.bf16.msra.mxu2 %v13306_v6  ;;  %v116_v2 = vld [vmem:[%s21646_s0 + $0x8] sm:$0xff] }
  0x4e   :  { %v19139_v8 = vld [vmem:[#allocation2 + $0x5c] sm:$0xf0] }
  0x4f   :  { %v13017_v9 = vld [vmem:[#allocation2 + $0x240] sm:$0xf]  ;;  %v12762_v16 = vor.u32 %v19139_v8, %v12761_v7  ;;  %2894 = vmatpush.bf16.msra.mxu3 %v13562_v10  ;;  %v591_v8 = vunpack.c.l.b16 %v116_v2  ;;  %v592_v10 = vunpack.c.h.b16 %v116_v2 }
  0x50   :  { %v19203_v11 = vld [vmem:[#allocation2 + $0x25c] sm:$0xf0] }
  0x51   :  { %v13273_v12 = vld [vmem:[#allocation2 + $0x440] sm:$0xf]  ;;  %v13018_v19 = vor.u32 %v19203_v11, %v13017_v9  ;;  %2856 = vmatpush.bf16.msra.mxu0 %v12762_v16  ;;  %v12894_v11 = vor.u32 %v19167_v62, %v12891_v63  ;;  %v19159_v16 = vld [vmem:[#allocation2 + $0x104] sm:$0xf] }
  0x52   :  { %v19267_v13 = vld [vmem:[#allocation2 + $0x45c] sm:$0xf0] }
  0x53   :  { %v13529_v14 = vld [vmem:[#allocation2 + $0x640] sm:$0xf]  ;;  %v13274_v20 = vor.u32 %v19267_v13, %v13273_v12  ;;  %2869 = vmatpush.bf16.msra.mxu1 %v13018_v19 }
  0x54   :  { %v19331_v15 = vld [vmem:[#allocation2 + $0x65c] sm:$0xf0] }
  0x55   :  { %v12729_v17 = vld [vmem:[#allocation2] sm:$0xf]  ;;  %v13530_v24 = vor.u32 %v19331_v15, %v13529_v14  ;;  %2882 = vmatpush.bf16.msra.mxu2 %v13274_v20  ;;  %v21006_v20 = vpack.c.b16 %v592_v10, %v592_v10  ;;  %v19311_v10 = vld [vmem:[#allocation2 + $0x5c4] sm:$0xf] }
  0x56   :  { %v19131_v18 = vld [vmem:[#allocation2 + $0x1c] sm:$0xf0] }
  0x57   :  { %v12985_v21 = vld [vmem:[#allocation2 + $0x200] sm:$0xf]  ;;  %v12730_v31 = vor.u32 %v19131_v18, %v12729_v17  ;;  %2895 = vmatpush.bf16.msra.mxu3 %v13530_v24  ;;  %v12859_v17 = vld [vmem:[#allocation2 + $0x120] sm:$0xf0]  ;;  %v21002_v18 = vpack.c.b16 %v591_v8, %v591_v8 }
  0x58   :  { %v19195_v22 = vld [vmem:[#allocation2 + $0x21c] sm:$0xf0]  ;;  %v19247_v8 = vld [vmem:[#allocation2 + $0x3c4] sm:$0xf] }
  0x59   :  { %v13241_v23 = vld [vmem:[#allocation2 + $0x400] sm:$0xf]  ;;  %v12986_v35 = vor.u32 %v19195_v22, %v12985_v21  ;;  %2857 = vmatpush.bf16.msra.mxu0 %v12730_v31 }
  0x5a   :  { %v19259_v25 = vld [vmem:[#allocation2 + $0x41c] sm:$0xf0] }
  0x5b   :  { %v13497_v26 = vld [vmem:[#allocation2 + $0x600] sm:$0xf]  ;;  %v13242_v36 = vor.u32 %v19259_v25, %v13241_v23  ;;  %2870 = vmatpush.bf16.msra.mxu1 %v12986_v35 }
  0x5c   :  { %v19323_v27 = vld [vmem:[#allocation2 + $0x61c] sm:$0xf0] }
  0x5d   :  { %v13977_v28 = vld [vmem:[#allocation2 + $0x9c0] sm:$0xf]  ;;  %v13498_v39 = vor.u32 %v19323_v27, %v13497_v26  ;;  %2883 = vmatpush.bf16.msra.mxu2 %v13242_v36 }
  0x5e   :  { %v19443_v29 = vld [vmem:[#allocation2 + $0x9dc] sm:$0xf0] }
  0x5f   :  { %v14233_v30 = vld [vmem:[#allocation2 + $0xbc0] sm:$0xf]  ;;  %v13978_v40 = vor.u32 %v19443_v29, %v13977_v28  ;;  %2896 = vmatpush.bf16.msra.mxu3 %v13498_v39  ;;  %v12862_v28 = vor.u32 %v19159_v16, %v12859_v17 }
  0x60   :  { %v19507_v32 = vld [vmem:[#allocation2 + $0xbdc] sm:$0xf0]  ;;  %2884 = vmatmul.bf16.vlgmr.msra.gmra.mxu2 %v21002_v18 }
  0x61   :  { %v14489_v33 = vld [vmem:[#allocation2 + $0xdc0] sm:$0xf]  ;;  %v14234_v41 = vor.u32 %v19507_v32, %v14233_v30  ;;  %2902 = vmatpush.bf16.msrb.mxu0 %v13978_v40  ;;  %v19151_v32 = vld [vmem:[#allocation2 + $0xc4] sm:$0xf] }
  0x62   :  { %v19571_v34 = vld [vmem:[#allocation2 + $0xddc] sm:$0xf0]  ;;  %2897 = vmatmul.bf16.vlgmr.msra.gmra.mxu3 %v21006_v20 }
  0x63   :  { %v14490_v42 = vor.u32 %v19571_v34, %v14489_v33  ;;  %v13945_v43 = vld [vmem:[#allocation2 + $0x980] sm:$0xf]  ;;  %2915 = vmatpush.bf16.msrb.mxu1 %v14234_v41  ;;  %2941 = vmatpush.bf16.msrb.mxu3 %v12958_v46  ;;  %v12827_v33 = vld [vmem:[#allocation2 + $0xe0] sm:$0xf0] }
  0x64   :  { %v19435_v44 = vld [vmem:[#allocation2 + $0x99c] sm:$0xf0]  ;;  %v12830_v40 = vor.u32 %v19151_v32, %v12827_v33  ;;  %v19303_v32 = vld [vmem:[#allocation2 + $0x584] sm:$0xf] }
  0x65   :  { %v14201_v45 = vld [vmem:[#allocation2 + $0xb80] sm:$0xf]  ;;  %v13946_v52 = vor.u32 %v19435_v44, %v13945_v43  ;;  %2928 = vmatpush.bf16.msrb.mxu2 %v14490_v42  ;;  %v19143_v44 = vld [vmem:[#allocation2 + $0x84] sm:$0xf] }
  0x66   :  { %v19499_v47 = vld [vmem:[#allocation2 + $0xb9c] sm:$0xf0] }
  0x67   :  { %v14457_v48 = vld [vmem:[#allocation2 + $0xd80] sm:$0xf]  ;;  %v14202_v54 = vor.u32 %v19499_v47, %v14201_v45  ;;  %2903 = vmatpush.bf16.msrb.mxu0 %v13946_v52  ;;  %2942 = vmatpush.bf16.msrb.mxu3 %v12926_v59  ;;  %v12795_v45 = vld [vmem:[#allocation2 + $0xa0] sm:$0xf0] }
  0x68   :  { %v19563_v49 = vld [vmem:[#allocation2 + $0xd9c] sm:$0xf0]  ;;  %v12798_v52 = vor.u32 %v19143_v44, %v12795_v45  ;;  %v19231_v45 = vld [vmem:[#allocation2 + $0x344] sm:$0xf] }
  0x69   :  { %v13913_v53 = vld [vmem:[#allocation2 + $0x940] sm:$0xf]  ;;  %v14458_v55 = vor.u32 %v19563_v49, %v14457_v48  ;;  %2916 = vmatpush.bf16.msrb.mxu1 %v14202_v54 }
  0x6a   :  { %v19427_v56 = vld [vmem:[#allocation2 + $0x95c] sm:$0xf0] }
  0x6b   :  { %v14169_v57 = vld [vmem:[#allocation2 + $0xb40] sm:$0xf]  ;;  %v13914_v0 = vor.u32 %v19427_v56, %v13913_v53  ;;  %2929 = vmatpush.bf16.msrb.mxu2 %v14458_v55  ;;  %2943 = vmatpush.bf16.msrb.mxu3 %v12894_v11  ;;  %v19135_v56 = vld [vmem:[#allocation2 + $0x44] sm:$0xf] }
  0x6c   :  { %v19491_v58 = vld [vmem:[#allocation2 + $0xb5c] sm:$0xf0] }
  0x6d   :  { %v14425_v60 = vld [vmem:[#allocation2 + $0xd40] sm:$0xf]  ;;  %v14170_v1 = vor.u32 %v19491_v58, %v14169_v57  ;;  %2904 = vmatpush.bf16.msrb.mxu0 %v13914_v0  ;;  %v12763_v57 = vld [vmem:[#allocation2 + $0x60] sm:$0xf0] }
  0x6e   :  { %v19555_v61 = vld [vmem:[#allocation2 + $0xd5c] sm:$0xf0] }
  0x6f   :  { %v115_v3 = vld [vmem:[%s21646_s0] sm:$0xff]  ;;  %v14426_v4 = vor.u32 %v19555_v61, %v14425_v60  ;;  %2917 = vmatpush.bf16.msrb.mxu1 %v14170_v1  ;;  %2944 = vmatpush.bf16.msrb.mxu3 %v12862_v28 }
  0x70   :  { %v13881_v5 = vld [vmem:[#allocation2 + $0x900] sm:$0xf]  ;;  %v589_v9 = vunpack.c.l.b16 %v115_v3  ;;  %v590_v15 = vunpack.c.h.b16 %v115_v3  ;;  %v118_v3 = vld [vmem:[%s21646_s0 + $0x18] sm:$0xf] }
  0x71   :  { %v19419_v6 = vld [vmem:[#allocation2 + $0x91c] sm:$0xf0]  ;;  %2930 = vmatpush.bf16.msrb.mxu2 %v14426_v4  ;;  %v12766_v4 = vor.u32 %v19135_v56, %v12763_v57  ;;  %v19223_v57 = vld [vmem:[#allocation2 + $0x304] sm:$0xf] }
  0x72   :  { %v14137_v7 = vld [vmem:[#allocation2 + $0xb00] sm:$0xf]  ;;  %v21004_v19 = vpack.c.b16 %v589_v9, %v589_v9  ;;  %v13882_v21 = vor.u32 %v19419_v6, %v13881_v5  ;;  %v21008_v22 = vpack.c.b16 %v590_v15, %v590_v15  ;;  %v19127_v5 = vld [vmem:[#allocation2 + $0x4] sm:$0xf]  ;;  %v595_v15 = vunpack.c.l.b16 %v118_v3 }
  0x73   :  { %v19483_v12 = vld [vmem:[#allocation2 + $0xb1c] sm:$0xf0]  ;;  %2945 = vmatpush.bf16.msrb.mxu3 %v12830_v40  ;;  %v12731_v6 = vld [vmem:[#allocation2 + $0x20] sm:$0xf0] }
  0x74   :  { %v14393_v13 = vld [vmem:[#allocation2 + $0xd00] sm:$0xf]  ;;  %v14138_v23 = vor.u32 %v19483_v12, %v14137_v7  ;;  %2858 = vmatmul.bf16.vlgmr.msra.gmra.mxu0 %v21004_v19  ;;  %2871 = vmatmul.bf16.vlgmr.msra.gmra.mxu1 %v21008_v22  ;;  %v117_v7 = vld [vmem:[%s21646_s0 + $0x10] sm:$0xff]  ;;  %v13211_v9 = vld [vmem:[#allocation2 + $0x3e0] sm:$0xf0]  ;;  %s20937_s0 = smov [#allocation13]  }
  0x75   :  { %v19547_v14 = vld [vmem:[#allocation2 + $0xd1c] sm:$0xf0]  ;;  %2905 = vmatpush.bf16.msrb.mxu0 %v13882_v21  ;;  %v13467_v12 = vld [vmem:[#allocation2 + $0x5e0] sm:$0xf0]  ;;  %s12712_s14 = sshll.u32 %s20937_s0, 4  ;;  %s12713_s14 = int_to_ptr.vmem [resolvable:$true] %s12712_s14 }
  0x76   :  { %v14394_v24 = vor.u32 %v19547_v14, %v14393_v13  ;;  %v13849_v25 = vld [vmem:[#allocation2 + $0x8c0] sm:$0xf]  ;;  %2918 = vmatpush.bf16.msrb.mxu1 %v14138_v23  ;;  %v19375_v13 = vld [vmem:[#allocation2 + $0x7c4] sm:$0xf]  ;;  %v13470_v28 = vor.u32 %v19311_v10, %v13467_v12 }
  0x77   :  { %v19411_v26 = vld [vmem:[#allocation2 + $0x8dc] sm:$0xf0]  ;;  %2946 = vmatpush.bf16.msrb.mxu3 %v12798_v52  ;;  %v13723_v14 = vld [vmem:[#allocation2 + $0x7e0] sm:$0xf0] }
  0x78   :  { %v14105_v27 = vld [vmem:[#allocation2 + $0xac0] sm:$0xf]  ;;  %v13850_v34 = vor.u32 %v19411_v26, %v13849_v25  ;;  %2931 = vmatpush.bf16.msrb.mxu2 %v14394_v24  ;;  %v19439_v21 = vld [vmem:[#allocation2 + $0x9c4] sm:$0xf]  ;;  %v593_v24 = vunpack.c.l.b16 %v117_v7  ;;  %v594_v25 = vunpack.c.h.b16 %v117_v7  ;;  %v12734_v26 = vor.u32 %v19127_v5, %v12731_v6 }
  0x79   :  { %v19475_v29 = vld [vmem:[#allocation2 + $0xadc] sm:$0xf0]  ;;  %v13979_v23 = vld [vmem:[#allocation2 + $0x9e0] sm:$0xf0] }
  0x7a   :  { %v14361_v30 = vld [vmem:[#allocation2 + $0xcc0] sm:$0xf]  ;;  %v14106_v35 = vor.u32 %v19475_v29, %v14105_v27  ;;  %2906 = vmatpush.bf16.msrb.mxu0 %v13850_v34  ;;  %v13214_v27 = vor.u32 %v19247_v8, %v13211_v9  ;;  %v13726_v29 = vor.u32 %v19375_v13, %v13723_v14  ;;  %v13982_v33 = vor.u32 %v19439_v21, %v13979_v23  ;;  %v13435_v34 = vld [vmem:[#allocation2 + $0x5a0] sm:$0xf0] }
  0x7b   :  { %v19539_v31 = vld [vmem:[#allocation2 + $0xcdc] sm:$0xf0]  ;;  %2947 = vmatpush.bf16.msrb.mxu3 %v12766_v4  ;;  %v21022_v40 = vpack.c.b16 %v593_v24, %v593_v24  ;;  %v19423_v52 = vld [vmem:[#allocation2 + $0x944] sm:$0xf] }
  0x7c   :  { %v14362_v36 = vor.u32 %v19539_v31, %v14361_v30  ;;  %v13817_v37 = vld [vmem:[#allocation2 + $0x880] sm:$0xf]  ;;  %2919 = vmatpush.bf16.msrb.mxu1 %v14106_v35  ;;  %v19239_v30 = vld [vmem:[#allocation2 + $0x384] sm:$0xf] }
  0x7d   :  { %v19403_v38 = vld [vmem:[#allocation2 + $0x89c] sm:$0xf0]  ;;  %v13179_v31 = vld [vmem:[#allocation2 + $0x3a0] sm:$0xf0] }
  0x7e   :  { %v14073_v39 = vld [vmem:[#allocation2 + $0xa80] sm:$0xf]  ;;  %v13818_v46 = vor.u32 %v19403_v38, %v13817_v37  ;;  %2932 = vmatpush.bf16.msrb.mxu2 %v14362_v36  ;;  %v19367_v35 = vld [vmem:[#allocation2 + $0x784] sm:$0xf]  ;;  %v21020_v37 = vpack.c.b16 %v595_v15, %v595_v15 }
  0x7f   :  { %v19467_v41 = vld [vmem:[#allocation2 + $0xa9c] sm:$0xf0]  ;;  %v13691_v36 = vld [vmem:[#allocation2 + $0x7a0] sm:$0xf0]  ;;  %2948 = vmatpush.bf16.msrb.mxu3 %v12734_v26 }
  0x80   :  { %v14329_v42 = vld [vmem:[#allocation2 + $0xc80] sm:$0xf]  ;;  %v14074_v47 = vor.u32 %v19467_v41, %v14073_v39  ;;  %2907 = vmatpush.bf16.msrb.mxu0 %v13818_v46  ;;  %v19431_v38 = vld [vmem:[#allocation2 + $0x984] sm:$0xf]  ;;  %v21024_v41 = vpack.c.b16 %v594_v25, %v594_v25  ;;  %v13694_v44 = vor.u32 %v19367_v35, %v13691_v36 }
  0x81   :  { %v19531_v43 = vld [vmem:[#allocation2 + $0xc9c] sm:$0xf0]  ;;  %v13947_v39 = vld [vmem:[#allocation2 + $0x9a0] sm:$0xf0] }
  0x82   :  { %v14330_v48 = vor.u32 %v19531_v43, %v14329_v42  ;;  %v13785_v49 = vld [vmem:[#allocation2 + $0x840] sm:$0xf]  ;;  %2920 = vmatpush.bf16.msrb.mxu1 %v14074_v47  ;;  %v13182_v42 = vor.u32 %v19239_v30, %v13179_v31  ;;  %v13438_v43 = vor.u32 %v19303_v32, %v13435_v34  ;;  %v13147_v46 = vld [vmem:[#allocation2 + $0x360] sm:$0xf0]  ;;  %2949 = vmatmul.bf16.vlgmr.msrb.gmra.mxu3 %v21004_v19 }
  0x83   :  { %v19395_v50 = vld [vmem:[#allocation2 + $0x85c] sm:$0xf0]  ;;  %v19295_v47 = vld [vmem:[#allocation2 + $0x544] sm:$0xf]  ;;  %2993 = vmatpush.bf16.msra.mxu3 %v13982_v33 }
  0x84   :  { %v14041_v51 = vld [vmem:[#allocation2 + $0xa40] sm:$0xf]  ;;  %v13786_v59 = vor.u32 %v19395_v50, %v13785_v49  ;;  %2933 = vmatpush.bf16.msrb.mxu2 %v14330_v48  ;;  %v13950_v48 = vor.u32 %v19431_v38, %v13947_v39  ;;  %v13403_v49 = vld [vmem:[#allocation2 + $0x560] sm:$0xf0] }
  0x85   :  { %v19459_v53 = vld [vmem:[#allocation2 + $0xa5c] sm:$0xf0]  ;;  %v19359_v50 = vld [vmem:[#allocation2 + $0x744] sm:$0xf] }
  0x86   :  { %v14297_v54 = vld [vmem:[#allocation2 + $0xc40] sm:$0xf]  ;;  %v14042_v63 = vor.u32 %v19459_v53, %v14041_v51  ;;  %2908 = vmatpush.bf16.msrb.mxu0 %v13786_v59  ;;  %v13659_v51 = vld [vmem:[#allocation2 + $0x760] sm:$0xf0] }
  0x87   :  { %v19523_v55 = vld [vmem:[#allocation2 + $0xc5c] sm:$0xf0]  ;;  %v13915_v53 = vld [vmem:[#allocation2 + $0x960] sm:$0xf0]  ;;  %v13662_v56 = vor.u32 %v19359_v50, %v13659_v51  ;;  %2994 = vmatpush.bf16.msra.mxu3 %v13950_v48 }
  0x88   :  { %v13753_v58 = vld [vmem:[#allocation2 + $0x800] sm:$0xf]  ;;  %v14298_v0 = vor.u32 %v19523_v55, %v14297_v54  ;;  %2921 = vmatpush.bf16.msrb.mxu1 %v14042_v63  ;;  %v13150_v54 = vor.u32 %v19231_v45, %v13147_v46  ;;  %v13406_v55 = vor.u32 %v19295_v47, %v13403_v49  ;;  %v19287_v59 = vld [vmem:[#allocation2 + $0x504] sm:$0xf] }
  0x89   :  { %v19387_v60 = vld [vmem:[#allocation2 + $0x81c] sm:$0xf0]  ;;  %v13627_v63 = vld [vmem:[#allocation2 + $0x720] sm:$0xf0] }
  0x8a   :  { %v14009_v61 = vld [vmem:[#allocation2 + $0xa00] sm:$0xf]  ;;  %v13754_v11 = vor.u32 %v19387_v60, %v13753_v58  ;;  %2934 = vmatpush.bf16.msrb.mxu2 %v14298_v0  ;;  %v13115_v58 = vld [vmem:[#allocation2 + $0x320] sm:$0xf0]  ;;  %v13918_v60 = vor.u32 %v19423_v52, %v13915_v53 }
  0x8b   :  { %v19451_v62 = vld [vmem:[#allocation2 + $0xa1c] sm:$0xf0]  ;;  %v19415_v0 = vld [vmem:[#allocation2 + $0x904] sm:$0xf] }
  0x8c   :  { %v14265_v1 = vld [vmem:[#allocation2 + $0xc00] sm:$0xf]  ;;  %v14010_v16 = vor.u32 %v19451_v62, %v14009_v61  ;;  %2909 = vmatpush.bf16.msrb.mxu0 %v13754_v11  ;;  %v13371_v61 = vld [vmem:[#allocation2 + $0x520] sm:$0xf0]  ;;  %2995 = vmatpush.bf16.msra.mxu3 %v13918_v60 }
  0x8d   :  { %v19515_v2 = vld [vmem:[#allocation2 + $0xc1c] sm:$0xf0]  ;;  %v19351_v62 = vld [vmem:[#allocation2 + $0x704] sm:$0xf]  ;;  %v13374_v3 = vor.u32 %v19287_v59, %v13371_v61 }
  0x8e   :  { %v14266_v17 = vor.u32 %v19515_v2, %v14265_v1  ;;  %2922 = vmatpush.bf16.msrb.mxu1 %v14010_v16  ;;  %v13883_v1 = vld [vmem:[#allocation2 + $0x920] sm:$0xf0]  ;;  %v13118_v2 = vor.u32 %v19223_v57, %v13115_v58  ;;  %v13630_v4 = vor.u32 %v19351_v62, %v13627_v63  ;;  %v12961_v62 = vld [vmem:[#allocation2 + $0x1c8] sm:$0xf] }
  0x8f   :  { %2910 = vmatmul.bf16.vlgmr.msrb.gmra.mxu0 %v21022_v40  ;;  %v19215_v5 = vld [vmem:[#allocation2 + $0x2c4] sm:$0xf]  ;;  %v13886_v8 = vor.u32 %v19415_v0, %v13883_v1  ;;  %v19188_v63 = vld [vmem:[#allocation2 + $0x1e4] sm:$0xf0] }
  0x90   :  { %2935 = vmatpush.bf16.msrb.mxu2 %v14266_v17  ;;  %2954 = vmatpush.bf16.msra.mxu0 %v13214_v27  ;;  %v13083_v6 = vld [vmem:[#allocation2 + $0x2e0] sm:$0xf0] }
  0x91   :  { %2923 = vmatmul.bf16.vlgmr.msrb.gmra.mxu1 %v21024_v41  ;;  %v19279_v7 = vld [vmem:[#allocation2 + $0x4c4] sm:$0xf]  ;;  %v13086_v14 = vor.u32 %v19215_v5, %v13083_v6  ;;  %2996 = vmatpush.bf16.msra.mxu3 %v13886_v8 }
  0x92   :  { %2967 = vmatpush.bf16.msra.mxu1 %v13470_v28  ;;  %v13339_v9 = vld [vmem:[#allocation2 + $0x4e0] sm:$0xf0] }
  0x93   :  { %2936 = vmatmul.bf16.vlgmr.msrb.gmra.mxu2 %v21020_v37  ;;  %v19343_v10 = vld [vmem:[#allocation2 + $0x6c4] sm:$0xf]  ;;  %v13342_v15 = vor.u32 %v19279_v7, %v13339_v9  ;;  %v12962_v7 = vor.u32 %v19188_v63, %v12961_v62 }
  0x94   :  { %2980 = vmatpush.bf16.msra.mxu2 %v13726_v29  ;;  %2955 = vmatpush.bf16.msra.mxu0 %v13182_v42  ;;  %v13595_v11 = vld [vmem:[#allocation2 + $0x6e0] sm:$0xf0] }
  0x95   :  { %v19407_v12 = vld [vmem:[#allocation2 + $0x8c4] sm:$0xf]  ;;  %v13598_v16 = vor.u32 %v19343_v10, %v13595_v11 }
  0x96   :  { %2968 = vmatpush.bf16.msra.mxu1 %v13438_v43  ;;  %v13851_v13 = vld [vmem:[#allocation2 + $0x8e0] sm:$0xf0] }
  0x97   :  { %v19207_v17 = vld [vmem:[#allocation2 + $0x284] sm:$0xf]  ;;  %v13854_v24 = vor.u32 %v19407_v12, %v13851_v13  ;;  %v12929_v13 = vld [vmem:[#allocation2 + $0x188] sm:$0xf] }
  0x98   :  { %2981 = vmatpush.bf16.msra.mxu2 %v13694_v44  ;;  %2956 = vmatpush.bf16.msra.mxu0 %v13150_v54  ;;  %v13051_v21 = vld [vmem:[#allocation2 + $0x2a0] sm:$0xf0] }
  0x99   :  { %v19271_v23 = vld [vmem:[#allocation2 + $0x484] sm:$0xf]  ;;  %v13054_v30 = vor.u32 %v19207_v17, %v13051_v21  ;;  %2997 = vmatpush.bf16.msra.mxu3 %v13854_v24 }
  0x9a   :  { %2969 = vmatpush.bf16.msra.mxu1 %v13406_v55  ;;  %v13307_v25 = vld [vmem:[#allocation2 + $0x4a0] sm:$0xf0] }
  0x9b   :  { %v19335_v26 = vld [vmem:[#allocation2 + $0x684] sm:$0xf]  ;;  %v13310_v31 = vor.u32 %v19271_v23, %v13307_v25 }
  0x9c   :  { %2982 = vmatpush.bf16.msra.mxu2 %v13662_v56  ;;  %2957 = vmatpush.bf16.msra.mxu0 %v13118_v2  ;;  %v13563_v27 = vld [vmem:[#allocation2 + $0x6a0] sm:$0xf0]  ;;  %v13217_v2 = vld [vmem:[#allocation2 + $0x3c8] sm:$0xf] }
  0x9d   :  { %v19399_v28 = vld [vmem:[#allocation2 + $0x884] sm:$0xf]  ;;  %v13566_v32 = vor.u32 %v19335_v26, %v13563_v27 }
  0x9e   :  { %2970 = vmatpush.bf16.msra.mxu1 %v13374_v3  ;;  %v13819_v29 = vld [vmem:[#allocation2 + $0x8a0] sm:$0xf0]  ;;  %v19252_v3 = vld [vmem:[#allocation2 + $0x3e4] sm:$0xf0] }
  0x9f   :  { %v19199_v33 = vld [vmem:[#allocation2 + $0x244] sm:$0xf]  ;;  %v13822_v36 = vor.u32 %v19399_v28, %v13819_v29  ;;  %v13218_v11 = vor.u32 %v19252_v3, %v13217_v2  ;;  %v12897_v29 = vld [vmem:[#allocation2 + $0x148] sm:$0xf] }
  0xa0   :  { %2983 = vmatpush.bf16.msra.mxu2 %v13630_v4  ;;  %2958 = vmatpush.bf16.msra.mxu0 %v13086_v14  ;;  %v13019_v34 = vld [vmem:[#allocation2 + $0x260] sm:$0xf0]  ;;  %v19180_v14 = vld [vmem:[#allocation2 + $0x1a4] sm:$0xf0] }
  0xa1   :  { %v19263_v35 = vld [vmem:[#allocation2 + $0x444] sm:$0xf]  ;;  %v13022_v45 = vor.u32 %v19199_v33, %v13019_v34  ;;  %2998 = vmatpush.bf16.msra.mxu3 %v13822_v36  ;;  %v12930_v23 = vor.u32 %v19180_v14, %v12929_v13 }
  0xa2   :  { %2971 = vmatpush.bf16.msra.mxu1 %v13342_v15  ;;  %v13275_v38 = vld [vmem:[#allocation2 + $0x460] sm:$0xf0]  ;;  %v13185_v15 = vld [vmem:[#allocation2 + $0x388] sm:$0xf] }
  0xa3   :  { %v19327_v39 = vld [vmem:[#allocation2 + $0x644] sm:$0xf]  ;;  %v13278_v48 = vor.u32 %v19263_v35, %v13275_v38 }
  0xa4   :  { %2984 = vmatpush.bf16.msra.mxu2 %v13598_v16  ;;  %v13531_v42 = vld [vmem:[#allocation2 + $0x660] sm:$0xf0]  ;;  %2959 = vmatpush.bf16.msra.mxu0 %v13054_v30  ;;  %v19244_v16 = vld [vmem:[#allocation2 + $0x3a4] sm:$0xf0] }
  0xa5   :  { %v19391_v43 = vld [vmem:[#allocation2 + $0x844] sm:$0xf]  ;;  %v13534_v49 = vor.u32 %v19327_v39, %v13531_v42  ;;  %v13186_v27 = vor.u32 %v19244_v16, %v13185_v15  ;;  %v19172_v30 = vld [vmem:[#allocation2 + $0x164] sm:$0xf0] }
  0xa6   :  { %v13787_v44 = vld [vmem:[#allocation2 + $0x860] sm:$0xf0]  ;;  %2972 = vmatpush.bf16.msra.mxu1 %v13310_v31  ;;  %v13153_v31 = vld [vmem:[#allocation2 + $0x348] sm:$0xf]  ;;  %v12898_v35 = vor.u32 %v19172_v30, %v12897_v29 }
  0xa7   :  { %v19191_v46 = vld [vmem:[#allocation2 + $0x204] sm:$0xf]  ;;  %v13790_v53 = vor.u32 %v19391_v43, %v13787_v44  ;;  %v12865_v44 = vld [vmem:[#allocation2 + $0x108] sm:$0xf] }
  0xa8   :  { %v12987_v47 = vld [vmem:[#allocation2 + $0x220] sm:$0xf0]  ;;  %2985 = vmatpush.bf16.msra.mxu2 %v13566_v32  ;;  %2960 = vmatpush.bf16.msra.mxu0 %v13022_v45  ;;  %v19236_v32 = vld [vmem:[#allocation2 + $0x364] sm:$0xf0] }
  0xa9   :  { %v19255_v50 = vld [vmem:[#allocation2 + $0x404] sm:$0xf]  ;;  %v12990_v60 = vor.u32 %v19191_v46, %v12987_v47  ;;  %2999 = vmatpush.bf16.msra.mxu3 %v13790_v53  ;;  %v13154_v42 = vor.u32 %v19236_v32, %v13153_v31  ;;  %v19164_v45 = vld [vmem:[#allocation2 + $0x124] sm:$0xf0] }
  0xaa   :  { %v13243_v51 = vld [vmem:[#allocation2 + $0x420] sm:$0xf0]  ;;  %2973 = vmatpush.bf16.msra.mxu1 %v13278_v48  ;;  %v13121_v46 = vld [vmem:[#allocation2 + $0x308] sm:$0xf] }
  0xab   :  { %v19319_v52 = vld [vmem:[#allocation2 + $0x604] sm:$0xf]  ;;  %v13246_v0 = vor.u32 %v19255_v50, %v13243_v51  ;;  %v19228_v47 = vld [vmem:[#allocation2 + $0x324] sm:$0xf0]  ;;  %v12866_v50 = vor.u32 %v19164_v45, %v12865_v44 }
  0xac   :  { %v13499_v54 = vld [vmem:[#allocation2 + $0x620] sm:$0xf0]  ;;  %2986 = vmatpush.bf16.msra.mxu2 %v13534_v49  ;;  %2961 = vmatpush.bf16.msra.mxu0 %v12990_v60  ;;  %v12769_v16 = vld [vmem:[#allocation2 + $0x48] sm:$0xf] }
  0xad   :  { %v19383_v55 = vld [vmem:[#allocation2 + $0x804] sm:$0xf]  ;;  %v13502_v1 = vor.u32 %v19319_v52, %v13499_v54  ;;  %v13122_v54 = vor.u32 %v19228_v47, %v13121_v46  ;;  %v12737_v31 = vld [vmem:[#allocation2 + $0x8] sm:$0xf] }
  0xae   :  { %v13755_v56 = vld [vmem:[#allocation2 + $0x820] sm:$0xf0]  ;;  %2974 = vmatpush.bf16.msra.mxu1 %v13246_v0  ;;  %v13985_v44 = vld [vmem:[#allocation2 + $0x9c8] sm:$0xf] }
  0xaf   :  { %v19503_v57 = vld [vmem:[#allocation2 + $0xbc4] sm:$0xf]  ;;  %v13758_v4 = vor.u32 %v19383_v55, %v13755_v56  ;;  %2962 = vmatmul.bf16.vlgmr.msra.gmra.mxu0 %v21008_v22  ;;  %v12833_v56 = vld [vmem:[#allocation2 + $0xc8] sm:$0xf] }
  0xb0   :  { %v14235_v58 = vld [vmem:[#allocation2 + $0xbe0] sm:$0xf0]  ;;  %2987 = vmatpush.bf16.msra.mxu2 %v13502_v1  ;;  %v19444_v45 = vld [vmem:[#allocation2 + $0x9e4] sm:$0xf0] }
  0xb1   :  { %v19567_v59 = vld [vmem:[#allocation2 + $0xdc4] sm:$0xf]  ;;  %v14238_v5 = vor.u32 %v19503_v57, %v14235_v58  ;;  %3000 = vmatpush.bf16.msra.mxu3 %v13758_v4  ;;  %2975 = vmatmul.bf16.vlgmr.msra.gmra.mxu1 %v21002_v18  ;;  %v19156_v57 = vld [vmem:[#allocation2 + $0xe4] sm:$0xf0] }
  0xb2   :  { %v14491_v61 = vld [vmem:[#allocation2 + $0xde0] sm:$0xf0]  ;;  %v13089_v58 = vld [vmem:[#allocation2 + $0x2c8] sm:$0xf]  ;;  %v12834_v62 = vor.u32 %v19156_v57, %v12833_v56 }
  0xb3   :  { %v14494_v6 = vor.u32 %v19567_v59, %v14491_v61  ;;  %v19495_v8 = vld [vmem:[#allocation2 + $0xb84] sm:$0xf]  ;;  %3006 = vmatpush.bf16.msrb.mxu0 %v14238_v5  ;;  %2988 = vmatmul.bf16.vlgmr.msra.gmra.mxu2 %v21006_v20  ;;  %v19220_v59 = vld [vmem:[#allocation2 + $0x2e4] sm:$0xf0] }
  0xb4   :  { %v14203_v9 = vld [vmem:[#allocation2 + $0xba0] sm:$0xf0]  ;;  %3032 = vmatpush.bf16.msrb.mxu2 %v12962_v7  ;;  %3001 = vmatmul.bf16.vlgmr.msra.gmra.mxu3 %v21022_v40  ;;  %v13090_v2 = vor.u32 %v19220_v59, %v13089_v58  ;;  %v12801_v4 = vld [vmem:[#allocation2 + $0x88] sm:$0xf] }
  0xb5   :  { %v19559_v10 = vld [vmem:[#allocation2 + $0xd84] sm:$0xf]  ;;  %v14206_v17 = vor.u32 %v19495_v8, %v14203_v9  ;;  %3019 = vmatpush.bf16.msrb.mxu1 %v14494_v6  ;;  %3045 = vmatpush.bf16.msrb.mxu3 %v13218_v11  ;;  %v19148_v5 = vld [vmem:[#allocation2 + $0xa4] sm:$0xf0] }
  0xb6   :  { %v14459_v12 = vld [vmem:[#allocation2 + $0xda0] sm:$0xf0]  ;;  %v13057_v6 = vld [vmem:[#allocation2 + $0x288] sm:$0xf] }
  0xb7   :  { %v14462_v21 = vor.u32 %v19559_v10, %v14459_v12  ;;  %v19487_v24 = vld [vmem:[#allocation2 + $0xb44] sm:$0xf]  ;;  %3007 = vmatpush.bf16.msrb.mxu0 %v14206_v17  ;;  %v19212_v7 = vld [vmem:[#allocation2 + $0x2a4] sm:$0xf0]  ;;  %v12802_v10 = vor.u32 %v19148_v5, %v12801_v4 }
  0xb8   :  { %v14171_v25 = vld [vmem:[#allocation2 + $0xb60] sm:$0xf0]  ;;  %3033 = vmatpush.bf16.msrb.mxu2 %v12930_v23  ;;  %v13058_v14 = vor.u32 %v19212_v7, %v13057_v6  ;;  %v19140_v17 = vld [vmem:[#allocation2 + $0x64] sm:$0xf0] }
  0xb9   :  { %v19551_v26 = vld [vmem:[#allocation2 + $0xd44] sm:$0xf]  ;;  %v14174_v33 = vor.u32 %v19487_v24, %v14171_v25  ;;  %3020 = vmatpush.bf16.msrb.mxu1 %v14462_v21  ;;  %3046 = vmatpush.bf16.msrb.mxu3 %v13186_v27  ;;  %v13025_v21 = vld [vmem:[#allocation2 + $0x248] sm:$0xf] }
  0xba   :  { %v14427_v28 = vld [vmem:[#allocation2 + $0xd60] sm:$0xf0]  ;;  %v19204_v23 = vld [vmem:[#allocation2 + $0x264] sm:$0xf0] }
  0xbb   :  { %v14430_v34 = vor.u32 %v19551_v26, %v14427_v28  ;;  %v19479_v36 = vld [vmem:[#allocation2 + $0xb04] sm:$0xf]  ;;  %3008 = vmatpush.bf16.msrb.mxu0 %v14174_v33  ;;  %v12770_v28 = vor.u32 %v19140_v17, %v12769_v16  ;;  %v13026_v32 = vor.u32 %v19204_v23, %v13025_v21  ;;  %v19132_v33 = vld [vmem:[#allocation2 + $0x24] sm:$0xf0] }
  0xbc   :  { %v14139_v38 = vld [vmem:[#allocation2 + $0xb20] sm:$0xf0]  ;;  %3034 = vmatpush.bf16.msrb.mxu2 %v12898_v35  ;;  %v19196_v35 = vld [vmem:[#allocation2 + $0x224] sm:$0xf0]  ;;  %v12738_v47 = vor.u32 %v19132_v33, %v12737_v31 }
  0xbd   :  { %v19543_v39 = vld [vmem:[#allocation2 + $0xd04] sm:$0xf]  ;;  %v14142_v48 = vor.u32 %v19479_v36, %v14139_v38  ;;  %3021 = vmatpush.bf16.msrb.mxu1 %v14430_v34  ;;  %3047 = vmatpush.bf16.msrb.mxu3 %v13154_v42  ;;  %v12993_v34 = vld [vmem:[#allocation2 + $0x208] sm:$0xf] }
  0xbe   :  { %v14395_v43 = vld [vmem:[#allocation2 + $0xd20] sm:$0xf0]  ;;  %v13473_v36 = vld [vmem:[#allocation2 + $0x5c8] sm:$0xf] }
  0xbf   :  { %v14398_v49 = vor.u32 %v19543_v39, %v14395_v43  ;;  %v19471_v51 = vld [vmem:[#allocation2 + $0xac4] sm:$0xf]  ;;  %3009 = vmatpush.bf16.msrb.mxu0 %v14142_v48  ;;  %v19316_v38 = vld [vmem:[#allocation2 + $0x5e4] sm:$0xf0] }
  0xc0   :  { %v14107_v52 = vld [vmem:[#allocation2 + $0xae0] sm:$0xf0]  ;;  %3035 = vmatpush.bf16.msrb.mxu2 %v12866_v50  ;;  %v13729_v39 = vld [vmem:[#allocation2 + $0x7c8] sm:$0xf]  ;;  %v12994_v50 = vor.u32 %v19196_v35, %v12993_v34 }
  0xc1   :  { %v19535_v53 = vld [vmem:[#allocation2 + $0xcc4] sm:$0xf]  ;;  %v14110_v60 = vor.u32 %v19471_v51, %v14107_v52  ;;  %3022 = vmatpush.bf16.msrb.mxu1 %v14398_v49  ;;  %3048 = vmatpush.bf16.msrb.mxu3 %v13122_v54  ;;  %v19380_v43 = vld [vmem:[#allocation2 + $0x7e4] sm:$0xf0]  ;;  %v13474_v51 = vor.u32 %v19316_v38, %v13473_v36 }
  0xc2   :  { %v14363_v55 = vld [vmem:[#allocation2 + $0xce0] sm:$0xf0]  ;;  %v14241_v48 = vld [vmem:[#allocation2 + $0xbc8] sm:$0xf]  ;;  %v13730_v52 = vor.u32 %v19380_v43, %v13729_v39 }
  0xc3   :  { %v14366_v61 = vor.u32 %v19535_v53, %v14363_v55  ;;  %v19463_v63 = vld [vmem:[#allocation2 + $0xa84] sm:$0xf]  ;;  %3010 = vmatpush.bf16.msrb.mxu0 %v14110_v60  ;;  %v19508_v49 = vld [vmem:[#allocation2 + $0xbe4] sm:$0xf0]  ;;  %v13986_v53 = vor.u32 %v19444_v45, %v13985_v44 }
  0xc4   :  { %v14075_v0 = vld [vmem:[#allocation2 + $0xaa0] sm:$0xf0]  ;;  %3036 = vmatpush.bf16.msrb.mxu2 %v12834_v62  ;;  %v13441_v54 = vld [vmem:[#allocation2 + $0x588] sm:$0xf]  ;;  %v14242_v57 = vor.u32 %v19508_v49, %v14241_v48 }
  0xc5   :  { %v19527_v1 = vld [vmem:[#allocation2 + $0xc84] sm:$0xf]  ;;  %v14078_v8 = vor.u32 %v19463_v63, %v14075_v0  ;;  %3023 = vmatpush.bf16.msrb.mxu1 %v14366_v61  ;;  %3049 = vmatpush.bf16.msrb.mxu3 %v13090_v2  ;;  %v19308_v55 = vld [vmem:[#allocation2 + $0x5a4] sm:$0xf0] }
  0xc6   :  { %v14331_v3 = vld [vmem:[#allocation2 + $0xca0] sm:$0xf0]  ;;  %v13697_v56 = vld [vmem:[#allocation2 + $0x788] sm:$0xf]  ;;  %v13442_v63 = vor.u32 %v19308_v55, %v13441_v54 }
  0xc7   :  { %v14334_v9 = vor.u32 %v19527_v1, %v14331_v3  ;;  %v19455_v11 = vld [vmem:[#allocation2 + $0xa44] sm:$0xf]  ;;  %3011 = vmatpush.bf16.msrb.mxu0 %v14078_v8  ;;  %v19372_v58 = vld [vmem:[#allocation2 + $0x7a4] sm:$0xf0] }
  0xc8   :  { %v14043_v12 = vld [vmem:[#allocation2 + $0xa60] sm:$0xf0]  ;;  %3037 = vmatpush.bf16.msrb.mxu2 %v12802_v10  ;;  %v13953_v59 = vld [vmem:[#allocation2 + $0x988] sm:$0xf]  ;;  %v13698_v0 = vor.u32 %v19372_v58, %v13697_v56 }
  0xc9   :  { %v19519_v13 = vld [vmem:[#allocation2 + $0xc44] sm:$0xf]  ;;  %v14046_v24 = vor.u32 %v19455_v11, %v14043_v12  ;;  %3024 = vmatpush.bf16.msrb.mxu1 %v14334_v9  ;;  %3050 = vmatpush.bf16.msrb.mxu3 %v13058_v14  ;;  %v19436_v60 = vld [vmem:[#allocation2 + $0x9a4] sm:$0xf0] }
  0xca   :  { %v14299_v15 = vld [vmem:[#allocation2 + $0xc60] sm:$0xf0]  ;;  %v14209_v61 = vld [vmem:[#allocation2 + $0xb88] sm:$0xf]  ;;  %v13954_v1 = vor.u32 %v19436_v60, %v13953_v59 }
  0xcb   :  { %v19447_v25 = vld [vmem:[#allocation2 + $0xa04] sm:$0xf]  ;;  %v14302_v27 = vor.u32 %v19519_v13, %v14299_v15  ;;  %3012 = vmatpush.bf16.msrb.mxu0 %v14046_v24  ;;  %v19500_v62 = vld [vmem:[#allocation2 + $0xba4] sm:$0xf0] }
  0xcc   :  { %v14011_v26 = vld [vmem:[#allocation2 + $0xa20] sm:$0xf0]  ;;  %3038 = vmatpush.bf16.msrb.mxu2 %v12770_v28  ;;  %v13409_v2 = vld [vmem:[#allocation2 + $0x548] sm:$0xf]  ;;  %v14210_v5 = vor.u32 %v19500_v62, %v14209_v61 }
  0xcd   :  { %v19511_v29 = vld [vmem:[#allocation2 + $0xc04] sm:$0xf]  ;;  %v14014_v42 = vor.u32 %v19447_v25, %v14011_v26  ;;  %3025 = vmatpush.bf16.msrb.mxu1 %v14302_v27  ;;  %3051 = vmatpush.bf16.msrb.mxu3 %v13026_v32  ;;  %v19300_v3 = vld [vmem:[#allocation2 + $0x564] sm:$0xf0] }
  0xce   :  { %v14267_v30 = vld [vmem:[#allocation2 + $0xc20] sm:$0xf0]  ;;  %v13665_v4 = vld [vmem:[#allocation2 + $0x748] sm:$0xf]  ;;  %v13410_v11 = vor.u32 %v19300_v3, %v13409_v2 }
  0xcf   :  { %v14270_v46 = vor.u32 %v19511_v29, %v14267_v30  ;;  %3013 = vmatpush.bf16.msrb.mxu0 %v14014_v42  ;;  %v19364_v6 = vld [vmem:[#allocation2 + $0x764] sm:$0xf0] }
  0xd0   :  { %3039 = vmatpush.bf16.msrb.mxu2 %v12738_v47  ;;  %v13921_v7 = vld [vmem:[#allocation2 + $0x948] sm:$0xf]  ;;  %v13666_v12 = vor.u32 %v19364_v6, %v13665_v4 }
  0xd1   :  { %3026 = vmatpush.bf16.msrb.mxu1 %v14270_v46  ;;  %3052 = vmatpush.bf16.msrb.mxu3 %v12994_v50  ;;  %v19428_v8 = vld [vmem:[#allocation2 + $0x964] sm:$0xf0] }
  0xd2   :  { %3014 = vmatmul.bf16.vlgmr.msrb.gmra.mxu0 %v21024_v41  ;;  %v14177_v9 = vld [vmem:[#allocation2 + $0xb48] sm:$0xf]  ;;  %v13922_v13 = vor.u32 %v19428_v8, %v13921_v7 }
  0xd3   :  { %3058 = vmatpush.bf16.msra.mxu0 %v13474_v51  ;;  %v19492_v10 = vld [vmem:[#allocation2 + $0xb64] sm:$0xf0]  ;;  %3040 = vmatmul.bf16.vlgmr.msrb.gmra.mxu2 %v21004_v19 }
  0xd4   :  { %3084 = vmatpush.bf16.msra.mxu2 %v13986_v53  ;;  %3027 = vmatmul.bf16.vlgmr.msrb.gmra.mxu1 %v21020_v37  ;;  %v13377_v14 = vld [vmem:[#allocation2 + $0x508] sm:$0xf]  ;;  %v14178_v17 = vor.u32 %v19492_v10, %v14177_v9 }
  0xd5   :  { %3071 = vmatpush.bf16.msra.mxu1 %v13730_v52  ;;  %3097 = vmatpush.bf16.msra.mxu3 %v14242_v57  ;;  %v19292_v15 = vld [vmem:[#allocation2 + $0x524] sm:$0xf0] }
  0xd6   :  { %3053 = vmatmul.bf16.vlgmr.msrb.gmra.mxu3 %v21008_v22  ;;  %v13633_v16 = vld [vmem:[#allocation2 + $0x708] sm:$0xf]  ;;  %v13378_v27 = vor.u32 %v19292_v15, %v13377_v14 }
  0xd7   :  { %3059 = vmatpush.bf16.msra.mxu0 %v13442_v63  ;;  %v19356_v21 = vld [vmem:[#allocation2 + $0x724] sm:$0xf0] }
  0xd8   :  { %3085 = vmatpush.bf16.msra.mxu2 %v13954_v1  ;;  %v13889_v23 = vld [vmem:[#allocation2 + $0x908] sm:$0xf]  ;;  %v13634_v28 = vor.u32 %v19356_v21, %v13633_v16  ;;  %v19184_v16 = vld [vmem:[#allocation2 + $0x1cc] sm:$0xf] }
  0xd9   :  { %3072 = vmatpush.bf16.msra.mxu1 %v13698_v0  ;;  %3098 = vmatpush.bf16.msra.mxu3 %v14210_v5  ;;  %v19420_v24 = vld [vmem:[#allocation2 + $0x924] sm:$0xf0]  ;;  %v12963_v21 = vld [vmem:[#allocation2 + $0x1e8] sm:$0xf0] }
  0xda   :  { %v14145_v25 = vld [vmem:[#allocation2 + $0xb08] sm:$0xf]  ;;  %v13890_v29 = vor.u32 %v19420_v24, %v13889_v23  ;;  %v19248_v23 = vld [vmem:[#allocation2 + $0x3cc] sm:$0xf] }
  0xdb   :  { %v19484_v26 = vld [vmem:[#allocation2 + $0xb24] sm:$0xf0]  ;;  %3060 = vmatpush.bf16.msra.mxu0 %v13410_v11  ;;  %v13219_v24 = vld [vmem:[#allocation2 + $0x3e8] sm:$0xf0] }
  0xdc   :  { %3086 = vmatpush.bf16.msra.mxu2 %v13922_v13  ;;  %v13345_v30 = vld [vmem:[#allocation2 + $0x4c8] sm:$0xf]  ;;  %v14146_v33 = vor.u32 %v19484_v26, %v14145_v25 }
  0xdd   :  { %3073 = vmatpush.bf16.msra.mxu1 %v13666_v12  ;;  %v19284_v31 = vld [vmem:[#allocation2 + $0x4e4] sm:$0xf0]  ;;  %3099 = vmatpush.bf16.msra.mxu3 %v14178_v17 }
  0xde   :  { %v13601_v32 = vld [vmem:[#allocation2 + $0x6c8] sm:$0xf]  ;;  %v13346_v42 = vor.u32 %v19284_v31, %v13345_v30  ;;  %v12966_v31 = vor.u32 %v19184_v16, %v12963_v21  ;;  %v19280_v16 = vld [vmem:[#allocation2 + $0x4cc] sm:$0xf] }
  0xdf   :  { %v19348_v34 = vld [vmem:[#allocation2 + $0x6e4] sm:$0xf0]  ;;  %3061 = vmatpush.bf16.msra.mxu0 %v13378_v27  ;;  %v19312_v27 = vld [vmem:[#allocation2 + $0x5cc] sm:$0xf] }
  0xe0   :  { %v13857_v35 = vld [vmem:[#allocation2 + $0x8c8] sm:$0xf]  ;;  %3087 = vmatpush.bf16.msra.mxu2 %v13890_v29  ;;  %v13602_v43 = vor.u32 %v19348_v34, %v13601_v32  ;;  %v13222_v32 = vor.u32 %v19248_v23, %v13219_v24 }
  0xe1   :  { %v19412_v36 = vld [vmem:[#allocation2 + $0x8e4] sm:$0xf0]  ;;  %3074 = vmatpush.bf16.msra.mxu1 %v13634_v28  ;;  %3100 = vmatpush.bf16.msra.mxu3 %v14146_v33  ;;  %v13475_v28 = vld [vmem:[#allocation2 + $0x5e8] sm:$0xf0] }
  0xe2   :  { %v14113_v38 = vld [vmem:[#allocation2 + $0xac8] sm:$0xf]  ;;  %v13858_v44 = vor.u32 %v19412_v36, %v13857_v35  ;;  %v19176_v35 = vld [vmem:[#allocation2 + $0x18c] sm:$0xf]  ;;  %v13478_v36 = vor.u32 %v19312_v27, %v13475_v28 }
  0xe3   :  { %v19476_v39 = vld [vmem:[#allocation2 + $0xae4] sm:$0xf0]  ;;  %3062 = vmatpush.bf16.msra.mxu0 %v13346_v42  ;;  %v13187_v42 = vld [vmem:[#allocation2 + $0x3a8] sm:$0xf0] }
  0xe4   :  { %v13313_v45 = vld [vmem:[#allocation2 + $0x488] sm:$0xf]  ;;  %v14114_v48 = vor.u32 %v19476_v39, %v14113_v38  ;;  %3088 = vmatpush.bf16.msra.mxu2 %v13858_v44  ;;  %v12931_v38 = vld [vmem:[#allocation2 + $0x1a8] sm:$0xf0] }
  0xe5   :  { %v19276_v46 = vld [vmem:[#allocation2 + $0x4a4] sm:$0xf0]  ;;  %3075 = vmatpush.bf16.msra.mxu1 %v13602_v43  ;;  %v19240_v39 = vld [vmem:[#allocation2 + $0x38c] sm:$0xf] }
  0xe6   :  { %v13569_v47 = vld [vmem:[#allocation2 + $0x688] sm:$0xf]  ;;  %v13314_v54 = vor.u32 %v19276_v46, %v13313_v45  ;;  %3101 = vmatpush.bf16.msra.mxu3 %v14114_v48  ;;  %v19304_v43 = vld [vmem:[#allocation2 + $0x58c] sm:$0xf]  ;;  %v12934_v46 = vor.u32 %v19176_v35, %v12931_v38 }
  0xe7   :  { %v19340_v49 = vld [vmem:[#allocation2 + $0x6a4] sm:$0xf0]  ;;  %v13443_v44 = vld [vmem:[#allocation2 + $0x5a8] sm:$0xf0] }
  0xe8   :  { %v13825_v50 = vld [vmem:[#allocation2 + $0x888] sm:$0xf]  ;;  %v13570_v55 = vor.u32 %v19340_v49, %v13569_v47  ;;  %3063 = vmatpush.bf16.msra.mxu0 %v13314_v54  ;;  %v13190_v47 = vor.u32 %v19240_v39, %v13187_v42  ;;  %v13155_v54 = vld [vmem:[#allocation2 + $0x368] sm:$0xf0] }
  0xe9   :  { %v19404_v51 = vld [vmem:[#allocation2 + $0x8a4] sm:$0xf0]  ;;  %v19144_v27 = vld [vmem:[#allocation2 + $0x8c] sm:$0xf] }
  0xea   :  { %v14081_v52 = vld [vmem:[#allocation2 + $0xa88] sm:$0xf]  ;;  %v13826_v56 = vor.u32 %v19404_v51, %v13825_v50  ;;  %3076 = vmatpush.bf16.msra.mxu1 %v13570_v55  ;;  %v19168_v50 = vld [vmem:[#allocation2 + $0x14c] sm:$0xf]  ;;  %v13446_v51 = vor.u32 %v19304_v43, %v13443_v44 }
  0xeb   :  { %v19468_v53 = vld [vmem:[#allocation2 + $0xaa4] sm:$0xf0]  ;;  %v19296_v55 = vld [vmem:[#allocation2 + $0x54c] sm:$0xf] }
  0xec   :  { %v13281_v57 = vld [vmem:[#allocation2 + $0x448] sm:$0xf]  ;;  %v14082_v60 = vor.u32 %v19468_v53, %v14081_v52  ;;  %3089 = vmatpush.bf16.msra.mxu2 %v13826_v56  ;;  %v12899_v52 = vld [vmem:[#allocation2 + $0x168] sm:$0xf0] }
  0xed   :  { %v19268_v58 = vld [vmem:[#allocation2 + $0x464] sm:$0xf0]  ;;  %v19232_v53 = vld [vmem:[#allocation2 + $0x34c] sm:$0xf] }
  0xee   :  { %v13537_v59 = vld [vmem:[#allocation2 + $0x648] sm:$0xf]  ;;  %v13282_v2 = vor.u32 %v19268_v58, %v13281_v57  ;;  %3102 = vmatpush.bf16.msra.mxu3 %v14082_v60  ;;  %v13411_v56 = vld [vmem:[#allocation2 + $0x568] sm:$0xf0]  ;;  %v12902_v58 = vor.u32 %v19168_v50, %v12899_v52 }
  0xef   :  { %v19332_v61 = vld [vmem:[#allocation2 + $0x664] sm:$0xf0]  ;;  %v19136_v44 = vld [vmem:[#allocation2 + $0x4c] sm:$0xf] }
  0xf0   :  { %v13793_v62 = vld [vmem:[#allocation2 + $0x848] sm:$0xf]  ;;  %v13538_v5 = vor.u32 %v19332_v61, %v13537_v59  ;;  %3064 = vmatpush.bf16.msra.mxu0 %v13282_v2  ;;  %v13158_v59 = vor.u32 %v19232_v53, %v13155_v54  ;;  %v13123_v2 = vld [vmem:[#allocation2 + $0x328] sm:$0xf0] }
  0xf1   :  { %v19396_v63 = vld [vmem:[#allocation2 + $0x864] sm:$0xf0]  ;;  %v13027_v50 = vld [vmem:[#allocation2 + $0x268] sm:$0xf0] }
  0xf2   :  { %v14049_v0 = vld [vmem:[#allocation2 + $0xa48] sm:$0xf]  ;;  %v13794_v6 = vor.u32 %v19396_v63, %v13793_v62  ;;  %3077 = vmatpush.bf16.msra.mxu1 %v13538_v5  ;;  %v19160_v62 = vld [vmem:[#allocation2 + $0x10c] sm:$0xf]  ;;  %v13414_v63 = vor.u32 %v19296_v55, %v13411_v56 }
  0xf3   :  { %v19460_v1 = vld [vmem:[#allocation2 + $0xa64] sm:$0xf0]  ;;  %v13283_v52 = vld [vmem:[#allocation2 + $0x468] sm:$0xf0] }
  0xf4   :  { %v13249_v3 = vld [vmem:[#allocation2 + $0x408] sm:$0xf]  ;;  %v14050_v10 = vor.u32 %v19460_v1, %v14049_v0  ;;  %3090 = vmatpush.bf16.msra.mxu2 %v13794_v6  ;;  %v12867_v0 = vld [vmem:[#allocation2 + $0x128] sm:$0xf0] }
  0xf5   :  { %v19260_v4 = vld [vmem:[#allocation2 + $0x424] sm:$0xf0]  ;;  %v19224_v1 = vld [vmem:[#allocation2 + $0x30c] sm:$0xf] }
  0xf6   :  { %v13505_v7 = vld [vmem:[#allocation2 + $0x608] sm:$0xf]  ;;  %v13250_v17 = vor.u32 %v19260_v4, %v13249_v3  ;;  %3103 = vmatpush.bf16.msra.mxu3 %v14050_v10  ;;  %v19288_v3 = vld [vmem:[#allocation2 + $0x50c] sm:$0xf] }
  0xf7   :  { %v19324_v8 = vld [vmem:[#allocation2 + $0x624] sm:$0xf0]  ;;  %v13379_v4 = vld [vmem:[#allocation2 + $0x528] sm:$0xf0] }
  0xf8   :  { %v13761_v9 = vld [vmem:[#allocation2 + $0x808] sm:$0xf]  ;;  %v13506_v25 = vor.u32 %v19324_v8, %v13505_v7  ;;  %3065 = vmatpush.bf16.msra.mxu0 %v13250_v17  ;;  %v12870_v7 = vor.u32 %v19160_v62, %v12867_v0  ;;  %v13126_v8 = vor.u32 %v19224_v1, %v13123_v2  ;;  %v19152_v10 = vld [vmem:[#allocation2 + $0xcc] sm:$0xf]  ;;  %v2885_v62 = vpop.f32.mrf.mxu2 }
  0xf9   :  { %v19388_v11 = vld [vmem:[#allocation2 + $0x824] sm:$0xf0]  ;;  %v13347_v17 = vld [vmem:[#allocation2 + $0x4e8] sm:$0xf0] }
  0xfa   :  { %v14017_v12 = vld [vmem:[#allocation2 + $0xa08] sm:$0xf]  ;;  %v13762_v26 = vor.u32 %v19388_v11, %v13761_v9  ;;  %3078 = vmatpush.bf16.msra.mxu1 %v13506_v25  ;;  %v12835_v11 = vld [vmem:[#allocation2 + $0xe8] sm:$0xf0] }
  0xfb   :  { %v19452_v13 = vld [vmem:[#allocation2 + $0xa24] sm:$0xf0]  ;;  %3066 = vmatmul.bf16.vlgmr.msra.gmra.mxu0 %v21002_v18  ;;  %v12838_v24 = vor.u32 %v19152_v10, %v12835_v11  ;;  %v12995_v0 = vld [vmem:[#allocation2 + $0x228] sm:$0xf0] }
  0xfc   :  { %v14497_v14 = vld [vmem:[#allocation2 + $0xdc8] sm:$0xf]  ;;  %v14018_v29 = vor.u32 %v19452_v13, %v14017_v12  ;;  %3091 = vmatpush.bf16.msra.mxu2 %v13762_v26  ;;  %v13382_v12 = vor.u32 %v19288_v3, %v13379_v4  ;;  %v19216_v13 = vld [vmem:[#allocation2 + $0x2cc] sm:$0xf]  ;;  %v2898_v4 = vpop.f32.mrf.mxu3 }
  0xfd   :  { %v19572_v15 = vld [vmem:[#allocation2 + $0xde4] sm:$0xf0]  ;;  %3079 = vmatmul.bf16.vlgmr.msra.gmra.mxu1 %v21006_v20  ;;  %v19256_v1 = vld [vmem:[#allocation2 + $0x40c] sm:$0xf] }
  0xfe   :  { %v14498_v30 = vor.u32 %v19572_v15, %v14497_v14  ;;  %v14465_v33 = vld [vmem:[#allocation2 + $0xd88] sm:$0xf]  ;;  %3104 = vmatpush.bf16.msra.mxu3 %v14018_v29  ;;  %3123 = vmatpush.bf16.msrb.mxu1 %v12966_v31  ;;  %v13091_v14 = vld [vmem:[#allocation2 + $0x2e8] sm:$0xf0]  ;;  %v21042_v15 = vld [vmem:[#allocation5] sm:$0xff]  ;;  %v13350_v29 = vor.u32 %v19280_v16, %v13347_v17 }
  0xff   :  { %v19564_v34 = vld [vmem:[#allocation2 + $0xda4] sm:$0xf0]  ;;  %3092 = vmatmul.bf16.vlgmr.msra.gmra.mxu2 %v21022_v40  ;;  %v13094_v25 = vor.u32 %v19216_v13, %v13091_v14  ;;  %v569_v28 = vperm.slane %v21042_v15, 0  ;;  %v19208_v31 = vld [vmem:[#allocation2 + $0x28c] sm:$0xf] }
 0x100   :  { %3110 = vmatpush.bf16.msrb.mxu0 %v14498_v30  ;;  %v14466_v45 = vor.u32 %v19564_v34, %v14465_v33  ;;  %3136 = vmatpush.bf16.msrb.mxu2 %v13222_v32  ;;  %v14433_v48 = vld [vmem:[#allocation2 + $0xd48] sm:$0xf]  ;;  %v12803_v30 = vld [vmem:[#allocation2 + $0xa8] sm:$0xf0] }
 0x101   :  { %v19556_v49 = vld [vmem:[#allocation2 + $0xd64] sm:$0xf0]  ;;  %3105 = vmatmul.bf16.vlgmr.msra.gmra.mxu3 %v21024_v41  ;;  %v13059_v32 = vld [vmem:[#allocation2 + $0x2a8] sm:$0xf0]  ;;  %v12806_v38 = vor.u32 %v19144_v27, %v12803_v30 }
 0x102   :  { %3149 = vmatpush.bf16.msrb.mxu3 %v13478_v36  ;;  %v14434_v57 = vor.u32 %v19556_v49, %v14433_v48  ;;  %3124 = vmatpush.bf16.msrb.mxu1 %v12934_v46  ;;  %v14401_v60 = vld [vmem:[#allocation2 + $0xd08] sm:$0xf]  ;;  %v19272_v33 = vld [vmem:[#allocation2 + $0x48c] sm:$0xf]  ;;  %v2859_v36 = vpop.f32.mrf.mxu0  ;;  %v13062_v39 = vor.u32 %v19208_v31, %v13059_v32  ;;  %v2872_v46 = vpop.f32.mrf.mxu1 }
 0x103   :  { %v19548_v61 = vld [vmem:[#allocation2 + $0xd24] sm:$0xf0]  ;;  %v13315_v34 = vld [vmem:[#allocation2 + $0x4a8] sm:$0xf0] }
 0x104   :  { %3111 = vmatpush.bf16.msrb.mxu0 %v14466_v45  ;;  %3137 = vmatpush.bf16.msrb.mxu2 %v13190_v47  ;;  %v14402_v5 = vor.u32 %v19548_v61, %v14401_v60  ;;  %v14369_v6 = vld [vmem:[#allocation2 + $0xcc8] sm:$0xf]  ;;  %v2860_v45 = vadd.f32 %v2859_v36, %v569_v28  ;;  %v13318_v47 = vor.u32 %v19272_v33, %v13315_v34  ;;  %v12771_v48 = vld [vmem:[#allocation2 + $0x68] sm:$0xf0] }
 0x105   :  { %v19540_v9 = vld [vmem:[#allocation2 + $0xce4] sm:$0xf0]  ;;  %v19200_v49 = vld [vmem:[#allocation2 + $0x24c] sm:$0xf] }
 0x106   :  { %3150 = vmatpush.bf16.msrb.mxu3 %v13446_v51  ;;  %3125 = vmatpush.bf16.msrb.mxu1 %v12902_v58  ;;  %v14370_v21 = vor.u32 %v19540_v9, %v14369_v6  ;;  %v14337_v23 = vld [vmem:[#allocation2 + $0xc88] sm:$0xf]  ;;  %v19264_v51 = vld [vmem:[#allocation2 + $0x44c] sm:$0xf]  ;;  %v2873_v53 = vadd.f32 %v2872_v46, %v2860_v45  ;;  %v13030_v58 = vor.u32 %v19200_v49, %v13027_v50 }
 0x107   :  { %v19532_v26 = vld [vmem:[#allocation2 + $0xca4] sm:$0xf0]  ;;  %v12739_v60 = vld [vmem:[#allocation2 + $0x28] sm:$0xf0] }
 0x108   :  { %3112 = vmatpush.bf16.msrb.mxu0 %v14434_v57  ;;  %3138 = vmatpush.bf16.msrb.mxu2 %v13158_v59  ;;  %v14338_v35 = vor.u32 %v19532_v26, %v14337_v23  ;;  %v14305_v42 = vld [vmem:[#allocation2 + $0xc48] sm:$0xf]  ;;  %v12774_v57 = vor.u32 %v19136_v44, %v12771_v48  ;;  %v19128_v59 = vld [vmem:[#allocation2 + $0xc] sm:$0xf]  ;;  %v2886_v3 = vadd.f32 %v2885_v62, %v2873_v53 }
 0x109   :  { %v19524_v43 = vld [vmem:[#allocation2 + $0xc64] sm:$0xf0]  ;;  %v19192_v61 = vld [vmem:[#allocation2 + $0x20c] sm:$0xf]  ;;  %v12742_v14 = vor.u32 %v19128_v59, %v12739_v60 }
 0x10a   :  { %3151 = vmatpush.bf16.msrb.mxu3 %v13414_v63  ;;  %3126 = vmatpush.bf16.msrb.mxu1 %v12870_v7  ;;  %v14306_v54 = vor.u32 %v19524_v43, %v14305_v42  ;;  %v14273_v55 = vld [vmem:[#allocation2 + $0xc08] sm:$0xf]  ;;  %v13286_v63 = vor.u32 %v19264_v51, %v13283_v52  ;;  %v13251_v2 = vld [vmem:[#allocation2 + $0x428] sm:$0xf0]  ;;  %v2861_v13 = vpop.f32.mrf.mxu0  ;;  %v12998_v16 = vor.u32 %v19192_v61, %v12995_v0  ;;  %v2874_v23 = vpop.f32.mrf.mxu1 }
 0x10b   :  { %v19516_v56 = vld [vmem:[#allocation2 + $0xc24] sm:$0xf0]  ;;  %v13731_v6 = vld [vmem:[#allocation2 + $0x7e8] sm:$0xf0]  ;;  %v2900_v42 = vpop.f32.mrf.mxu3 }
 0x10c   :  { %3113 = vmatpush.bf16.msrb.mxu0 %v14402_v5  ;;  %3139 = vmatpush.bf16.msrb.mxu2 %v13126_v8  ;;  %v19376_v5 = vld [vmem:[#allocation2 + $0x7cc] sm:$0xf]  ;;  %v14274_v8 = vor.u32 %v19516_v56, %v14273_v55 }
 0x10d   :  { %v19440_v7 = vld [vmem:[#allocation2 + $0x9cc] sm:$0xf] }
 0x10e   :  { %3152 = vmatpush.bf16.msrb.mxu3 %v13382_v12  ;;  %3127 = vmatpush.bf16.msrb.mxu1 %v12838_v24  ;;  %v13987_v9 = vld [vmem:[#allocation2 + $0x9e8] sm:$0xf0]  ;;  %v21045_v12 = vadd.f32 %v2898_v4, %v2886_v3  ;;  %v13254_v24 = vor.u32 %v19256_v1, %v13251_v2 }
 0x10f   :  { %v19504_v10 = vld [vmem:[#allocation2 + $0xbcc] sm:$0xf]  ;;  %v13990_v26 = vor.u32 %v19440_v7, %v13987_v9 }
 0x110   :  { %3114 = vmatpush.bf16.msrb.mxu0 %v14370_v21  ;;  %3140 = vmatpush.bf16.msrb.mxu2 %v13094_v25  ;;  %v14243_v11 = vld [vmem:[#allocation2 + $0xbe8] sm:$0xf0]  ;;  %v13734_v25 = vor.u32 %v19376_v5, %v13731_v6 }
 0x111   :  { %v19568_v17 = vld [vmem:[#allocation2 + $0xdcc] sm:$0xf]  ;;  %v14246_v27 = vor.u32 %v19504_v10, %v14243_v11 }
 0x112   :  { %3153 = vmatpush.bf16.msrb.mxu3 %v13350_v29  ;;  %3128 = vmatpush.bf16.msrb.mxu1 %v12806_v38  ;;  %v14499_v21 = vld [vmem:[#allocation2 + $0xde8] sm:$0xf0]  ;;  %v2887_v38 = vpop.f32.mrf.mxu2  ;;  %v2911_v3 = vpop.f32.mrf.mxu0 }
 0x113   :  { %v19368_v28 = vld [vmem:[#allocation2 + $0x78c] sm:$0xf]  ;;  %v14502_v31 = vor.u32 %v19568_v17, %v14499_v21  ;;  %v2924_v4 = vpop.f32.mrf.mxu1  ;;  %v2912_v10 = vadd.f32 %v2911_v3, %v21045_v12  ;;  %v21054_v38 = vpop.f32.mrf.mxu3 }
 0x114   :  { %3115 = vmatpush.bf16.msrb.mxu0 %v14338_v35  ;;  %3141 = vmatpush.bf16.msrb.mxu2 %v13062_v39  ;;  %v13699_v29 = vld [vmem:[#allocation2 + $0x7a8] sm:$0xf0] }
 0x115   :  { %v19432_v30 = vld [vmem:[#allocation2 + $0x98c] sm:$0xf]  ;;  %v13702_v39 = vor.u32 %v19368_v28, %v13699_v29  ;;  %v2925_v23 = vadd.f32 %v2924_v4, %v2912_v10  ;;  %v12969_v4 = vld [vmem:[#allocation2 + $0x1d0] sm:$0xf] }
 0x116   :  { %3154 = vmatpush.bf16.msrb.mxu3 %v13318_v47  ;;  %3129 = vmatpush.bf16.msrb.mxu1 %v12774_v57  ;;  %v13955_v32 = vld [vmem:[#allocation2 + $0x9a8] sm:$0xf0]  ;;  %v13481_v10 = vld [vmem:[#allocation2 + $0x5d0] sm:$0xf] }
 0x117   :  { %v19496_v33 = vld [vmem:[#allocation2 + $0xb8c] sm:$0xf]  ;;  %v13958_v43 = vor.u32 %v19432_v30, %v13955_v32 }
 0x118   :  { %3116 = vmatpush.bf16.msrb.mxu0 %v14306_v54  ;;  %3142 = vmatpush.bf16.msrb.mxu2 %v13030_v58  ;;  %v14211_v34 = vld [vmem:[#allocation2 + $0xba8] sm:$0xf0] }
 0x119   :  { %v19560_v35 = vld [vmem:[#allocation2 + $0xd8c] sm:$0xf]  ;;  %v14214_v44 = vor.u32 %v19496_v33, %v14211_v34 }
 0x11a   :  { %3155 = vmatpush.bf16.msrb.mxu3 %v13286_v63  ;;  %3130 = vmatpush.bf16.msrb.mxu1 %v12742_v14  ;;  %v14467_v36 = vld [vmem:[#allocation2 + $0xda8] sm:$0xf0]  ;;  %v2937_v30 = vpop.f32.mrf.mxu2  ;;  %v2913_v42 = vpop.f32.mrf.mxu0 }
 0x11b   :  { %v19360_v45 = vld [vmem:[#allocation2 + $0x74c] sm:$0xf]  ;;  %v14470_v48 = vor.u32 %v19560_v35, %v14467_v36  ;;  %v21052_v34 = vadd.f32 %v2937_v30, %v2925_v23  ;;  %v19245_v30 = vld [vmem:[#allocation2 + $0x3ac] sm:$0xf0] }
 0x11c   :  { %3117 = vmatpush.bf16.msrb.mxu0 %v14274_v8  ;;  %3143 = vmatpush.bf16.msrb.mxu2 %v12998_v16  ;;  %v13667_v46 = vld [vmem:[#allocation2 + $0x768] sm:$0xf0] }
 0x11d   :  { %v19424_v47 = vld [vmem:[#allocation2 + $0x94c] sm:$0xf]  ;;  %v13670_v54 = vor.u32 %v19360_v45, %v13667_v46  ;;  %3131 = vmatmul.bf16.vlgmr.msrb.gmra.mxu1 %v21004_v19 }
 0x11e   :  { %3156 = vmatpush.bf16.msrb.mxu3 %v13254_v24  ;;  %3175 = vmatpush.bf16.msra.mxu1 %v13990_v26  ;;  %v13923_v49 = vld [vmem:[#allocation2 + $0x968] sm:$0xf0] }
 0x11f   :  { %3118 = vmatmul.bf16.vlgmr.msrb.gmra.mxu0 %v21020_v37  ;;  %v19488_v50 = vld [vmem:[#allocation2 + $0xb4c] sm:$0xf]  ;;  %3144 = vmatmul.bf16.vlgmr.msrb.gmra.mxu2 %v21008_v22  ;;  %v13926_v55 = vor.u32 %v19424_v47, %v13923_v49 }
 0x120   :  { %3162 = vmatpush.bf16.msra.mxu0 %v13734_v25  ;;  %3188 = vmatpush.bf16.msra.mxu2 %v14246_v27  ;;  %v14179_v51 = vld [vmem:[#allocation2 + $0xb68] sm:$0xf0] }
 0x121   :  { %v19552_v52 = vld [vmem:[#allocation2 + $0xd4c] sm:$0xf]  ;;  %3157 = vmatmul.bf16.vlgmr.msrb.gmra.mxu3 %v21002_v18  ;;  %v14182_v56 = vor.u32 %v19488_v50, %v14179_v51 }
 0x122   :  { %3201 = vmatpush.bf16.msra.mxu3 %v14502_v31  ;;  %v14435_v53 = vld [vmem:[#allocation2 + $0xd68] sm:$0xf0]  ;;  %3176 = vmatpush.bf16.msra.mxu1 %v13958_v43  ;;  %v2926_v43 = vpop.f32.mrf.mxu1 }
 0x123   :  { %v19352_v57 = vld [vmem:[#allocation2 + $0x70c] sm:$0xf]  ;;  %v14438_v60 = vor.u32 %v19552_v52, %v14435_v53  ;;  %v19173_v43 = vld [vmem:[#allocation2 + $0x16c] sm:$0xf0] }
 0x124   :  { %3163 = vmatpush.bf16.msra.mxu0 %v13702_v39  ;;  %3189 = vmatpush.bf16.msra.mxu2 %v14214_v44  ;;  %v13635_v58 = vld [vmem:[#allocation2 + $0x728] sm:$0xf0] }
 0x125   :  { %v19416_v59 = vld [vmem:[#allocation2 + $0x90c] sm:$0xf]  ;;  %v13638_v2 = vor.u32 %v19352_v57, %v13635_v58 }
 0x126   :  { %3202 = vmatpush.bf16.msra.mxu3 %v14470_v48  ;;  %v13891_v61 = vld [vmem:[#allocation2 + $0x928] sm:$0xf0]  ;;  %3177 = vmatpush.bf16.msra.mxu1 %v13926_v55 }
 0x127   :  { %v19480_v62 = vld [vmem:[#allocation2 + $0xb0c] sm:$0xf]  ;;  %v13894_v5 = vor.u32 %v19416_v59, %v13891_v61 }
 0x128   :  { %v14147_v63 = vld [vmem:[#allocation2 + $0xb28] sm:$0xf0]  ;;  %3164 = vmatpush.bf16.msra.mxu0 %v13670_v54  ;;  %3190 = vmatpush.bf16.msra.mxu2 %v14182_v56 }
 0x129   :  { %v19544_v0 = vld [vmem:[#allocation2 + $0xd0c] sm:$0xf]  ;;  %v14150_v6 = vor.u32 %v19480_v62, %v14147_v63  ;;  %v2939_v63 = vpop.f32.mrf.mxu2 }
 0x12a   :  { %v14403_v1 = vld [vmem:[#allocation2 + $0xd28] sm:$0xf0]  ;;  %3203 = vmatpush.bf16.msra.mxu3 %v14438_v60  ;;  %3178 = vmatpush.bf16.msra.mxu1 %v13894_v5  ;;  %v19189_v5 = vld [vmem:[#allocation2 + $0x1ec] sm:$0xf0] }
 0x12b   :  { %v19344_v7 = vld [vmem:[#allocation2 + $0x6cc] sm:$0xf]  ;;  %v14406_v11 = vor.u32 %v19544_v0, %v14403_v1  ;;  %v12970_v23 = vor.u32 %v19189_v5, %v12969_v4  ;;  %v13641_v63 = vld [vmem:[#allocation2 + $0x710] sm:$0xf] }
 0x12c   :  { %v13603_v8 = vld [vmem:[#allocation2 + $0x6e8] sm:$0xf0]  ;;  %3165 = vmatpush.bf16.msra.mxu0 %v13638_v2  ;;  %3191 = vmatpush.bf16.msra.mxu2 %v14150_v6  ;;  %v13225_v6 = vld [vmem:[#allocation2 + $0x3d0] sm:$0xf] }
 0x12d   :  { %v19408_v9 = vld [vmem:[#allocation2 + $0x8cc] sm:$0xf]  ;;  %v13606_v24 = vor.u32 %v19344_v7, %v13603_v8  ;;  %v2952_v7 = vpop.f32.mrf.mxu3  ;;  %v12841_v5 = vld [vmem:[#allocation2 + $0xd0] sm:$0xf] }
 0x12e   :  { %v13859_v13 = vld [vmem:[#allocation2 + $0x8e8] sm:$0xf0]  ;;  %3204 = vmatpush.bf16.msra.mxu3 %v14406_v11  ;;  %v19317_v11 = vld [vmem:[#allocation2 + $0x5ec] sm:$0xf0] }
 0x12f   :  { %v19472_v14 = vld [vmem:[#allocation2 + $0xacc] sm:$0xf]  ;;  %v13862_v25 = vor.u32 %v19408_v9, %v13859_v13  ;;  %v19253_v9 = vld [vmem:[#allocation2 + $0x3ec] sm:$0xf0] }
 0x130   :  { %v14115_v16 = vld [vmem:[#allocation2 + $0xae8] sm:$0xf0]  ;;  %3166 = vmatpush.bf16.msra.mxu0 %v13606_v24  ;;  %v13226_v24 = vor.u32 %v19253_v9, %v13225_v6  ;;  %v19157_v6 = vld [vmem:[#allocation2 + $0xec] sm:$0xf0] }
 0x131   :  { %v19536_v17 = vld [vmem:[#allocation2 + $0xccc] sm:$0xf]  ;;  %v14118_v26 = vor.u32 %v19472_v14, %v14115_v16  ;;  %3179 = vmatpush.bf16.msra.mxu1 %v13862_v25  ;;  %v13737_v16 = vld [vmem:[#allocation2 + $0x7d0] sm:$0xf]  ;;  %v13482_v25 = vor.u32 %v19317_v11, %v13481_v10 }
 0x132   :  { %v14371_v21 = vld [vmem:[#allocation2 + $0xce8] sm:$0xf0]  ;;  %v19221_v10 = vld [vmem:[#allocation2 + $0x2ec] sm:$0xf0] }
 0x133   :  { %v19336_v27 = vld [vmem:[#allocation2 + $0x68c] sm:$0xf]  ;;  %v14374_v12 = vor.u32 %v19536_v17, %v14371_v21  ;;  %3192 = vmatpush.bf16.msra.mxu2 %v14118_v26  ;;  %v19381_v17 = vld [vmem:[#allocation2 + $0x7ec] sm:$0xf0] }
 0x134   :  { %v13571_v28 = vld [vmem:[#allocation2 + $0x6a8] sm:$0xf0]  ;;  %v12937_v26 = vld [vmem:[#allocation2 + $0x190] sm:$0xf] }
 0x135   :  { %v19400_v29 = vld [vmem:[#allocation2 + $0x88c] sm:$0xf]  ;;  %v13574_v39 = vor.u32 %v19336_v27, %v13571_v28  ;;  %3205 = vmatpush.bf16.msra.mxu3 %v14374_v12  ;;  %v19181_v27 = vld [vmem:[#allocation2 + $0x1ac] sm:$0xf0] }
 0x136   :  { %v13827_v31 = vld [vmem:[#allocation2 + $0x8a8] sm:$0xf0]  ;;  %v13193_v28 = vld [vmem:[#allocation2 + $0x390] sm:$0xf] }
 0x137   :  { %v19464_v32 = vld [vmem:[#allocation2 + $0xa8c] sm:$0xf]  ;;  %v13830_v44 = vor.u32 %v19400_v29, %v13827_v31  ;;  %3167 = vmatpush.bf16.msra.mxu0 %v13574_v39  ;;  %v13738_v29 = vor.u32 %v19381_v17, %v13737_v16  ;;  %v13449_v12 = vld [vmem:[#allocation2 + $0x590] sm:$0xf]  ;;  %v13194_v39 = vor.u32 %v19245_v30, %v13193_v28  ;;  %v2989_v28 = vpop.f32.mrf.mxu2 }
 0x138   :  { %v14083_v33 = vld [vmem:[#allocation2 + $0xaa8] sm:$0xf0]  ;;  %v19309_v31 = vld [vmem:[#allocation2 + $0x5ac] sm:$0xf0] }
 0x139   :  { %v19528_v35 = vld [vmem:[#allocation2 + $0xc8c] sm:$0xf]  ;;  %v14086_v45 = vor.u32 %v19464_v32, %v14083_v33  ;;  %3180 = vmatpush.bf16.msra.mxu1 %v13830_v44  ;;  %v13705_v32 = vld [vmem:[#allocation2 + $0x790] sm:$0xf]  ;;  %v13450_v42 = vor.u32 %v19309_v31, %v13449_v12 }
 0x13a   :  { %v14339_v36 = vld [vmem:[#allocation2 + $0xca8] sm:$0xf0]  ;;  %v19373_v33 = vld [vmem:[#allocation2 + $0x7ac] sm:$0xf0] }
 0x13b   :  { %v19328_v46 = vld [vmem:[#allocation2 + $0x64c] sm:$0xf]  ;;  %v14342_v49 = vor.u32 %v19528_v35, %v14339_v36  ;;  %3193 = vmatpush.bf16.msra.mxu2 %v14086_v45  ;;  %v12938_v35 = vor.u32 %v19181_v27, %v12937_v26  ;;  %v12905_v36 = vld [vmem:[#allocation2 + $0x150] sm:$0xf]  ;;  %v570_v45 = vperm.slane %v21042_v15, 1 }
 0x13c   :  { %v13539_v47 = vld [vmem:[#allocation2 + $0x668] sm:$0xf0]  ;;  %v13161_v44 = vld [vmem:[#allocation2 + $0x350] sm:$0xf] }
 0x13d   :  { %v19392_v48 = vld [vmem:[#allocation2 + $0x84c] sm:$0xf]  ;;  %v13542_v55 = vor.u32 %v19328_v46, %v13539_v47  ;;  %3206 = vmatpush.bf16.msra.mxu3 %v14342_v49  ;;  %v13706_v46 = vor.u32 %v19373_v33, %v13705_v32  ;;  %v19237_v47 = vld [vmem:[#allocation2 + $0x36c] sm:$0xf0]  ;;  %v3002_v33 = vpop.f32.mrf.mxu3 }
 0x13e   :  { %v13795_v50 = vld [vmem:[#allocation2 + $0x868] sm:$0xf0]  ;;  %v19301_v49 = vld [vmem:[#allocation2 + $0x56c] sm:$0xf0] }
 0x13f   :  { %v19456_v51 = vld [vmem:[#allocation2 + $0xa4c] sm:$0xf]  ;;  %v13798_v58 = vor.u32 %v19392_v48, %v13795_v50  ;;  %3168 = vmatpush.bf16.msra.mxu0 %v13542_v55  ;;  %v13417_v48 = vld [vmem:[#allocation2 + $0x550] sm:$0xf]  ;;  %v2951_v55 = vadd.f32 %v21054_v38, %v570_v45 }
 0x140   :  { %v14051_v52 = vld [vmem:[#allocation2 + $0xa68] sm:$0xf0]  ;;  %v13673_v50 = vld [vmem:[#allocation2 + $0x750] sm:$0xf] }
 0x141   :  { %v19520_v53 = vld [vmem:[#allocation2 + $0xc4c] sm:$0xf]  ;;  %v14054_v59 = vor.u32 %v19456_v51, %v14051_v52  ;;  %3181 = vmatpush.bf16.msra.mxu1 %v13798_v58  ;;  %v19365_v51 = vld [vmem:[#allocation2 + $0x76c] sm:$0xf0]  ;;  %v12906_v52 = vor.u32 %v19173_v43, %v12905_v36 }
 0x142   :  { %v14307_v54 = vld [vmem:[#allocation2 + $0xc68] sm:$0xf0]  ;;  %v13129_v58 = vld [vmem:[#allocation2 + $0x310] sm:$0xf] }
 0x143   :  { %v19320_v56 = vld [vmem:[#allocation2 + $0x60c] sm:$0xf]  ;;  %v14310_v0 = vor.u32 %v19520_v53, %v14307_v54  ;;  %3194 = vmatpush.bf16.msra.mxu2 %v14054_v59  ;;  %v13162_v53 = vor.u32 %v19237_v47, %v13161_v44  ;;  %v13418_v54 = vor.u32 %v19301_v49, %v13417_v48  ;;  %v13674_v59 = vor.u32 %v19365_v51, %v13673_v50  ;;  %v13097_v38 = vld [vmem:[#allocation2 + $0x2d0] sm:$0xf] }
 0x144   :  { %v13507_v57 = vld [vmem:[#allocation2 + $0x628] sm:$0xf0]  ;;  %v13353_v11 = vld [vmem:[#allocation2 + $0x4d0] sm:$0xf] }
 0x145   :  { %v19384_v60 = vld [vmem:[#allocation2 + $0x80c] sm:$0xf]  ;;  %v13510_v8 = vor.u32 %v19320_v56, %v13507_v57  ;;  %3207 = vmatpush.bf16.msra.mxu3 %v14310_v0  ;;  %v12873_v56 = vld [vmem:[#allocation2 + $0x110] sm:$0xf] }
 0x146   :  { %v13763_v61 = vld [vmem:[#allocation2 + $0x828] sm:$0xf0]  ;;  %v19165_v57 = vld [vmem:[#allocation2 + $0x12c] sm:$0xf0] }
 0x147   :  { %v19448_v62 = vld [vmem:[#allocation2 + $0xa0c] sm:$0xf]  ;;  %v13766_v13 = vor.u32 %v19384_v60, %v13763_v61  ;;  %3169 = vmatpush.bf16.msra.mxu0 %v13510_v8  ;;  %v19229_v60 = vld [vmem:[#allocation2 + $0x32c] sm:$0xf0]  ;;  %v2976_v8 = vpop.f32.mrf.mxu1 }
 0x148   :  { %v14019_v1 = vld [vmem:[#allocation2 + $0xa28] sm:$0xf0]  ;;  %v13385_v61 = vld [vmem:[#allocation2 + $0x510] sm:$0xf] }
 0x149   :  { %v19512_v2 = vld [vmem:[#allocation2 + $0xc0c] sm:$0xf]  ;;  %v14022_v14 = vor.u32 %v19448_v62, %v14019_v1  ;;  %3182 = vmatpush.bf16.msra.mxu1 %v13766_v13  ;;  %v19293_v62 = vld [vmem:[#allocation2 + $0x52c] sm:$0xf0]  ;;  %v12874_v1 = vor.u32 %v19165_v57, %v12873_v56 }
 0x14a   :  { %v14275_v3 = vld [vmem:[#allocation2 + $0xc28] sm:$0xf0]  ;;  %3170 = vmatmul.bf16.vlgmr.msra.gmra.mxu0 %v21006_v20  ;;  %v19357_v0 = vld [vmem:[#allocation2 + $0x72c] sm:$0xf0]  ;;  %v13386_v4 = vor.u32 %v19293_v62, %v13385_v61 }
 0x14b   :  { %v14278_v21 = vor.u32 %v19512_v2, %v14275_v3  ;;  %3195 = vmatpush.bf16.msra.mxu2 %v14022_v14  ;;  %3214 = vmatpush.bf16.msrb.mxu0 %v12970_v23  ;;  %v2963_v2 = vpop.f32.mrf.mxu0  ;;  %v13130_v3 = vor.u32 %v19229_v60, %v13129_v58  ;;  %v13642_v9 = vor.u32 %v19357_v0, %v13641_v63  ;;  %v19285_v13 = vld [vmem:[#allocation2 + $0x4ec] sm:$0xf0]  ;;  %v2991_v0 = vpop.f32.mrf.mxu2 }
 0x14c   :  { %3183 = vmatmul.bf16.vlgmr.msra.gmra.mxu1 %v21022_v40  ;;  %v2964_v7 = vadd.f32 %v2963_v2, %v2951_v55  ;;  %v13609_v14 = vld [vmem:[#allocation2 + $0x6d0] sm:$0xf]  ;;  %v13098_v23 = vor.u32 %v19221_v10, %v13097_v38  ;;  %v12875_v0 = vld [vmem:[#allocation2 + $0x130] sm:$0xf0] }
 0x14d   :  { %3208 = vmatpush.bf16.msra.mxu3 %v14278_v21  ;;  %3227 = vmatpush.bf16.msrb.mxu1 %v13226_v24  ;;  %v19349_v16 = vld [vmem:[#allocation2 + $0x6ec] sm:$0xf0]  ;;  %v12842_v21 = vor.u32 %v19157_v6, %v12841_v5  ;;  %v13354_v24 = vor.u32 %v19285_v13, %v13353_v11  ;;  %v3004_v5 = vpop.f32.mrf.mxu3 }
 0x14e   :  { %3196 = vmatmul.bf16.vlgmr.msra.gmra.mxu2 %v21024_v41  ;;  %v2977_v17 = vadd.f32 %v2976_v8, %v2964_v7  ;;  %v19149_v26 = vld [vmem:[#allocation2 + $0xac] sm:$0xf0] }
 0x14f   :  { %3240 = vmatpush.bf16.msrb.mxu2 %v13482_v25  ;;  %3215 = vmatpush.bf16.msrb.mxu0 %v12938_v35  ;;  %v12809_v25 = vld [vmem:[#allocation2 + $0x90] sm:$0xf]  ;;  %v2978_v49 = vpop.f32.mrf.mxu1 }
 0x150   :  { %3209 = vmatmul.bf16.vlgmr.msra.gmra.mxu3 %v21020_v37  ;;  %v13065_v27 = vld [vmem:[#allocation2 + $0x290] sm:$0xf]  ;;  %v2990_v32 = vadd.f32 %v2989_v28, %v2977_v17  ;;  %v12971_v17 = vld [vmem:[#allocation2 + $0x1f0] sm:$0xf0] }
 0x151   :  { %3253 = vmatpush.bf16.msrb.mxu3 %v13738_v29  ;;  %3228 = vmatpush.bf16.msrb.mxu1 %v13194_v39  ;;  %v13610_v29 = vor.u32 %v19349_v16, %v13609_v14  ;;  %v19213_v30 = vld [vmem:[#allocation2 + $0x2ac] sm:$0xf0]  ;;  %v12810_v39 = vor.u32 %v19149_v26, %v12809_v25  ;;  %v19185_v16 = vld [vmem:[#allocation2 + $0x1d4] sm:$0xf] }
 0x152   :  { %v13321_v12 = vld [vmem:[#allocation2 + $0x490] sm:$0xf]  ;;  %v13066_v44 = vor.u32 %v19213_v30, %v13065_v27 }
 0x153   :  { %3241 = vmatpush.bf16.msrb.mxu2 %v13450_v42  ;;  %3216 = vmatpush.bf16.msrb.mxu0 %v12906_v52  ;;  %v19277_v31 = vld [vmem:[#allocation2 + $0x4ac] sm:$0xf0]  ;;  %v21062_v42 = vadd.f32 %v3002_v33, %v2990_v32  ;;  %v2965_v43 = vpop.f32.mrf.mxu0  ;;  %v19177_v32 = vld [vmem:[#allocation2 + $0x194] sm:$0xf] }
 0x154   :  { %v13577_v35 = vld [vmem:[#allocation2 + $0x690] sm:$0xf]  ;;  %v13322_v45 = vor.u32 %v19277_v31, %v13321_v12  ;;  %v12939_v33 = vld [vmem:[#allocation2 + $0x1b0] sm:$0xf0] }
 0x155   :  { %3254 = vmatpush.bf16.msrb.mxu3 %v13706_v46  ;;  %3229 = vmatpush.bf16.msrb.mxu1 %v13162_v53  ;;  %v19341_v36 = vld [vmem:[#allocation2 + $0x6ac] sm:$0xf0] }
 0x156   :  { %v12777_v46 = vld [vmem:[#allocation2 + $0x50] sm:$0xf]  ;;  %v13578_v50 = vor.u32 %v19341_v36, %v13577_v35 }
 0x157   :  { %3242 = vmatpush.bf16.msrb.mxu2 %v13418_v54  ;;  %3217 = vmatpush.bf16.msrb.mxu0 %v12874_v1  ;;  %v19141_v47 = vld [vmem:[#allocation2 + $0x6c] sm:$0xf0] }
 0x158   :  { %v13033_v48 = vld [vmem:[#allocation2 + $0x250] sm:$0xf]  ;;  %v12778_v56 = vor.u32 %v19141_v47, %v12777_v46  ;;  %v12942_v46 = vor.u32 %v19177_v32, %v12939_v33  ;;  %v12811_v32 = vld [vmem:[#allocation2 + $0xb0] sm:$0xf0] }
 0x159   :  { %3255 = vmatpush.bf16.msrb.mxu3 %v13674_v59  ;;  %3230 = vmatpush.bf16.msrb.mxu1 %v13130_v3  ;;  %v19205_v51 = vld [vmem:[#allocation2 + $0x26c] sm:$0xf0] }
 0x15a   :  { %v13289_v52 = vld [vmem:[#allocation2 + $0x450] sm:$0xf]  ;;  %v13034_v59 = vor.u32 %v19205_v51, %v13033_v48  ;;  %v12907_v51 = vld [vmem:[#allocation2 + $0x170] sm:$0xf0] }
 0x15b   :  { %3243 = vmatpush.bf16.msrb.mxu2 %v13386_v4  ;;  %3218 = vmatpush.bf16.msrb.mxu0 %v12842_v21  ;;  %v19269_v53 = vld [vmem:[#allocation2 + $0x46c] sm:$0xf0] }
 0x15c   :  { %v13545_v54 = vld [vmem:[#allocation2 + $0x650] sm:$0xf]  ;;  %v13290_v60 = vor.u32 %v19269_v53, %v13289_v52 }
 0x15d   :  { %3256 = vmatpush.bf16.msrb.mxu3 %v13642_v9  ;;  %3231 = vmatpush.bf16.msrb.mxu1 %v13098_v23  ;;  %v19333_v55 = vld [vmem:[#allocation2 + $0x66c] sm:$0xf0] }
 0x15e   :  { %v12745_v57 = vld [vmem:[#allocation2 + $0x10] sm:$0xf]  ;;  %v13546_v1 = vor.u32 %v19333_v55, %v13545_v54 }
 0x15f   :  { %3244 = vmatpush.bf16.msrb.mxu2 %v13354_v24  ;;  %3219 = vmatpush.bf16.msrb.mxu0 %v12810_v39  ;;  %v19133_v58 = vld [vmem:[#allocation2 + $0x2c] sm:$0xf0] }
 0x160   :  { %v13001_v61 = vld [vmem:[#allocation2 + $0x210] sm:$0xf]  ;;  %v12746_v8 = vor.u32 %v19133_v58, %v12745_v57 }
 0x161   :  { %3257 = vmatpush.bf16.msrb.mxu3 %v13610_v29  ;;  %3232 = vmatpush.bf16.msrb.mxu1 %v13066_v44  ;;  %v19197_v62 = vld [vmem:[#allocation2 + $0x22c] sm:$0xf0]  ;;  %v12974_v29 = vor.u32 %v19185_v16, %v12971_v17  ;;  %v12843_v16 = vld [vmem:[#allocation2 + $0xf0] sm:$0xf0] }
 0x162   :  { %v13257_v63 = vld [vmem:[#allocation2 + $0x410] sm:$0xf]  ;;  %v13002_v13 = vor.u32 %v19197_v62, %v13001_v61  ;;  %v3015_v62 = vpop.f32.mrf.mxu0 }
 0x163   :  { %3245 = vmatpush.bf16.msrb.mxu2 %v13322_v45  ;;  %v19261_v2 = vld [vmem:[#allocation2 + $0x42c] sm:$0xf0]  ;;  %3220 = vmatpush.bf16.msrb.mxu0 %v12778_v56 }
 0x164   :  { %v13513_v3 = vld [vmem:[#allocation2 + $0x610] sm:$0xf]  ;;  %v13258_v14 = vor.u32 %v19261_v2, %v13257_v63  ;;  %v19161_v63 = vld [vmem:[#allocation2 + $0x114] sm:$0xf] }
 0x165   :  { %3258 = vmatpush.bf16.msrb.mxu3 %v13578_v50  ;;  %v19325_v4 = vld [vmem:[#allocation2 + $0x62c] sm:$0xf0]  ;;  %3233 = vmatpush.bf16.msrb.mxu1 %v13034_v59  ;;  %v19169_v50 = vld [vmem:[#allocation2 + $0x154] sm:$0xf] }
 0x166   :  { %v13993_v6 = vld [vmem:[#allocation2 + $0x9d0] sm:$0xf]  ;;  %v13514_v21 = vor.u32 %v19325_v4, %v13513_v3  ;;  %v12910_v58 = vor.u32 %v19169_v50, %v12907_v51  ;;  %v3028_v3 = vpop.f32.mrf.mxu1 }
 0x167   :  { %v19445_v38 = vld [vmem:[#allocation2 + $0x9ec] sm:$0xf0]  ;;  %3246 = vmatpush.bf16.msrb.mxu2 %v13290_v60  ;;  %3221 = vmatpush.bf16.msrb.mxu0 %v12746_v8  ;;  %v12878_v8 = vor.u32 %v19161_v63, %v12875_v0 }
 0x168   :  { %v14249_v7 = vld [vmem:[#allocation2 + $0xbd0] sm:$0xf]  ;;  %v13994_v23 = vor.u32 %v19445_v38, %v13993_v6 }
 0x169   :  { %v19509_v9 = vld [vmem:[#allocation2 + $0xbec] sm:$0xf0]  ;;  %3259 = vmatpush.bf16.msrb.mxu3 %v13546_v1  ;;  %3234 = vmatpush.bf16.msrb.mxu1 %v13002_v13  ;;  %v3016_v1 = vadd.f32 %v3015_v62, %v21062_v42  ;;  %v571_v42 = vperm.slane %v21042_v15, 2 }
 0x16a   :  { %v14505_v10 = vld [vmem:[#allocation2 + $0xdd0] sm:$0xf]  ;;  %v14250_v24 = vor.u32 %v19509_v9, %v14249_v7  ;;  %3222 = vmatmul.bf16.vlgmr.msrb.gmra.mxu0 %v21004_v19  ;;  %v3017_v15 = vpop.f32.mrf.mxu0 }
 0x16b   :  { %v19573_v11 = vld [vmem:[#allocation2 + $0xdec] sm:$0xf0]  ;;  %3247 = vmatpush.bf16.msrb.mxu2 %v13258_v14  ;;  %3266 = vmatpush.bf16.msra.mxu0 %v13994_v23  ;;  %v21069_v9 = vadd.f32 %v3028_v3, %v3016_v1  ;;  %v19153_v14 = vld [vmem:[#allocation2 + $0xd4] sm:$0xf] }
 0x16c   :  { %v14506_v25 = vor.u32 %v19573_v11, %v14505_v10  ;;  %v13961_v26 = vld [vmem:[#allocation2 + $0x990] sm:$0xf]  ;;  %3235 = vmatmul.bf16.vlgmr.msrb.gmra.mxu1 %v21008_v22  ;;  %v19129_v1 = vld [vmem:[#allocation2 + $0x14] sm:$0xf] }
 0x16d   :  { %v19437_v27 = vld [vmem:[#allocation2 + $0x9ac] sm:$0xf0]  ;;  %3260 = vmatpush.bf16.msrb.mxu3 %v13514_v21  ;;  %3279 = vmatpush.bf16.msra.mxu1 %v14250_v24 }
 0x16e   :  { %v14217_v28 = vld [vmem:[#allocation2 + $0xb90] sm:$0xf]  ;;  %v13962_v35 = vor.u32 %v19437_v27, %v13961_v26  ;;  %3248 = vmatmul.bf16.vlgmr.msrb.gmra.mxu2 %v21002_v18  ;;  %v12846_v27 = vor.u32 %v19153_v14, %v12843_v16  ;;  %v19441_v16 = vld [vmem:[#allocation2 + $0x9d4] sm:$0xf] }
 0x16f   :  { %v19501_v30 = vld [vmem:[#allocation2 + $0xbac] sm:$0xf0]  ;;  %3292 = vmatpush.bf16.msra.mxu2 %v14506_v25 }
 0x170   :  { %v14473_v12 = vld [vmem:[#allocation2 + $0xd90] sm:$0xf]  ;;  %v14218_v36 = vor.u32 %v19501_v30, %v14217_v28  ;;  %3261 = vmatmul.bf16.vlgmr.msrb.gmra.mxu3 %v21006_v20  ;;  %3267 = vmatpush.bf16.msra.mxu0 %v13962_v35  ;;  %v3054_v35 = vpop.f32.mrf.mxu3 }
 0x171   :  { %v19565_v31 = vld [vmem:[#allocation2 + $0xdac] sm:$0xf0]  ;;  %3305 = vmatpush.bf16.msra.mxu3 %v12974_v29 }
 0x172   :  { %v14474_v39 = vor.u32 %v19565_v31, %v14473_v12  ;;  %v13929_v43 = vld [vmem:[#allocation2 + $0x950] sm:$0xf]  ;;  %3280 = vmatpush.bf16.msra.mxu1 %v14218_v36  ;;  %v3041_v12 = vpop.f32.mrf.mxu2  ;;  %v19145_v31 = vld [vmem:[#allocation2 + $0x94] sm:$0xf] }
 0x173   :  { %v19429_v44 = vld [vmem:[#allocation2 + $0x96c] sm:$0xf0]  ;;  %v3042_v33 = vadd.f32 %v3041_v12, %v571_v42  ;;  %v13995_v42 = vld [vmem:[#allocation2 + $0x9f0] sm:$0xf0] }
 0x174   :  { %v14185_v45 = vld [vmem:[#allocation2 + $0xb50] sm:$0xf]  ;;  %v13930_v52 = vor.u32 %v19429_v44, %v13929_v43  ;;  %3293 = vmatpush.bf16.msra.mxu2 %v14474_v39  ;;  %v3030_v39 = vpop.f32.mrf.mxu1  ;;  %v13707_v12 = vld [vmem:[#allocation2 + $0x7b0] sm:$0xf0] }
 0x175   :  { %v19493_v47 = vld [vmem:[#allocation2 + $0xb6c] sm:$0xf0]  ;;  %3306 = vmatpush.bf16.msra.mxu3 %v12942_v46  ;;  %v13163_v39 = vld [vmem:[#allocation2 + $0x370] sm:$0xf0] }
 0x176   :  { %v14441_v48 = vld [vmem:[#allocation2 + $0xd50] sm:$0xf]  ;;  %v14186_v53 = vor.u32 %v19493_v47, %v14185_v45  ;;  %3268 = vmatpush.bf16.msra.mxu0 %v13930_v52 }
 0x177   :  { %v19557_v49 = vld [vmem:[#allocation2 + $0xd6c] sm:$0xf0] }
 0x178   :  { %v14442_v54 = vor.u32 %v19557_v49, %v14441_v48  ;;  %v13897_v55 = vld [vmem:[#allocation2 + $0x910] sm:$0xf]  ;;  %3281 = vmatpush.bf16.msra.mxu1 %v14186_v53  ;;  %v21072_v48 = vadd.f32 %v3054_v35, %v3042_v33  ;;  %v12814_v49 = vor.u32 %v19145_v31, %v12811_v32  ;;  %v19137_v53 = vld [vmem:[#allocation2 + $0x54] sm:$0xf] }
 0x179   :  { %v19421_v56 = vld [vmem:[#allocation2 + $0x92c] sm:$0xf0]  ;;  %3307 = vmatpush.bf16.msra.mxu3 %v12910_v58  ;;  %v19433_v31 = vld [vmem:[#allocation2 + $0x994] sm:$0xf] }
 0x17a   :  { %v14153_v57 = vld [vmem:[#allocation2 + $0xb10] sm:$0xf]  ;;  %v13898_v2 = vor.u32 %v19421_v56, %v13897_v55  ;;  %3294 = vmatpush.bf16.msra.mxu2 %v14442_v54  ;;  %v12779_v54 = vld [vmem:[#allocation2 + $0x70] sm:$0xf0]  ;;  %v3043_v3 = vpop.f32.mrf.mxu2 }
 0x17b   :  { %v19485_v59 = vld [vmem:[#allocation2 + $0xb2c] sm:$0xf0]  ;;  %v12782_v63 = vor.u32 %v19137_v53, %v12779_v54  ;;  %v13963_v32 = vld [vmem:[#allocation2 + $0x9b0] sm:$0xf0] }
 0x17c   :  { %v14409_v60 = vld [vmem:[#allocation2 + $0xd10] sm:$0xf]  ;;  %v14154_v4 = vor.u32 %v19485_v59, %v14153_v57  ;;  %3269 = vmatpush.bf16.msra.mxu0 %v13898_v2  ;;  %v12747_v2 = vld [vmem:[#allocation2 + $0x30] sm:$0xf0] }
 0x17d   :  { %v19549_v61 = vld [vmem:[#allocation2 + $0xd2c] sm:$0xf0]  ;;  %3308 = vmatpush.bf16.msra.mxu3 %v12878_v8  ;;  %v13483_v8 = vld [vmem:[#allocation2 + $0x5f0] sm:$0xf0] }
 0x17e   :  { %v14410_v5 = vor.u32 %v19549_v61, %v14409_v60  ;;  %v13865_v6 = vld [vmem:[#allocation2 + $0x8d0] sm:$0xf]  ;;  %3282 = vmatpush.bf16.msra.mxu1 %v14154_v4  ;;  %v19249_v4 = vld [vmem:[#allocation2 + $0x3d4] sm:$0xf] }
 0x17f   :  { %v19413_v38 = vld [vmem:[#allocation2 + $0x8ec] sm:$0xf0]  ;;  %v19225_v54 = vld [vmem:[#allocation2 + $0x314] sm:$0xf] }
 0x180   :  { %v14121_v7 = vld [vmem:[#allocation2 + $0xad0] sm:$0xf]  ;;  %v13866_v17 = vor.u32 %v19413_v38, %v13865_v6  ;;  %3295 = vmatpush.bf16.msra.mxu2 %v14410_v5  ;;  %v13227_v5 = vld [vmem:[#allocation2 + $0x3f0] sm:$0xf0]  ;;  %v3056_v38 = vpop.f32.mrf.mxu3 }
 0x181   :  { %v19477_v10 = vld [vmem:[#allocation2 + $0xaec] sm:$0xf0]  ;;  %3309 = vmatpush.bf16.msra.mxu3 %v12846_v27  ;;  %v19313_v6 = vld [vmem:[#allocation2 + $0x5d4] sm:$0xf]  ;;  %v3080_v38 = vpop.f32.mrf.mxu1 }
 0x182   :  { %v14377_v11 = vld [vmem:[#allocation2 + $0xcd0] sm:$0xf]  ;;  %v14122_v21 = vor.u32 %v19477_v10, %v14121_v7  ;;  %3270 = vmatpush.bf16.msra.mxu0 %v13866_v17  ;;  %v19377_v10 = vld [vmem:[#allocation2 + $0x7d4] sm:$0xf]  ;;  %v12750_v17 = vor.u32 %v19129_v1, %v12747_v2 }
 0x183   :  { %v19541_v13 = vld [vmem:[#allocation2 + $0xcec] sm:$0xf0]  ;;  %v19305_v27 = vld [vmem:[#allocation2 + $0x594] sm:$0xf] }
 0x184   :  { %v14378_v23 = vor.u32 %v19541_v13, %v14377_v11  ;;  %v13833_v24 = vld [vmem:[#allocation2 + $0x890] sm:$0xf]  ;;  %3283 = vmatpush.bf16.msra.mxu1 %v14122_v21  ;;  %v13739_v11 = vld [vmem:[#allocation2 + $0x7f0] sm:$0xf0]  ;;  %v13230_v21 = vor.u32 %v19249_v4, %v13227_v5 }
 0x185   :  { %v19405_v25 = vld [vmem:[#allocation2 + $0x8ac] sm:$0xf0]  ;;  %3310 = vmatpush.bf16.msra.mxu3 %v12814_v49  ;;  %v19425_v49 = vld [vmem:[#allocation2 + $0x954] sm:$0xf] }
 0x186   :  { %v14089_v26 = vld [vmem:[#allocation2 + $0xa90] sm:$0xf]  ;;  %v13834_v36 = vor.u32 %v19405_v25, %v13833_v24  ;;  %3296 = vmatpush.bf16.msra.mxu2 %v14378_v23  ;;  %v13486_v23 = vor.u32 %v19313_v6, %v13483_v8  ;;  %v13742_v24 = vor.u32 %v19377_v10, %v13739_v11  ;;  %v19241_v25 = vld [vmem:[#allocation2 + $0x394] sm:$0xf] }
 0x187   :  { %v19469_v28 = vld [vmem:[#allocation2 + $0xaac] sm:$0xf0]  ;;  %v19217_v3 = vld [vmem:[#allocation2 + $0x2d4] sm:$0xf] }
 0x188   :  { %v14345_v29 = vld [vmem:[#allocation2 + $0xc90] sm:$0xf]  ;;  %v14090_v43 = vor.u32 %v19469_v28, %v14089_v26  ;;  %3271 = vmatpush.bf16.msra.mxu0 %v13834_v36  ;;  %v13195_v26 = vld [vmem:[#allocation2 + $0x3b0] sm:$0xf0]  ;;  %v13998_v28 = vor.u32 %v19441_v16, %v13995_v42 }
 0x189   :  { %v19533_v30 = vld [vmem:[#allocation2 + $0xcac] sm:$0xf0]  ;;  %3311 = vmatpush.bf16.msra.mxu3 %v12782_v63  ;;  %v13198_v33 = vor.u32 %v19241_v25, %v13195_v26  ;;  %v19233_v36 = vld [vmem:[#allocation2 + $0x354] sm:$0xf]  ;;  %v3093_v26 = vpop.f32.mrf.mxu2 }
 0x18a   :  { %v14346_v44 = vor.u32 %v19533_v30, %v14345_v29  ;;  %v13801_v45 = vld [vmem:[#allocation2 + $0x850] sm:$0xf]  ;;  %3284 = vmatpush.bf16.msra.mxu1 %v14090_v43  ;;  %v13451_v29 = vld [vmem:[#allocation2 + $0x5b0] sm:$0xf0] }
 0x18b   :  { %v19397_v46 = vld [vmem:[#allocation2 + $0x86c] sm:$0xf0]  ;;  %v19369_v30 = vld [vmem:[#allocation2 + $0x794] sm:$0xf]  ;;  %v13454_v35 = vor.u32 %v19305_v27, %v13451_v29 }
 0x18c   :  { %v14057_v47 = vld [vmem:[#allocation2 + $0xa50] sm:$0xf]  ;;  %v13802_v55 = vor.u32 %v19397_v46, %v13801_v45  ;;  %3297 = vmatpush.bf16.msra.mxu2 %v14346_v44  ;;  %v13710_v15 = vor.u32 %v19369_v30, %v13707_v12  ;;  %v19297_v43 = vld [vmem:[#allocation2 + $0x554] sm:$0xf]  ;;  %v13966_v44 = vor.u32 %v19433_v31, %v13963_v32  ;;  %v3106_v12 = vpop.f32.mrf.mxu3 }
 0x18d   :  { %v19461_v50 = vld [vmem:[#allocation2 + $0xa6c] sm:$0xf0]  ;;  %3312 = vmatpush.bf16.msra.mxu3 %v12750_v17  ;;  %v13419_v45 = vld [vmem:[#allocation2 + $0x570] sm:$0xf0] }
 0x18e   :  { %v14313_v51 = vld [vmem:[#allocation2 + $0xc50] sm:$0xf]  ;;  %v14058_v58 = vor.u32 %v19461_v50, %v14057_v47  ;;  %3272 = vmatpush.bf16.msra.mxu0 %v13802_v55  ;;  %v19361_v46 = vld [vmem:[#allocation2 + $0x754] sm:$0xf] }
 0x18f   :  { %v19525_v52 = vld [vmem:[#allocation2 + $0xc6c] sm:$0xf0]  ;;  %v13675_v47 = vld [vmem:[#allocation2 + $0x770] sm:$0xf0] }
 0x190   :  { %v13769_v56 = vld [vmem:[#allocation2 + $0x810] sm:$0xf]  ;;  %v14314_v59 = vor.u32 %v19525_v52, %v14313_v51  ;;  %3285 = vmatpush.bf16.msra.mxu1 %v14058_v58  ;;  %v13931_v50 = vld [vmem:[#allocation2 + $0x970] sm:$0xf0]  ;;  %v13166_v51 = vor.u32 %v19233_v36, %v13163_v39  ;;  %3313 = vmatmul.bf16.vlgmr.msra.gmra.mxu3 %v21004_v19  ;;  %v13422_v52 = vor.u32 %v19297_v43, %v13419_v45 }
 0x191   :  { %v19389_v57 = vld [vmem:[#allocation2 + $0x82c] sm:$0xf0]  ;;  %3357 = vmatpush.bf16.msrb.mxu3 %v13998_v28  ;;  %v13678_v53 = vor.u32 %v19361_v46, %v13675_v47  ;;  %v13131_v55 = vld [vmem:[#allocation2 + $0x330] sm:$0xf0]  ;;  %v3082_v46 = vpop.f32.mrf.mxu1 }
 0x192   :  { %v14025_v60 = vld [vmem:[#allocation2 + $0xa10] sm:$0xf]  ;;  %v13770_v7 = vor.u32 %v19389_v57, %v13769_v56  ;;  %3298 = vmatpush.bf16.msra.mxu2 %v14314_v59  ;;  %v19289_v56 = vld [vmem:[#allocation2 + $0x514] sm:$0xf]  ;;  %v13934_v57 = vor.u32 %v19425_v49, %v13931_v50  ;;  %v13134_v63 = vor.u32 %v19225_v54, %v13131_v55  ;;  %v19174_v46 = vld [vmem:[#allocation2 + $0x174] sm:$0xf0] }
 0x193   :  { %v19453_v61 = vld [vmem:[#allocation2 + $0xa2c] sm:$0xf0]  ;;  %v13387_v58 = vld [vmem:[#allocation2 + $0x530] sm:$0xf0] }
 0x194   :  { %v14281_v62 = vld [vmem:[#allocation2 + $0xc10] sm:$0xf]  ;;  %v14026_v13 = vor.u32 %v19453_v61, %v14025_v60  ;;  %3273 = vmatpush.bf16.msra.mxu0 %v13770_v7  ;;  %v19353_v59 = vld [vmem:[#allocation2 + $0x714] sm:$0xf]  ;;  %v13390_v1 = vor.u32 %v19289_v56, %v13387_v58 }
 0x195   :  { %v19517_v0 = vld [vmem:[#allocation2 + $0xc2c] sm:$0xf0]  ;;  %3358 = vmatpush.bf16.msrb.mxu3 %v13966_v44  ;;  %v13643_v60 = vld [vmem:[#allocation2 + $0x730] sm:$0xf0] }
 0x196   :  { %v14282_v14 = vor.u32 %v19517_v0, %v14281_v62  ;;  %3286 = vmatpush.bf16.msra.mxu1 %v14026_v13  ;;  %v19417_v61 = vld [vmem:[#allocation2 + $0x914] sm:$0xf]  ;;  %v3067_v0 = vpop.f32.mrf.mxu0  ;;  %v13646_v2 = vor.u32 %v19353_v59, %v13643_v60 }
 0x197   :  { %3274 = vmatmul.bf16.vlgmr.msra.gmra.mxu0 %v21022_v40  ;;  %v13899_v62 = vld [vmem:[#allocation2 + $0x930] sm:$0xf0]  ;;  %v3068_v6 = vadd.f32 %v3067_v0, %v21072_v48 }
 0x198   :  { %3299 = vmatpush.bf16.msra.mxu2 %v14282_v14  ;;  %3318 = vmatpush.bf16.msrb.mxu0 %v13230_v21  ;;  %v13099_v4 = vld [vmem:[#allocation2 + $0x2f0] sm:$0xf0]  ;;  %v13902_v7 = vor.u32 %v19417_v61, %v13899_v62  ;;  %v3095_v62 = vpop.f32.mrf.mxu2 }
 0x199   :  { %3287 = vmatmul.bf16.vlgmr.msra.gmra.mxu1 %v21024_v41  ;;  %v19281_v5 = vld [vmem:[#allocation2 + $0x4d4] sm:$0xf]  ;;  %3359 = vmatpush.bf16.msrb.mxu3 %v13934_v57  ;;  %v3081_v16 = vadd.f32 %v3080_v38, %v3068_v6  ;;  %v13102_v42 = vor.u32 %v19217_v3, %v13099_v4  ;;  %v3108_v3 = vpop.f32.mrf.mxu3  ;;  %v19230_v62 = vld [vmem:[#allocation2 + $0x334] sm:$0xf0] }
 0x19a   :  { %3331 = vmatpush.bf16.msrb.mxu1 %v13486_v23  ;;  %v13355_v8 = vld [vmem:[#allocation2 + $0x4f0] sm:$0xf0] }
 0x19b   :  { %3300 = vmatmul.bf16.vlgmr.msra.gmra.mxu2 %v21020_v37  ;;  %v19345_v10 = vld [vmem:[#allocation2 + $0x6d4] sm:$0xf]  ;;  %v13358_v17 = vor.u32 %v19281_v5, %v13355_v8  ;;  %v3094_v30 = vadd.f32 %v3093_v26, %v3081_v16  ;;  %v12977_v8 = vld [vmem:[#allocation2 + $0x1d8] sm:$0xf] }
 0x19c   :  { %3344 = vmatpush.bf16.msrb.mxu2 %v13742_v24  ;;  %3319 = vmatpush.bf16.msrb.mxu0 %v13198_v33  ;;  %v13611_v11 = vld [vmem:[#allocation2 + $0x6f0] sm:$0xf0]  ;;  %v19254_v16 = vld [vmem:[#allocation2 + $0x3f4] sm:$0xf0] }
 0x19d   :  { %v19409_v13 = vld [vmem:[#allocation2 + $0x8d4] sm:$0xf]  ;;  %v13614_v21 = vor.u32 %v19345_v10, %v13611_v11  ;;  %3360 = vmatpush.bf16.msrb.mxu3 %v13902_v7  ;;  %v19190_v10 = vld [vmem:[#allocation2 + $0x1f4] sm:$0xf0] }
 0x19e   :  { %3332 = vmatpush.bf16.msrb.mxu1 %v13454_v35  ;;  %v13867_v14 = vld [vmem:[#allocation2 + $0x8f0] sm:$0xf0]  ;;  %v21079_v35 = vadd.f32 %v3106_v12, %v3094_v30  ;;  %v13201_v30 = vld [vmem:[#allocation2 + $0x398] sm:$0xf] }
 0x19f   :  { %v19209_v23 = vld [vmem:[#allocation2 + $0x294] sm:$0xf]  ;;  %v13870_v48 = vor.u32 %v19409_v13, %v13867_v14  ;;  %v13233_v14 = vld [vmem:[#allocation2 + $0x3d8] sm:$0xf] }
 0x1a0   :  { %3345 = vmatpush.bf16.msrb.mxu2 %v13710_v15  ;;  %3320 = vmatpush.bf16.msrb.mxu0 %v13166_v51  ;;  %v13067_v24 = vld [vmem:[#allocation2 + $0x2b0] sm:$0xf0]  ;;  %v3069_v15 = vpop.f32.mrf.mxu0  ;;  %v19246_v12 = vld [vmem:[#allocation2 + $0x3b4] sm:$0xf0] }
 0x1a1   :  { %v19273_v25 = vld [vmem:[#allocation2 + $0x494] sm:$0xf]  ;;  %v13070_v33 = vor.u32 %v19209_v23, %v13067_v24  ;;  %3361 = vmatpush.bf16.msrb.mxu3 %v13870_v48  ;;  %v12978_v23 = vor.u32 %v19190_v10, %v12977_v8  ;;  %v13234_v48 = vor.u32 %v19254_v16, %v13233_v14  ;;  %v13105_v14 = vld [vmem:[#allocation2 + $0x2d8] sm:$0xf] }
 0x1a2   :  { %3333 = vmatpush.bf16.msrb.mxu1 %v13422_v52  ;;  %v13323_v27 = vld [vmem:[#allocation2 + $0x4b0] sm:$0xf0]  ;;  %v19222_v16 = vld [vmem:[#allocation2 + $0x2f4] sm:$0xf0] }
 0x1a3   :  { %v19337_v28 = vld [vmem:[#allocation2 + $0x694] sm:$0xf]  ;;  %v13326_v36 = vor.u32 %v19273_v25, %v13323_v27 }
 0x1a4   :  { %3346 = vmatpush.bf16.msrb.mxu2 %v13678_v53  ;;  %3321 = vmatpush.bf16.msrb.mxu0 %v13134_v63  ;;  %v13579_v29 = vld [vmem:[#allocation2 + $0x6b0] sm:$0xf0] }
 0x1a5   :  { %v19401_v31 = vld [vmem:[#allocation2 + $0x894] sm:$0xf]  ;;  %v13582_v39 = vor.u32 %v19337_v28, %v13579_v29  ;;  %v12945_v28 = vld [vmem:[#allocation2 + $0x198] sm:$0xf] }
 0x1a6   :  { %3334 = vmatpush.bf16.msrb.mxu1 %v13390_v1  ;;  %v13835_v32 = vld [vmem:[#allocation2 + $0x8b0] sm:$0xf0]  ;;  %v19182_v29 = vld [vmem:[#allocation2 + $0x1b4] sm:$0xf0] }
 0x1a7   :  { %v19201_v43 = vld [vmem:[#allocation2 + $0x254] sm:$0xf]  ;;  %v13838_v47 = vor.u32 %v19401_v31, %v13835_v32 }
 0x1a8   :  { %3347 = vmatpush.bf16.msrb.mxu2 %v13646_v2  ;;  %3322 = vmatpush.bf16.msrb.mxu0 %v13102_v42  ;;  %v13035_v44 = vld [vmem:[#allocation2 + $0x270] sm:$0xf0] }
 0x1a9   :  { %v19265_v45 = vld [vmem:[#allocation2 + $0x454] sm:$0xf]  ;;  %v13038_v54 = vor.u32 %v19201_v43, %v13035_v44  ;;  %3362 = vmatpush.bf16.msrb.mxu3 %v13838_v47  ;;  %v13202_v43 = vor.u32 %v19246_v12, %v13201_v30  ;;  %v13169_v47 = vld [vmem:[#allocation2 + $0x358] sm:$0xf]  ;;  %v3158_v30 = vpop.f32.mrf.mxu3 }
 0x1aa   :  { %3335 = vmatpush.bf16.msrb.mxu1 %v13358_v17  ;;  %v13291_v49 = vld [vmem:[#allocation2 + $0x470] sm:$0xf0]  ;;  %v13073_v12 = vld [vmem:[#allocation2 + $0x298] sm:$0xf] }
 0x1ab   :  { %v19329_v50 = vld [vmem:[#allocation2 + $0x654] sm:$0xf]  ;;  %v13294_v57 = vor.u32 %v19265_v45, %v13291_v49  ;;  %v12913_v45 = vld [vmem:[#allocation2 + $0x158] sm:$0xf] }
 0x1ac   :  { %3348 = vmatpush.bf16.msrb.mxu2 %v13614_v21  ;;  %v13547_v51 = vld [vmem:[#allocation2 + $0x670] sm:$0xf0]  ;;  %3323 = vmatpush.bf16.msrb.mxu0 %v13070_v33  ;;  %v12946_v33 = vor.u32 %v19182_v29, %v12945_v28  ;;  %v19238_v49 = vld [vmem:[#allocation2 + $0x374] sm:$0xf0]  ;;  %v3145_v29 = vpop.f32.mrf.mxu2 }
 0x1ad   :  { %v19393_v52 = vld [vmem:[#allocation2 + $0x854] sm:$0xf]  ;;  %v13550_v58 = vor.u32 %v19329_v50, %v13547_v51  ;;  %v19150_v28 = vld [vmem:[#allocation2 + $0xb4] sm:$0xf0] }
 0x1ae   :  { %v13803_v53 = vld [vmem:[#allocation2 + $0x870] sm:$0xf0]  ;;  %3336 = vmatpush.bf16.msrb.mxu1 %v13326_v36 }
 0x1af   :  { %v19193_v55 = vld [vmem:[#allocation2 + $0x214] sm:$0xf]  ;;  %v13806_v63 = vor.u32 %v19393_v52, %v13803_v53  ;;  %v12914_v52 = vor.u32 %v19174_v46, %v12913_v45 }
 0x1b0   :  { %v13003_v56 = vld [vmem:[#allocation2 + $0x230] sm:$0xf0]  ;;  %3349 = vmatpush.bf16.msrb.mxu2 %v13582_v39  ;;  %3324 = vmatpush.bf16.msrb.mxu0 %v13038_v54 }
 0x1b1   :  { %v19257_v59 = vld [vmem:[#allocation2 + $0x414] sm:$0xf]  ;;  %v13006_v38 = vor.u32 %v19193_v55, %v13003_v56  ;;  %3363 = vmatpush.bf16.msrb.mxu3 %v13806_v63  ;;  %v13170_v56 = vor.u32 %v19238_v49, %v13169_v47  ;;  %v21085_v63 = vld [vmem:[#allocation5] sm:$0xff] }
 0x1b2   :  { %v13259_v60 = vld [vmem:[#allocation2 + $0x430] sm:$0xf0]  ;;  %3337 = vmatpush.bf16.msrb.mxu1 %v13294_v57 }
 0x1b3   :  { %v19321_v61 = vld [vmem:[#allocation2 + $0x614] sm:$0xf]  ;;  %v13262_v11 = vor.u32 %v19257_v59, %v13259_v60  ;;  %v19166_v59 = vld [vmem:[#allocation2 + $0x134] sm:$0xf0]  ;;  %v3119_v60 = vpop.f32.mrf.mxu0 }
 0x1b4   :  { %v13515_v0 = vld [vmem:[#allocation2 + $0x630] sm:$0xf0]  ;;  %3350 = vmatpush.bf16.msrb.mxu2 %v13550_v58  ;;  %3325 = vmatpush.bf16.msrb.mxu0 %v13006_v38  ;;  %v12881_v58 = vld [vmem:[#allocation2 + $0x118] sm:$0xf] }
 0x1b5   :  { %v19385_v1 = vld [vmem:[#allocation2 + $0x814] sm:$0xf]  ;;  %v13518_v13 = vor.u32 %v19321_v61, %v13515_v0  ;;  %v13137_v61 = vld [vmem:[#allocation2 + $0x318] sm:$0xf]  ;;  %v572_v0 = vperm.slane %v21085_v63, 3 }
 0x1b6   :  { %v13771_v2 = vld [vmem:[#allocation2 + $0x830] sm:$0xf0]  ;;  %3338 = vmatpush.bf16.msrb.mxu1 %v13262_v11  ;;  %v13138_v8 = vor.u32 %v19230_v62, %v13137_v61  ;;  %v12849_v11 = vld [vmem:[#allocation2 + $0xd8] sm:$0xf] }
 0x1b7   :  { %v19505_v4 = vld [vmem:[#allocation2 + $0xbd4] sm:$0xf]  ;;  %v13774_v42 = vor.u32 %v19385_v1, %v13771_v2  ;;  %3326 = vmatmul.bf16.vlgmr.msrb.gmra.mxu0 %v21008_v22  ;;  %v21089_v1 = vadd.f32 %v3119_v60, %v21079_v35  ;;  %v12753_v62 = vld [vmem:[#allocation2 + $0x18] sm:$0xf] }
 0x1b8   :  { %v14251_v5 = vld [vmem:[#allocation2 + $0xbf0] sm:$0xf0]  ;;  %3351 = vmatpush.bf16.msrb.mxu2 %v13518_v13  ;;  %v19158_v13 = vld [vmem:[#allocation2 + $0xf4] sm:$0xf0] }
 0x1b9   :  { %v19569_v6 = vld [vmem:[#allocation2 + $0xdd4] sm:$0xf]  ;;  %v14254_v17 = vor.u32 %v19505_v4, %v14251_v5  ;;  %3364 = vmatpush.bf16.msrb.mxu3 %v13774_v42  ;;  %3339 = vmatmul.bf16.vlgmr.msrb.gmra.mxu1 %v21002_v18  ;;  %v12882_v4 = vor.u32 %v19166_v59, %v12881_v58 }
 0x1ba   :  { %v14507_v7 = vld [vmem:[#allocation2 + $0xdf0] sm:$0xf0] }
 0x1bb   :  { %v14510_v21 = vor.u32 %v19569_v6, %v14507_v7  ;;  %v19497_v24 = vld [vmem:[#allocation2 + $0xb94] sm:$0xf]  ;;  %3370 = vmatpush.bf16.msra.mxu0 %v14254_v17  ;;  %3352 = vmatmul.bf16.vlgmr.msrb.gmra.mxu2 %v21006_v20  ;;  %v3132_v7 = vpop.f32.mrf.mxu1 }
 0x1bc   :  { %v14219_v25 = vld [vmem:[#allocation2 + $0xbb0] sm:$0xf0]  ;;  %3396 = vmatpush.bf16.msra.mxu2 %v12978_v23  ;;  %3365 = vmatmul.bf16.vlgmr.msrb.gmra.mxu3 %v21022_v40  ;;  %v3133_v42 = vadd.f32 %v3132_v7, %v572_v0  ;;  %v19318_v7 = vld [vmem:[#allocation2 + $0x5f4] sm:$0xf0] }
 0x1bd   :  { %v19561_v26 = vld [vmem:[#allocation2 + $0xd94] sm:$0xf]  ;;  %v14222_v31 = vor.u32 %v19497_v24, %v14219_v25  ;;  %3383 = vmatpush.bf16.msra.mxu1 %v14510_v21  ;;  %3409 = vmatpush.bf16.msra.mxu3 %v13234_v48  ;;  %v12850_v21 = vor.u32 %v19158_v13, %v12849_v11  ;;  %v19382_v11 = vld [vmem:[#allocation2 + $0x7f4] sm:$0xf0] }
 0x1be   :  { %v14475_v27 = vld [vmem:[#allocation2 + $0xdb0] sm:$0xf0]  ;;  %v14001_v13 = vld [vmem:[#allocation2 + $0x9d8] sm:$0xf] }
 0x1bf   :  { %v14478_v32 = vor.u32 %v19561_v26, %v14475_v27  ;;  %v19489_v15 = vld [vmem:[#allocation2 + $0xb54] sm:$0xf]  ;;  %3371 = vmatpush.bf16.msra.mxu0 %v14222_v31  ;;  %v13106_v26 = vor.u32 %v19222_v16, %v13105_v14  ;;  %v12817_v27 = vld [vmem:[#allocation2 + $0x98] sm:$0xf] }
 0x1c0   :  { %v14187_v36 = vld [vmem:[#allocation2 + $0xb70] sm:$0xf0]  ;;  %3397 = vmatpush.bf16.msra.mxu2 %v12946_v33  ;;  %v19214_v31 = vld [vmem:[#allocation2 + $0x2b4] sm:$0xf0]  ;;  %v3121_v33 = vpop.f32.mrf.mxu0 }
 0x1c1   :  { %v19553_v39 = vld [vmem:[#allocation2 + $0xd54] sm:$0xf]  ;;  %v14190_v50 = vor.u32 %v19489_v15, %v14187_v36  ;;  %3384 = vmatpush.bf16.msra.mxu1 %v14478_v32  ;;  %3410 = vmatpush.bf16.msra.mxu3 %v13202_v43  ;;  %v3146_v32 = vadd.f32 %v3145_v29, %v3133_v42  ;;  %v13074_v49 = vor.u32 %v19214_v31, %v13073_v12  ;;  %v19446_v14 = vld [vmem:[#allocation2 + $0x9f4] sm:$0xf0] }
 0x1c2   :  { %v14443_v44 = vld [vmem:[#allocation2 + $0xd70] sm:$0xf0]  ;;  %v19374_v29 = vld [vmem:[#allocation2 + $0x7b4] sm:$0xf0] }
 0x1c3   :  { %v14446_v51 = vor.u32 %v19553_v39, %v14443_v44  ;;  %v19481_v53 = vld [vmem:[#allocation2 + $0xb14] sm:$0xf]  ;;  %3372 = vmatpush.bf16.msra.mxu0 %v14190_v50  ;;  %v12818_v39 = vor.u32 %v19150_v28, %v12817_v27  ;;  %v21091_v46 = vadd.f32 %v3158_v30, %v3146_v32  ;;  %v3134_v47 = vpop.f32.mrf.mxu1  ;;  %v13713_v27 = vld [vmem:[#allocation2 + $0x798] sm:$0xf] }
 0x1c4   :  { %v14155_v54 = vld [vmem:[#allocation2 + $0xb30] sm:$0xf0]  ;;  %3398 = vmatpush.bf16.msra.mxu2 %v12914_v52  ;;  %v19142_v52 = vld [vmem:[#allocation2 + $0x74] sm:$0xf0] }
 0x1c5   :  { %v19545_v55 = vld [vmem:[#allocation2 + $0xd14] sm:$0xf]  ;;  %v14158_v2 = vor.u32 %v19481_v53, %v14155_v54  ;;  %3385 = vmatpush.bf16.msra.mxu1 %v14446_v51  ;;  %3411 = vmatpush.bf16.msra.mxu3 %v13170_v56  ;;  %v12785_v51 = vld [vmem:[#allocation2 + $0x58] sm:$0xf] }
 0x1c6   :  { %v14411_v57 = vld [vmem:[#allocation2 + $0xd30] sm:$0xf0]  ;;  %v13041_v53 = vld [vmem:[#allocation2 + $0x258] sm:$0xf]  ;;  %v12786_v59 = vor.u32 %v19142_v52, %v12785_v51 }
 0x1c7   :  { %v14414_v3 = vor.u32 %v19545_v55, %v14411_v57  ;;  %v19473_v5 = vld [vmem:[#allocation2 + $0xad4] sm:$0xf]  ;;  %3373 = vmatpush.bf16.msra.mxu0 %v14158_v2  ;;  %v19206_v54 = vld [vmem:[#allocation2 + $0x274] sm:$0xf0] }
 0x1c8   :  { %v14123_v6 = vld [vmem:[#allocation2 + $0xaf0] sm:$0xf0]  ;;  %3399 = vmatpush.bf16.msra.mxu2 %v12882_v4  ;;  %v13042_v0 = vor.u32 %v19206_v54, %v13041_v53  ;;  %v19134_v2 = vld [vmem:[#allocation2 + $0x34] sm:$0xf0] }
 0x1c9   :  { %v19537_v38 = vld [vmem:[#allocation2 + $0xcd4] sm:$0xf]  ;;  %v14126_v35 = vor.u32 %v19473_v5, %v14123_v6  ;;  %3386 = vmatpush.bf16.msra.mxu1 %v14414_v3  ;;  %3412 = vmatpush.bf16.msra.mxu3 %v13138_v8  ;;  %v13009_v3 = vld [vmem:[#allocation2 + $0x218] sm:$0xf]  ;;  %v3147_v5 = vpop.f32.mrf.mxu2  ;;  %v3160_v6 = vpop.f32.mrf.mxu3  ;;  %v12754_v42 = vor.u32 %v19134_v2, %v12753_v62 }
 0x1ca   :  { %v14379_v10 = vld [vmem:[#allocation2 + $0xcf0] sm:$0xf0]  ;;  %v19198_v4 = vld [vmem:[#allocation2 + $0x234] sm:$0xf0] }
 0x1cb   :  { %v14382_v17 = vor.u32 %v19537_v38, %v14379_v10  ;;  %v19465_v23 = vld [vmem:[#allocation2 + $0xa94] sm:$0xf]  ;;  %3374 = vmatpush.bf16.msra.mxu0 %v14126_v35  ;;  %v13489_v38 = vld [vmem:[#allocation2 + $0x5d8] sm:$0xf] }
 0x1cc   :  { %v14091_v24 = vld [vmem:[#allocation2 + $0xab0] sm:$0xf0]  ;;  %3400 = vmatpush.bf16.msra.mxu2 %v12850_v21  ;;  %v13745_v8 = vld [vmem:[#allocation2 + $0x7d8] sm:$0xf]  ;;  %v13010_v21 = vor.u32 %v19198_v4, %v13009_v3  ;;  %v3171_v4 = vpop.f32.mrf.mxu0 }
 0x1cd   :  { %v19529_v25 = vld [vmem:[#allocation2 + $0xc94] sm:$0xf]  ;;  %v14094_v15 = vor.u32 %v19465_v23, %v14091_v24  ;;  %3387 = vmatpush.bf16.msra.mxu1 %v14382_v17  ;;  %3413 = vmatpush.bf16.msra.mxu3 %v13106_v26  ;;  %v14257_v35 = vld [vmem:[#allocation2 + $0xbd8] sm:$0xf]  ;;  %v13490_v23 = vor.u32 %v19318_v7, %v13489_v38  ;;  %v13746_v24 = vor.u32 %v19382_v11, %v13745_v8  ;;  %v3184_v11 = vpop.f32.mrf.mxu1 }
 0x1ce   :  { %v14347_v48 = vld [vmem:[#allocation2 + $0xcb0] sm:$0xf0]  ;;  %v19510_v17 = vld [vmem:[#allocation2 + $0xbf4] sm:$0xf0] }
 0x1cf   :  { %v14350_v36 = vor.u32 %v19529_v25, %v14347_v48  ;;  %v19457_v43 = vld [vmem:[#allocation2 + $0xa54] sm:$0xf]  ;;  %3375 = vmatpush.bf16.msra.mxu0 %v14094_v15  ;;  %v14002_v25 = vor.u32 %v19446_v14, %v14001_v13  ;;  %v13457_v26 = vld [vmem:[#allocation2 + $0x598] sm:$0xf]  ;;  %v14258_v28 = vor.u32 %v19510_v17, %v14257_v35  ;;  %v13714_v15 = vor.u32 %v19374_v29, %v13713_v27 }
 0x1d0   :  { %v14059_v44 = vld [vmem:[#allocation2 + $0xa70] sm:$0xf0]  ;;  %3401 = vmatpush.bf16.msra.mxu2 %v12818_v39  ;;  %v19310_v48 = vld [vmem:[#allocation2 + $0x5b4] sm:$0xf0] }
 0x1d1   :  { %v19521_v45 = vld [vmem:[#allocation2 + $0xc54] sm:$0xf]  ;;  %v14062_v55 = vor.u32 %v19457_v43, %v14059_v44  ;;  %3388 = vmatpush.bf16.msra.mxu1 %v14350_v36  ;;  %3414 = vmatpush.bf16.msra.mxu3 %v13074_v49  ;;  %v13969_v30 = vld [vmem:[#allocation2 + $0x998] sm:$0xf]  ;;  %v13458_v33 = vor.u32 %v19310_v48, %v13457_v26 }
 0x1d2   :  { %v14315_v50 = vld [vmem:[#allocation2 + $0xc70] sm:$0xf0]  ;;  %v19438_v12 = vld [vmem:[#allocation2 + $0x9b4] sm:$0xf0] }
 0x1d3   :  { %v19449_v56 = vld [vmem:[#allocation2 + $0xa14] sm:$0xf]  ;;  %v14318_v58 = vor.u32 %v19521_v45, %v14315_v50  ;;  %3376 = vmatpush.bf16.msra.mxu0 %v14062_v55  ;;  %v14225_v31 = vld [vmem:[#allocation2 + $0xb98] sm:$0xf]  ;;  %v13970_v36 = vor.u32 %v19438_v12, %v13969_v30 }
 0x1d4   :  { %v14027_v57 = vld [vmem:[#allocation2 + $0xa30] sm:$0xf0]  ;;  %3402 = vmatpush.bf16.msra.mxu2 %v12786_v59  ;;  %v19502_v32 = vld [vmem:[#allocation2 + $0xbb4] sm:$0xf0] }
 0x1d5   :  { %v19513_v60 = vld [vmem:[#allocation2 + $0xc14] sm:$0xf]  ;;  %v14030_v10 = vor.u32 %v19449_v56, %v14027_v57  ;;  %3389 = vmatpush.bf16.msra.mxu1 %v14318_v58  ;;  %3415 = vmatpush.bf16.msra.mxu3 %v13042_v0  ;;  %v13425_v39 = vld [vmem:[#allocation2 + $0x558] sm:$0xf]  ;;  %v14226_v45 = vor.u32 %v19502_v32, %v14225_v31  ;;  %v3210_v32 = vpop.f32.mrf.mxu3 }
 0x1d6   :  { %v14283_v61 = vld [vmem:[#allocation2 + $0xc30] sm:$0xf0]  ;;  %v19302_v43 = vld [vmem:[#allocation2 + $0x574] sm:$0xf0] }
 0x1d7   :  { %v14286_v16 = vor.u32 %v19513_v60, %v14283_v61  ;;  %3377 = vmatpush.bf16.msra.mxu0 %v14030_v10  ;;  %v13681_v44 = vld [vmem:[#allocation2 + $0x758] sm:$0xf]  ;;  %v13426_v53 = vor.u32 %v19302_v43, %v13425_v39  ;;  %v3172_v10 = vadd.f32 %v3171_v4, %v21091_v46  ;;  %v3173_v43 = vpop.f32.mrf.mxu0 }
 0x1d8   :  { %3403 = vmatpush.bf16.msra.mxu2 %v12754_v42  ;;  %v19366_v47 = vld [vmem:[#allocation2 + $0x774] sm:$0xf0] }
 0x1d9   :  { %3390 = vmatpush.bf16.msra.mxu1 %v14286_v16  ;;  %3416 = vmatpush.bf16.msra.mxu3 %v13010_v21  ;;  %v13937_v49 = vld [vmem:[#allocation2 + $0x958] sm:$0xf]  ;;  %v13682_v54 = vor.u32 %v19366_v47, %v13681_v44  ;;  %v3185_v21 = vadd.f32 %v3184_v11, %v3172_v10 }
 0x1da   :  { %3378 = vmatmul.bf16.vlgmr.msra.gmra.mxu0 %v21024_v41  ;;  %v19430_v50 = vld [vmem:[#allocation2 + $0x974] sm:$0xf0] }
 0x1db   :  { %3422 = vmatpush.bf16.msrb.mxu0 %v13490_v23  ;;  %v14193_v51 = vld [vmem:[#allocation2 + $0xb58] sm:$0xf]  ;;  %3404 = vmatmul.bf16.vlgmr.msra.gmra.mxu2 %v21004_v19  ;;  %v13938_v55 = vor.u32 %v19430_v50, %v13937_v49 }
 0x1dc   :  { %3448 = vmatpush.bf16.msrb.mxu2 %v14002_v25  ;;  %3391 = vmatmul.bf16.vlgmr.msra.gmra.mxu1 %v21020_v37  ;;  %v19494_v52 = vld [vmem:[#allocation2 + $0xb74] sm:$0xf0] }
 0x1dd   :  { %3435 = vmatpush.bf16.msrb.mxu1 %v13746_v24  ;;  %3461 = vmatpush.bf16.msrb.mxu3 %v14258_v28  ;;  %v13393_v56 = vld [vmem:[#allocation2 + $0x518] sm:$0xf]  ;;  %v14194_v59 = vor.u32 %v19494_v52, %v14193_v51  ;;  %v3197_v28 = vpop.f32.mrf.mxu2  ;;  %v3186_v51 = vpop.f32.mrf.mxu1 }
 0x1de   :  { %3417 = vmatmul.bf16.vlgmr.msra.gmra.mxu3 %v21008_v22  ;;  %v19294_v57 = vld [vmem:[#allocation2 + $0x534] sm:$0xf0]  ;;  %v3198_v31 = vadd.f32 %v3197_v28, %v3185_v21  ;;  %v12915_v51 = vld [vmem:[#allocation2 + $0x178] sm:$0xf0] }
 0x1df   :  { %3423 = vmatpush.bf16.msrb.mxu0 %v13458_v33  ;;  %v13649_v58 = vld [vmem:[#allocation2 + $0x718] sm:$0xf]  ;;  %v13394_v3 = vor.u32 %v19294_v57, %v13393_v56 }
 0x1e0   :  { %3449 = vmatpush.bf16.msrb.mxu2 %v13970_v36  ;;  %v19358_v60 = vld [vmem:[#allocation2 + $0x734] sm:$0xf0]  ;;  %v21098_v39 = vadd.f32 %v3210_v32, %v3198_v31  ;;  %v19242_v31 = vld [vmem:[#allocation2 + $0x39c] sm:$0xf] }
 0x1e1   :  { %3436 = vmatpush.bf16.msrb.mxu1 %v13714_v15  ;;  %3462 = vmatpush.bf16.msrb.mxu3 %v14226_v45  ;;  %v13905_v61 = vld [vmem:[#allocation2 + $0x918] sm:$0xf]  ;;  %v13650_v5 = vor.u32 %v19358_v60, %v13649_v58  ;;  %v13203_v32 = vld [vmem:[#allocation2 + $0x3b8] sm:$0xf0] }
 0x1e2   :  { %v19422_v62 = vld [vmem:[#allocation2 + $0x934] sm:$0xf0] }
 0x1e3   :  { %v14161_v0 = vld [vmem:[#allocation2 + $0xb18] sm:$0xf]  ;;  %3424 = vmatpush.bf16.msrb.mxu0 %v13426_v53  ;;  %v13906_v6 = vor.u32 %v19422_v62, %v13905_v61 }
 0x1e4   :  { %v19486_v2 = vld [vmem:[#allocation2 + $0xb34] sm:$0xf0]  ;;  %3450 = vmatpush.bf16.msrb.mxu2 %v13938_v55 }
 0x1e5   :  { %3437 = vmatpush.bf16.msrb.mxu1 %v13682_v54  ;;  %v13361_v38 = vld [vmem:[#allocation2 + $0x4d8] sm:$0xf]  ;;  %3463 = vmatpush.bf16.msrb.mxu3 %v14194_v59  ;;  %v14162_v13 = vor.u32 %v19486_v2, %v14161_v0  ;;  %v3199_v4 = vpop.f32.mrf.mxu2 }
 0x1e6   :  { %v19286_v7 = vld [vmem:[#allocation2 + $0x4f4] sm:$0xf0]  ;;  %v13139_v4 = vld [vmem:[#allocation2 + $0x338] sm:$0xf0] }
 0x1e7   :  { %v13617_v8 = vld [vmem:[#allocation2 + $0x6d8] sm:$0xf]  ;;  %3425 = vmatpush.bf16.msrb.mxu0 %v13394_v3  ;;  %v13362_v23 = vor.u32 %v19286_v7, %v13361_v38 }
 0x1e8   :  { %v19350_v14 = vld [vmem:[#allocation2 + $0x6f4] sm:$0xf0]  ;;  %3451 = vmatpush.bf16.msrb.mxu2 %v13906_v6 }
 0x1e9   :  { %v13873_v16 = vld [vmem:[#allocation2 + $0x8d8] sm:$0xf]  ;;  %3438 = vmatpush.bf16.msrb.mxu1 %v13650_v5  ;;  %v13618_v24 = vor.u32 %v19350_v14, %v13617_v8  ;;  %3464 = vmatpush.bf16.msrb.mxu3 %v14162_v13  ;;  %v3212_v8 = vpop.f32.mrf.mxu3  ;;  %v19186_v13 = vld [vmem:[#allocation2 + $0x1dc] sm:$0xf] }
 0x1ea   :  { %v19414_v42 = vld [vmem:[#allocation2 + $0x8f4] sm:$0xf0] }
 0x1eb   :  { %v14129_v35 = vld [vmem:[#allocation2 + $0xad8] sm:$0xf]  ;;  %v13874_v25 = vor.u32 %v19414_v42, %v13873_v16  ;;  %3426 = vmatpush.bf16.msrb.mxu0 %v13362_v23  ;;  %v12979_v16 = vld [vmem:[#allocation2 + $0x1f8] sm:$0xf0] }
 0x1ec   :  { %v19478_v17 = vld [vmem:[#allocation2 + $0xaf4] sm:$0xf0]  ;;  %v19250_v42 = vld [vmem:[#allocation2 + $0x3dc] sm:$0xf] }
 0x1ed   :  { %v13329_v26 = vld [vmem:[#allocation2 + $0x498] sm:$0xf]  ;;  %v14130_v46 = vor.u32 %v19478_v17, %v14129_v35  ;;  %3439 = vmatpush.bf16.msrb.mxu1 %v13618_v24  ;;  %3452 = vmatpush.bf16.msrb.mxu2 %v13874_v25  ;;  %v13235_v35 = vld [vmem:[#allocation2 + $0x3f8] sm:$0xf0] }
 0x1ee   :  { %v19278_v48 = vld [vmem:[#allocation2 + $0x4b4] sm:$0xf0]  ;;  %v19314_v23 = vld [vmem:[#allocation2 + $0x5dc] sm:$0xf] }
 0x1ef   :  { %v13585_v27 = vld [vmem:[#allocation2 + $0x698] sm:$0xf]  ;;  %v13330_v36 = vor.u32 %v19278_v48, %v13329_v26  ;;  %3465 = vmatpush.bf16.msrb.mxu3 %v14130_v46  ;;  %v13491_v24 = vld [vmem:[#allocation2 + $0x5f8] sm:$0xf0]  ;;  %v12982_v48 = vor.u32 %v19186_v13, %v12979_v16 }
 0x1f0   :  { %v19342_v29 = vld [vmem:[#allocation2 + $0x6b4] sm:$0xf0] }
 0x1f1   :  { %v13841_v30 = vld [vmem:[#allocation2 + $0x898] sm:$0xf]  ;;  %v13586_v44 = vor.u32 %v19342_v29, %v13585_v27  ;;  %3427 = vmatpush.bf16.msrb.mxu0 %v13330_v36  ;;  %v13238_v27 = vor.u32 %v19250_v42, %v13235_v35  ;;  %v19178_v29 = vld [vmem:[#allocation2 + $0x19c] sm:$0xf]  ;;  %v3236_v42 = vpop.f32.mrf.mxu1 }
 0x1f2   :  { %v19406_v12 = vld [vmem:[#allocation2 + $0x8b4] sm:$0xf0]  ;;  %v12851_v35 = vld [vmem:[#allocation2 + $0xf8] sm:$0xf0] }
 0x1f3   :  { %v14097_v33 = vld [vmem:[#allocation2 + $0xa98] sm:$0xf]  ;;  %v13842_v45 = vor.u32 %v19406_v12, %v13841_v30  ;;  %3440 = vmatpush.bf16.msrb.mxu1 %v13586_v44  ;;  %v13494_v30 = vor.u32 %v19314_v23, %v13491_v24  ;;  %v12947_v12 = vld [vmem:[#allocation2 + $0x1b8] sm:$0xf0]  ;;  %v13206_v44 = vor.u32 %v19242_v31, %v13203_v32 }
 0x1f4   :  { %v19470_v15 = vld [vmem:[#allocation2 + $0xab4] sm:$0xf0]  ;;  %v12950_v43 = vor.u32 %v19178_v29, %v12947_v12  ;;  %v19282_v23 = vld [vmem:[#allocation2 + $0x4dc] sm:$0xf] }
 0x1f5   :  { %v13297_v47 = vld [vmem:[#allocation2 + $0x458] sm:$0xf]  ;;  %v14098_v52 = vor.u32 %v19470_v15, %v14097_v33  ;;  %3453 = vmatpush.bf16.msrb.mxu2 %v13842_v45  ;;  %v19306_v33 = vld [vmem:[#allocation2 + $0x59c] sm:$0xf] }
 0x1f6   :  { %v19270_v49 = vld [vmem:[#allocation2 + $0x474] sm:$0xf0]  ;;  %v13459_v15 = vld [vmem:[#allocation2 + $0x5b8] sm:$0xf0] }
 0x1f7   :  { %v13553_v50 = vld [vmem:[#allocation2 + $0x658] sm:$0xf]  ;;  %v13298_v58 = vor.u32 %v19270_v49, %v13297_v47  ;;  %3466 = vmatpush.bf16.msrb.mxu3 %v14098_v52  ;;  %v19170_v49 = vld [vmem:[#allocation2 + $0x15c] sm:$0xf] }
 0x1f8   :  { %v19334_v53 = vld [vmem:[#allocation2 + $0x674] sm:$0xf0]  ;;  %v19234_v52 = vld [vmem:[#allocation2 + $0x35c] sm:$0xf] }
 0x1f9   :  { %v13809_v54 = vld [vmem:[#allocation2 + $0x858] sm:$0xf]  ;;  %v13554_v61 = vor.u32 %v19334_v53, %v13553_v50  ;;  %3428 = vmatpush.bf16.msrb.mxu0 %v13298_v58  ;;  %v13462_v50 = vor.u32 %v19306_v33, %v13459_v15  ;;  %v13171_v53 = vld [vmem:[#allocation2 + $0x378] sm:$0xf0]  ;;  %v12918_v58 = vor.u32 %v19170_v49, %v12915_v51 }
 0x1fa   :  { %v19398_v55 = vld [vmem:[#allocation2 + $0x874] sm:$0xf0]  ;;  %v13363_v24 = vld [vmem:[#allocation2 + $0x4f8] sm:$0xf0] }
 0x1fb   :  { %v14065_v56 = vld [vmem:[#allocation2 + $0xa58] sm:$0xf]  ;;  %v13810_v62 = vor.u32 %v19398_v55, %v13809_v54  ;;  %3441 = vmatpush.bf16.msrb.mxu1 %v13554_v61  ;;  %v19298_v54 = vld [vmem:[#allocation2 + $0x55c] sm:$0xf]  ;;  %v13366_v12 = vor.u32 %v19282_v23, %v13363_v24 }
 0x1fc   :  { %v19462_v57 = vld [vmem:[#allocation2 + $0xa74] sm:$0xf0]  ;;  %v13427_v55 = vld [vmem:[#allocation2 + $0x578] sm:$0xf0] }
 0x1fd   :  { %v13265_v59 = vld [vmem:[#allocation2 + $0x418] sm:$0xf]  ;;  %v14066_v5 = vor.u32 %v19462_v57, %v14065_v56  ;;  %3454 = vmatpush.bf16.msrb.mxu2 %v13810_v62  ;;  %v19162_v61 = vld [vmem:[#allocation2 + $0x11c] sm:$0xf]  ;;  %v573_v62 = vperm.slane %v21085_v63, 4 }
 0x1fe   :  { %v19262_v60 = vld [vmem:[#allocation2 + $0x434] sm:$0xf0]  ;;  %v19146_v29 = vld [vmem:[#allocation2 + $0x9c] sm:$0xf] }
 0x1ff   :  { %v13521_v0 = vld [vmem:[#allocation2 + $0x618] sm:$0xf]  ;;  %v13266_v14 = vor.u32 %v19262_v60, %v13265_v59  ;;  %3467 = vmatpush.bf16.msrb.mxu3 %v14066_v5  ;;  %v13174_v59 = vor.u32 %v19234_v52, %v13171_v53  ;;  %v19290_v5 = vld [vmem:[#allocation2 + $0x51c] sm:$0xf] }
 0x200   :  { %v19326_v2 = vld [vmem:[#allocation2 + $0x634] sm:$0xf0]  ;;  %v12819_v31 = vld [vmem:[#allocation2 + $0xb8] sm:$0xf0] }
 0x201   :  { %v13777_v3 = vld [vmem:[#allocation2 + $0x818] sm:$0xf]  ;;  %v13522_v17 = vor.u32 %v19326_v2, %v13521_v0  ;;  %3429 = vmatpush.bf16.msrb.mxu0 %v13266_v14  ;;  %v13430_v0 = vor.u32 %v19298_v54, %v13427_v55  ;;  %v12883_v2 = vld [vmem:[#allocation2 + $0x138] sm:$0xf0]  ;;  %v3238_v55 = vpop.f32.mrf.mxu1 }
 0x202   :  { %v19390_v6 = vld [vmem:[#allocation2 + $0x834] sm:$0xf0]  ;;  %v12886_v8 = vor.u32 %v19162_v61, %v12883_v2  ;;  %v19154_v14 = vld [vmem:[#allocation2 + $0xdc] sm:$0xf] }
 0x203   :  { %v14033_v38 = vld [vmem:[#allocation2 + $0xa18] sm:$0xf]  ;;  %v13778_v21 = vor.u32 %v19390_v6, %v13777_v3  ;;  %3442 = vmatpush.bf16.msrb.mxu1 %v13522_v17  ;;  %v19226_v3 = vld [vmem:[#allocation2 + $0x31c] sm:$0xf] }
 0x204   :  { %v19454_v7 = vld [vmem:[#allocation2 + $0xa34] sm:$0xf0]  ;;  %3430 = vmatmul.bf16.vlgmr.msrb.gmra.mxu0 %v21002_v18  ;;  %v13395_v6 = vld [vmem:[#allocation2 + $0x538] sm:$0xf0] }
 0x205   :  { %v14513_v10 = vld [vmem:[#allocation2 + $0xdd8] sm:$0xf]  ;;  %v14034_v25 = vor.u32 %v19454_v7, %v14033_v38  ;;  %3455 = vmatpush.bf16.msrb.mxu2 %v13778_v21  ;;  %v3223_v7 = vpop.f32.mrf.mxu0  ;;  %v13398_v63 = vor.u32 %v19290_v5, %v13395_v6  ;;  %v19218_v17 = vld [vmem:[#allocation2 + $0x2dc] sm:$0xf] }
 0x206   :  { %v19574_v11 = vld [vmem:[#allocation2 + $0xdf4] sm:$0xf0]  ;;  %3443 = vmatmul.bf16.vlgmr.msrb.gmra.mxu1 %v21006_v20  ;;  %v3224_v16 = vadd.f32 %v3223_v7, %v573_v62  ;;  %v13107_v21 = vld [vmem:[#allocation2 + $0x2f8] sm:$0xf0] }
 0x207   :  { %v14514_v26 = vor.u32 %v19574_v11, %v14513_v10  ;;  %v14481_v28 = vld [vmem:[#allocation2 + $0xd98] sm:$0xf]  ;;  %3468 = vmatpush.bf16.msrb.mxu3 %v14034_v25  ;;  %3487 = vmatpush.bf16.msra.mxu1 %v12982_v48  ;;  %v13142_v10 = vor.u32 %v19226_v3, %v13139_v4  ;;  %v12854_v48 = vor.u32 %v19154_v14, %v12851_v35  ;;  %v19210_v32 = vld [vmem:[#allocation2 + $0x29c] sm:$0xf] }
 0x208   :  { %v19566_v46 = vld [vmem:[#allocation2 + $0xdb4] sm:$0xf0]  ;;  %3456 = vmatmul.bf16.vlgmr.msrb.gmra.mxu2 %v21022_v40  ;;  %v3237_v25 = vadd.f32 %v3236_v42, %v3224_v16  ;;  %v13075_v33 = vld [vmem:[#allocation2 + $0x2b8] sm:$0xf0] }
 0x209   :  { %3474 = vmatpush.bf16.msra.mxu0 %v14514_v26  ;;  %v14482_v36 = vor.u32 %v19566_v46, %v14481_v28  ;;  %3500 = vmatpush.bf16.msra.mxu2 %v13238_v27  ;;  %v14449_v45 = vld [vmem:[#allocation2 + $0xd58] sm:$0xf]  ;;  %v13110_v27 = vor.u32 %v19218_v17, %v13107_v21  ;;  %v13078_v51 = vor.u32 %v19210_v32, %v13075_v33  ;;  %v19138_v54 = vld [vmem:[#allocation2 + $0x5c] sm:$0xf] }
 0x20a   :  { %v19558_v47 = vld [vmem:[#allocation2 + $0xd74] sm:$0xf0]  ;;  %3469 = vmatmul.bf16.vlgmr.msrb.gmra.mxu3 %v21024_v41  ;;  %v13299_v61 = vld [vmem:[#allocation2 + $0x478] sm:$0xf0] }
 0x20b   :  { %3513 = vmatpush.bf16.msra.mxu3 %v13494_v30  ;;  %v14450_v56 = vor.u32 %v19558_v47, %v14449_v45  ;;  %v14417_v57 = vld [vmem:[#allocation2 + $0xd18] sm:$0xf]  ;;  %3488 = vmatpush.bf16.msra.mxu1 %v12950_v43  ;;  %v3249_v30 = vpop.f32.mrf.mxu2  ;;  %v19274_v43 = vld [vmem:[#allocation2 + $0x49c] sm:$0xf] }
 0x20c   :  { %v19550_v60 = vld [vmem:[#allocation2 + $0xd34] sm:$0xf0]  ;;  %v3250_v15 = vadd.f32 %v3249_v30, %v3237_v25  ;;  %v19130_v5 = vld [vmem:[#allocation2 + $0x1c] sm:$0xf] }
 0x20d   :  { %3475 = vmatpush.bf16.msra.mxu0 %v14482_v36  ;;  %3501 = vmatpush.bf16.msra.mxu2 %v13206_v44  ;;  %v14418_v38 = vor.u32 %v19550_v60, %v14417_v57  ;;  %v14385_v11 = vld [vmem:[#allocation2 + $0xcd8] sm:$0xf]  ;;  %v3262_v36 = vpop.f32.mrf.mxu3  ;;  %v13331_v44 = vld [vmem:[#allocation2 + $0x4b8] sm:$0xf0]  ;;  %v3225_v49 = vpop.f32.mrf.mxu0 }
 0x20e   :  { %v19542_v13 = vld [vmem:[#allocation2 + $0xcf4] sm:$0xf0]  ;;  %v21105_v47 = vadd.f32 %v3262_v36, %v3250_v15  ;;  %v12787_v57 = vld [vmem:[#allocation2 + $0x78] sm:$0xf0] }
 0x20f   :  { %3514 = vmatpush.bf16.msra.mxu3 %v13462_v50  ;;  %3489 = vmatpush.bf16.msra.mxu1 %v12918_v58  ;;  %v14386_v26 = vor.u32 %v19542_v13, %v14385_v11  ;;  %v14353_v28 = vld [vmem:[#allocation2 + $0xc98] sm:$0xf]  ;;  %v12822_v50 = vor.u32 %v19146_v29, %v12819_v31  ;;  %v19202_v58 = vld [vmem:[#allocation2 + $0x25c] sm:$0xf]  ;;  %v12790_v3 = vor.u32 %v19138_v54, %v12787_v57 }
 0x210   :  { %v19534_v46 = vld [vmem:[#allocation2 + $0xcb4] sm:$0xf0]  ;;  %v19266_v60 = vld [vmem:[#allocation2 + $0x45c] sm:$0xf] }
 0x211   :  { %3476 = vmatpush.bf16.msra.mxu0 %v14450_v56  ;;  %3502 = vmatpush.bf16.msra.mxu2 %v13174_v59  ;;  %v14354_v45 = vor.u32 %v19534_v46, %v14353_v28  ;;  %v14321_v52 = vld [vmem:[#allocation2 + $0xc58] sm:$0xf]  ;;  %v13334_v56 = vor.u32 %v19274_v43, %v13331_v44  ;;  %v13043_v59 = vld [vmem:[#allocation2 + $0x278] sm:$0xf0] }
 0x212   :  { %v19526_v53 = vld [vmem:[#allocation2 + $0xc74] sm:$0xf0]  ;;  %v13046_v4 = vor.u32 %v19202_v58, %v13043_v59  ;;  %v12755_v6 = vld [vmem:[#allocation2 + $0x38] sm:$0xf0] }
 0x213   :  { %3515 = vmatpush.bf16.msra.mxu3 %v13430_v0  ;;  %3490 = vmatpush.bf16.msra.mxu1 %v12886_v8  ;;  %v14322_v62 = vor.u32 %v19526_v53, %v14321_v52  ;;  %v14289_v0 = vld [vmem:[#allocation2 + $0xc18] sm:$0xf]  ;;  %v3251_v7 = vpop.f32.mrf.mxu2  ;;  %v13302_v8 = vor.u32 %v19266_v60, %v13299_v61  ;;  %v19258_v11 = vld [vmem:[#allocation2 + $0x41c] sm:$0xf]  ;;  %v12758_v24 = vor.u32 %v19130_v5, %v12755_v6 }
 0x214   :  { %v19518_v2 = vld [vmem:[#allocation2 + $0xc34] sm:$0xf0]  ;;  %v13267_v13 = vld [vmem:[#allocation2 + $0x438] sm:$0xf0] }
 0x215   :  { %3477 = vmatpush.bf16.msra.mxu0 %v14418_v38  ;;  %3503 = vmatpush.bf16.msra.mxu2 %v13142_v10  ;;  %v19194_v38 = vld [vmem:[#allocation2 + $0x21c] sm:$0xf]  ;;  %v3264_v14 = vpop.f32.mrf.mxu3  ;;  %v14290_v35 = vor.u32 %v19518_v2, %v14289_v0 }
 0x216   :  { %v13011_v10 = vld [vmem:[#allocation2 + $0x238] sm:$0xf0] }
 0x217   :  { %3516 = vmatpush.bf16.msra.mxu3 %v13398_v63  ;;  %3491 = vmatpush.bf16.msra.mxu1 %v12854_v48  ;;  %v19378_v16 = vld [vmem:[#allocation2 + $0x7dc] sm:$0xf]  ;;  %v13014_v25 = vor.u32 %v19194_v38, %v13011_v10  ;;  %v3288_v10 = vpop.f32.mrf.mxu1 }
 0x218   :  { %v13747_v42 = vld [vmem:[#allocation2 + $0x7f8] sm:$0xf0] }
 0x219   :  { %3478 = vmatpush.bf16.msra.mxu0 %v14386_v26  ;;  %3504 = vmatpush.bf16.msra.mxu2 %v13110_v27  ;;  %v19442_v63 = vld [vmem:[#allocation2 + $0x9dc] sm:$0xf]  ;;  %v13270_v27 = vor.u32 %v19258_v11, %v13267_v13  ;;  %v13750_v28 = vor.u32 %v19378_v16, %v13747_v42 }
 0x21a   :  { %v14003_v17 = vld [vmem:[#allocation2 + $0x9f8] sm:$0xf0] }
 0x21b   :  { %3517 = vmatpush.bf16.msra.mxu3 %v13366_v12  ;;  %3492 = vmatpush.bf16.msra.mxu1 %v12822_v50  ;;  %v19506_v21 = vld [vmem:[#allocation2 + $0xbdc] sm:$0xf]  ;;  %v14006_v46 = vor.u32 %v19442_v63, %v14003_v17 }
 0x21c   :  { %v14259_v23 = vld [vmem:[#allocation2 + $0xbf8] sm:$0xf0] }
 0x21d   :  { %3479 = vmatpush.bf16.msra.mxu0 %v14354_v45  ;;  %3505 = vmatpush.bf16.msra.mxu2 %v13078_v51  ;;  %v19570_v26 = vld [vmem:[#allocation2 + $0xddc] sm:$0xf]  ;;  %v14262_v29 = vor.u32 %v19506_v21, %v14259_v23 }
 0x21e   :  { %v14515_v48 = vld [vmem:[#allocation2 + $0xdf8] sm:$0xf0] }
 0x21f   :  { %3518 = vmatpush.bf16.msra.mxu3 %v13334_v56  ;;  %3493 = vmatpush.bf16.msra.mxu1 %v12790_v3  ;;  %v19370_v30 = vld [vmem:[#allocation2 + $0x79c] sm:$0xf]  ;;  %v14518_v32 = vor.u32 %v19570_v26, %v14515_v48 }
 0x220   :  { %v13715_v12 = vld [vmem:[#allocation2 + $0x7b8] sm:$0xf0] }
 0x221   :  { %3480 = vmatpush.bf16.msra.mxu0 %v14322_v62  ;;  %3506 = vmatpush.bf16.msra.mxu2 %v13046_v4  ;;  %v19434_v31 = vld [vmem:[#allocation2 + $0x99c] sm:$0xf]  ;;  %v13718_v45 = vor.u32 %v19370_v30, %v13715_v12  ;;  %v3301_v30 = vpop.f32.mrf.mxu2 }
 0x222   :  { %v13971_v33 = vld [vmem:[#allocation2 + $0x9b8] sm:$0xf0] }
 0x223   :  { %3519 = vmatpush.bf16.msra.mxu3 %v13302_v8  ;;  %v19498_v15 = vld [vmem:[#allocation2 + $0xb9c] sm:$0xf]  ;;  %3494 = vmatpush.bf16.msra.mxu1 %v12758_v24  ;;  %v13974_v49 = vor.u32 %v19434_v31, %v13971_v33  ;;  %v3275_v8 = vpop.f32.mrf.mxu0 }
 0x224   :  { %v14227_v36 = vld [vmem:[#allocation2 + $0xbb8] sm:$0xf0]  ;;  %v3276_v42 = vadd.f32 %v3275_v8, %v21105_v47 }
 0x225   :  { %3481 = vmatpush.bf16.msra.mxu0 %v14290_v35  ;;  %3507 = vmatpush.bf16.msra.mxu2 %v13014_v25  ;;  %v19562_v43 = vld [vmem:[#allocation2 + $0xd9c] sm:$0xf]  ;;  %v14230_v50 = vor.u32 %v19498_v15, %v14227_v36 }
 0x226   :  { %v14483_v44 = vld [vmem:[#allocation2 + $0xdb8] sm:$0xf0]  ;;  %3495 = vmatmul.bf16.vlgmr.msra.gmra.mxu1 %v21004_v19  ;;  %v3289_v25 = vadd.f32 %v3288_v10, %v3276_v42  ;;  %v14969_v10 = vld [vmem:[#allocation7 + $0x380] sm:$0xf] }
 0x227   :  { %3520 = vmatpush.bf16.msra.mxu3 %v13270_v27  ;;  %3539 = vmatpush.bf16.msrb.mxu1 %v14006_v46  ;;  %v19362_v51 = vld [vmem:[#allocation2 + $0x75c] sm:$0xf]  ;;  %v14486_v54 = vor.u32 %v19562_v43, %v14483_v44  ;;  %v21114_v43 = vpop.f32.mrf.mxu3  ;;  %v15993_v42 = vld [vmem:[#allocation7 + $0xb80] sm:$0xf] }
 0x228   :  { %v13683_v52 = vld [vmem:[#allocation2 + $0x778] sm:$0xf0]  ;;  %3482 = vmatmul.bf16.vlgmr.msra.gmra.mxu0 %v21020_v37  ;;  %3508 = vmatmul.bf16.vlgmr.msra.gmra.mxu2 %v21008_v22  ;;  %v21112_v33 = vadd.f32 %v3301_v30, %v3289_v25  ;;  %v19807_v30 = vld [vmem:[#allocation7 + $0x73c] sm:$0xf0] }
 0x229   :  { %3526 = vmatpush.bf16.msrb.mxu0 %v13750_v28  ;;  %3552 = vmatpush.bf16.msrb.mxu2 %v14262_v29  ;;  %v19426_v53 = vld [vmem:[#allocation2 + $0x95c] sm:$0xf]  ;;  %v13686_v60 = vor.u32 %v19362_v51, %v13683_v52 }
 0x22a   :  { %v13939_v55 = vld [vmem:[#allocation2 + $0x978] sm:$0xf0]  ;;  %3521 = vmatmul.bf16.vlgmr.msra.gmra.mxu3 %v21002_v18 }
 0x22b   :  { %3565 = vmatpush.bf16.msrb.mxu3 %v14518_v32  ;;  %v19490_v56 = vld [vmem:[#allocation2 + $0xb5c] sm:$0xf]  ;;  %3540 = vmatpush.bf16.msrb.mxu1 %v13974_v49  ;;  %v13942_v61 = vor.u32 %v19426_v53, %v13939_v55  ;;  %v3290_v49 = vpop.f32.mrf.mxu1 }
 0x22c   :  { %v14195_v57 = vld [vmem:[#allocation2 + $0xb78] sm:$0xf0]  ;;  %v19663_v49 = vld [vmem:[#allocation7 + $0x2bc] sm:$0xf0] }
 0x22d   :  { %v19554_v58 = vld [vmem:[#allocation2 + $0xd5c] sm:$0xf]  ;;  %3527 = vmatpush.bf16.msrb.mxu0 %v13718_v45  ;;  %3553 = vmatpush.bf16.msrb.mxu2 %v14230_v50  ;;  %v14198_v62 = vor.u32 %v19490_v56, %v14195_v57  ;;  %v3277_v45 = vpop.f32.mrf.mxu0 }
 0x22e   :  { %v14451_v59 = vld [vmem:[#allocation2 + $0xd78] sm:$0xf0]  ;;  %v14841_v45 = vld [vmem:[#allocation7 + $0x280] sm:$0xf] }
 0x22f   :  { %v19354_v0 = vld [vmem:[#allocation2 + $0x71c] sm:$0xf]  ;;  %3566 = vmatpush.bf16.msrb.mxu3 %v14486_v54  ;;  %v14454_v4 = vor.u32 %v19554_v58, %v14451_v59  ;;  %3541 = vmatpush.bf16.msrb.mxu1 %v13942_v61 }
 0x230   :  { %v13651_v2 = vld [vmem:[#allocation2 + $0x738] sm:$0xf0] }
 0x231   :  { %v19418_v3 = vld [vmem:[#allocation2 + $0x91c] sm:$0xf]  ;;  %3528 = vmatpush.bf16.msrb.mxu0 %v13686_v60  ;;  %v13654_v18 = vor.u32 %v19354_v0, %v13651_v2  ;;  %3554 = vmatpush.bf16.msrb.mxu2 %v14198_v62 }
 0x232   :  { %v13907_v5 = vld [vmem:[#allocation2 + $0x938] sm:$0xf0] }
 0x233   :  { %v19482_v6 = vld [vmem:[#allocation2 + $0xb1c] sm:$0xf]  ;;  %v13910_v19 = vor.u32 %v19418_v3, %v13907_v5  ;;  %3567 = vmatpush.bf16.msrb.mxu3 %v14454_v4 }
 0x234   :  { %v14163_v22 = vld [vmem:[#allocation2 + $0xb38] sm:$0xf0] }
 0x235   :  { %v19546_v38 = vld [vmem:[#allocation2 + $0xd1c] sm:$0xf]  ;;  %v14166_v11 = vor.u32 %v19482_v6, %v14163_v22  ;;  %3529 = vmatpush.bf16.msrb.mxu0 %v13654_v18  ;;  %3542 = vmatpush.bf16.msrb.mxu1 %v13910_v19  ;;  %v3303_v22 = vpop.f32.mrf.mxu2  ;;  %v19695_v19 = vld [vmem:[#allocation7 + $0x3bc] sm:$0xf0] }
 0x236   :  { %v14419_v7 = vld [vmem:[#allocation2 + $0xd38] sm:$0xf0]  ;;  %v14970_v25 = vor.u32 %v19695_v19, %v14969_v10  ;;  %v14713_v22 = vld [vmem:[#allocation7 + $0x180] sm:$0xf] }
 0x237   :  { %v19346_v13 = vld [vmem:[#allocation2 + $0x6dc] sm:$0xf]  ;;  %v14422_v63 = vor.u32 %v19546_v38, %v14419_v7  ;;  %3555 = vmatpush.bf16.msrb.mxu2 %v14166_v11  ;;  %v15481_v11 = vld [vmem:[#allocation7 + $0x780] sm:$0xf] }
 0x238   :  { %v13619_v14 = vld [vmem:[#allocation2 + $0x6f8] sm:$0xf0]  ;;  %v19759_v10 = vld [vmem:[#allocation7 + $0x5bc] sm:$0xf0] }
 0x239   :  { %v19410_v16 = vld [vmem:[#allocation2 + $0x8dc] sm:$0xf]  ;;  %v13622_v26 = vor.u32 %v19346_v13, %v13619_v14  ;;  %3568 = vmatpush.bf16.msrb.mxu3 %v14422_v63  ;;  %v3316_v13 = vpop.f32.mrf.mxu3  ;;  %v19951_v63 = vld [vmem:[#allocation7 + $0xbbc] sm:$0xf0] }
 0x23a   :  { %v13875_v35 = vld [vmem:[#allocation2 + $0x8f8] sm:$0xf0]  ;;  %v15737_v19 = vld [vmem:[#allocation7 + $0x980] sm:$0xf] }
 0x23b   :  { %v19474_v17 = vld [vmem:[#allocation2 + $0xadc] sm:$0xf]  ;;  %v13878_v48 = vor.u32 %v19410_v16, %v13875_v35  ;;  %3530 = vmatpush.bf16.msrb.mxu0 %v13622_v26  ;;  %v19823_v16 = vld [vmem:[#allocation7 + $0x7bc] sm:$0xf0] }
 0x23c   :  { %v14131_v21 = vld [vmem:[#allocation2 + $0xaf8] sm:$0xf0]  ;;  %v15482_v26 = vor.u32 %v19823_v16, %v15481_v11  ;;  %v19887_v11 = vld [vmem:[#allocation7 + $0x9bc] sm:$0xf0] }
 0x23d   :  { %v19538_v23 = vld [vmem:[#allocation2 + $0xcdc] sm:$0xf]  ;;  %v14134_v27 = vor.u32 %v19474_v17, %v14131_v21  ;;  %3543 = vmatpush.bf16.msrb.mxu1 %v13878_v48  ;;  %v16505_v21 = vld [vmem:[#allocation7 + $0xf80] sm:$0xf]  ;;  %v15994_v48 = vor.u32 %v19951_v63, %v15993_v42  ;;  %v15738_v63 = vor.u32 %v19887_v11, %v15737_v19  ;;  %v21131_v19 = vld [vmem:[#allocation5] sm:$0xff] }
 0x23e   :  { %v14387_v24 = vld [vmem:[#allocation2 + $0xcf8] sm:$0xf0]  ;;  %v16249_v13 = vld [vmem:[#allocation7 + $0xd80] sm:$0xf]  ;;  %v574_v11 = vperm.slane %v21131_v19, 5 }
 0x23f   :  { %v19338_v28 = vld [vmem:[#allocation2 + $0x69c] sm:$0xf]  ;;  %v14390_v47 = vor.u32 %v19538_v23, %v14387_v24  ;;  %3556 = vmatpush.bf16.msrb.mxu2 %v14134_v27  ;;  %v20079_v23 = vld [vmem:[#allocation7 + $0xfbc] sm:$0xf0] }
 0x240   :  { %v13587_v46 = vld [vmem:[#allocation2 + $0x6b8] sm:$0xf0]  ;;  %v14905_v27 = vld [vmem:[#allocation7 + $0x300] sm:$0xf] }
 0x241   :  { %v19402_v29 = vld [vmem:[#allocation2 + $0x89c] sm:$0xf]  ;;  %v13590_v44 = vor.u32 %v19338_v28, %v13587_v46  ;;  %3569 = vmatpush.bf16.msrb.mxu3 %v14390_v47  ;;  %v19679_v28 = vld [vmem:[#allocation7 + $0x33c] sm:$0xf0] }
 0x242   :  { %v13843_v12 = vld [vmem:[#allocation2 + $0x8b8] sm:$0xf0]  ;;  %v15417_v46 = vld [vmem:[#allocation7 + $0x700] sm:$0xf] }
 0x243   :  { %v19466_v31 = vld [vmem:[#allocation2 + $0xa9c] sm:$0xf]  ;;  %v13846_v50 = vor.u32 %v19402_v29, %v13843_v12  ;;  %3531 = vmatpush.bf16.msrb.mxu0 %v13590_v44  ;;  %v16506_v29 = vor.u32 %v20079_v23, %v16505_v21  ;;  %v15929_v47 = vld [vmem:[#allocation7 + $0xb00] sm:$0xf]  ;;  %v21124_v23 = vpop.f32.mrf.mxu2 }
 0x244   :  { %v14099_v32 = vld [vmem:[#allocation2 + $0xab8] sm:$0xf0]  ;;  %v19935_v12 = vld [vmem:[#allocation7 + $0xb3c] sm:$0xf0] }
 0x245   :  { %v19530_v15 = vld [vmem:[#allocation2 + $0xc9c] sm:$0xf]  ;;  %v14102_v51 = vor.u32 %v19466_v31, %v14099_v32  ;;  %3544 = vmatpush.bf16.msrb.mxu1 %v13846_v50  ;;  %v16441_v31 = vld [vmem:[#allocation7 + $0xf00] sm:$0xf]  ;;  %v15930_v44 = vor.u32 %v19935_v12, %v15929_v47 }
 0x246   :  { %v14355_v36 = vld [vmem:[#allocation2 + $0xcb8] sm:$0xf0]  ;;  %v20063_v32 = vld [vmem:[#allocation7 + $0xf3c] sm:$0xf0] }
 0x247   :  { %v19330_v52 = vld [vmem:[#allocation2 + $0x65c] sm:$0xf]  ;;  %v14358_v55 = vor.u32 %v19530_v15, %v14355_v36  ;;  %3557 = vmatpush.bf16.msrb.mxu2 %v14102_v51  ;;  %v14906_v15 = vor.u32 %v19679_v28, %v14905_v27  ;;  %v15418_v36 = vor.u32 %v19807_v30, %v15417_v46  ;;  %v15353_v50 = vld [vmem:[#allocation7 + $0x680] sm:$0xf]  ;;  %v16442_v51 = vor.u32 %v20063_v32, %v16441_v31  ;;  %v21126_v27 = vpop.f32.mrf.mxu3 }
 0x248   :  { %v13555_v53 = vld [vmem:[#allocation2 + $0x678] sm:$0xf0]  ;;  %v15161_v21 = vld [vmem:[#allocation7 + $0x500] sm:$0xf] }
 0x249   :  { %v19394_v54 = vld [vmem:[#allocation2 + $0x85c] sm:$0xf]  ;;  %v13558_v61 = vor.u32 %v19330_v52, %v13555_v53  ;;  %3570 = vmatpush.bf16.msrb.mxu3 %v14358_v55  ;;  %v19791_v52 = vld [vmem:[#allocation7 + $0x6bc] sm:$0xf0] }
 0x24a   :  { %v13811_v56 = vld [vmem:[#allocation2 + $0x878] sm:$0xf0]  ;;  %v15865_v53 = vld [vmem:[#allocation7 + $0xa80] sm:$0xf] }
 0x24b   :  { %v19458_v57 = vld [vmem:[#allocation2 + $0xa5c] sm:$0xf]  ;;  %v13814_v2 = vor.u32 %v19394_v54, %v13811_v56  ;;  %3532 = vmatpush.bf16.msrb.mxu0 %v13558_v61  ;;  %v19919_v54 = vld [vmem:[#allocation7 + $0xabc] sm:$0xf0] }
 0x24c   :  { %v14067_v58 = vld [vmem:[#allocation2 + $0xa78] sm:$0xf0]  ;;  %v16377_v55 = vld [vmem:[#allocation7 + $0xe80] sm:$0xf] }
 0x24d   :  { %v19522_v59 = vld [vmem:[#allocation2 + $0xc5c] sm:$0xf]  ;;  %v14070_v3 = vor.u32 %v19458_v57, %v14067_v58  ;;  %3545 = vmatpush.bf16.msrb.mxu1 %v13814_v2  ;;  %v20047_v56 = vld [vmem:[#allocation7 + $0xebc] sm:$0xf0]  ;;  %v14842_v57 = vor.u32 %v19663_v49, %v14841_v45  ;;  %v15354_v58 = vor.u32 %v19791_v52, %v15353_v50 }
 0x24e   :  { %v14323_v60 = vld [vmem:[#allocation2 + $0xc78] sm:$0xf0]  ;;  %v15289_v61 = vld [vmem:[#allocation7 + $0x600] sm:$0xf] }
 0x24f   :  { %v19322_v62 = vld [vmem:[#allocation2 + $0x61c] sm:$0xf]  ;;  %v14326_v38 = vor.u32 %v19522_v59, %v14323_v60  ;;  %3558 = vmatpush.bf16.msrb.mxu2 %v14070_v3  ;;  %v15866_v59 = vor.u32 %v19919_v54, %v15865_v53  ;;  %v14777_v60 = vld [vmem:[#allocation7 + $0x200] sm:$0xf] }
 0x250   :  { %v13523_v0 = vld [vmem:[#allocation2 + $0x638] sm:$0xf0]  ;;  %v15801_v2 = vld [vmem:[#allocation7 + $0xa00] sm:$0xf] }
 0x251   :  { %v19386_v4 = vld [vmem:[#allocation2 + $0x81c] sm:$0xf]  ;;  %v13526_v14 = vor.u32 %v19322_v62, %v13523_v0  ;;  %3571 = vmatpush.bf16.msrb.mxu3 %v14326_v38  ;;  %v16378_v62 = vor.u32 %v20047_v56, %v16377_v55  ;;  %v19775_v0 = vld [vmem:[#allocation7 + $0x63c] sm:$0xf0] }
 0x252   :  { %v13779_v5 = vld [vmem:[#allocation2 + $0x838] sm:$0xf0]  ;;  %v16313_v3 = vld [vmem:[#allocation7 + $0xe00] sm:$0xf] }
 0x253   :  { %v19450_v6 = vld [vmem:[#allocation2 + $0xa1c] sm:$0xf]  ;;  %v13782_v35 = vor.u32 %v19386_v4, %v13779_v5  ;;  %3533 = vmatpush.bf16.msrb.mxu0 %v13526_v14  ;;  %v21120_v5 = vpop.f32.mrf.mxu0  ;;  %v19631_v38 = vld [vmem:[#allocation7 + $0x1bc] sm:$0xf0] }
 0x254   :  { %v14035_v7 = vld [vmem:[#allocation2 + $0xa38] sm:$0xf0]  ;;  %v20015_v14 = vld [vmem:[#allocation7 + $0xdbc] sm:$0xf0]  ;;  %v14714_v16 = vor.u32 %v19631_v38, %v14713_v22  ;;  %v3578_v22 = vmax.f32 %v21052_v34, 0.0  ;;  %v3579_v38 = vmax.f32 %v21069_v9, 0.0 }
 0x255   :  { %v19514_v18 = vld [vmem:[#allocation2 + $0xc1c] sm:$0xf]  ;;  %v14038_v17 = vor.u32 %v19450_v6, %v14035_v7  ;;  %3546 = vmatpush.bf16.msrb.mxu1 %v13782_v35  ;;  %v15225_v7 = vld [vmem:[#allocation7 + $0x580] sm:$0xf] }
 0x256   :  { %v14291_v8 = vld [vmem:[#allocation2 + $0xc38] sm:$0xf0]  ;;  %3534 = vmatmul.bf16.vlgmr.msrb.gmra.mxu0 %v21006_v20  ;;  %v19647_v20 = vld [vmem:[#allocation7 + $0x23c] sm:$0xf0]  ;;  %v15226_v42 = vor.u32 %v19759_v10, %v15225_v7  ;;  %v3580_v10 = vmax.f32 %v21089_v1, 0.0  ;;  %v21137_v1 = vpack.c.bf16 %v3579_v38, %v3579_v38 }
 0x257   :  { %v14294_v24 = vor.u32 %v19514_v18, %v14291_v8  ;;  %3559 = vmatpush.bf16.msrb.mxu2 %v14038_v17  ;;  %9774 = vmatpush.bf16.msra.mxu0 %v14970_v25  ;;  %v14778_v4 = vor.u32 %v19647_v20, %v14777_v60  ;;  %v21122_v18 = vpop.f32.mrf.mxu1  ;;  %v14649_v35 = vld [vmem:[#allocation7 + $0x100] sm:$0xf]  ;;  %v3355_v60 = vpop.f32.mrf.mxu2 }
 0x258   :  { %3547 = vmatmul.bf16.vlgmr.msrb.gmra.mxu1 %v21022_v40  ;;  %v19903_v40 = vld [vmem:[#allocation7 + $0xa3c] sm:$0xf0] }
 0x259   :  { %3572 = vmatpush.bf16.msrb.mxu3 %v14294_v24  ;;  %9787 = vmatpush.bf16.msra.mxu1 %v15482_v26  ;;  %v15802_v6 = vor.u32 %v19903_v40, %v15801_v2  ;;  %v19615_v17 = vld [vmem:[#allocation7 + $0x13c] sm:$0xf0]  ;;  %v16250_v24 = vor.u32 %v20015_v14, %v16249_v13  ;;  %v3368_v2 = vpop.f32.mrf.mxu3 }
 0x25a   :  { %3560 = vmatmul.bf16.vlgmr.msrb.gmra.mxu2 %v21024_v41  ;;  %v20031_v41 = vld [vmem:[#allocation7 + $0xe3c] sm:$0xf0] }
 0x25b   :  { %9800 = vmatpush.bf16.msra.mxu2 %v15994_v48  ;;  %9775 = vmatpush.bf16.msra.mxu0 %v14906_v15  ;;  %v16314_v8 = vor.u32 %v20031_v41, %v16313_v3  ;;  %v19743_v25 = vld [vmem:[#allocation7 + $0x53c] sm:$0xf0]  ;;  %v3329_v30 = vpop.f32.mrf.mxu0 }
 0x25c   :  { %3573 = vmatmul.bf16.vlgmr.msrb.gmra.mxu3 %v21020_v37  ;;  %v15290_v37 = vor.u32 %v19775_v0, %v15289_v61  ;;  %v15673_v26 = vld [vmem:[#allocation7 + $0x900] sm:$0xf]  ;;  %v15162_v47 = vor.u32 %v19743_v25, %v15161_v21 }
 0x25d   :  { %9813 = vmatpush.bf16.msra.mxu3 %v16506_v29  ;;  %9788 = vmatpush.bf16.msra.mxu1 %v15418_v36  ;;  %v19871_v48 = vld [vmem:[#allocation7 + $0x93c] sm:$0xf0]  ;;  %v14650_v29 = vor.u32 %v19615_v17, %v14649_v35 }
 0x25e   :  { %v16185_v28 = vld [vmem:[#allocation7 + $0xd00] sm:$0xf]  ;;  %v15674_v12 = vor.u32 %v19871_v48, %v15673_v26  ;;  %v21139_v26 = vpack.c.bf16 %v3580_v10, %v3580_v10  ;;  %v3315_v48 = vadd.f32 %v21114_v43, %v574_v11 }
 0x25f   :  { %9801 = vmatpush.bf16.msra.mxu2 %v15930_v44  ;;  %9776 = vmatpush.bf16.msra.mxu0 %v14842_v57  ;;  %v19999_v46 = vld [vmem:[#allocation7 + $0xd3c] sm:$0xf0]  ;;  %v3342_v36 = vpop.f32.mrf.mxu1 }
 0x260   :  { %v14585_v31 = vld [vmem:[#allocation7 + $0x80] sm:$0xf]  ;;  %v16186_v44 = vor.u32 %v19999_v46, %v16185_v28 }
 0x261   :  { %9814 = vmatpush.bf16.msra.mxu3 %v16442_v51  ;;  %9789 = vmatpush.bf16.msra.mxu1 %v15354_v58  ;;  %v19599_v32 = vld [vmem:[#allocation7 + $0xbc] sm:$0xf0]  ;;  %v21153_v10 = vpop.f32.mrf.mxu3 }
 0x262   :  { %v15097_v15 = vld [vmem:[#allocation7 + $0x480] sm:$0xf]  ;;  %v14586_v53 = vor.u32 %v19599_v32, %v14585_v31 }
 0x263   :  { %9802 = vmatpush.bf16.msra.mxu2 %v15866_v59  ;;  %9777 = vmatpush.bf16.msra.mxu0 %v14778_v4  ;;  %v19727_v45 = vld [vmem:[#allocation7 + $0x4bc] sm:$0xf0] }
 0x264   :  { %v15609_v49 = vld [vmem:[#allocation7 + $0x880] sm:$0xf]  ;;  %v15098_v55 = vor.u32 %v19727_v45, %v15097_v15  ;;  %v3328_v15 = vadd.f32 %v21120_v5, %v3315_v48 }
 0x265   :  { %9815 = vmatpush.bf16.msra.mxu3 %v16378_v62  ;;  %9790 = vmatpush.bf16.msra.mxu1 %v15290_v37  ;;  %v19855_v50 = vld [vmem:[#allocation7 + $0x8bc] sm:$0xf0] }
 0x266   :  { %v16121_v51 = vld [vmem:[#allocation7 + $0xc80] sm:$0xf]  ;;  %v15610_v56 = vor.u32 %v19855_v50, %v15609_v49 }
 0x267   :  { %9803 = vmatpush.bf16.msra.mxu2 %v15802_v6  ;;  %9778 = vmatpush.bf16.msra.mxu0 %v14714_v16  ;;  %v19983_v52 = vld [vmem:[#allocation7 + $0xcbc] sm:$0xf0] }
 0x268   :  { %v14521_v54 = vld [vmem:[#allocation7] sm:$0xf]  ;;  %v16122_v20 = vor.u32 %v19983_v52, %v16121_v51 }
 0x269   :  { %9816 = vmatpush.bf16.msra.mxu3 %v16314_v8  ;;  %9791 = vmatpush.bf16.msra.mxu1 %v15226_v42  ;;  %v19583_v57 = vld [vmem:[#allocation7 + $0x3c] sm:$0xf0] }
 0x26a   :  { %v15033_v58 = vld [vmem:[#allocation7 + $0x400] sm:$0xf]  ;;  %v14522_v4 = vor.u32 %v19583_v57, %v14521_v54  ;;  %v3379_v54 = vpop.f32.mrf.mxu0 }
 0x26b   :  { %9804 = vmatpush.bf16.msra.mxu2 %v15738_v63  ;;  %9779 = vmatpush.bf16.msra.mxu0 %v14650_v29  ;;  %v19711_v59 = vld [vmem:[#allocation7 + $0x43c] sm:$0xf0]  ;;  %v3581_v63 = vmax.f32 %v21098_v39, 0.0 }
 0x26c   :  { %v15545_v61 = vld [vmem:[#allocation7 + $0x800] sm:$0xf]  ;;  %v15034_v7 = vor.u32 %v19711_v59, %v15033_v58  ;;  %v3392_v58 = vpop.f32.mrf.mxu1 }
 0x26d   :  { %9817 = vmatpush.bf16.msra.mxu3 %v16250_v24  ;;  %9792 = vmatpush.bf16.msra.mxu1 %v15162_v47  ;;  %v19839_v62 = vld [vmem:[#allocation7 + $0x83c] sm:$0xf0]  ;;  %v21135_v24 = vpack.c.bf16 %v3578_v22, %v3578_v22  ;;  %v21142_v29 = vpack.c.bf16 %v3581_v63, %v3581_v63 }
 0x26e   :  { %v16057_v0 = vld [vmem:[#allocation7 + $0xc00] sm:$0xf]  ;;  %v15546_v8 = vor.u32 %v19839_v62, %v15545_v61 }
 0x26f   :  { %9805 = vmatpush.bf16.msra.mxu2 %v15674_v12  ;;  %v19967_v40 = vld [vmem:[#allocation7 + $0xc3c] sm:$0xf0]  ;;  %9780 = vmatpush.bf16.msra.mxu0 %v14586_v53 }
 0x270   :  { %v17017_v3 = vld [vmem:[#allocation7 + $0x1380] sm:$0xf]  ;;  %v16058_v13 = vor.u32 %v19967_v40, %v16057_v0 }
 0x271   :  { %9818 = vmatpush.bf16.msra.mxu3 %v16186_v44  ;;  %v20207_v41 = vld [vmem:[#allocation7 + $0x13bc] sm:$0xf0]  ;;  %9793 = vmatpush.bf16.msra.mxu1 %v15098_v55 }
 0x272   :  { %v17529_v37 = vld [vmem:[#allocation7 + $0x1780] sm:$0xf]  ;;  %v17018_v14 = vor.u32 %v20207_v41, %v17017_v3  ;;  %v3381_v11 = vpop.f32.mrf.mxu0 }
 0x273   :  { %v20335_v6 = vld [vmem:[#allocation7 + $0x17bc] sm:$0xf0]  ;;  %9806 = vmatpush.bf16.msra.mxu2 %v15610_v56  ;;  %9781 = vmatpush.bf16.msra.mxu0 %v14522_v4  ;;  %v3341_v56 = vadd.f32 %v21122_v18, %v3328_v15  ;;  %v19687_v15 = vld [vmem:[#allocation7 + $0x384] sm:$0xf] }
 0x274   :  { %v18041_v16 = vld [vmem:[#allocation7 + $0x1b80] sm:$0xf]  ;;  %v17530_v34 = vor.u32 %v20335_v6, %v17529_v37 }
 0x275   :  { %9819 = vmatpush.bf16.msra.mxu3 %v16122_v20  ;;  %v20463_v42 = vld [vmem:[#allocation7 + $0x1bbc] sm:$0xf0]  ;;  %9794 = vmatpush.bf16.msra.mxu1 %v15034_v7  ;;  %v3354_v40 = vadd.f32 %v21124_v23, %v3341_v56  ;;  %v21151_v7 = vpop.f32.mrf.mxu2 }
 0x276   :  { %v16953_v35 = vld [vmem:[#allocation7 + $0x1300] sm:$0xf]  ;;  %v18042_v25 = vor.u32 %v20463_v42, %v18041_v16  ;;  %9782 = vmatmul.bf16.vlgmr.msra.gmra.mxu0 %v21135_v24  ;;  %v3394_v42 = vpop.f32.mrf.mxu1 }
 0x277   :  { %v20191_v9 = vld [vmem:[#allocation7 + $0x133c] sm:$0xf0]  ;;  %9807 = vmatpush.bf16.msra.mxu2 %v15546_v8  ;;  %9826 = vmatpush.bf16.msrb.mxu0 %v17018_v14  ;;  %v19783_v42 = vld [vmem:[#allocation7 + $0x684] sm:$0xf] }
 0x278   :  { %v17465_v17 = vld [vmem:[#allocation7 + $0x1700] sm:$0xf]  ;;  %v16954_v39 = vor.u32 %v20191_v9, %v16953_v35  ;;  %9795 = vmatmul.bf16.vlgmr.msra.gmra.mxu1 %v21137_v1 }
 0x279   :  { %v20319_v21 = vld [vmem:[#allocation7 + $0x173c] sm:$0xf0]  ;;  %9820 = vmatpush.bf16.msra.mxu3 %v16058_v13  ;;  %9839 = vmatpush.bf16.msrb.mxu1 %v17530_v34  ;;  %v3367_v13 = vadd.f32 %v21126_v27, %v3354_v40  ;;  %v19799_v40 = vld [vmem:[#allocation7 + $0x704] sm:$0xf] }
 0x27a   :  { %v17977_v28 = vld [vmem:[#allocation7 + $0x1b00] sm:$0xf]  ;;  %v17466_v30 = vor.u32 %v20319_v21, %v17465_v17  ;;  %9808 = vmatmul.bf16.vlgmr.msra.gmra.mxu2 %v21139_v26 }
 0x27b   :  { %v20447_v46 = vld [vmem:[#allocation7 + $0x1b3c] sm:$0xf0]  ;;  %9852 = vmatpush.bf16.msrb.mxu2 %v18042_v25  ;;  %9827 = vmatpush.bf16.msrb.mxu0 %v16954_v39  ;;  %v3380_v9 = vadd.f32 %v3379_v54, %v3367_v13 }
 0x27c   :  { %v16889_v47 = vld [vmem:[#allocation7 + $0x1280] sm:$0xf]  ;;  %9821 = vmatmul.bf16.vlgmr.msra.gmra.mxu3 %v21142_v29  ;;  %v17978_v43 = vor.u32 %v20447_v46, %v17977_v28 }
 0x27d   :  { %v20175_v12 = vld [vmem:[#allocation7 + $0x12bc] sm:$0xf0]  ;;  %9840 = vmatpush.bf16.msrb.mxu1 %v17466_v30 }
 0x27e   :  { %v17401_v31 = vld [vmem:[#allocation7 + $0x1680] sm:$0xf]  ;;  %v16890_v36 = vor.u32 %v20175_v12, %v16889_v47 }
 0x27f   :  { %v20303_v32 = vld [vmem:[#allocation7 + $0x16bc] sm:$0xf0]  ;;  %9853 = vmatpush.bf16.msrb.mxu2 %v17978_v43 }
 0x280   :  { %v17913_v44 = vld [vmem:[#allocation7 + $0x1a80] sm:$0xf]  ;;  %v17402_v49 = vor.u32 %v20303_v32, %v17401_v31  ;;  %9828 = vmatpush.bf16.msrb.mxu0 %v16890_v36  ;;  %v3393_v32 = vadd.f32 %v3392_v58, %v3380_v9  ;;  %v14971_v36 = vld [vmem:[#allocation7 + $0x3c0] sm:$0xf0] }
 0x281   :  { %v20431_v45 = vld [vmem:[#allocation7 + $0x1abc] sm:$0xf0] }
 0x282   :  { %v16825_v50 = vld [vmem:[#allocation7 + $0x1200] sm:$0xf]  ;;  %v17914_v55 = vor.u32 %v20431_v45, %v17913_v44  ;;  %9841 = vmatpush.bf16.msrb.mxu1 %v17402_v49  ;;  %v3407_v44 = vpop.f32.mrf.mxu2  ;;  %v3582_v49 = vmax.f32 %v21112_v33, 0.0  ;;  %v19671_v33 = vld [vmem:[#allocation7 + $0x304] sm:$0xf] }
 0x283   :  { %v20159_v51 = vld [vmem:[#allocation7 + $0x123c] sm:$0xf0]  ;;  %v19623_v44 = vld [vmem:[#allocation7 + $0x184] sm:$0xf] }
 0x284   :  { %v17337_v52 = vld [vmem:[#allocation7 + $0x1600] sm:$0xf]  ;;  %v16826_v57 = vor.u32 %v20159_v51, %v16825_v50  ;;  %9854 = vmatpush.bf16.msrb.mxu2 %v17914_v55  ;;  %v19815_v50 = vld [vmem:[#allocation7 + $0x784] sm:$0xf] }
 0x285   :  { %v20287_v53 = vld [vmem:[#allocation7 + $0x163c] sm:$0xf0]  ;;  %v15483_v51 = vld [vmem:[#allocation7 + $0x7c0] sm:$0xf0] }
 0x286   :  { %v17849_v59 = vld [vmem:[#allocation7 + $0x1a00] sm:$0xf]  ;;  %v17338_v60 = vor.u32 %v20287_v53, %v17337_v52  ;;  %9829 = vmatpush.bf16.msrb.mxu0 %v16826_v57  ;;  %v3420_v53 = vpop.f32.mrf.mxu3  ;;  %v19943_v57 = vld [vmem:[#allocation7 + $0xb84] sm:$0xf] }
 0x287   :  { %v20415_v5 = vld [vmem:[#allocation7 + $0x1a3c] sm:$0xf0]  ;;  %v21165_v53 = vpop.f32.mrf.mxu1 }
 0x288   :  { %v16761_v20 = vld [vmem:[#allocation7 + $0x1180] sm:$0xf]  ;;  %v17850_v2 = vor.u32 %v20415_v5, %v17849_v59  ;;  %9842 = vmatpush.bf16.msrb.mxu1 %v17338_v60  ;;  %v14974_v59 = vor.u32 %v19687_v15, %v14971_v36  ;;  %v15995_v5 = vld [vmem:[#allocation7 + $0xbc0] sm:$0xf0] }
 0x289   :  { %v20143_v61 = vld [vmem:[#allocation7 + $0x11bc] sm:$0xf0] }
 0x28a   :  { %v17273_v62 = vld [vmem:[#allocation7 + $0x1580] sm:$0xf]  ;;  %v16762_v3 = vor.u32 %v20143_v61, %v16761_v20  ;;  %9855 = vmatpush.bf16.msrb.mxu2 %v17850_v2  ;;  %v3583_v61 = vmax.f32 %v3393_v32, 0.0  ;;  %v15803_v32 = vld [vmem:[#allocation7 + $0xa40] sm:$0xf0] }
 0x28b   :  { %v20271_v0 = vld [vmem:[#allocation7 + $0x15bc] sm:$0xf0] }
 0x28c   :  { %v17785_v41 = vld [vmem:[#allocation7 + $0x1980] sm:$0xf]  ;;  %v17274_v18 = vor.u32 %v20271_v0, %v17273_v62  ;;  %9830 = vmatpush.bf16.msrb.mxu0 %v16762_v3  ;;  %v15486_v62 = vor.u32 %v19815_v50, %v15483_v51  ;;  %v14907_v0 = vld [vmem:[#allocation7 + $0x340] sm:$0xf0]  ;;  %v21159_v11 = vpack.c.bf16 %v3583_v61, %v3583_v61 }
 0x28d   :  { %v20399_v4 = vld [vmem:[#allocation7 + $0x19bc] sm:$0xf0]  ;;  %v15419_v3 = vld [vmem:[#allocation7 + $0x740] sm:$0xf0] }
 0x28e   :  { %v16697_v37 = vld [vmem:[#allocation7 + $0x1100] sm:$0xf]  ;;  %v17786_v8 = vor.u32 %v20399_v4, %v17785_v41  ;;  %9843 = vmatpush.bf16.msrb.mxu1 %v17274_v18  ;;  %v15998_v4 = vor.u32 %v19943_v57, %v15995_v5  ;;  %v19927_v18 = vld [vmem:[#allocation7 + $0xb04] sm:$0xf]  ;;  %v15422_v13 = vor.u32 %v19799_v40, %v15419_v3  ;;  %v575_v5 = vperm.slane %v21131_v19, 6  ;;  %v21170_v40 = vpop.f32.mrf.mxu3 }
 0x28f   :  { %v20127_v6 = vld [vmem:[#allocation7 + $0x113c] sm:$0xf0]  ;;  %v19751_v51 = vld [vmem:[#allocation7 + $0x584] sm:$0xf] }
 0x290   :  { %v17209_v22 = vld [vmem:[#allocation7 + $0x1500] sm:$0xf]  ;;  %v16698_v23 = vor.u32 %v20127_v6, %v16697_v37  ;;  %9856 = vmatpush.bf16.msrb.mxu2 %v17786_v8  ;;  %v21157_v37 = vpack.c.bf16 %v3582_v49, %v3582_v49  ;;  %v14910_v6 = vor.u32 %v19671_v33, %v14907_v0  ;;  %v21163_v49 = vpop.f32.mrf.mxu0  ;;  %v15739_v57 = vld [vmem:[#allocation7 + $0x9c0] sm:$0xf0] }
 0x291   :  { %v20255_v38 = vld [vmem:[#allocation7 + $0x153c] sm:$0xf0]  ;;  %v14651_v61 = vld [vmem:[#allocation7 + $0x140] sm:$0xf0] }
 0x292   :  { %v17721_v14 = vld [vmem:[#allocation7 + $0x1900] sm:$0xf]  ;;  %v17210_v63 = vor.u32 %v20255_v38, %v17209_v22  ;;  %9831 = vmatpush.bf16.msrb.mxu0 %v16698_v23  ;;  %v15931_v22 = vld [vmem:[#allocation7 + $0xb40] sm:$0xf0] }
 0x293   :  { %v20383_v16 = vld [vmem:[#allocation7 + $0x193c] sm:$0xf0]  ;;  %v19655_v23 = vld [vmem:[#allocation7 + $0x284] sm:$0xf] }
 0x294   :  { %v16633_v34 = vld [vmem:[#allocation7 + $0x1080] sm:$0xf]  ;;  %v17722_v48 = vor.u32 %v20383_v16, %v17721_v14  ;;  %9844 = vmatpush.bf16.msrb.mxu1 %v17210_v63  ;;  %v14843_v14 = vld [vmem:[#allocation7 + $0x2c0] sm:$0xf0] }
 0x295   :  { %v20111_v35 = vld [vmem:[#allocation7 + $0x10bc] sm:$0xf0]  ;;  %v15355_v63 = vld [vmem:[#allocation7 + $0x6c0] sm:$0xf0]  ;;  %v14846_v9 = vor.u32 %v19655_v23, %v14843_v14 }
 0x296   :  { %v17145_v17 = vld [vmem:[#allocation7 + $0x1480] sm:$0xf]  ;;  %v16634_v39 = vor.u32 %v20111_v35, %v16633_v34  ;;  %9857 = vmatpush.bf16.msrb.mxu2 %v17722_v48  ;;  %v15934_v34 = vor.u32 %v19927_v18, %v15931_v22  ;;  %v19911_v35 = vld [vmem:[#allocation7 + $0xa84] sm:$0xf]  ;;  %v15358_v48 = vor.u32 %v19783_v42, %v15355_v63 }
 0x297   :  { %v20239_v21 = vld [vmem:[#allocation7 + $0x14bc] sm:$0xf0]  ;;  %v19735_v33 = vld [vmem:[#allocation7 + $0x504] sm:$0xf] }
 0x298   :  { %v16569_v25 = vld [vmem:[#allocation7 + $0x1000] sm:$0xf]  ;;  %v17146_v30 = vor.u32 %v20239_v21, %v17145_v17  ;;  %9832 = vmatpush.bf16.msrb.mxu0 %v16634_v39  ;;  %v15867_v17 = vld [vmem:[#allocation7 + $0xac0] sm:$0xf0]  ;;  %v3433_v14 = vpop.f32.mrf.mxu0 }
 0x299   :  { %v20095_v28 = vld [vmem:[#allocation7 + $0x103c] sm:$0xf0]  ;;  %v19639_v39 = vld [vmem:[#allocation7 + $0x204] sm:$0xf] }
 0x29a   :  { %v17657_v46 = vld [vmem:[#allocation7 + $0x1880] sm:$0xf]  ;;  %v16570_v54 = vor.u32 %v20095_v28, %v16569_v25  ;;  %9845 = vmatpush.bf16.msrb.mxu1 %v17146_v30  ;;  %v14779_v28 = vld [vmem:[#allocation7 + $0x240] sm:$0xf0] }
 0x29b   :  { %v20367_v27 = vld [vmem:[#allocation7 + $0x18bc] sm:$0xf0]  ;;  %v15291_v30 = vld [vmem:[#allocation7 + $0x640] sm:$0xf0] }
 0x29c   :  { %v17081_v47 = vld [vmem:[#allocation7 + $0x1400] sm:$0xf]  ;;  %v17658_v52 = vor.u32 %v20367_v27, %v17657_v46  ;;  %9833 = vmatpush.bf16.msrb.mxu0 %v16570_v54  ;;  %v19767_v27 = vld [vmem:[#allocation7 + $0x604] sm:$0xf] }
 0x29d   :  { %v18553_v12 = vld [vmem:[#allocation7 + $0x1f80] sm:$0xf]  ;;  %v15294_v36 = vor.u32 %v19767_v27, %v15291_v30  ;;  %v15163_v0 = vld [vmem:[#allocation7 + $0x540] sm:$0xf0] }
 0x29e   :  { %v20591_v31 = vld [vmem:[#allocation7 + $0x1fbc] sm:$0xf0]  ;;  %9858 = vmatpush.bf16.msrb.mxu2 %v17658_v52  ;;  %v15227_v52 = vld [vmem:[#allocation7 + $0x5c0] sm:$0xf0] }
 0x29f   :  { %v20223_v43 = vld [vmem:[#allocation7 + $0x143c] sm:$0xf0]  ;;  %v18554_v45 = vor.u32 %v20591_v31, %v18553_v12  ;;  %9834 = vmatmul.bf16.vlgmr.msrb.gmra.mxu0 %v21157_v37  ;;  %v19895_v12 = vld [vmem:[#allocation7 + $0xa04] sm:$0xf]  ;;  %v14782_v31 = vor.u32 %v19639_v39, %v14779_v28 }
 0x2a0   :  { %v17593_v55 = vld [vmem:[#allocation7 + $0x1800] sm:$0xf]  ;;  %v17082_v58 = vor.u32 %v20223_v43, %v17081_v47  ;;  %9878 = vmatpush.bf16.msra.mxu0 %v14974_v59  ;;  %v15870_v47 = vor.u32 %v19911_v35, %v15867_v17  ;;  %v15806_v54 = vor.u32 %v19895_v12, %v15803_v32  ;;  %v15675_v18 = vld [vmem:[#allocation7 + $0x940] sm:$0xf0] }
 0x2a1   :  { %v20351_v56 = vld [vmem:[#allocation7 + $0x183c] sm:$0xf0]  ;;  %9865 = vmatpush.bf16.msrb.mxu3 %v18554_v45  ;;  %v14715_v45 = vld [vmem:[#allocation7 + $0x1c0] sm:$0xf0] }
 0x2a2   :  { %v18489_v60 = vld [vmem:[#allocation7 + $0x1f00] sm:$0xf]  ;;  %v17594_v41 = vor.u32 %v20351_v56, %v17593_v55  ;;  %9846 = vmatpush.bf16.msrb.mxu1 %v17082_v58  ;;  %v19879_v55 = vld [vmem:[#allocation7 + $0x984] sm:$0xf]  ;;  %v14718_v56 = vor.u32 %v19623_v44, %v14715_v45 }
 0x2a3   :  { %v20575_v20 = vld [vmem:[#allocation7 + $0x1f3c] sm:$0xf0]  ;;  %v15742_v3 = vor.u32 %v19879_v55, %v15739_v57  ;;  %v14587_v23 = vld [vmem:[#allocation7 + $0xc0] sm:$0xf0] }
 0x2a4   :  { %v18490_v2 = vor.u32 %v20575_v20, %v18489_v60  ;;  %v18425_v38 = vld [vmem:[#allocation7 + $0x1e80] sm:$0xf]  ;;  %9859 = vmatpush.bf16.msrb.mxu2 %v17594_v41  ;;  %9879 = vmatpush.bf16.msra.mxu0 %v14910_v6  ;;  %v15230_v60 = vor.u32 %v19751_v51, %v15227_v52  ;;  %v19607_v20 = vld [vmem:[#allocation7 + $0x104] sm:$0xf]  ;;  %v3472_v51 = vpop.f32.mrf.mxu3 }
 0x2a5   :  { %v20559_v8 = vld [vmem:[#allocation7 + $0x1ebc] sm:$0xf0]  ;;  %9847 = vmatmul.bf16.vlgmr.msrb.gmra.mxu1 %v21159_v11  ;;  %v19863_v41 = vld [vmem:[#allocation7 + $0x904] sm:$0xf] }
 0x2a6   :  { %9866 = vmatpush.bf16.msrb.mxu3 %v18490_v2  ;;  %9891 = vmatpush.bf16.msra.mxu1 %v15486_v62  ;;  %v18426_v16 = vor.u32 %v20559_v8, %v18425_v38  ;;  %v18361_v21 = vld [vmem:[#allocation7 + $0x1e00] sm:$0xf]  ;;  %v21168_v2 = vpop.f32.mrf.mxu2  ;;  %v3406_v38 = vadd.f32 %v21151_v7, %v575_v5  ;;  %v15166_v8 = vor.u32 %v19735_v33, %v15163_v0  ;;  %v19719_v42 = vld [vmem:[#allocation7 + $0x484] sm:$0xf] }
 0x2a7   :  { %v20543_v25 = vld [vmem:[#allocation7 + $0x1e3c] sm:$0xf0]  ;;  %v15099_v63 = vld [vmem:[#allocation7 + $0x4c0] sm:$0xf0]  ;;  %v15678_v17 = vor.u32 %v19863_v41, %v15675_v18 }
 0x2a8   :  { %9904 = vmatpush.bf16.msra.mxu2 %v15998_v4  ;;  %v18362_v46 = vor.u32 %v20543_v25, %v18361_v21  ;;  %9880 = vmatpush.bf16.msra.mxu0 %v14846_v9  ;;  %v18297_v43 = vld [vmem:[#allocation7 + $0x1d80] sm:$0xf]  ;;  %v14654_v4 = vor.u32 %v19607_v20, %v14651_v61  ;;  %v19575_v35 = vld [vmem:[#allocation7 + $0x4] sm:$0xf]  ;;  %v3419_v28 = vadd.f32 %v21153_v10, %v3406_v38 }
 0x2a9   :  { %v20527_v15 = vld [vmem:[#allocation7 + $0x1dbc] sm:$0xf0]  ;;  %v14523_v9 = vld [vmem:[#allocation7 + $0x40] sm:$0xf0] }
 0x2aa   :  { %9867 = vmatpush.bf16.msrb.mxu3 %v18426_v16  ;;  %9892 = vmatpush.bf16.msra.mxu1 %v15422_v13  ;;  %v18298_v50 = vor.u32 %v20527_v15, %v18297_v43  ;;  %v18233_v58 = vld [vmem:[#allocation7 + $0x1d00] sm:$0xf]  ;;  %v19591_v13 = vld [vmem:[#allocation7 + $0x84] sm:$0xf]  ;;  %v14526_v52 = vor.u32 %v19575_v35, %v14523_v9  ;;  %v3432_v55 = vadd.f32 %v21163_v49, %v3419_v28 }
 0x2ab   :  { %v20511_v59 = vld [vmem:[#allocation7 + $0x1d3c] sm:$0xf0]  ;;  %v19847_v21 = vld [vmem:[#allocation7 + $0x884] sm:$0xf]  ;;  %v14590_v25 = vor.u32 %v19591_v13, %v14587_v23 }
 0x2ac   :  { %9905 = vmatpush.bf16.msra.mxu2 %v15934_v34  ;;  %9881 = vmatpush.bf16.msra.mxu0 %v14782_v31  ;;  %v18234_v62 = vor.u32 %v20511_v59, %v18233_v58  ;;  %v18169_v6 = vld [vmem:[#allocation7 + $0x1c80] sm:$0xf]  ;;  %v3446_v34 = vpop.f32.mrf.mxu1  ;;  %v19703_v27 = vld [vmem:[#allocation7 + $0x404] sm:$0xf] }
 0x2ad   :  { %v20495_v22 = vld [vmem:[#allocation7 + $0x1cbc] sm:$0xf0]  ;;  %v16507_v12 = vld [vmem:[#allocation7 + $0xfc0] sm:$0xf0] }
 0x2ae   :  { %9868 = vmatpush.bf16.msrb.mxu3 %v18362_v46  ;;  %9893 = vmatpush.bf16.msra.mxu1 %v15358_v48  ;;  %v18170_v16 = vor.u32 %v20495_v22, %v18169_v6  ;;  %v15611_v48 = vld [vmem:[#allocation7 + $0x8c0] sm:$0xf0]  ;;  %v18105_v39 = vld [vmem:[#allocation7 + $0x1c00] sm:$0xf]  ;;  %v15102_v46 = vor.u32 %v19719_v42, %v15099_v63  ;;  %v3459_v15 = vpop.f32.mrf.mxu2 }
 0x2af   :  { %v20479_v7 = vld [vmem:[#allocation7 + $0x1c3c] sm:$0xf0]  ;;  %v15035_v31 = vld [vmem:[#allocation7 + $0x440] sm:$0xf0] }
 0x2b0   :  { %9906 = vmatpush.bf16.msra.mxu2 %v15870_v47  ;;  %9882 = vmatpush.bf16.msra.mxu0 %v14718_v56  ;;  %v18106_v30 = vor.u32 %v20479_v7, %v18105_v39  ;;  %v20071_v47 = vld [vmem:[#allocation7 + $0xf84] sm:$0xf]  ;;  %v15038_v56 = vor.u32 %v19703_v27, %v15035_v31 }
 0x2b1   :  { %v20199_v32 = vld [vmem:[#allocation7 + $0x1384] sm:$0xf] }
 0x2b2   :  { %9869 = vmatpush.bf16.msrb.mxu3 %v18298_v50  ;;  %9894 = vmatpush.bf16.msra.mxu1 %v15294_v36  ;;  %v17019_v43 = vld [vmem:[#allocation7 + $0x13c0] sm:$0xf0]  ;;  %v16510_v36 = vor.u32 %v20071_v47, %v16507_v12  ;;  %v15614_v50 = vor.u32 %v19847_v21, %v15611_v48 }
 0x2b3   :  { %v20327_v44 = vld [vmem:[#allocation7 + $0x1784] sm:$0xf]  ;;  %v17022_v57 = vor.u32 %v20199_v32, %v17019_v43 }
 0x2b4   :  { %9907 = vmatpush.bf16.msra.mxu2 %v15806_v54  ;;  %9883 = vmatpush.bf16.msra.mxu0 %v14654_v4  ;;  %v17531_v45 = vld [vmem:[#allocation7 + $0x17c0] sm:$0xf0]  ;;  %v21180_v43 = vpop.f32.mrf.mxu1 }
 0x2b5   :  { %v19831_v54 = vld [vmem:[#allocation7 + $0x804] sm:$0xf]  ;;  %v17534_v5 = vor.u32 %v20327_v44, %v17531_v45 }
 0x2b6   :  { %9870 = vmatpush.bf16.msrb.mxu3 %v18234_v62  ;;  %9895 = vmatpush.bf16.msra.mxu1 %v15230_v60  ;;  %v15547_v10 = vld [vmem:[#allocation7 + $0x840] sm:$0xf0] }
 0x2b7   :  { %v20055_v58 = vld [vmem:[#allocation7 + $0xf04] sm:$0xf]  ;;  %v15550_v0 = vor.u32 %v19831_v54, %v15547_v10 }
 0x2b8   :  { %9908 = vmatpush.bf16.msra.mxu2 %v15742_v3  ;;  %9884 = vmatpush.bf16.msra.mxu0 %v14590_v25  ;;  %v16443_v59 = vld [vmem:[#allocation7 + $0xf40] sm:$0xf0]  ;;  %v3445_v3 = vadd.f32 %v21165_v53, %v3432_v55 }
 0x2b9   :  { %v20183_v60 = vld [vmem:[#allocation7 + $0x1304] sm:$0xf]  ;;  %v16446_v61 = vor.u32 %v20055_v58, %v16443_v59 }
 0x2ba   :  { %9871 = vmatpush.bf16.msrb.mxu3 %v18170_v16  ;;  %9896 = vmatpush.bf16.msra.mxu1 %v15166_v8  ;;  %v16955_v20 = vld [vmem:[#allocation7 + $0x1340] sm:$0xf0]  ;;  %v3458_v53 = vadd.f32 %v21168_v2, %v3445_v3  ;;  %v3483_v2 = vpop.f32.mrf.mxu0 }
 0x2bb   :  { %v20311_v62 = vld [vmem:[#allocation7 + $0x1704] sm:$0xf]  ;;  %v16958_v49 = vor.u32 %v20183_v60, %v16955_v20  ;;  %v21187_v60 = vpop.f32.mrf.mxu3 }
 0x2bc   :  { %9909 = vmatpush.bf16.msra.mxu2 %v15678_v17  ;;  %v17467_v33 = vld [vmem:[#allocation7 + $0x1740] sm:$0xf0]  ;;  %9885 = vmatpush.bf16.msra.mxu0 %v14526_v52  ;;  %v3471_v21 = vadd.f32 %v21170_v40, %v3458_v53 }
 0x2bd   :  { %v20039_v41 = vld [vmem:[#allocation7 + $0xe84] sm:$0xf]  ;;  %v17470_v18 = vor.u32 %v20311_v62, %v17467_v33 }
 0x2be   :  { %9872 = vmatpush.bf16.msrb.mxu3 %v18106_v30  ;;  %9897 = vmatpush.bf16.msra.mxu1 %v15102_v46  ;;  %v16379_v4 = vld [vmem:[#allocation7 + $0xec0] sm:$0xf0]  ;;  %v3484_v47 = vadd.f32 %v3483_v2, %v3471_v21 }
 0x2bf   :  { %v20167_v6 = vld [vmem:[#allocation7 + $0x1284] sm:$0xf]  ;;  %v16382_v38 = vor.u32 %v20039_v41, %v16379_v4  ;;  %9886 = vmatmul.bf16.vlgmr.msra.gmra.mxu0 %v21135_v24 }
 0x2c0   :  { %9910 = vmatpush.bf16.msra.mxu2 %v15614_v50  ;;  %9930 = vmatpush.bf16.msrb.mxu0 %v17022_v57  ;;  %v16891_v22 = vld [vmem:[#allocation7 + $0x12c0] sm:$0xf0]  ;;  %v3584_v15 = vmax.f32 %v3484_v47, 0.0 }
 0x2c1   :  { %v20295_v8 = vld [vmem:[#allocation7 + $0x1684] sm:$0xf]  ;;  %v16894_v23 = vor.u32 %v20167_v6, %v16891_v22 }
 0x2c2   :  { %9917 = vmatpush.bf16.msra.mxu3 %v16510_v36  ;;  %9898 = vmatpush.bf16.msra.mxu1 %v15038_v56  ;;  %v17403_v13 = vld [vmem:[#allocation7 + $0x16c0] sm:$0xf0]  ;;  %v21182_v10 = vpack.c.bf16 %v3584_v15, %v3584_v15  ;;  %v3485_v41 = vpop.f32.mrf.mxu0  ;;  %v15425_v15 = vld [vmem:[#allocation7 + $0x708] sm:$0xf] }
 0x2c3   :  { %v20023_v14 = vld [vmem:[#allocation7 + $0xe04] sm:$0xf]  ;;  %v17406_v42 = vor.u32 %v20295_v8, %v17403_v13 }
 0x2c4   :  { %9911 = vmatpush.bf16.msra.mxu2 %v15550_v0  ;;  %9931 = vmatpush.bf16.msrb.mxu0 %v16958_v49  ;;  %v16315_v16 = vld [vmem:[#allocation7 + $0xe40] sm:$0xf0] }
 0x2c5   :  { %9899 = vmatmul.bf16.vlgmr.msra.gmra.mxu1 %v21137_v1  ;;  %v20151_v63 = vld [vmem:[#allocation7 + $0x1204] sm:$0xf]  ;;  %v16318_v35 = vor.u32 %v20023_v14, %v16315_v16  ;;  %9860 = vmatmul.bf16.vlgmr.msrb.gmra.mxu2 %v21182_v10 }
 0x2c6   :  { %9943 = vmatpush.bf16.msrb.mxu1 %v17534_v5  ;;  %9918 = vmatpush.bf16.msra.mxu3 %v16446_v61  ;;  %v16827_v34 = vld [vmem:[#allocation7 + $0x1240] sm:$0xf0]  ;;  %v21185_v5 = vpop.f32.mrf.mxu2 }
 0x2c7   :  { %v20279_v9 = vld [vmem:[#allocation7 + $0x1604] sm:$0xf]  ;;  %v16830_v25 = vor.u32 %v20151_v63, %v16827_v34 }
 0x2c8   :  { %v17339_v17 = vld [vmem:[#allocation7 + $0x1640] sm:$0xf0]  ;;  %9932 = vmatpush.bf16.msrb.mxu0 %v16894_v23 }
 0x2c9   :  { %v20007_v48 = vld [vmem:[#allocation7 + $0xd84] sm:$0xf]  ;;  %v17342_v7 = vor.u32 %v20279_v9, %v17339_v17  ;;  %v19696_v9 = vld [vmem:[#allocation7 + $0x3c4] sm:$0xf0] }
 0x2ca   :  { %9944 = vmatpush.bf16.msrb.mxu1 %v17470_v18  ;;  %9919 = vmatpush.bf16.msra.mxu3 %v16382_v38  ;;  %v16251_v39 = vld [vmem:[#allocation7 + $0xdc0] sm:$0xf0]  ;;  %v3498_v38 = vpop.f32.mrf.mxu1  ;;  %v15489_v17 = vld [vmem:[#allocation7 + $0x788] sm:$0xf] }
 0x2cb   :  { %v20135_v28 = vld [vmem:[#allocation7 + $0x1184] sm:$0xf]  ;;  %v16254_v30 = vor.u32 %v20007_v48, %v16251_v39  ;;  %v19632_v38 = vld [vmem:[#allocation7 + $0x1c4] sm:$0xf0] }
 0x2cc   :  { %v16763_v46 = vld [vmem:[#allocation7 + $0x11c0] sm:$0xf0]  ;;  %9933 = vmatpush.bf16.msrb.mxu0 %v16830_v25  ;;  %v19824_v25 = vld [vmem:[#allocation7 + $0x7c4] sm:$0xf0] }
 0x2cd   :  { %v20263_v27 = vld [vmem:[#allocation7 + $0x1584] sm:$0xf]  ;;  %v16766_v40 = vor.u32 %v20135_v28, %v16763_v46  ;;  %v3524_v28 = vpop.f32.mrf.mxu3  ;;  %v576_v46 = vperm.slane %v21131_v19, 7  ;;  %v15490_v47 = vor.u32 %v19824_v25, %v15489_v17  ;;  %v19616_v25 = vld [vmem:[#allocation7 + $0x144] sm:$0xf0] }
 0x2ce   :  { %9945 = vmatpush.bf16.msrb.mxu1 %v17406_v42  ;;  %9920 = vmatpush.bf16.msra.mxu3 %v16318_v35  ;;  %v17275_v12 = vld [vmem:[#allocation7 + $0x15c0] sm:$0xf0]  ;;  %v14977_v35 = vld [vmem:[#allocation7 + $0x388] sm:$0xf] }
 0x2cf   :  { %v20455_v31 = vld [vmem:[#allocation7 + $0x1b84] sm:$0xf]  ;;  %v17278_v45 = vor.u32 %v20263_v27, %v17275_v12 }
 0x2d0   :  { %v18043_v32 = vld [vmem:[#allocation7 + $0x1bc0] sm:$0xf0]  ;;  %9934 = vmatpush.bf16.msrb.mxu0 %v16766_v40  ;;  %v19808_v40 = vld [vmem:[#allocation7 + $0x744] sm:$0xf0] }
 0x2d1   :  { %v19991_v36 = vld [vmem:[#allocation7 + $0xd04] sm:$0xf]  ;;  %v18046_v50 = vor.u32 %v20455_v31, %v18043_v32  ;;  %v14913_v31 = vld [vmem:[#allocation7 + $0x308] sm:$0xf]  ;;  %v15426_v19 = vor.u32 %v19808_v40, %v15425_v15 }
 0x2d2   :  { %v16187_v44 = vld [vmem:[#allocation7 + $0xd40] sm:$0xf0]  ;;  %9946 = vmatpush.bf16.msrb.mxu1 %v17342_v7  ;;  %9921 = vmatpush.bf16.msra.mxu3 %v16254_v30  ;;  %v3511_v7 = vpop.f32.mrf.mxu2  ;;  %v14978_v30 = vor.u32 %v19696_v9, %v14977_v35  ;;  %v19680_v32 = vld [vmem:[#allocation7 + $0x344] sm:$0xf0] }
 0x2d3   :  { %v20119_v51 = vld [vmem:[#allocation7 + $0x1104] sm:$0xf]  ;;  %v16190_v58 = vor.u32 %v19991_v36, %v16187_v44  ;;  %9956 = vmatpush.bf16.msrb.mxu2 %v18046_v50  ;;  %v19936_v7 = vld [vmem:[#allocation7 + $0xb44] sm:$0xf0] }
 0x2d4   :  { %v16699_v52 = vld [vmem:[#allocation7 + $0x1140] sm:$0xf0] }
 0x2d5   :  { %v20247_v54 = vld [vmem:[#allocation7 + $0x1504] sm:$0xf]  ;;  %v16702_v59 = vor.u32 %v20119_v51, %v16699_v52  ;;  %v14849_v51 = vld [vmem:[#allocation7 + $0x288] sm:$0xf]  ;;  %9912 = vmatmul.bf16.vlgmr.msra.gmra.mxu2 %v21139_v26 }
 0x2d6   :  { %v17211_v55 = vld [vmem:[#allocation7 + $0x1540] sm:$0xf0]  ;;  %9947 = vmatpush.bf16.msrb.mxu1 %v17278_v45  ;;  %9922 = vmatpush.bf16.msra.mxu3 %v16190_v58  ;;  %v14914_v45 = vor.u32 %v19680_v32, %v14913_v31  ;;  %v19664_v52 = vld [vmem:[#allocation7 + $0x2c4] sm:$0xf0] }
 0x2d7   :  { %v20439_v56 = vld [vmem:[#allocation7 + $0x1b04] sm:$0xf]  ;;  %v17214_v62 = vor.u32 %v20247_v54, %v17211_v55  ;;  %9935 = vmatpush.bf16.msrb.mxu0 %v16702_v59  ;;  %v15361_v54 = vld [vmem:[#allocation7 + $0x688] sm:$0xf]  ;;  %v3497_v55 = vadd.f32 %v21180_v43, %v576_v46  ;;  %v14850_v59 = vor.u32 %v19664_v52, %v14849_v51 }
 0x2d8   :  { %v17979_v57 = vld [vmem:[#allocation7 + $0x1b40] sm:$0xf0]  ;;  %v19920_v51 = vld [vmem:[#allocation7 + $0xac4] sm:$0xf0] }
 0x2d9   :  { %v19975_v20 = vld [vmem:[#allocation7 + $0xc84] sm:$0xf]  ;;  %v17982_v33 = vor.u32 %v20439_v56, %v17979_v57  ;;  %v19792_v56 = vld [vmem:[#allocation7 + $0x6c4] sm:$0xf0]  ;;  %v3510_v43 = vadd.f32 %v21185_v5, %v3497_v55 }
 0x2da   :  { %v16123_v61 = vld [vmem:[#allocation7 + $0xcc0] sm:$0xf0]  ;;  %9948 = vmatpush.bf16.msrb.mxu1 %v17214_v62  ;;  %v14785_v62 = vld [vmem:[#allocation7 + $0x208] sm:$0xf] }
 0x2db   :  { %v20103_v0 = vld [vmem:[#allocation7 + $0x1084] sm:$0xf]  ;;  %v16126_v22 = vor.u32 %v19975_v20, %v16123_v61  ;;  %9957 = vmatpush.bf16.msrb.mxu2 %v17982_v33  ;;  %v15362_v20 = vor.u32 %v19792_v56, %v15361_v54  ;;  %v19648_v33 = vld [vmem:[#allocation7 + $0x244] sm:$0xf0] }
 0x2dc   :  { %v16635_v3 = vld [vmem:[#allocation7 + $0x10c0] sm:$0xf0]  ;;  %v16001_v5 = vld [vmem:[#allocation7 + $0xb88] sm:$0xf] }
 0x2dd   :  { %v20231_v49 = vld [vmem:[#allocation7 + $0x1484] sm:$0xf]  ;;  %v16638_v8 = vor.u32 %v20103_v0, %v16635_v3  ;;  %9923 = vmatpush.bf16.msra.mxu3 %v16126_v22  ;;  %v15297_v0 = vld [vmem:[#allocation7 + $0x608] sm:$0xf] }
 0x2de   :  { %v17147_v4 = vld [vmem:[#allocation7 + $0x14c0] sm:$0xf0]  ;;  %v19776_v3 = vld [vmem:[#allocation7 + $0x644] sm:$0xf0] }
 0x2df   :  { %v20423_v18 = vld [vmem:[#allocation7 + $0x1a84] sm:$0xf]  ;;  %v17150_v14 = vor.u32 %v20231_v49, %v17147_v4  ;;  %9936 = vmatpush.bf16.msrb.mxu0 %v16638_v8  ;;  %v14786_v4 = vor.u32 %v19648_v33, %v14785_v62  ;;  %v14721_v22 = vld [vmem:[#allocation7 + $0x188] sm:$0xf]  ;;  %v3574_v32 = vpop.f32.mrf.mxu3 }
 0x2e0   :  { %v17915_v6 = vld [vmem:[#allocation7 + $0x1ac0] sm:$0xf0]  ;;  %v15233_v8 = vld [vmem:[#allocation7 + $0x588] sm:$0xf]  ;;  %v14722_v35 = vor.u32 %v19632_v38, %v14721_v22 }
 0x2e1   :  { %v20087_v13 = vld [vmem:[#allocation7 + $0x1004] sm:$0xf]  ;;  %v17918_v16 = vor.u32 %v20423_v18, %v17915_v6  ;;  %9949 = vmatpush.bf16.msrb.mxu1 %v17150_v14  ;;  %v15298_v18 = vor.u32 %v19776_v3, %v15297_v0  ;;  %v14529_v56 = vld [vmem:[#allocation7 + $0x8] sm:$0xf] }
 0x2e2   :  { %v19959_v53 = vld [vmem:[#allocation7 + $0xc04] sm:$0xf]  ;;  %v20208_v0 = vld [vmem:[#allocation7 + $0x13c4] sm:$0xf0] }
 0x2e3   :  { %v16059_v23 = vld [vmem:[#allocation7 + $0xc40] sm:$0xf0]  ;;  %9958 = vmatpush.bf16.msrb.mxu2 %v17918_v16 }
 0x2e4   :  { %v16571_v42 = vld [vmem:[#allocation7 + $0x1040] sm:$0xf0]  ;;  %v16062_v21 = vor.u32 %v19959_v53, %v16059_v23  ;;  %v3535_v53 = vpop.f32.mrf.mxu0  ;;  %v19760_v23 = vld [vmem:[#allocation7 + $0x5c4] sm:$0xf0] }
 0x2e5   :  { %v20215_v63 = vld [vmem:[#allocation7 + $0x1404] sm:$0xf]  ;;  %v16574_v2 = vor.u32 %v20087_v13, %v16571_v42  ;;  %v3523_v13 = vadd.f32 %v21187_v60, %v3510_v43  ;;  %v3548_v42 = vpop.f32.mrf.mxu1  ;;  %v15234_v9 = vor.u32 %v19760_v23, %v15233_v8  ;;  %v15937_v60 = vld [vmem:[#allocation7 + $0xb08] sm:$0xf] }
 0x2e6   :  { %v17083_v34 = vld [vmem:[#allocation7 + $0x1440] sm:$0xf0]  ;;  %9924 = vmatpush.bf16.msra.mxu3 %v16062_v21  ;;  %v14657_v21 = vld [vmem:[#allocation7 + $0x108] sm:$0xf]  ;;  %v15938_v40 = vor.u32 %v19936_v7, %v15937_v60 }
 0x2e7   :  { %v20407_v48 = vld [vmem:[#allocation7 + $0x1a04] sm:$0xf]  ;;  %v17086_v27 = vor.u32 %v20215_v63, %v17083_v34  ;;  %9937 = vmatpush.bf16.msrb.mxu0 %v16574_v2  ;;  %v19952_v63 = vld [vmem:[#allocation7 + $0xbc4] sm:$0xf0]  ;;  %v3536_v34 = vadd.f32 %v3535_v53, %v3523_v13  ;;  %v14658_v46 = vor.u32 %v19616_v25, %v14657_v21  ;;  %v3576_v23 = vpop.f32.mrf.mxu3 }
 0x2e8   :  { %v17851_v39 = vld [vmem:[#allocation7 + $0x1a40] sm:$0xf0]  ;;  %v19744_v2 = vld [vmem:[#allocation7 + $0x544] sm:$0xf0] }
 0x2e9   :  { %v17854_v12 = vor.u32 %v20407_v48, %v17851_v39  ;;  %v20391_v36 = vld [vmem:[#allocation7 + $0x1984] sm:$0xf]  ;;  %9950 = vmatpush.bf16.msrb.mxu1 %v17086_v27  ;;  %v16002_v48 = vor.u32 %v19952_v63, %v16001_v5  ;;  %v15169_v39 = vld [vmem:[#allocation7 + $0x508] sm:$0xf]  ;;  %v3549_v28 = vadd.f32 %v3548_v42, %v3536_v34  ;;  %v3561_v27 = vpop.f32.mrf.mxu2 }
 0x2ea   :  { %v17787_v44 = vld [vmem:[#allocation7 + $0x19c0] sm:$0xf0]  ;;  %9938 = vmatmul.bf16.vlgmr.msrb.gmra.mxu0 %v21157_v37  ;;  %v17537_v43 = vld [vmem:[#allocation7 + $0x1788] sm:$0xf] }
 0x2eb   :  { %9982 = vmatpush.bf16.msra.mxu0 %v14978_v30  ;;  %9959 = vmatpush.bf16.msrb.mxu2 %v17854_v12  ;;  %v17790_v50 = vor.u32 %v20391_v36, %v17787_v44  ;;  %v20375_v57 = vld [vmem:[#allocation7 + $0x1904] sm:$0xf]  ;;  %v15170_v30 = vor.u32 %v19744_v2, %v15169_v39  ;;  %v19600_v12 = vld [vmem:[#allocation7 + $0xc4] sm:$0xf0]  ;;  %v3562_v31 = vadd.f32 %v3561_v27, %v3549_v28 }
 0x2ec   :  { %v17723_v58 = vld [vmem:[#allocation7 + $0x1940] sm:$0xf0]  ;;  %9951 = vmatmul.bf16.vlgmr.msrb.gmra.mxu1 %v21159_v11  ;;  %v3537_v15 = vpop.f32.mrf.mxu0  ;;  %v15105_v36 = vld [vmem:[#allocation7 + $0x488] sm:$0xf] }
 0x2ed   :  { %9995 = vmatpush.bf16.msra.mxu1 %v15490_v47  ;;  %v17726_v61 = vor.u32 %v20375_v57, %v17723_v58  ;;  %v20359_v49 = vld [vmem:[#allocation7 + $0x1884] sm:$0xf]  ;;  %v14593_v47 = vld [vmem:[#allocation7 + $0x88] sm:$0xf]  ;;  %v3575_v52 = vadd.f32 %v3574_v32, %v3562_v31 }
 0x2ee   :  { %v17659_v41 = vld [vmem:[#allocation7 + $0x18c0] sm:$0xf0]  ;;  %v19728_v44 = vld [vmem:[#allocation7 + $0x4c4] sm:$0xf0]  ;;  %v14594_v54 = vor.u32 %v19600_v12, %v14593_v47 }
 0x2ef   :  { %9983 = vmatpush.bf16.msra.mxu0 %v14914_v45  ;;  %9960 = vmatpush.bf16.msrb.mxu2 %v17790_v50  ;;  %v17662_v6 = vor.u32 %v20359_v49, %v17659_v41  ;;  %v20343_v14 = vld [vmem:[#allocation7 + $0x1804] sm:$0xf]  ;;  %v3550_v45 = vpop.f32.mrf.mxu1  ;;  %v15873_v50 = vld [vmem:[#allocation7 + $0xa88] sm:$0xf]  ;;  %v15106_v58 = vor.u32 %v19728_v44, %v15105_v36  ;;  %v3585_v62 = vmax.f32 %v3575_v52, 0.0 }
 0x2f0   :  { %v17595_v16 = vld [vmem:[#allocation7 + $0x1840] sm:$0xf0]  ;;  %v19584_v57 = vld [vmem:[#allocation7 + $0x44] sm:$0xf0]  ;;  %v15874_v33 = vor.u32 %v19920_v51, %v15873_v50 }
 0x2f1   :  { %9996 = vmatpush.bf16.msra.mxu1 %v15426_v19  ;;  %v17598_v17 = vor.u32 %v20343_v14, %v17595_v16  ;;  %v20583_v19 = vld [vmem:[#allocation7 + $0x1f84] sm:$0xf]  ;;  %v20336_v49 = vld [vmem:[#allocation7 + $0x17c4] sm:$0xf0]  ;;  %v3563_v8 = vpop.f32.mrf.mxu2 }
 0x2f2   :  { %v18555_v55 = vld [vmem:[#allocation7 + $0x1fc0] sm:$0xf0]  ;;  %v15809_v41 = vld [vmem:[#allocation7 + $0xa08] sm:$0xf]  ;;  %v17538_v14 = vor.u32 %v20336_v49, %v17537_v43 }
 0x2f3   :  { %9984 = vmatpush.bf16.msra.mxu0 %v14850_v59  ;;  %9961 = vmatpush.bf16.msrb.mxu2 %v17726_v61  ;;  %v15041_v59 = vld [vmem:[#allocation7 + $0x408] sm:$0xf]  ;;  %v18558_v3 = vor.u32 %v20583_v19, %v18555_v55  ;;  %v20567_v22 = vld [vmem:[#allocation7 + $0x1f04] sm:$0xf] }
 0x2f4   :  { %v17025_v61 = vld [vmem:[#allocation7 + $0x1388] sm:$0xf]  ;;  %v18491_v38 = vld [vmem:[#allocation7 + $0x1f40] sm:$0xf0] }
 0x2f5   :  { %9997 = vmatpush.bf16.msra.mxu1 %v15362_v20  ;;  %v19712_v20 = vld [vmem:[#allocation7 + $0x444] sm:$0xf0]  ;;  %v17026_v53 = vor.u32 %v20208_v0, %v17025_v61  ;;  %v18494_v34 = vor.u32 %v20567_v22, %v18491_v38  ;;  %v20551_v21 = vld [vmem:[#allocation7 + $0x1e84] sm:$0xf] }
 0x2f6   :  { %v15042_v13 = vor.u32 %v19712_v20, %v15041_v59  ;;  %v16961_v42 = vld [vmem:[#allocation7 + $0x1308] sm:$0xf]  ;;  %v18427_v25 = vld [vmem:[#allocation7 + $0x1ec0] sm:$0xf0] }
 0x2f7   :  { %9985 = vmatpush.bf16.msra.mxu0 %v14786_v4  ;;  %9962 = vmatpush.bf16.msrb.mxu2 %v17662_v6  ;;  %v19904_v4 = vld [vmem:[#allocation7 + $0xa44] sm:$0xf0]  ;;  %v14530_v6 = vor.u32 %v19584_v57, %v14529_v56  ;;  %v18430_v27 = vor.u32 %v20551_v21, %v18427_v25  ;;  %v21201_v12 = vld [vmem:[#allocation8] sm:$0xff] }
 0x2f8   :  { %v15810_v16 = vor.u32 %v19904_v4, %v15809_v41  ;;  %v20192_v5 = vld [vmem:[#allocation7 + $0x1344] sm:$0xf0]  ;;  %v20535_v31 = vld [vmem:[#allocation7 + $0x1e04] sm:$0xf]  ;;  %v4622_v44 = vperm.slane %v21201_v12, 0  ;;  %v9796_v4 = vpop.f32.mrf.mxu1 }
 0x2f9   :  { %9998 = vmatpush.bf16.msra.mxu1 %v15298_v18  ;;  %v21197_v18 = vpack.c.bf16 %v3585_v62, %v3585_v62  ;;  %v17473_v63 = vld [vmem:[#allocation7 + $0x1708] sm:$0xf]  ;;  %v18363_v32 = vld [vmem:[#allocation7 + $0x1e40] sm:$0xf0]  ;;  %v9783_v62 = vpop.f32.mrf.mxu0 }
 0x2fa   :  { %v16897_v39 = vld [vmem:[#allocation7 + $0x1288] sm:$0xf]  ;;  %v18366_v50 = vor.u32 %v20535_v31, %v18363_v32  ;;  %v18299_v55 = vld [vmem:[#allocation7 + $0x1dc0] sm:$0xf0]  ;;  %v9784_v41 = vadd.f32 %v9783_v62, %v4622_v44  ;;  %v14979_v62 = vld [vmem:[#allocation7 + $0x3c8] sm:$0xf0] }
 0x2fb   :  { %9986 = vmatpush.bf16.msra.mxu0 %v14722_v35  ;;  %9963 = vmatpush.bf16.msrb.mxu2 %v17598_v17  ;;  %v20320_v35 = vld [vmem:[#allocation7 + $0x1744] sm:$0xf0]  ;;  %v20503_v49 = vld [vmem:[#allocation7 + $0x1d04] sm:$0xf] }
 0x2fc   :  { %9873 = vmatmul.bf16.vlgmr.msrb.gmra.mxu3 %v21197_v18  ;;  %v19888_v17 = vld [vmem:[#allocation7 + $0x9c4] sm:$0xf0]  ;;  %v17474_v2 = vor.u32 %v20320_v35, %v17473_v63  ;;  %v9797_v23 = vadd.f32 %v9796_v4, %v9784_v41  ;;  %v18171_v21 = vld [vmem:[#allocation7 + $0x1cc0] sm:$0xf0] }
 0x2fd   :  { %9999 = vmatpush.bf16.msra.mxu1 %v15234_v9  ;;  %9969 = vmatpush.bf16.msrb.mxu3 %v18558_v3  ;;  %v15745_v9 = vld [vmem:[#allocation7 + $0x988] sm:$0xf]  ;;  %v18107_v44 = vld [vmem:[#allocation7 + $0x1c40] sm:$0xf0] }
 0x2fe   :  { %9964 = vmatmul.bf16.vlgmr.msrb.gmra.mxu2 %v21182_v10  ;;  %v15746_v60 = vor.u32 %v19888_v17, %v15745_v9  ;;  %v20176_v7 = vld [vmem:[#allocation7 + $0x12c4] sm:$0xf0]  ;;  %v20487_v17 = vld [vmem:[#allocation7 + $0x1c84] sm:$0xf] }
 0x2ff   :  { %10008 = vmatpush.bf16.msra.mxu2 %v16002_v48  ;;  %9987 = vmatpush.bf16.msra.mxu0 %v14658_v46  ;;  %v16962_v48 = vor.u32 %v20192_v5, %v16961_v42  ;;  %v17409_v28 = vld [vmem:[#allocation7 + $0x1688] sm:$0xf]  ;;  %v16898_v15 = vor.u32 %v20176_v7, %v16897_v39 }
 0x300   :  { %v20304_v46 = vld [vmem:[#allocation7 + $0x16c4] sm:$0xf0] }
 0x301   :  { %10000 = vmatpush.bf16.msra.mxu1 %v15170_v30  ;;  %9970 = vmatpush.bf16.msrb.mxu3 %v18494_v34  ;;  %v15681_v30 = vld [vmem:[#allocation7 + $0x908] sm:$0xf] }
 0x302   :  { %v19872_v47 = vld [vmem:[#allocation7 + $0x944] sm:$0xf0] }
 0x303   :  { %10009 = vmatpush.bf16.msra.mxu2 %v15938_v40  ;;  %9988 = vmatpush.bf16.msra.mxu0 %v14594_v54  ;;  %v17410_v40 = vor.u32 %v20304_v46, %v17409_v28  ;;  %v15682_v36 = vor.u32 %v19872_v47, %v15681_v30  ;;  %v16833_v45 = vld [vmem:[#allocation7 + $0x1208] sm:$0xf]  ;;  %v20519_v54 = vld [vmem:[#allocation7 + $0x1d84] sm:$0xf]  ;;  %v9785_v30 = vpop.f32.mrf.mxu0  ;;  %v18174_v47 = vor.u32 %v20487_v17, %v18171_v21 }
 0x304   :  { %v20160_v19 = vld [vmem:[#allocation7 + $0x1244] sm:$0xf0] }
 0x305   :  { %10001 = vmatpush.bf16.msra.mxu1 %v15106_v58  ;;  %9971 = vmatpush.bf16.msrb.mxu3 %v18430_v27  ;;  %v17345_v51 = vld [vmem:[#allocation7 + $0x1608] sm:$0xf]  ;;  %v16834_v58 = vor.u32 %v20160_v19, %v16833_v45  ;;  %v9822_v27 = vpop.f32.mrf.mxu3 }
 0x306   :  { %v20288_v52 = vld [vmem:[#allocation7 + $0x1644] sm:$0xf0] }
 0x307   :  { %10010 = vmatpush.bf16.msra.mxu2 %v15874_v33  ;;  %9989 = vmatpush.bf16.msra.mxu0 %v14530_v6  ;;  %v15617_v56 = vld [vmem:[#allocation7 + $0x888] sm:$0xf]  ;;  %v17346_v59 = vor.u32 %v20288_v52, %v17345_v51  ;;  %v18302_v33 = vor.u32 %v20519_v54, %v18299_v55  ;;  %v18235_v6 = vld [vmem:[#allocation7 + $0x1d40] sm:$0xf0] }
 0x308   :  { %v19856_v57 = vld [vmem:[#allocation7 + $0x8c4] sm:$0xf0]  ;;  %v18238_v5 = vor.u32 %v20503_v49, %v18235_v6 }
 0x309   :  { %10002 = vmatpush.bf16.msra.mxu1 %v15042_v13  ;;  %v16769_v20 = vld [vmem:[#allocation7 + $0x1188] sm:$0xf]  ;;  %9972 = vmatpush.bf16.msrb.mxu3 %v18366_v50  ;;  %v15618_v0 = vor.u32 %v19856_v57, %v15617_v56 }
 0x30a   :  { %9990 = vmatmul.bf16.vlgmr.msra.gmra.mxu0 %v21135_v24  ;;  %v20144_v61 = vld [vmem:[#allocation7 + $0x11c4] sm:$0xf0] }
 0x30b   :  { %10034 = vmatpush.bf16.msrb.mxu0 %v17026_v53  ;;  %10011 = vmatpush.bf16.msra.mxu2 %v15810_v16  ;;  %v17281_v43 = vld [vmem:[#allocation7 + $0x1588] sm:$0xf]  ;;  %v16770_v8 = vor.u32 %v20144_v61, %v16769_v20  ;;  %v19688_v61 = vld [vmem:[#allocation7 + $0x38c] sm:$0xf] }
 0x30c   :  { %10003 = vmatmul.bf16.vlgmr.msra.gmra.mxu1 %v21137_v1  ;;  %v20272_v3 = vld [vmem:[#allocation7 + $0x15c4] sm:$0xf0]  ;;  %9925 = vmatmul.bf16.vlgmr.msra.gmra.mxu3 %v21142_v29 }
 0x30d   :  { %10047 = vmatpush.bf16.msrb.mxu1 %v17538_v14  ;;  %v15553_v22 = vld [vmem:[#allocation7 + $0x808] sm:$0xf]  ;;  %v17282_v14 = vor.u32 %v20272_v3, %v17281_v43  ;;  %9973 = vmatpush.bf16.msrb.mxu3 %v18302_v33  ;;  %v19816_v43 = vld [vmem:[#allocation7 + $0x78c] sm:$0xf] }
 0x30e   :  { %v19840_v38 = vld [vmem:[#allocation7 + $0x844] sm:$0xf0]  ;;  %v15491_v3 = vld [vmem:[#allocation7 + $0x7c8] sm:$0xf0] }
 0x30f   :  { %10035 = vmatpush.bf16.msrb.mxu0 %v16962_v48  ;;  %10012 = vmatpush.bf16.msra.mxu2 %v15746_v60  ;;  %v18049_v13 = vld [vmem:[#allocation7 + $0x1b88] sm:$0xf]  ;;  %v15554_v63 = vor.u32 %v19840_v38, %v15553_v22 }
 0x310   :  { %v20464_v53 = vld [vmem:[#allocation7 + $0x1bc4] sm:$0xf0] }
 0x311   :  { %10048 = vmatpush.bf16.msrb.mxu1 %v17474_v2  ;;  %v16705_v16 = vld [vmem:[#allocation7 + $0x1108] sm:$0xf]  ;;  %v18050_v9 = vor.u32 %v20464_v53, %v18049_v13  ;;  %v9809_v2 = vpop.f32.mrf.mxu2  ;;  %9974 = vmatpush.bf16.msrb.mxu3 %v18238_v5  ;;  %v9824_v13 = vpop.f32.mrf.mxu3  ;;  %v14982_v53 = vor.u32 %v19688_v61, %v14979_v62 }
 0x312   :  { %v20128_v42 = vld [vmem:[#allocation7 + $0x1144] sm:$0xf0]  ;;  %v9810_v46 = vadd.f32 %v9809_v2, %v9797_v23  ;;  %v15494_v23 = vor.u32 %v19816_v43, %v15491_v3  ;;  %v14851_v2 = vld [vmem:[#allocation7 + $0x2c8] sm:$0xf0] }
 0x313   :  { %10036 = vmatpush.bf16.msrb.mxu0 %v16898_v15  ;;  %10013 = vmatpush.bf16.msra.mxu2 %v15682_v36  ;;  %v17217_v34 = vld [vmem:[#allocation7 + $0x1508] sm:$0xf]  ;;  %v16706_v25 = vor.u32 %v20128_v42, %v16705_v16  ;;  %v9798_v15 = vpop.f32.mrf.mxu1  ;;  %v20471_v36 = vld [vmem:[#allocation7 + $0x1c04] sm:$0xf]  ;;  %v14915_v16 = vld [vmem:[#allocation7 + $0x348] sm:$0xf0] }
 0x314   :  { %v20256_v35 = vld [vmem:[#allocation7 + $0x1544] sm:$0xf0]  ;;  %v21206_v19 = vadd.f32 %v9822_v27, %v9810_v46  ;;  %v15363_v46 = vld [vmem:[#allocation7 + $0x6c8] sm:$0xf0] }
 0x315   :  { %10049 = vmatpush.bf16.msrb.mxu1 %v17410_v40  ;;  %v17985_v48 = vld [vmem:[#allocation7 + $0x1b08] sm:$0xf]  ;;  %v17218_v60 = vor.u32 %v20256_v35, %v17217_v34  ;;  %9975 = vmatpush.bf16.msrb.mxu3 %v18174_v47  ;;  %v15427_v34 = vld [vmem:[#allocation7 + $0x748] sm:$0xf0] }
 0x316   :  { %v20448_v39 = vld [vmem:[#allocation7 + $0x1b44] sm:$0xf0] }
 0x317   :  { %10037 = vmatpush.bf16.msrb.mxu0 %v16834_v58  ;;  %10014 = vmatpush.bf16.msra.mxu2 %v15618_v0  ;;  %v16641_v7 = vld [vmem:[#allocation7 + $0x1088] sm:$0xf]  ;;  %v17986_v40 = vor.u32 %v20448_v39, %v17985_v48  ;;  %v19656_v39 = vld [vmem:[#allocation7 + $0x28c] sm:$0xf] }
 0x318   :  { %v20112_v28 = vld [vmem:[#allocation7 + $0x10c4] sm:$0xf0] }
 0x319   :  { %10050 = vmatpush.bf16.msrb.mxu1 %v17346_v59  ;;  %v17153_v31 = vld [vmem:[#allocation7 + $0x1488] sm:$0xf]  ;;  %v16642_v50 = vor.u32 %v20112_v28, %v16641_v7  ;;  %v18110_v59 = vor.u32 %v20471_v36, %v18107_v44  ;;  %v9811_v38 = vpop.f32.mrf.mxu2  ;;  %v19784_v28 = vld [vmem:[#allocation7 + $0x68c] sm:$0xf] }
 0x31a   :  { %v20240_v32 = vld [vmem:[#allocation7 + $0x14c4] sm:$0xf0]  ;;  %v15366_v15 = vor.u32 %v19784_v28, %v15363_v46  ;;  %v14787_v36 = vld [vmem:[#allocation7 + $0x248] sm:$0xf0] }
 0x31b   :  { %10038 = vmatpush.bf16.msrb.mxu0 %v16770_v8  ;;  %10015 = vmatpush.bf16.msra.mxu2 %v15554_v63  ;;  %v16513_v45 = vld [vmem:[#allocation7 + $0xf88] sm:$0xf]  ;;  %v17154_v55 = vor.u32 %v20240_v32, %v17153_v31  ;;  %v19800_v63 = vld [vmem:[#allocation7 + $0x70c] sm:$0xf]  ;;  %v14854_v32 = vor.u32 %v19656_v39, %v14851_v2 }
 0x31c   :  { %v20080_v51 = vld [vmem:[#allocation7 + $0xfc4] sm:$0xf0]  ;;  %9976 = vmatpush.bf16.msrb.mxu3 %v18110_v59  ;;  %v15430_v48 = vor.u32 %v19800_v63, %v15427_v34  ;;  %v19624_v59 = vld [vmem:[#allocation7 + $0x18c] sm:$0xf]  ;;  %v9835_v3 = vpop.f32.mrf.mxu0 }
 0x31d   :  { %10051 = vmatpush.bf16.msrb.mxu1 %v17282_v14  ;;  %v17921_v52 = vld [vmem:[#allocation7 + $0x1a88] sm:$0xf]  ;;  %v16514_v33 = vor.u32 %v20080_v51, %v16513_v45  ;;  %v19672_v14 = vld [vmem:[#allocation7 + $0x30c] sm:$0xf] }
 0x31e   :  { %v20432_v54 = vld [vmem:[#allocation7 + $0x1ac4] sm:$0xf0]  ;;  %10016 = vmatmul.bf16.vlgmr.msra.gmra.mxu2 %v21139_v26  ;;  %v15299_v51 = vld [vmem:[#allocation7 + $0x648] sm:$0xf0] }
 0x31f   :  { %10060 = vmatpush.bf16.msrb.mxu2 %v18050_v9  ;;  %10039 = vmatpush.bf16.msrb.mxu0 %v16706_v25  ;;  %v16577_v56 = vld [vmem:[#allocation7 + $0x1008] sm:$0xf]  ;;  %v17922_v0 = vor.u32 %v20432_v54, %v17921_v52  ;;  %v14918_v25 = vor.u32 %v19672_v14, %v14915_v16  ;;  %v19944_v38 = vld [vmem:[#allocation7 + $0xb8c] sm:$0xf] }
 0x320   :  { %v20096_v57 = vld [vmem:[#allocation7 + $0x1044] sm:$0xf0]  ;;  %10021 = vmatpush.bf16.msra.mxu3 %v16514_v33  ;;  %v19752_v33 = vld [vmem:[#allocation7 + $0x58c] sm:$0xf] }
 0x321   :  { %10052 = vmatpush.bf16.msrb.mxu1 %v17218_v60  ;;  %v17089_v58 = vld [vmem:[#allocation7 + $0x1408] sm:$0xf]  ;;  %v16578_v41 = vor.u32 %v20096_v57, %v16577_v56  ;;  %9977 = vmatmul.bf16.vlgmr.msrb.gmra.mxu3 %v21197_v18  ;;  %v19736_v63 = vld [vmem:[#allocation7 + $0x50c] sm:$0xf] }
 0x322   :  { %v20224_v20 = vld [vmem:[#allocation7 + $0x1444] sm:$0xf0]  ;;  %v15107_v28 = vld [vmem:[#allocation7 + $0x4c8] sm:$0xf0] }
 0x323   :  { %10061 = vmatpush.bf16.msrb.mxu2 %v17986_v40  ;;  %v16449_v49 = vld [vmem:[#allocation7 + $0xf08] sm:$0xf]  ;;  %10040 = vmatpush.bf16.msrb.mxu0 %v16642_v50  ;;  %v17090_v8 = vor.u32 %v20224_v20, %v17089_v58  ;;  %v19640_v40 = vld [vmem:[#allocation7 + $0x20c] sm:$0xf] }
 0x324   :  { %v20064_v4 = vld [vmem:[#allocation7 + $0xf44] sm:$0xf0]  ;;  %v19768_v50 = vld [vmem:[#allocation7 + $0x60c] sm:$0xf]  ;;  %v14790_v57 = vor.u32 %v19640_v40, %v14787_v36  ;;  %v9837_v46 = vpop.f32.mrf.mxu0 }
 0x325   :  { %v17857_v6 = vld [vmem:[#allocation7 + $0x1a08] sm:$0xf]  ;;  %10053 = vmatpush.bf16.msrb.mxu1 %v17154_v55  ;;  %v16450_v42 = vor.u32 %v20064_v4, %v16449_v49  ;;  %v15302_v58 = vor.u32 %v19768_v50, %v15299_v51  ;;  %v14723_v20 = vld [vmem:[#allocation7 + $0x1c8] sm:$0xf0] }
 0x326   :  { %v20416_v22 = vld [vmem:[#allocation7 + $0x1a44] sm:$0xf0]  ;;  %v14726_v13 = vor.u32 %v19624_v59, %v14723_v20  ;;  %v19912_v40 = vld [vmem:[#allocation7 + $0xa8c] sm:$0xf] }
 0x327   :  { %10062 = vmatpush.bf16.msrb.mxu2 %v17922_v0  ;;  %v17858_v5 = vor.u32 %v20416_v22, %v17857_v6  ;;  %v16385_v35 = vld [vmem:[#allocation7 + $0xe88] sm:$0xf]  ;;  %10041 = vmatpush.bf16.msrb.mxu0 %v16578_v41  ;;  %v15235_v0 = vld [vmem:[#allocation7 + $0x5c8] sm:$0xf0]  ;;  %v9836_v6 = vadd.f32 %v9835_v3, %v21206_v19  ;;  %v9848_v22 = vpop.f32.mrf.mxu1 }
 0x328   :  { %v20048_v9 = vld [vmem:[#allocation7 + $0xec4] sm:$0xf0]  ;;  %10022 = vmatpush.bf16.msra.mxu3 %v16450_v42  ;;  %v19608_v42 = vld [vmem:[#allocation7 + $0x10c] sm:$0xf] }
 0x329   :  { %v17793_v17 = vld [vmem:[#allocation7 + $0x1988] sm:$0xf]  ;;  %10054 = vmatpush.bf16.msrb.mxu1 %v17090_v8  ;;  %v16386_v60 = vor.u32 %v20048_v9, %v16385_v35  ;;  %v16003_v8 = vld [vmem:[#allocation7 + $0xbc8] sm:$0xf0] }
 0x32a   :  { %v20400_v21 = vld [vmem:[#allocation7 + $0x19c4] sm:$0xf0]  ;;  %10042 = vmatmul.bf16.vlgmr.msrb.gmra.mxu0 %v21157_v37  ;;  %v16006_v34 = vor.u32 %v19944_v38, %v16003_v8  ;;  %v15171_v35 = vld [vmem:[#allocation7 + $0x548] sm:$0xf0] }
 0x32b   :  { %10086 = vmatpush.bf16.msra.mxu0 %v14982_v53  ;;  %10063 = vmatpush.bf16.msrb.mxu2 %v17858_v5  ;;  %v17794_v7 = vor.u32 %v20400_v21, %v17793_v17  ;;  %v16321_v27 = vld [vmem:[#allocation7 + $0xe08] sm:$0xf]  ;;  %v15238_v53 = vor.u32 %v19752_v33, %v15235_v0  ;;  %v14659_v5 = vld [vmem:[#allocation7 + $0x148] sm:$0xf0]  ;;  %v15174_v39 = vor.u32 %v19736_v63, %v15171_v35 }
 0x32c   :  { %10055 = vmatmul.bf16.vlgmr.msrb.gmra.mxu1 %v21159_v11  ;;  %v20032_v30 = vld [vmem:[#allocation7 + $0xe44] sm:$0xf0]  ;;  %10023 = vmatpush.bf16.msra.mxu3 %v16386_v60  ;;  %v19928_v17 = vld [vmem:[#allocation7 + $0xb0c] sm:$0xf] }
 0x32d   :  { %10099 = vmatpush.bf16.msra.mxu1 %v15494_v23  ;;  %v17729_v47 = vld [vmem:[#allocation7 + $0x1908] sm:$0xf]  ;;  %v16322_v44 = vor.u32 %v20032_v30, %v16321_v27  ;;  %v21213_v23 = vadd.f32 %v9848_v22, %v9836_v6  ;;  %v15939_v21 = vld [vmem:[#allocation7 + $0xb48] sm:$0xf0] }
 0x32e   :  { %v20384_v31 = vld [vmem:[#allocation7 + $0x1944] sm:$0xf0]  ;;  %v14595_v60 = vld [vmem:[#allocation7 + $0xc8] sm:$0xf0]  ;;  %v15942_v27 = vor.u32 %v19928_v17, %v15939_v21 }
 0x32f   :  { %10087 = vmatpush.bf16.msra.mxu0 %v14918_v25  ;;  %10064 = vmatpush.bf16.msrb.mxu2 %v17794_v7  ;;  %v17730_v45 = vor.u32 %v20384_v31, %v17729_v47  ;;  %v16257_v52 = vld [vmem:[#allocation7 + $0xd88] sm:$0xf]  ;;  %v14662_v25 = vor.u32 %v19608_v42, %v14659_v5  ;;  %v19720_v7 = vld [vmem:[#allocation7 + $0x48c] sm:$0xf] }
 0x330   :  { %v20016_v54 = vld [vmem:[#allocation7 + $0xdc4] sm:$0xf0]  ;;  %10024 = vmatpush.bf16.msra.mxu3 %v16322_v44  ;;  %v15875_v36 = vld [vmem:[#allocation7 + $0xac8] sm:$0xf0]  ;;  %v15110_v50 = vor.u32 %v19720_v7, %v15107_v28 }
 0x331   :  { %10100 = vmatpush.bf16.msra.mxu1 %v15430_v48  ;;  %v17665_v55 = vld [vmem:[#allocation7 + $0x1888] sm:$0xf]  ;;  %v16258_v61 = vor.u32 %v20016_v54, %v16257_v52  ;;  %v19592_v48 = vld [vmem:[#allocation7 + $0x8c] sm:$0xf] }
 0x332   :  { %v20368_v56 = vld [vmem:[#allocation7 + $0x18c4] sm:$0xf0]  ;;  %v14598_v44 = vor.u32 %v19592_v48, %v14595_v60  ;;  %v14531_v52 = vld [vmem:[#allocation7 + $0x48] sm:$0xf0] }
 0x333   :  { %10088 = vmatpush.bf16.msra.mxu0 %v14854_v32  ;;  %10065 = vmatpush.bf16.msrb.mxu2 %v17730_v45  ;;  %v17666_v62 = vor.u32 %v20368_v56, %v17665_v55  ;;  %v16193_v43 = vld [vmem:[#allocation7 + $0xd08] sm:$0xf]  ;;  %v9850_v32 = vpop.f32.mrf.mxu1  ;;  %v19576_v45 = vld [vmem:[#allocation7 + $0xc] sm:$0xf] }
 0x334   :  { %v20000_v49 = vld [vmem:[#allocation7 + $0xd44] sm:$0xf0]  ;;  %10025 = vmatpush.bf16.msra.mxu3 %v16258_v61  ;;  %v19704_v54 = vld [vmem:[#allocation7 + $0x40c] sm:$0xf]  ;;  %v14534_v0 = vor.u32 %v19576_v45, %v14531_v52 }
 0x335   :  { %10101 = vmatpush.bf16.msra.mxu1 %v15366_v15  ;;  %v17601_v41 = vld [vmem:[#allocation7 + $0x1808] sm:$0xf]  ;;  %v16194_v14 = vor.u32 %v20000_v49, %v16193_v43  ;;  %v15043_v55 = vld [vmem:[#allocation7 + $0x448] sm:$0xf0] }
 0x336   :  { %v20352_v4 = vld [vmem:[#allocation7 + $0x1844] sm:$0xf0]  ;;  %v17027_v59 = vld [vmem:[#allocation7 + $0x13c8] sm:$0xf0]  ;;  %v15046_v49 = vor.u32 %v19704_v54, %v15043_v55 }
 0x337   :  { %10089 = vmatpush.bf16.msra.mxu0 %v14790_v57  ;;  %10066 = vmatpush.bf16.msrb.mxu2 %v17666_v62  ;;  %v17602_v16 = vor.u32 %v20352_v4, %v17601_v41  ;;  %v16129_v9 = vld [vmem:[#allocation7 + $0xc88] sm:$0xf]  ;;  %v15878_v57 = vor.u32 %v19912_v40, %v15875_v36  ;;  %v20328_v20 = vld [vmem:[#allocation7 + $0x178c] sm:$0xf]  ;;  %v4623_v36 = vperm.slane %v21201_v12, 1 }
 0x338   :  { %v19984_v19 = vld [vmem:[#allocation7 + $0xcc4] sm:$0xf0]  ;;  %10026 = vmatpush.bf16.msra.mxu3 %v16194_v14  ;;  %v17539_v61 = vld [vmem:[#allocation7 + $0x17c8] sm:$0xf0] }
 0x339   :  { %10102 = vmatpush.bf16.msra.mxu1 %v15302_v58  ;;  %v16130_v2 = vor.u32 %v19984_v19, %v16129_v9  ;;  %v16065_v30 = vld [vmem:[#allocation7 + $0xc08] sm:$0xf]  ;;  %v20200_v58 = vld [vmem:[#allocation7 + $0x138c] sm:$0xf]  ;;  %v17542_v4 = vor.u32 %v20328_v20, %v17539_v61 }
 0x33a   :  { %v19968_v47 = vld [vmem:[#allocation7 + $0xc44] sm:$0xf0]  ;;  %v19896_v43 = vld [vmem:[#allocation7 + $0xa0c] sm:$0xf]  ;;  %v17030_v41 = vor.u32 %v20200_v58, %v17027_v59 }
 0x33b   :  { %10090 = vmatpush.bf16.msra.mxu0 %v14726_v13  ;;  %10067 = vmatpush.bf16.msrb.mxu2 %v17602_v16  ;;  %v18561_v31 = vld [vmem:[#allocation7 + $0x1f88] sm:$0xf]  ;;  %v16066_v51 = vor.u32 %v19968_v47, %v16065_v30  ;;  %v15811_v3 = vld [vmem:[#allocation7 + $0xa48] sm:$0xf0] }
 0x33c   :  { %v20592_v15 = vld [vmem:[#allocation7 + $0x1fc4] sm:$0xf0]  ;;  %10027 = vmatpush.bf16.msra.mxu3 %v16130_v2  ;;  %v20184_v22 = vld [vmem:[#allocation7 + $0x130c] sm:$0xf]  ;;  %v15814_v13 = vor.u32 %v19896_v43, %v15811_v3 }
 0x33d   :  { %10103 = vmatpush.bf16.msra.mxu1 %v15238_v53  ;;  %v18562_v56 = vor.u32 %v20592_v15, %v18561_v31  ;;  %v18497_v62 = vld [vmem:[#allocation7 + $0x1f08] sm:$0xf]  ;;  %v16963_v38 = vld [vmem:[#allocation7 + $0x1348] sm:$0xf0] }
 0x33e   :  { %10068 = vmatmul.bf16.vlgmr.msrb.gmra.mxu2 %v21182_v10  ;;  %v20576_v33 = vld [vmem:[#allocation7 + $0x1f44] sm:$0xf0]  ;;  %v20312_v8 = vld [vmem:[#allocation7 + $0x170c] sm:$0xf]  ;;  %v16966_v63 = vor.u32 %v20184_v22, %v16963_v38 }
 0x33f   :  { %10112 = vmatpush.bf16.msra.mxu2 %v16006_v34  ;;  %10091 = vmatpush.bf16.msra.mxu0 %v14662_v25  ;;  %v18498_v6 = vor.u32 %v20576_v33, %v18497_v62  ;;  %v17475_v53 = vld [vmem:[#allocation7 + $0x1748] sm:$0xf0]  ;;  %v18433_v14 = vld [vmem:[#allocation7 + $0x1e88] sm:$0xf] }
 0x340   :  { %10028 = vmatpush.bf16.msra.mxu3 %v16066_v51  ;;  %v20560_v16 = vld [vmem:[#allocation7 + $0x1ec4] sm:$0xf0]  ;;  %v19880_v42 = vld [vmem:[#allocation7 + $0x98c] sm:$0xf]  ;;  %v17478_v34 = vor.u32 %v20312_v8, %v17475_v53 }
 0x341   :  { %10104 = vmatpush.bf16.msra.mxu1 %v15174_v39  ;;  %v15747_v5 = vld [vmem:[#allocation7 + $0x9c8] sm:$0xf0]  ;;  %v18434_v35 = vor.u32 %v20560_v16, %v18433_v14  ;;  %v18369_v48 = vld [vmem:[#allocation7 + $0x1e08] sm:$0xf] }
 0x342   :  { %v20168_v9 = vld [vmem:[#allocation7 + $0x128c] sm:$0xf]  ;;  %v15750_v21 = vor.u32 %v19880_v42, %v15747_v5  ;;  %v20544_v39 = vld [vmem:[#allocation7 + $0x1e44] sm:$0xf0]  ;;  %v9900_v33 = vpop.f32.mrf.mxu1 }
 0x343   :  { %10113 = vmatpush.bf16.msra.mxu2 %v15942_v27  ;;  %10092 = vmatpush.bf16.msra.mxu0 %v14598_v44  ;;  %v16899_v19 = vld [vmem:[#allocation7 + $0x12c8] sm:$0xf0]  ;;  %v18370_v46 = vor.u32 %v20544_v39, %v18369_v48  ;;  %v18305_v15 = vld [vmem:[#allocation7 + $0x1d88] sm:$0xf] }
 0x344   :  { %10073 = vmatpush.bf16.msrb.mxu3 %v18562_v56  ;;  %v20296_v17 = vld [vmem:[#allocation7 + $0x168c] sm:$0xf]  ;;  %v16902_v7 = vor.u32 %v20168_v9, %v16899_v19  ;;  %v20528_v40 = vld [vmem:[#allocation7 + $0x1dc4] sm:$0xf0] }
 0x345   :  { %10105 = vmatpush.bf16.msra.mxu1 %v15110_v50  ;;  %10029 = vmatmul.bf16.vlgmr.msra.gmra.mxu3 %v21142_v29  ;;  %v17411_v25 = vld [vmem:[#allocation7 + $0x16c8] sm:$0xf0]  ;;  %v18306_v52 = vor.u32 %v20528_v40, %v18305_v15  ;;  %v18241_v20 = vld [vmem:[#allocation7 + $0x1d08] sm:$0xf] }
 0x346   :  { %v19864_v2 = vld [vmem:[#allocation7 + $0x90c] sm:$0xf]  ;;  %v17414_v28 = vor.u32 %v20296_v17, %v17411_v25  ;;  %v20512_v61 = vld [vmem:[#allocation7 + $0x1d44] sm:$0xf0] }
 0x347   :  { %10114 = vmatpush.bf16.msra.mxu2 %v15878_v57  ;;  %10093 = vmatpush.bf16.msra.mxu0 %v14534_v0  ;;  %v15683_v60 = vld [vmem:[#allocation7 + $0x948] sm:$0xf0]  ;;  %v9887_v57 = vpop.f32.mrf.mxu0  ;;  %v18177_v16 = vld [vmem:[#allocation7 + $0x1c88] sm:$0xf] }
 0x348   :  { %10074 = vmatpush.bf16.msrb.mxu3 %v18498_v6  ;;  %v20152_v27 = vld [vmem:[#allocation7 + $0x120c] sm:$0xf]  ;;  %v15686_v31 = vor.u32 %v19864_v2, %v15683_v60  ;;  %v9888_v62 = vadd.f32 %v9887_v57, %v4623_v36  ;;  %v18242_v6 = vor.u32 %v20512_v61, %v18241_v20  ;;  %v20496_v42 = vld [vmem:[#allocation7 + $0x1cc4] sm:$0xf0] }
 0x349   :  { %10106 = vmatpush.bf16.msra.mxu1 %v15046_v49  ;;  %v16835_v30 = vld [vmem:[#allocation7 + $0x1248] sm:$0xf0]  ;;  %v18113_v60 = vld [vmem:[#allocation7 + $0x1c08] sm:$0xf] }
 0x34a   :  { %10094 = vmatmul.bf16.vlgmr.msra.gmra.mxu0 %v21135_v24  ;;  %v20280_v47 = vld [vmem:[#allocation7 + $0x160c] sm:$0xf]  ;;  %v16838_v50 = vor.u32 %v20152_v27, %v16835_v30  ;;  %v9902_v39 = vpop.f32.mrf.mxu1 }
 0x34b   :  { %10138 = vmatpush.bf16.msrb.mxu0 %v17030_v41  ;;  %10115 = vmatpush.bf16.msra.mxu2 %v15814_v13  ;;  %v17347_v32 = vld [vmem:[#allocation7 + $0x1648] sm:$0xf0]  ;;  %v21220_v41 = vadd.f32 %v9900_v33, %v9888_v62 }
 0x34c   :  { %10107 = vmatmul.bf16.vlgmr.msra.gmra.mxu1 %v21137_v1  ;;  %10075 = vmatpush.bf16.msrb.mxu3 %v18434_v35  ;;  %v19848_v44 = vld [vmem:[#allocation7 + $0x88c] sm:$0xf]  ;;  %v17350_v51 = vor.u32 %v20280_v47, %v17347_v32 }
 0x34d   :  { %10151 = vmatpush.bf16.msrb.mxu1 %v17542_v4  ;;  %v15619_v45 = vld [vmem:[#allocation7 + $0x8c8] sm:$0xf0] }
 0x34e   :  { %v20136_v54 = vld [vmem:[#allocation7 + $0x118c] sm:$0xf]  ;;  %v15622_v58 = vor.u32 %v19848_v44, %v15619_v45  ;;  %v14985_v45 = vld [vmem:[#allocation7 + $0x390] sm:$0xf] }
 0x34f   :  { %10139 = vmatpush.bf16.msrb.mxu0 %v16966_v63  ;;  %10116 = vmatpush.bf16.msra.mxu2 %v15750_v21  ;;  %v16771_v55 = vld [vmem:[#allocation7 + $0x11c8] sm:$0xf0]  ;;  %v9889_v17 = vpop.f32.mrf.mxu0  ;;  %v18178_v21 = vor.u32 %v20496_v42, %v18177_v16  ;;  %v14857_v16 = vld [vmem:[#allocation7 + $0x290] sm:$0xf] }
 0x350   :  { %10076 = vmatpush.bf16.msrb.mxu3 %v18370_v46  ;;  %v20264_v56 = vld [vmem:[#allocation7 + $0x158c] sm:$0xf]  ;;  %v16774_v43 = vor.u32 %v20136_v54, %v16771_v55  ;;  %v15497_v54 = vld [vmem:[#allocation7 + $0x790] sm:$0xf] }
 0x351   :  { %10152 = vmatpush.bf16.msrb.mxu1 %v17478_v34  ;;  %v17283_v59 = vld [vmem:[#allocation7 + $0x15c8] sm:$0xf0]  ;;  %v19825_v55 = vld [vmem:[#allocation7 + $0x7cc] sm:$0xf0] }
 0x352   :  { %v19832_v12 = vld [vmem:[#allocation7 + $0x80c] sm:$0xf]  ;;  %v17286_v4 = vor.u32 %v20264_v56, %v17283_v59  ;;  %v15498_v33 = vor.u32 %v19825_v55, %v15497_v54  ;;  %v19665_v42 = vld [vmem:[#allocation7 + $0x2cc] sm:$0xf0] }
 0x353   :  { %10140 = vmatpush.bf16.msrb.mxu0 %v16902_v7  ;;  %10117 = vmatpush.bf16.msra.mxu2 %v15686_v31  ;;  %v15555_v0 = vld [vmem:[#allocation7 + $0x848] sm:$0xf0]  ;;  %v20480_v7 = vld [vmem:[#allocation7 + $0x1c44] sm:$0xf0]  ;;  %v19761_v54 = vld [vmem:[#allocation7 + $0x5cc] sm:$0xf0] }
 0x354   :  { %v20456_v3 = vld [vmem:[#allocation7 + $0x1b8c] sm:$0xf]  ;;  %10077 = vmatpush.bf16.msrb.mxu3 %v18306_v52  ;;  %v15558_v8 = vor.u32 %v19832_v12, %v15555_v0  ;;  %v18114_v36 = vor.u32 %v20480_v7, %v18113_v60  ;;  %v14921_v12 = vld [vmem:[#allocation7 + $0x310] sm:$0xf] }
 0x355   :  { %10153 = vmatpush.bf16.msrb.mxu1 %v17414_v28  ;;  %v18051_v49 = vld [vmem:[#allocation7 + $0x1bc8] sm:$0xf0]  ;;  %v19681_v0 = vld [vmem:[#allocation7 + $0x34c] sm:$0xf0] }
 0x356   :  { %v20120_v22 = vld [vmem:[#allocation7 + $0x110c] sm:$0xf]  ;;  %v18054_v14 = vor.u32 %v20456_v3, %v18051_v49  ;;  %v15433_v49 = vld [vmem:[#allocation7 + $0x710] sm:$0xf] }
 0x357   :  { %10141 = vmatpush.bf16.msrb.mxu0 %v16838_v50  ;;  %v16707_v38 = vld [vmem:[#allocation7 + $0x1148] sm:$0xf0]  ;;  %10118 = vmatpush.bf16.msra.mxu2 %v15622_v58  ;;  %v19697_v50 = vld [vmem:[#allocation7 + $0x3cc] sm:$0xf0] }
 0x358   :  { %v20248_v13 = vld [vmem:[#allocation7 + $0x150c] sm:$0xf]  ;;  %v16710_v5 = vor.u32 %v20120_v22, %v16707_v38  ;;  %10078 = vmatpush.bf16.msrb.mxu3 %v18242_v6  ;;  %v14986_v62 = vor.u32 %v19697_v50, %v14985_v45  ;;  %v19649_v60 = vld [vmem:[#allocation7 + $0x24c] sm:$0xf0] }
 0x359   :  { %10154 = vmatpush.bf16.msrb.mxu1 %v17350_v51  ;;  %v17219_v53 = vld [vmem:[#allocation7 + $0x1548] sm:$0xf0] }
 0x35a   :  { %v20440_v63 = vld [vmem:[#allocation7 + $0x1b0c] sm:$0xf]  ;;  %v17222_v35 = vor.u32 %v20248_v13, %v17219_v53  ;;  %v9861_v13 = vpop.f32.mrf.mxu2  ;;  %v14922_v53 = vor.u32 %v19681_v0, %v14921_v12 }
 0x35b   :  { %10142 = vmatpush.bf16.msrb.mxu0 %v16774_v43  ;;  %v17987_v34 = vld [vmem:[#allocation7 + $0x1b48] sm:$0xf0]  ;;  %10119 = vmatpush.bf16.msra.mxu2 %v15558_v8 }
 0x35c   :  { %v20104_v9 = vld [vmem:[#allocation7 + $0x108c] sm:$0xf]  ;;  %v17990_v2 = vor.u32 %v20440_v63, %v17987_v34  ;;  %10079 = vmatpush.bf16.msrb.mxu3 %v18178_v21 }
 0x35d   :  { %10155 = vmatpush.bf16.msrb.mxu1 %v17286_v4  ;;  %v16643_v19 = vld [vmem:[#allocation7 + $0x10c8] sm:$0xf0]  ;;  %v19809_v4 = vld [vmem:[#allocation7 + $0x74c] sm:$0xf0] }
 0x35e   :  { %v20232_v25 = vld [vmem:[#allocation7 + $0x148c] sm:$0xf]  ;;  %v16646_v46 = vor.u32 %v20104_v9, %v16643_v19  ;;  %10120 = vmatmul.bf16.vlgmr.msra.gmra.mxu2 %v21139_v26  ;;  %v19793_v9 = vld [vmem:[#allocation7 + $0x6cc] sm:$0xf0] }
 0x35f   :  { %v17155_v48 = vld [vmem:[#allocation7 + $0x14c8] sm:$0xf0]  ;;  %10164 = vmatpush.bf16.msrb.mxu2 %v18054_v14  ;;  %10143 = vmatpush.bf16.msrb.mxu0 %v16710_v5  ;;  %v15434_v14 = vor.u32 %v19809_v4, %v15433_v49  ;;  %v21225_v5 = vadd.f32 %v9861_v13, %v21213_v23  ;;  %v15177_v49 = vld [vmem:[#allocation7 + $0x510] sm:$0xf] }
 0x360   :  { %v20072_v28 = vld [vmem:[#allocation7 + $0xf8c] sm:$0xf]  ;;  %v17158_v31 = vor.u32 %v20232_v25, %v17155_v48  ;;  %10080 = vmatpush.bf16.msrb.mxu3 %v18114_v36  ;;  %v14858_v48 = vor.u32 %v19665_v42, %v14857_v16  ;;  %v14729_v36 = vld [vmem:[#allocation7 + $0x190] sm:$0xf] }
 0x361   :  { %v16515_v27 = vld [vmem:[#allocation7 + $0xfc8] sm:$0xf0]  ;;  %10156 = vmatpush.bf16.msrb.mxu1 %v17222_v35  ;;  %v15369_v35 = vld [vmem:[#allocation7 + $0x690] sm:$0xf] }
 0x362   :  { %v20424_v30 = vld [vmem:[#allocation7 + $0x1a8c] sm:$0xf]  ;;  %v16518_v51 = vor.u32 %v20072_v28, %v16515_v27  ;;  %v15370_v39 = vor.u32 %v19793_v9, %v15369_v35  ;;  %v15305_v28 = vld [vmem:[#allocation7 + $0x610] sm:$0xf] }
 0x363   :  { %v17923_v47 = vld [vmem:[#allocation7 + $0x1ac8] sm:$0xf0]  ;;  %10165 = vmatpush.bf16.msrb.mxu2 %v17990_v2  ;;  %10144 = vmatpush.bf16.msrb.mxu0 %v16646_v46  ;;  %v14793_v2 = vld [vmem:[#allocation7 + $0x210] sm:$0xf] }
 0x364   :  { %v20088_v32 = vld [vmem:[#allocation7 + $0x100c] sm:$0xf]  ;;  %v17926_v52 = vor.u32 %v20424_v30, %v17923_v47  ;;  %10125 = vmatpush.bf16.msra.mxu3 %v16518_v51  ;;  %v19777_v46 = vld [vmem:[#allocation7 + $0x64c] sm:$0xf0] }
 0x365   :  { %v16579_v15 = vld [vmem:[#allocation7 + $0x1048] sm:$0xf0]  ;;  %10157 = vmatpush.bf16.msrb.mxu1 %v17158_v31  ;;  %10081 = vmatmul.bf16.vlgmr.msrb.gmra.mxu3 %v21197_v18  ;;  %v19937_v13 = vld [vmem:[#allocation7 + $0xb4c] sm:$0xf0] }
 0x366   :  { %v20216_v40 = vld [vmem:[#allocation7 + $0x140c] sm:$0xf]  ;;  %v16582_v57 = vor.u32 %v20088_v32, %v16579_v15  ;;  %v9863_v32 = vpop.f32.mrf.mxu2  ;;  %v14794_v15 = vor.u32 %v19649_v60, %v14793_v2  ;;  %v14601_v16 = vld [vmem:[#allocation7 + $0x90] sm:$0xf] }
 0x367   :  { %v17091_v44 = vld [vmem:[#allocation7 + $0x1448] sm:$0xf0]  ;;  %10166 = vmatpush.bf16.msrb.mxu2 %v17926_v52  ;;  %v21229_v45 = vpop.f32.mrf.mxu0  ;;  %v15241_v52 = vld [vmem:[#allocation7 + $0x590] sm:$0xf] }
 0x368   :  { %v20056_v56 = vld [vmem:[#allocation7 + $0xf0c] sm:$0xf]  ;;  %v17094_v61 = vor.u32 %v20216_v40, %v17091_v44  ;;  %10145 = vmatpush.bf16.msrb.mxu0 %v16582_v57  ;;  %v15306_v40 = vor.u32 %v19777_v46, %v15305_v28  ;;  %v19633_v44 = vld [vmem:[#allocation7 + $0x1cc] sm:$0xf0] }
 0x369   :  { %v16451_v58 = vld [vmem:[#allocation7 + $0xf48] sm:$0xf0]  ;;  %v19601_v9 = vld [vmem:[#allocation7 + $0xcc] sm:$0xf0] }
 0x36a   :  { %v20408_v59 = vld [vmem:[#allocation7 + $0x1a0c] sm:$0xf]  ;;  %v16454_v43 = vor.u32 %v20056_v56, %v16451_v58  ;;  %10158 = vmatpush.bf16.msrb.mxu1 %v17094_v61  ;;  %v21231_v56 = vpop.f32.mrf.mxu1  ;;  %v19953_v61 = vld [vmem:[#allocation7 + $0xbcc] sm:$0xf0]  ;;  %v14602_v28 = vor.u32 %v19601_v9, %v14601_v16 }
 0x36b   :  { %v17859_v20 = vld [vmem:[#allocation7 + $0x1a48] sm:$0xf0]  ;;  %10146 = vmatmul.bf16.vlgmr.msrb.gmra.mxu0 %v21157_v37  ;;  %v17417_v16 = vld [vmem:[#allocation7 + $0x1690] sm:$0xf] }
 0x36c   :  { %v17862_v3 = vor.u32 %v20408_v59, %v17859_v20  ;;  %v20040_v6 = vld [vmem:[#allocation7 + $0xe8c] sm:$0xf]  ;;  %10190 = vmatpush.bf16.msra.mxu0 %v14986_v62  ;;  %10126 = vmatpush.bf16.msra.mxu3 %v16454_v43  ;;  %v16009_v20 = vld [vmem:[#allocation7 + $0xb90] sm:$0xf]  ;;  %v14730_v62 = vor.u32 %v19633_v44, %v14729_v36 }
 0x36d   :  { %v16387_v22 = vld [vmem:[#allocation7 + $0xec8] sm:$0xf0]  ;;  %10159 = vmatmul.bf16.vlgmr.msrb.gmra.mxu1 %v21159_v11  ;;  %v14665_v43 = vld [vmem:[#allocation7 + $0x110] sm:$0xf]  ;;  %v16010_v4 = vor.u32 %v19953_v61, %v16009_v20 }
 0x36e   :  { %v20392_v38 = vld [vmem:[#allocation7 + $0x198c] sm:$0xf]  ;;  %10203 = vmatpush.bf16.msra.mxu1 %v15498_v33  ;;  %10167 = vmatpush.bf16.msrb.mxu2 %v17862_v3  ;;  %v16390_v63 = vor.u32 %v20040_v6, %v16387_v22  ;;  %v15242_v33 = vor.u32 %v19761_v54, %v15241_v52  ;;  %v19617_v3 = vld [vmem:[#allocation7 + $0x14c] sm:$0xf0] }
 0x36f   :  { %v17795_v8 = vld [vmem:[#allocation7 + $0x19c8] sm:$0xf0]  ;;  %v19745_v6 = vld [vmem:[#allocation7 + $0x54c] sm:$0xf0]  ;;  %v9941_v42 = vpop.f32.mrf.mxu0 }
 0x370   :  { %v17798_v34 = vor.u32 %v20392_v38, %v17795_v8  ;;  %v20024_v19 = vld [vmem:[#allocation7 + $0xe0c] sm:$0xf]  ;;  %10191 = vmatpush.bf16.msra.mxu0 %v14922_v53  ;;  %10127 = vmatpush.bf16.msra.mxu3 %v16390_v63  ;;  %v15945_v8 = vld [vmem:[#allocation7 + $0xb10] sm:$0xf]  ;;  %v9913_v53 = vpop.f32.mrf.mxu2 }
 0x371   :  { %v16323_v17 = vld [vmem:[#allocation7 + $0xe48] sm:$0xf0]  ;;  %v21234_v63 = vadd.f32 %v9913_v53, %v21220_v41  ;;  %v14537_v41 = vld [vmem:[#allocation7 + $0x10] sm:$0xf] }
 0x372   :  { %v20376_v21 = vld [vmem:[#allocation7 + $0x190c] sm:$0xf]  ;;  %10204 = vmatpush.bf16.msra.mxu1 %v15434_v14  ;;  %10168 = vmatpush.bf16.msrb.mxu2 %v17798_v34  ;;  %v16326_v23 = vor.u32 %v20024_v19, %v16323_v17  ;;  %v14666_v14 = vor.u32 %v19617_v3, %v14665_v43  ;;  %v15178_v34 = vor.u32 %v19745_v6, %v15177_v49  ;;  %v15113_v19 = vld [vmem:[#allocation7 + $0x490] sm:$0xf] }
 0x373   :  { %v17731_v25 = vld [vmem:[#allocation7 + $0x1948] sm:$0xf0]  ;;  %v19729_v17 = vld [vmem:[#allocation7 + $0x4cc] sm:$0xf0] }
 0x374   :  { %v17734_v7 = vor.u32 %v20376_v21, %v17731_v25  ;;  %v20008_v27 = vld [vmem:[#allocation7 + $0xd8c] sm:$0xf]  ;;  %10192 = vmatpush.bf16.msra.mxu0 %v14858_v48  ;;  %10128 = vmatpush.bf16.msra.mxu3 %v16326_v23  ;;  %v9954_v21 = vpop.f32.mrf.mxu1  ;;  %v15946_v25 = vor.u32 %v19937_v13, %v15945_v8  ;;  %v15881_v23 = vld [vmem:[#allocation7 + $0xa90] sm:$0xf]  ;;  %v15114_v46 = vor.u32 %v19729_v17, %v15113_v19 }
 0x375   :  { %v16259_v30 = vld [vmem:[#allocation7 + $0xdc8] sm:$0xf0]  ;;  %v20209_v36 = vld [vmem:[#allocation7 + $0x13cc] sm:$0xf0] }
 0x376   :  { %v20360_v47 = vld [vmem:[#allocation7 + $0x188c] sm:$0xf]  ;;  %10205 = vmatpush.bf16.msra.mxu1 %v15370_v39  ;;  %10169 = vmatpush.bf16.msrb.mxu2 %v17734_v7  ;;  %v16262_v50 = vor.u32 %v20008_v27, %v16259_v30  ;;  %v19921_v7 = vld [vmem:[#allocation7 + $0xacc] sm:$0xf0] }
 0x377   :  { %v17667_v31 = vld [vmem:[#allocation7 + $0x18c8] sm:$0xf0]  ;;  %v19585_v30 = vld [vmem:[#allocation7 + $0x4c] sm:$0xf0] }
 0x378   :  { %v17670_v51 = vor.u32 %v20360_v47, %v17667_v31  ;;  %v19992_v55 = vld [vmem:[#allocation7 + $0xd0c] sm:$0xf]  ;;  %10193 = vmatpush.bf16.msra.mxu0 %v14794_v15  ;;  %10129 = vmatpush.bf16.msra.mxu3 %v16262_v50  ;;  %v15049_v47 = vld [vmem:[#allocation7 + $0x410] sm:$0xf]  ;;  %v15882_v15 = vor.u32 %v19921_v7, %v15881_v23  ;;  %v9915_v54 = vpop.f32.mrf.mxu2 }
 0x379   :  { %v16195_v57 = vld [vmem:[#allocation7 + $0xd48] sm:$0xf0]  ;;  %v19713_v31 = vld [vmem:[#allocation7 + $0x44c] sm:$0xf0] }
 0x37a   :  { %v20344_v58 = vld [vmem:[#allocation7 + $0x180c] sm:$0xf]  ;;  %10206 = vmatpush.bf16.msra.mxu1 %v15306_v40  ;;  %10170 = vmatpush.bf16.msrb.mxu2 %v17670_v51  ;;  %v16198_v12 = vor.u32 %v19992_v55, %v16195_v57  ;;  %v17033_v40 = vld [vmem:[#allocation7 + $0x1390] sm:$0xf]  ;;  %v14538_v55 = vor.u32 %v19585_v30, %v14537_v41 }
 0x37b   :  { %v17603_v59 = vld [vmem:[#allocation7 + $0x1848] sm:$0xf0]  ;;  %v17545_v44 = vld [vmem:[#allocation7 + $0x1790] sm:$0xf]  ;;  %v17034_v20 = vor.u32 %v20209_v36, %v17033_v40 }
 0x37c   :  { %v17606_v0 = vor.u32 %v20344_v58, %v17603_v59  ;;  %v19976_v22 = vld [vmem:[#allocation7 + $0xc8c] sm:$0xf]  ;;  %10194 = vmatpush.bf16.msra.mxu0 %v14730_v62  ;;  %10130 = vmatpush.bf16.msra.mxu3 %v16198_v12  ;;  %v20337_v50 = vld [vmem:[#allocation7 + $0x17cc] sm:$0xf0]  ;;  %v15050_v59 = vor.u32 %v19713_v31, %v15049_v47 }
 0x37d   :  { %v16131_v38 = vld [vmem:[#allocation7 + $0xcc8] sm:$0xf0]  ;;  %v15817_v57 = vld [vmem:[#allocation7 + $0xa10] sm:$0xf]  ;;  %v17546_v61 = vor.u32 %v20337_v50, %v17545_v44 }
 0x37e   :  { %10207 = vmatpush.bf16.msra.mxu1 %v15242_v33  ;;  %10171 = vmatpush.bf16.msrb.mxu2 %v17606_v0  ;;  %v16134_v35 = vor.u32 %v19976_v22, %v16131_v38  ;;  %v19960_v48 = vld [vmem:[#allocation7 + $0xc0c] sm:$0xf]  ;;  %v19905_v58 = vld [vmem:[#allocation7 + $0xa4c] sm:$0xf0] }
 0x37f   :  { %v16067_v39 = vld [vmem:[#allocation7 + $0xc48] sm:$0xf0]  ;;  %v16969_v33 = vld [vmem:[#allocation7 + $0x1310] sm:$0xf]  ;;  %v15818_v43 = vor.u32 %v19905_v58, %v15817_v57 }
 0x380   :  { %v20584_v2 = vld [vmem:[#allocation7 + $0x1f8c] sm:$0xf]  ;;  %10195 = vmatpush.bf16.msra.mxu0 %v14666_v14  ;;  %10131 = vmatpush.bf16.msra.mxu3 %v16134_v35  ;;  %v16070_v27 = vor.u32 %v19960_v48, %v16067_v39  ;;  %v20193_v12 = vld [vmem:[#allocation7 + $0x134c] sm:$0xf0]  ;;  %v21242_v48 = vld [vmem:[#allocation8] sm:$0xff] }
 0x381   :  { %v18563_v60 = vld [vmem:[#allocation7 + $0x1fc8] sm:$0xf0]  ;;  %10172 = vmatmul.bf16.vlgmr.msrb.gmra.mxu2 %v21182_v10  ;;  %v17481_v0 = vld [vmem:[#allocation7 + $0x1710] sm:$0xf]  ;;  %v16970_v38 = vor.u32 %v20193_v12, %v16969_v33  ;;  %v21240_v21 = vpop.f32.mrf.mxu2  ;;  %v4624_v39 = vperm.slane %v21242_v48, 2 }
 0x382   :  { %10216 = vmatpush.bf16.msra.mxu2 %v16010_v4  ;;  %10208 = vmatpush.bf16.msra.mxu1 %v15178_v34  ;;  %v18566_v32 = vor.u32 %v20584_v2, %v18563_v60  ;;  %v20568_v51 = vld [vmem:[#allocation7 + $0x1f0c] sm:$0xf]  ;;  %v20321_v3 = vld [vmem:[#allocation7 + $0x174c] sm:$0xf0] }
 0x383   :  { %v18499_v52 = vld [vmem:[#allocation7 + $0x1f48] sm:$0xf0]  ;;  %v15753_v6 = vld [vmem:[#allocation7 + $0x990] sm:$0xf]  ;;  %v17482_v8 = vor.u32 %v20321_v3, %v17481_v0 }
 0x384   :  { %10196 = vmatpush.bf16.msra.mxu0 %v14602_v28  ;;  %10132 = vmatpush.bf16.msra.mxu3 %v16070_v27  ;;  %v18502_v62 = vor.u32 %v20568_v51, %v18499_v52  ;;  %v20552_v49 = vld [vmem:[#allocation7 + $0x1e8c] sm:$0xf]  ;;  %v19889_v22 = vld [vmem:[#allocation7 + $0x9cc] sm:$0xf0] }
 0x385   :  { %v18435_v4 = vld [vmem:[#allocation7 + $0x1ec8] sm:$0xf0]  ;;  %v16905_v53 = vld [vmem:[#allocation7 + $0x1290] sm:$0xf]  ;;  %v15754_v42 = vor.u32 %v19889_v22, %v15753_v6 }
 0x386   :  { %10217 = vmatpush.bf16.msra.mxu2 %v15946_v25  ;;  %10209 = vmatpush.bf16.msra.mxu1 %v15114_v46  ;;  %v18438_v13 = vor.u32 %v20552_v49, %v18435_v4  ;;  %v20177_v14 = vld [vmem:[#allocation7 + $0x12cc] sm:$0xf0]  ;;  %v20536_v35 = vld [vmem:[#allocation7 + $0x1e0c] sm:$0xf] }
 0x387   :  { %10133 = vmatmul.bf16.vlgmr.msra.gmra.mxu3 %v21142_v29  ;;  %v20305_v34 = vld [vmem:[#allocation7 + $0x16cc] sm:$0xf0]  ;;  %v18371_v9 = vld [vmem:[#allocation7 + $0x1e48] sm:$0xf0]  ;;  %v16906_v25 = vor.u32 %v20177_v14, %v16905_v53 }
 0x388   :  { %10177 = vmatpush.bf16.msrb.mxu3 %v18566_v32  ;;  %10197 = vmatpush.bf16.msra.mxu0 %v14538_v55  ;;  %v15689_v19 = vld [vmem:[#allocation7 + $0x910] sm:$0xf]  ;;  %v17418_v2 = vor.u32 %v20305_v34, %v17417_v16  ;;  %v18374_v60 = vor.u32 %v20536_v35, %v18371_v9  ;;  %v20520_v27 = vld [vmem:[#allocation7 + $0x1d8c] sm:$0xf]  ;;  %v9874_v55 = vpop.f32.mrf.mxu3 }
 0x389   :  { %v19873_v17 = vld [vmem:[#allocation7 + $0x94c] sm:$0xf0]  ;;  %v18307_v30 = vld [vmem:[#allocation7 + $0x1dc8] sm:$0xf0]  ;;  %v10004_v54 = vpop.f32.mrf.mxu1  ;;  %v9967_v0 = vpop.f32.mrf.mxu2 }
 0x38a   :  { %10218 = vmatpush.bf16.msra.mxu2 %v15882_v15  ;;  %10210 = vmatpush.bf16.msra.mxu1 %v15050_v59  ;;  %v16841_v23 = vld [vmem:[#allocation7 + $0x1210] sm:$0xf]  ;;  %v15690_v41 = vor.u32 %v19873_v17, %v15689_v19  ;;  %v9991_v15 = vpop.f32.mrf.mxu0  ;;  %v18310_v36 = vor.u32 %v20520_v27, %v18307_v30  ;;  %v20504_v59 = vld [vmem:[#allocation7 + $0x1d0c] sm:$0xf] }
 0x38b   :  { %10198 = vmatmul.bf16.vlgmr.msra.gmra.mxu0 %v21135_v24  ;;  %v20161_v7 = vld [vmem:[#allocation7 + $0x124c] sm:$0xf0]  ;;  %v9992_v52 = vadd.f32 %v9991_v15, %v4624_v39  ;;  %v20488_v14 = vld [vmem:[#allocation7 + $0x1c8c] sm:$0xf] }
 0x38c   :  { %10242 = vmatpush.bf16.msrb.mxu0 %v17034_v20  ;;  %10178 = vmatpush.bf16.msrb.mxu3 %v18502_v62  ;;  %v17353_v28 = vld [vmem:[#allocation7 + $0x1610] sm:$0xf]  ;;  %v16842_v32 = vor.u32 %v20161_v7, %v16841_v23  ;;  %v18243_v20 = vld [vmem:[#allocation7 + $0x1d48] sm:$0xf0] }
 0x38d   :  { %10211 = vmatmul.bf16.vlgmr.msra.gmra.mxu1 %v21137_v1  ;;  %v20289_v46 = vld [vmem:[#allocation7 + $0x164c] sm:$0xf0]  ;;  %v21248_v12 = vadd.f32 %v10004_v54, %v9992_v52  ;;  %v18246_v6 = vor.u32 %v20504_v59, %v18243_v20  ;;  %v18179_v16 = vld [vmem:[#allocation7 + $0x1cc8] sm:$0xf0]  ;;  %v19689_v52 = vld [vmem:[#allocation7 + $0x394] sm:$0xf] }
 0x38e   :  { %10255 = vmatpush.bf16.msrb.mxu1 %v17546_v61  ;;  %10219 = vmatpush.bf16.msra.mxu2 %v15818_v43  ;;  %v15625_v47 = vld [vmem:[#allocation7 + $0x890] sm:$0xf]  ;;  %v17354_v40 = vor.u32 %v20289_v46, %v17353_v28  ;;  %v21246_v61 = vadd.f32 %v9874_v55, %v21225_v5  ;;  %v18115_v46 = vld [vmem:[#allocation7 + $0x1c48] sm:$0xf0]  ;;  %v14987_v54 = vld [vmem:[#allocation7 + $0x3d0] sm:$0xf0] }
 0x38f   :  { %v19857_v31 = vld [vmem:[#allocation7 + $0x8cc] sm:$0xf0]  ;;  %v15499_v59 = vld [vmem:[#allocation7 + $0x7d0] sm:$0xf0] }
 0x390   :  { %10243 = vmatpush.bf16.msrb.mxu0 %v16970_v38  ;;  %10179 = vmatpush.bf16.msrb.mxu3 %v18438_v13  ;;  %v16777_v44 = vld [vmem:[#allocation7 + $0x1190] sm:$0xf]  ;;  %v15626_v57 = vor.u32 %v19857_v31, %v15625_v47 }
 0x391   :  { %v20145_v50 = vld [vmem:[#allocation7 + $0x11cc] sm:$0xf0]  ;;  %v10006_v39 = vpop.f32.mrf.mxu1 }
 0x392   :  { %10256 = vmatpush.bf16.msrb.mxu1 %v17482_v8  ;;  %10220 = vmatpush.bf16.msra.mxu2 %v15754_v42  ;;  %v17289_v51 = vld [vmem:[#allocation7 + $0x1590] sm:$0xf]  ;;  %v16778_v43 = vor.u32 %v20145_v50, %v16777_v44  ;;  %v9993_v9 = vpop.f32.mrf.mxu0 }
 0x393   :  { %v20273_v58 = vld [vmem:[#allocation7 + $0x15cc] sm:$0xf0] }
 0x394   :  { %10244 = vmatpush.bf16.msrb.mxu0 %v16906_v25  ;;  %10180 = vmatpush.bf16.msrb.mxu3 %v18374_v60  ;;  %v15561_v62 = vld [vmem:[#allocation7 + $0x810] sm:$0xf]  ;;  %v17290_v4 = vor.u32 %v20273_v58, %v17289_v51  ;;  %v18182_v60 = vor.u32 %v20488_v14, %v18179_v16  ;;  %v19817_v58 = vld [vmem:[#allocation7 + $0x794] sm:$0xf] }
 0x395   :  { %v19841_v33 = vld [vmem:[#allocation7 + $0x84c] sm:$0xf0]  ;;  %v15435_v14 = vld [vmem:[#allocation7 + $0x750] sm:$0xf0] }
 0x396   :  { %10257 = vmatpush.bf16.msrb.mxu1 %v17418_v2  ;;  %10221 = vmatpush.bf16.msra.mxu2 %v15690_v41  ;;  %v18057_v3 = vld [vmem:[#allocation7 + $0x1b90] sm:$0xf]  ;;  %v15562_v8 = vor.u32 %v19841_v33, %v15561_v62  ;;  %v9876_v2 = vpop.f32.mrf.mxu3  ;;  %v20472_v41 = vld [vmem:[#allocation7 + $0x1c0c] sm:$0xf] }
 0x397   :  { %v20465_v49 = vld [vmem:[#allocation7 + $0x1bcc] sm:$0xf0]  ;;  %v18118_v50 = vor.u32 %v20472_v41, %v18115_v46 }
 0x398   :  { %10245 = vmatpush.bf16.msrb.mxu0 %v16842_v32  ;;  %10181 = vmatpush.bf16.msrb.mxu3 %v18310_v36  ;;  %v16713_v22 = vld [vmem:[#allocation7 + $0x1110] sm:$0xf]  ;;  %v18058_v53 = vor.u32 %v20465_v49, %v18057_v3 }
 0x399   :  { %v20129_v38 = vld [vmem:[#allocation7 + $0x114c] sm:$0xf0] }
 0x39a   :  { %10258 = vmatpush.bf16.msrb.mxu1 %v17354_v40  ;;  %10222 = vmatpush.bf16.msra.mxu2 %v15626_v57  ;;  %v17225_v13 = vld [vmem:[#allocation7 + $0x1510] sm:$0xf]  ;;  %v16714_v42 = vor.u32 %v20129_v38, %v16713_v22  ;;  %v19673_v22 = vld [vmem:[#allocation7 + $0x314] sm:$0xf] }
 0x39b   :  { %v20257_v5 = vld [vmem:[#allocation7 + $0x154c] sm:$0xf0]  ;;  %v14923_v38 = vld [vmem:[#allocation7 + $0x350] sm:$0xf0] }
 0x39c   :  { %10246 = vmatpush.bf16.msrb.mxu0 %v16778_v43  ;;  %v17993_v34 = vld [vmem:[#allocation7 + $0x1b10] sm:$0xf]  ;;  %10182 = vmatpush.bf16.msrb.mxu3 %v18246_v6  ;;  %v17226_v19 = vor.u32 %v20257_v5, %v17225_v13  ;;  %v15502_v6 = vor.u32 %v19817_v58, %v15499_v59  ;;  %v19625_v59 = vld [vmem:[#allocation7 + $0x194] sm:$0xf] }
 0x39d   :  { %v20449_v35 = vld [vmem:[#allocation7 + $0x1b4c] sm:$0xf0] }
 0x39e   :  { %10259 = vmatpush.bf16.msrb.mxu1 %v17290_v4  ;;  %v16649_v17 = vld [vmem:[#allocation7 + $0x1090] sm:$0xf]  ;;  %10223 = vmatpush.bf16.msra.mxu2 %v15562_v8  ;;  %v17994_v28 = vor.u32 %v20449_v35, %v17993_v34  ;;  %v9926_v49 = vpop.f32.mrf.mxu3  ;;  %v14990_v4 = vor.u32 %v19689_v52, %v14987_v54 }
 0x39f   :  { %v20113_v25 = vld [vmem:[#allocation7 + $0x10cc] sm:$0xf0]  ;;  %v9927_v8 = vadd.f32 %v9926_v49, %v21234_v63  ;;  %v14859_v63 = vld [vmem:[#allocation7 + $0x2d0] sm:$0xf0] }
 0x3a0   :  { %v17161_v23 = vld [vmem:[#allocation7 + $0x1490] sm:$0xf]  ;;  %10247 = vmatpush.bf16.msrb.mxu0 %v16714_v42  ;;  %v16650_v30 = vor.u32 %v20113_v25, %v16649_v17  ;;  %10183 = vmatpush.bf16.msrb.mxu3 %v18182_v60  ;;  %v19657_v25 = vld [vmem:[#allocation7 + $0x294] sm:$0xf] }
 0x3a1   :  { %v20241_v7 = vld [vmem:[#allocation7 + $0x14cc] sm:$0xf0]  ;;  %10224 = vmatmul.bf16.vlgmr.msra.gmra.mxu2 %v21139_v26  ;;  %v9940_v9 = vadd.f32 %v21229_v45, %v9927_v8  ;;  %v19785_v60 = vld [vmem:[#allocation7 + $0x694] sm:$0xf] }
 0x3a2   :  { %10268 = vmatpush.bf16.msrb.mxu2 %v18058_v53  ;;  %v16521_v27 = vld [vmem:[#allocation7 + $0xf90] sm:$0xf]  ;;  %10260 = vmatpush.bf16.msrb.mxu1 %v17226_v19  ;;  %v17162_v15 = vor.u32 %v20241_v7, %v17161_v23  ;;  %v19801_v53 = vld [vmem:[#allocation7 + $0x714] sm:$0xf]  ;;  %v14926_v19 = vor.u32 %v19673_v22, %v14923_v38 }
 0x3a3   :  { %v20081_v47 = vld [vmem:[#allocation7 + $0xfcc] sm:$0xf0]  ;;  %v15438_v17 = vor.u32 %v19801_v53, %v15435_v14  ;;  %v15371_v23 = vld [vmem:[#allocation7 + $0x6d0] sm:$0xf0] }
 0x3a4   :  { %v17929_v31 = vld [vmem:[#allocation7 + $0x1a90] sm:$0xf]  ;;  %v16522_v55 = vor.u32 %v20081_v47, %v16521_v27  ;;  %10248 = vmatpush.bf16.msrb.mxu0 %v16650_v30  ;;  %10184 = vmatpush.bf16.msrb.mxu3 %v18118_v50  ;;  %v10017_v30 = vpop.f32.mrf.mxu2  ;;  %v19769_v50 = vld [vmem:[#allocation7 + $0x614] sm:$0xf] }
 0x3a5   :  { %v20433_v32 = vld [vmem:[#allocation7 + $0x1acc] sm:$0xf0]  ;;  %v19945_v38 = vld [vmem:[#allocation7 + $0xb94] sm:$0xf] }
 0x3a6   :  { %v16585_v40 = vld [vmem:[#allocation7 + $0x1010] sm:$0xf]  ;;  %10269 = vmatpush.bf16.msrb.mxu2 %v17994_v28  ;;  %v17930_v57 = vor.u32 %v20433_v32, %v17929_v31  ;;  %10261 = vmatpush.bf16.msrb.mxu1 %v17162_v15  ;;  %v9953_v28 = vadd.f32 %v21231_v56, %v9940_v9  ;;  %v9928_v47 = vpop.f32.mrf.mxu3  ;;  %v14862_v31 = vor.u32 %v19657_v25, %v14859_v63  ;;  %v19641_v15 = vld [vmem:[#allocation7 + $0x214] sm:$0xf] }
 0x3a7   :  { %v20097_v36 = vld [vmem:[#allocation7 + $0x104c] sm:$0xf0]  ;;  %10185 = vmatmul.bf16.vlgmr.msrb.gmra.mxu3 %v21197_v18  ;;  %v15374_v32 = vor.u32 %v19785_v60, %v15371_v23  ;;  %v21259_v56 = vadd.f32 %v10017_v30, %v21248_v12  ;;  %v16011_v8 = vld [vmem:[#allocation7 + $0xbd0] sm:$0xf0] }
 0x3a8   :  { %v17097_v44 = vld [vmem:[#allocation7 + $0x1410] sm:$0xf]  ;;  %v16586_v62 = vor.u32 %v20097_v36, %v16585_v40  ;;  %10229 = vmatpush.bf16.msra.mxu3 %v16522_v55  ;;  %v9966_v27 = vadd.f32 %v21240_v21, %v9953_v28  ;;  %v14795_v40 = vld [vmem:[#allocation7 + $0x250] sm:$0xf0] }
 0x3a9   :  { %v20225_v51 = vld [vmem:[#allocation7 + $0x144c] sm:$0xf0]  ;;  %v21263_v12 = vpop.f32.mrf.mxu1  ;;  %v14667_v9 = vld [vmem:[#allocation7 + $0x150] sm:$0xf0] }
 0x3aa   :  { %v16457_v20 = vld [vmem:[#allocation7 + $0xf10] sm:$0xf]  ;;  %v17098_v3 = vor.u32 %v20225_v51, %v17097_v44  ;;  %10270 = vmatpush.bf16.msrb.mxu2 %v17930_v57  ;;  %10249 = vmatpush.bf16.msrb.mxu0 %v16586_v62  ;;  %v15307_v51 = vld [vmem:[#allocation7 + $0x650] sm:$0xf0]  ;;  %v14798_v57 = vor.u32 %v19641_v15, %v14795_v40  ;;  %v21261_v62 = vpop.f32.mrf.mxu0 }
 0x3ab   :  { %v20065_v33 = vld [vmem:[#allocation7 + $0xf4c] sm:$0xf0]  ;;  %v15310_v58 = vor.u32 %v19769_v50, %v15307_v51  ;;  %v15179_v25 = vld [vmem:[#allocation7 + $0x550] sm:$0xf0] }
 0x3ac   :  { %v17865_v0 = vld [vmem:[#allocation7 + $0x1a10] sm:$0xf]  ;;  %v16458_v13 = vor.u32 %v20065_v33, %v16457_v20  ;;  %10262 = vmatpush.bf16.msrb.mxu1 %v17098_v3  ;;  %v14731_v20 = vld [vmem:[#allocation7 + $0x1d0] sm:$0xf0] }
 0x3ad   :  { %v20417_v43 = vld [vmem:[#allocation7 + $0x1a4c] sm:$0xf0]  ;;  %10250 = vmatmul.bf16.vlgmr.msrb.gmra.mxu0 %v21157_v37  ;;  %v15243_v3 = vld [vmem:[#allocation7 + $0x5d0] sm:$0xf0]  ;;  %v14734_v53 = vor.u32 %v19625_v59, %v14731_v20 }
 0x3ae   :  { %v17866_v5 = vor.u32 %v20417_v43, %v17865_v0  ;;  %v16393_v16 = vld [vmem:[#allocation7 + $0xe90] sm:$0xf]  ;;  %10294 = vmatpush.bf16.msra.mxu0 %v14990_v4  ;;  %10230 = vmatpush.bf16.msra.mxu3 %v16458_v13  ;;  %v19753_v43 = vld [vmem:[#allocation7 + $0x594] sm:$0xf]  ;;  %v10019_v13 = vpop.f32.mrf.mxu2 }
 0x3af   :  { %v20049_v42 = vld [vmem:[#allocation7 + $0xecc] sm:$0xf0]  ;;  %10263 = vmatmul.bf16.vlgmr.msrb.gmra.mxu1 %v21159_v11  ;;  %v15246_v14 = vor.u32 %v19753_v43, %v15243_v3  ;;  %v15947_v60 = vld [vmem:[#allocation7 + $0xb50] sm:$0xf0] }
 0x3b0   :  { %v17801_v34 = vld [vmem:[#allocation7 + $0x1990] sm:$0xf]  ;;  %10307 = vmatpush.bf16.msra.mxu1 %v15502_v6  ;;  %10271 = vmatpush.bf16.msrb.mxu2 %v17866_v5  ;;  %v16394_v39 = vor.u32 %v20049_v42, %v16393_v16  ;;  %v9978_v5 = vpop.f32.mrf.mxu3  ;;  %v19721_v30 = vld [vmem:[#allocation7 + $0x494] sm:$0xf] }
 0x3b1   :  { %v20401_v35 = vld [vmem:[#allocation7 + $0x19cc] sm:$0xf0]  ;;  %v21265_v16 = vadd.f32 %v9978_v5, %v9966_v27  ;;  %v14603_v27 = vld [vmem:[#allocation7 + $0xd0] sm:$0xf0] }
 0x3b2   :  { %v17802_v2 = vor.u32 %v20401_v35, %v17801_v34  ;;  %v16329_v7 = vld [vmem:[#allocation7 + $0xe10] sm:$0xf]  ;;  %10295 = vmatpush.bf16.msra.mxu0 %v14926_v19  ;;  %10231 = vmatpush.bf16.msra.mxu3 %v16394_v39  ;;  %v19609_v35 = vld [vmem:[#allocation7 + $0x114] sm:$0xf]  ;;  %v10045_v28 = vpop.f32.mrf.mxu0 }
 0x3b3   :  { %v20033_v45 = vld [vmem:[#allocation7 + $0xe4c] sm:$0xf0]  ;;  %v19737_v19 = vld [vmem:[#allocation7 + $0x514] sm:$0xf]  ;;  %v14670_v23 = vor.u32 %v19609_v35, %v14667_v9 }
 0x3b4   :  { %v17737_v41 = vld [vmem:[#allocation7 + $0x1910] sm:$0xf]  ;;  %10308 = vmatpush.bf16.msra.mxu1 %v15438_v17  ;;  %10272 = vmatpush.bf16.msrb.mxu2 %v17802_v2  ;;  %v16330_v36 = vor.u32 %v20033_v45, %v16329_v7  ;;  %v16014_v17 = vor.u32 %v19945_v38, %v16011_v8  ;;  %v19929_v2 = vld [vmem:[#allocation7 + $0xb14] sm:$0xf]  ;;  %v10058_v45 = vpop.f32.mrf.mxu1 }
 0x3b5   :  { %v20385_v46 = vld [vmem:[#allocation7 + $0x194c] sm:$0xf0]  ;;  %v19593_v7 = vld [vmem:[#allocation7 + $0x94] sm:$0xf] }
 0x3b6   :  { %v17738_v44 = vor.u32 %v20385_v46, %v17737_v41  ;;  %v16265_v52 = vld [vmem:[#allocation7 + $0xd90] sm:$0xf]  ;;  %10296 = vmatpush.bf16.msra.mxu0 %v14862_v31  ;;  %10232 = vmatpush.bf16.msra.mxu3 %v16330_v36  ;;  %v15182_v41 = vor.u32 %v19737_v19, %v15179_v25  ;;  %v15115_v47 = vld [vmem:[#allocation7 + $0x4d0] sm:$0xf0]  ;;  %v15950_v31 = vor.u32 %v19929_v2, %v15947_v60 }
 0x3b7   :  { %v20017_v54 = vld [vmem:[#allocation7 + $0xdcc] sm:$0xf0]  ;;  %v15883_v50 = vld [vmem:[#allocation7 + $0xad0] sm:$0xf0] }
 0x3b8   :  { %v17673_v21 = vld [vmem:[#allocation7 + $0x1890] sm:$0xf]  ;;  %10309 = vmatpush.bf16.msra.mxu1 %v15374_v32  ;;  %10273 = vmatpush.bf16.msrb.mxu2 %v17738_v44  ;;  %v16266_v33 = vor.u32 %v20017_v54, %v16265_v52  ;;  %v19913_v44 = vld [vmem:[#allocation7 + $0xa94] sm:$0xf]  ;;  %v9980_v51 = vpop.f32.mrf.mxu3  ;;  %v14606_v52 = vor.u32 %v19593_v7, %v14603_v27 }
 0x3b9   :  { %v20369_v55 = vld [vmem:[#allocation7 + $0x18cc] sm:$0xf0]  ;;  %v19577_v54 = vld [vmem:[#allocation7 + $0x14] sm:$0xf] }
 0x3ba   :  { %v17674_v0 = vor.u32 %v20369_v55, %v17673_v21  ;;  %v16201_v49 = vld [vmem:[#allocation7 + $0xd10] sm:$0xf]  ;;  %10297 = vmatpush.bf16.msra.mxu0 %v14798_v57  ;;  %10233 = vmatpush.bf16.msra.mxu3 %v16266_v33  ;;  %v15118_v21 = vor.u32 %v19721_v30, %v15115_v47  ;;  %v14539_v57 = vld [vmem:[#allocation7 + $0x50] sm:$0xf0]  ;;  %v15886_v33 = vor.u32 %v19913_v44, %v15883_v50 }
 0x3bb   :  { %v20001_v4 = vld [vmem:[#allocation7 + $0xd4c] sm:$0xf0]  ;;  %v15051_v59 = vld [vmem:[#allocation7 + $0x450] sm:$0xf0] }
 0x3bc   :  { %v17609_v6 = vld [vmem:[#allocation7 + $0x1810] sm:$0xf]  ;;  %10310 = vmatpush.bf16.msra.mxu1 %v15310_v58  ;;  %10274 = vmatpush.bf16.msrb.mxu2 %v17674_v0  ;;  %v16202_v42 = vor.u32 %v20001_v4, %v16201_v49  ;;  %v19705_v58 = vld [vmem:[#allocation7 + $0x414] sm:$0xf] }
 0x3bd   :  { %v20353_v22 = vld [vmem:[#allocation7 + $0x184c] sm:$0xf0]  ;;  %v20201_v0 = vld [vmem:[#allocation7 + $0x1394] sm:$0xf]  ;;  %v15054_v13 = vor.u32 %v19705_v58, %v15051_v59 }
 0x3be   :  { %v17610_v34 = vor.u32 %v20353_v22, %v17609_v6  ;;  %v16137_v63 = vld [vmem:[#allocation7 + $0xc90] sm:$0xf]  ;;  %10298 = vmatpush.bf16.msra.mxu0 %v14734_v53  ;;  %10234 = vmatpush.bf16.msra.mxu3 %v16202_v42  ;;  %v17035_v43 = vld [vmem:[#allocation7 + $0x13d0] sm:$0xf0]  ;;  %v14542_v22 = vor.u32 %v19577_v54, %v14539_v57 }
 0x3bf   :  { %v19985_v39 = vld [vmem:[#allocation7 + $0xccc] sm:$0xf0]  ;;  %v20329_v3 = vld [vmem:[#allocation7 + $0x1794] sm:$0xf]  ;;  %v17038_v5 = vor.u32 %v20201_v0, %v17035_v43 }
 0x3c0   :  { %10311 = vmatpush.bf16.msra.mxu1 %v15246_v14  ;;  %10275 = vmatpush.bf16.msrb.mxu2 %v17610_v34  ;;  %v16138_v46 = vor.u32 %v19985_v39, %v16137_v63  ;;  %v16073_v32 = vld [vmem:[#allocation7 + $0xc10] sm:$0xf]  ;;  %v17547_v49 = vld [vmem:[#allocation7 + $0x17d0] sm:$0xf0] }
 0x3c1   :  { %v19969_v15 = vld [vmem:[#allocation7 + $0xc4c] sm:$0xf0]  ;;  %v19897_v38 = vld [vmem:[#allocation7 + $0xa14] sm:$0xf]  ;;  %v17550_v53 = vor.u32 %v20329_v3, %v17547_v49 }
 0x3c2   :  { %v18569_v40 = vld [vmem:[#allocation7 + $0x1f90] sm:$0xf]  ;;  %10299 = vmatpush.bf16.msra.mxu0 %v14670_v23  ;;  %10235 = vmatpush.bf16.msra.mxu3 %v16138_v46  ;;  %v16074_v55 = vor.u32 %v19969_v15, %v16073_v32  ;;  %v15819_v8 = vld [vmem:[#allocation7 + $0xa50] sm:$0xf0]  ;;  %v21271_v32 = vpop.f32.mrf.mxu2 }
 0x3c3   :  { %v20593_v36 = vld [vmem:[#allocation7 + $0x1fcc] sm:$0xf0]  ;;  %10276 = vmatmul.bf16.vlgmr.msrb.gmra.mxu2 %v21182_v10  ;;  %v20185_v42 = vld [vmem:[#allocation7 + $0x1314] sm:$0xf]  ;;  %v15822_v9 = vor.u32 %v19897_v38, %v15819_v8 }
 0x3c4   :  { %10320 = vmatpush.bf16.msra.mxu2 %v16014_v17  ;;  %10312 = vmatpush.bf16.msra.mxu1 %v15182_v41  ;;  %v18570_v20 = vor.u32 %v20593_v36, %v18569_v40  ;;  %v18505_v4 = vld [vmem:[#allocation7 + $0x1f10] sm:$0xf]  ;;  %v16971_v34 = vld [vmem:[#allocation7 + $0x1350] sm:$0xf0]  ;;  %v4625_v40 = vperm.slane %v21242_v48, 3 }
 0x3c5   :  { %v20577_v6 = vld [vmem:[#allocation7 + $0x1f4c] sm:$0xf0]  ;;  %v20313_v35 = vld [vmem:[#allocation7 + $0x1714] sm:$0xf]  ;;  %v16974_v2 = vor.u32 %v20185_v42, %v16971_v34 }
 0x3c6   :  { %10300 = vmatpush.bf16.msra.mxu0 %v14606_v52  ;;  %10236 = vmatpush.bf16.msra.mxu3 %v16074_v55  ;;  %v18506_v14 = vor.u32 %v20577_v6, %v18505_v4  ;;  %v17483_v19 = vld [vmem:[#allocation7 + $0x1750] sm:$0xf0]  ;;  %v18441_v17 = vld [vmem:[#allocation7 + $0x1e90] sm:$0xf] }
 0x3c7   :  { %v20561_v25 = vld [vmem:[#allocation7 + $0x1ecc] sm:$0xf0]  ;;  %v19881_v63 = vld [vmem:[#allocation7 + $0x994] sm:$0xf]  ;;  %v17486_v60 = vor.u32 %v20313_v35, %v17483_v19 }
 0x3c8   :  { %10321 = vmatpush.bf16.msra.mxu2 %v15950_v31  ;;  %10313 = vmatpush.bf16.msra.mxu1 %v15118_v21  ;;  %v15755_v39 = vld [vmem:[#allocation7 + $0x9d0] sm:$0xf0]  ;;  %v18442_v23 = vor.u32 %v20561_v25, %v18441_v17  ;;  %v18377_v27 = vld [vmem:[#allocation7 + $0x1e10] sm:$0xf]  ;;  %v10030_v42 = vpop.f32.mrf.mxu3 }
 0x3c9   :  { %10237 = vmatmul.bf16.vlgmr.msra.gmra.mxu3 %v21142_v29  ;;  %v20169_v7 = vld [vmem:[#allocation7 + $0x1294] sm:$0xf]  ;;  %v15758_v41 = vor.u32 %v19881_v63, %v15755_v39  ;;  %v20545_v30 = vld [vmem:[#allocation7 + $0x1e4c] sm:$0xf0]  ;;  %v10108_v6 = vpop.f32.mrf.mxu1  ;;  %v10031_v17 = vadd.f32 %v10030_v42, %v21259_v56 }
 0x3ca   :  { %10281 = vmatpush.bf16.msrb.mxu3 %v18570_v20  ;;  %10301 = vmatpush.bf16.msra.mxu0 %v14542_v22  ;;  %v16907_v28 = vld [vmem:[#allocation7 + $0x12d0] sm:$0xf0]  ;;  %v18378_v44 = vor.u32 %v20545_v30, %v18377_v27  ;;  %v18313_v55 = vld [vmem:[#allocation7 + $0x1d90] sm:$0xf]  ;;  %v10071_v34 = vpop.f32.mrf.mxu2 }
 0x3cb   :  { %v20297_v45 = vld [vmem:[#allocation7 + $0x1694] sm:$0xf]  ;;  %v16910_v15 = vor.u32 %v20169_v7, %v16907_v28  ;;  %v20529_v57 = vld [vmem:[#allocation7 + $0x1dcc] sm:$0xf0]  ;;  %v10044_v28 = vadd.f32 %v21261_v62, %v10031_v17 }
 0x3cc   :  { %10322 = vmatpush.bf16.msra.mxu2 %v15886_v33  ;;  %10314 = vmatpush.bf16.msra.mxu1 %v15054_v13  ;;  %v17419_v46 = vld [vmem:[#allocation7 + $0x16d0] sm:$0xf0]  ;;  %v10095_v33 = vpop.f32.mrf.mxu0  ;;  %v18314_v0 = vor.u32 %v20529_v57, %v18313_v55  ;;  %v18249_v8 = vld [vmem:[#allocation7 + $0x1d10] sm:$0xf] }
 0x3cd   :  { %10302 = vmatmul.bf16.vlgmr.msra.gmra.mxu0 %v21135_v24  ;;  %v19865_v47 = vld [vmem:[#allocation7 + $0x914] sm:$0xf]  ;;  %v17422_v36 = vor.u32 %v20297_v45, %v17419_v46  ;;  %v10096_v4 = vadd.f32 %v10095_v33, %v4625_v40  ;;  %v20513_v13 = vld [vmem:[#allocation7 + $0x1d4c] sm:$0xf0] }
 0x3ce   :  { %10346 = vmatpush.bf16.msrb.mxu0 %v17038_v5  ;;  %10282 = vmatpush.bf16.msrb.mxu3 %v18506_v14  ;;  %v15691_v31 = vld [vmem:[#allocation7 + $0x950] sm:$0xf0]  ;;  %v18250_v63 = vor.u32 %v20513_v13, %v18249_v8  ;;  %v20497_v46 = vld [vmem:[#allocation7 + $0x1ccc] sm:$0xf0]  ;;  %v15505_v8 = vld [vmem:[#allocation7 + $0x798] sm:$0xf] }
 0x3cf   :  { %10315 = vmatmul.bf16.vlgmr.msra.gmra.mxu1 %v21137_v1  ;;  %v20153_v50 = vld [vmem:[#allocation7 + $0x1214] sm:$0xf]  ;;  %v15694_v54 = vor.u32 %v19865_v47, %v15691_v31  ;;  %v21274_v14 = vadd.f32 %v10108_v6, %v10096_v4  ;;  %v14993_v6 = vld [vmem:[#allocation7 + $0x398] sm:$0xf] }
 0x3d0   :  { %10359 = vmatpush.bf16.msrb.mxu1 %v17550_v53  ;;  %10323 = vmatpush.bf16.msra.mxu2 %v15822_v9  ;;  %v16843_v51 = vld [vmem:[#allocation7 + $0x1250] sm:$0xf0]  ;;  %v19826_v13 = vld [vmem:[#allocation7 + $0x7d4] sm:$0xf0] }
 0x3d1   :  { %v20281_v52 = vld [vmem:[#allocation7 + $0x1614] sm:$0xf]  ;;  %v16846_v20 = vor.u32 %v20153_v50, %v16843_v51  ;;  %v15506_v17 = vor.u32 %v19826_v13, %v15505_v8  ;;  %v15249_v13 = vld [vmem:[#allocation7 + $0x598] sm:$0xf] }
 0x3d2   :  { %10347 = vmatpush.bf16.msrb.mxu0 %v16974_v2  ;;  %10283 = vmatpush.bf16.msrb.mxu3 %v18442_v23  ;;  %v17355_v21 = vld [vmem:[#allocation7 + $0x1650] sm:$0xf0] }
 0x3d3   :  { %v19849_v58 = vld [vmem:[#allocation7 + $0x894] sm:$0xf]  ;;  %v17358_v48 = vor.u32 %v20281_v52, %v17355_v21  ;;  %v20481_v21 = vld [vmem:[#allocation7 + $0x1c4c] sm:$0xf0] }
 0x3d4   :  { %10360 = vmatpush.bf16.msrb.mxu1 %v17486_v60  ;;  %10324 = vmatpush.bf16.msra.mxu2 %v15758_v41  ;;  %v15627_v59 = vld [vmem:[#allocation7 + $0x8d0] sm:$0xf0]  ;;  %v18185_v41 = vld [vmem:[#allocation7 + $0x1c90] sm:$0xf]  ;;  %v10097_v56 = vpop.f32.mrf.mxu0 }
 0x3d5   :  { %v20137_v43 = vld [vmem:[#allocation7 + $0x1194] sm:$0xf]  ;;  %v15630_v22 = vor.u32 %v19849_v58, %v15627_v59  ;;  %v18186_v50 = vor.u32 %v20497_v46, %v18185_v41  ;;  %v10032_v58 = vpop.f32.mrf.mxu3 }
 0x3d6   :  { %10348 = vmatpush.bf16.msrb.mxu0 %v16910_v15  ;;  %10284 = vmatpush.bf16.msrb.mxu3 %v18378_v44  ;;  %v16779_v3 = vld [vmem:[#allocation7 + $0x11d0] sm:$0xf0]  ;;  %v10110_v44 = vpop.f32.mrf.mxu1 }
 0x3d7   :  { %v20265_v49 = vld [vmem:[#allocation7 + $0x1594] sm:$0xf]  ;;  %v16782_v35 = vor.u32 %v20137_v43, %v16779_v3 }
 0x3d8   :  { %10361 = vmatpush.bf16.msrb.mxu1 %v17422_v36  ;;  %10325 = vmatpush.bf16.msra.mxu2 %v15694_v54  ;;  %v17291_v38 = vld [vmem:[#allocation7 + $0x15d0] sm:$0xf0]  ;;  %v10057_v36 = vadd.f32 %v21263_v12, %v10044_v28  ;;  %v18121_v54 = vld [vmem:[#allocation7 + $0x1c10] sm:$0xf] }
 0x3d9   :  { %v19833_v5 = vld [vmem:[#allocation7 + $0x814] sm:$0xf]  ;;  %v17294_v25 = vor.u32 %v20265_v49, %v17291_v38  ;;  %v18122_v49 = vor.u32 %v20481_v21, %v18121_v54  ;;  %v14801_v21 = vld [vmem:[#allocation7 + $0x218] sm:$0xf] }
 0x3da   :  { %v15563_v53 = vld [vmem:[#allocation7 + $0x850] sm:$0xf0]  ;;  %10349 = vmatpush.bf16.msrb.mxu0 %v16846_v20  ;;  %10285 = vmatpush.bf16.msrb.mxu3 %v18314_v0  ;;  %v21280_v57 = vadd.f32 %v21271_v32, %v10057_v36 }
 0x3db   :  { %v20457_v9 = vld [vmem:[#allocation7 + $0x1b94] sm:$0xf]  ;;  %v15566_v60 = vor.u32 %v19833_v5, %v15563_v53 }
 0x3dc   :  { %v18059_v19 = vld [vmem:[#allocation7 + $0x1bd0] sm:$0xf0]  ;;  %10362 = vmatpush.bf16.msrb.mxu1 %v17358_v48  ;;  %10326 = vmatpush.bf16.msra.mxu2 %v15630_v22  ;;  %v19698_v22 = vld [vmem:[#allocation7 + $0x3d4] sm:$0xf0] }
 0x3dd   :  { %v20121_v39 = vld [vmem:[#allocation7 + $0x1114] sm:$0xf]  ;;  %v18062_v45 = vor.u32 %v20457_v9, %v18059_v19  ;;  %v14994_v19 = vor.u32 %v19698_v22, %v14993_v6  ;;  %v14737_v6 = vld [vmem:[#allocation7 + $0x198] sm:$0xf] }
 0x3de   :  { %v16715_v2 = vld [vmem:[#allocation7 + $0x1150] sm:$0xf0]  ;;  %10350 = vmatpush.bf16.msrb.mxu0 %v16782_v35  ;;  %10286 = vmatpush.bf16.msrb.mxu3 %v18250_v63  ;;  %v19682_v63 = vld [vmem:[#allocation7 + $0x354] sm:$0xf0] }
 0x3df   :  { %v20249_v23 = vld [vmem:[#allocation7 + $0x1514] sm:$0xf]  ;;  %v16718_v27 = vor.u32 %v20121_v39, %v16715_v2  ;;  %v19634_v22 = vld [vmem:[#allocation7 + $0x1d4] sm:$0xf0] }
 0x3e0   :  { %v17227_v7 = vld [vmem:[#allocation7 + $0x1550] sm:$0xf0]  ;;  %10363 = vmatpush.bf16.msrb.mxu1 %v17294_v25  ;;  %10327 = vmatpush.bf16.msra.mxu2 %v15566_v60  ;;  %v14929_v25 = vld [vmem:[#allocation7 + $0x318] sm:$0xf] }
 0x3e1   :  { %v20441_v30 = vld [vmem:[#allocation7 + $0x1b14] sm:$0xf]  ;;  %v17230_v31 = vor.u32 %v20249_v23, %v17227_v7  ;;  %v15441_v60 = vld [vmem:[#allocation7 + $0x718] sm:$0xf]  ;;  %v14930_v46 = vor.u32 %v19682_v63, %v14929_v25  ;;  %v14738_v63 = vor.u32 %v19634_v22, %v14737_v6 }
 0x3e2   :  { %v17995_v47 = vld [vmem:[#allocation7 + $0x1b50] sm:$0xf0]  ;;  %10351 = vmatpush.bf16.msrb.mxu0 %v16718_v27  ;;  %10287 = vmatpush.bf16.msrb.mxu3 %v18186_v50  ;;  %v19810_v23 = vld [vmem:[#allocation7 + $0x754] sm:$0xf0] }
 0x3e3   :  { %v20105_v15 = vld [vmem:[#allocation7 + $0x1094] sm:$0xf]  ;;  %v17998_v52 = vor.u32 %v20441_v30, %v17995_v47  ;;  %10328 = vmatmul.bf16.vlgmr.msra.gmra.mxu2 %v21139_v26  ;;  %v15442_v27 = vor.u32 %v19810_v23, %v15441_v60  ;;  %v14865_v30 = vld [vmem:[#allocation7 + $0x298] sm:$0xf] }
 0x3e4   :  { %v16651_v40 = vld [vmem:[#allocation7 + $0x10d0] sm:$0xf0]  ;;  %10372 = vmatpush.bf16.msrb.mxu2 %v18062_v45  ;;  %10364 = vmatpush.bf16.msrb.mxu1 %v17230_v31  ;;  %v19666_v47 = vld [vmem:[#allocation7 + $0x2d4] sm:$0xf0] }
 0x3e5   :  { %v20233_v51 = vld [vmem:[#allocation7 + $0x1494] sm:$0xf]  ;;  %v16654_v59 = vor.u32 %v20105_v15, %v16651_v40  ;;  %v15377_v15 = vld [vmem:[#allocation7 + $0x698] sm:$0xf] }
 0x3e6   :  { %v17163_v62 = vld [vmem:[#allocation7 + $0x14d0] sm:$0xf0]  ;;  %10288 = vmatpush.bf16.msrb.mxu3 %v18122_v49  ;;  %v19794_v40 = vld [vmem:[#allocation7 + $0x6d4] sm:$0xf0] }
 0x3e7   :  { %v20073_v55 = vld [vmem:[#allocation7 + $0xf94] sm:$0xf]  ;;  %v17166_v12 = vor.u32 %v20233_v51, %v17163_v62  ;;  %10352 = vmatpush.bf16.msrb.mxu0 %v16654_v59  ;;  %v10121_v62 = vpop.f32.mrf.mxu2  ;;  %v15378_v54 = vor.u32 %v19794_v40, %v15377_v15  ;;  %v14609_v15 = vld [vmem:[#allocation7 + $0x98] sm:$0xf] }
 0x3e8   :  { %v16523_v20 = vld [vmem:[#allocation7 + $0xfd0] sm:$0xf0]  ;;  %10373 = vmatpush.bf16.msrb.mxu2 %v17998_v52  ;;  %v14866_v52 = vor.u32 %v19666_v47, %v14865_v30  ;;  %v21287_v58 = vadd.f32 %v10121_v62, %v21274_v14  ;;  %v15953_v47 = vld [vmem:[#allocation7 + $0xb18] sm:$0xf] }
 0x3e9   :  { %v20425_v33 = vld [vmem:[#allocation7 + $0x1a94] sm:$0xf]  ;;  %v16526_v32 = vor.u32 %v20073_v55, %v16523_v20  ;;  %10365 = vmatpush.bf16.msrb.mxu1 %v17166_v12  ;;  %10289 = vmatmul.bf16.vlgmr.msrb.gmra.mxu3 %v21197_v18  ;;  %v19650_v55 = vld [vmem:[#allocation7 + $0x254] sm:$0xf0] }
 0x3ea   :  { %v17931_v48 = vld [vmem:[#allocation7 + $0x1ad0] sm:$0xf0]  ;;  %v14802_v49 = vor.u32 %v19650_v55, %v14801_v21  ;;  %v21291_v14 = vpop.f32.mrf.mxu1  ;;  %v19730_v62 = vld [vmem:[#allocation7 + $0x4d4] sm:$0xf0] }
 0x3eb   :  { %v20089_v0 = vld [vmem:[#allocation7 + $0x1014] sm:$0xf]  ;;  %v17934_v38 = vor.u32 %v20425_v33, %v17931_v48  ;;  %10333 = vmatpush.bf16.msra.mxu3 %v16526_v32  ;;  %v15313_v33 = vld [vmem:[#allocation7 + $0x618] sm:$0xf]  ;;  %v21289_v32 = vpop.f32.mrf.mxu0 }
 0x3ec   :  { %v16587_v43 = vld [vmem:[#allocation7 + $0x1050] sm:$0xf0]  ;;  %v19778_v48 = vld [vmem:[#allocation7 + $0x654] sm:$0xf0] }
 0x3ed   :  { %v20217_v3 = vld [vmem:[#allocation7 + $0x1414] sm:$0xf]  ;;  %v16590_v53 = vor.u32 %v20089_v0, %v16587_v43  ;;  %10374 = vmatpush.bf16.msrb.mxu2 %v17934_v38  ;;  %v19714_v6 = vld [vmem:[#allocation7 + $0x454] sm:$0xf0] }
 0x3ee   :  { %v17099_v4 = vld [vmem:[#allocation7 + $0x1450] sm:$0xf0] }
 0x3ef   :  { %v20057_v5 = vld [vmem:[#allocation7 + $0xf14] sm:$0xf]  ;;  %v17102_v9 = vor.u32 %v20217_v3, %v17099_v4  ;;  %10353 = vmatpush.bf16.msrb.mxu0 %v16590_v53  ;;  %v15314_v4 = vor.u32 %v19778_v48, %v15313_v33  ;;  %v10123_v25 = vpop.f32.mrf.mxu2  ;;  %v19922_v33 = vld [vmem:[#allocation7 + $0xad4] sm:$0xf0] }
 0x3f0   :  { %v16459_v42 = vld [vmem:[#allocation7 + $0xf50] sm:$0xf0] }
 0x3f1   :  { %v20409_v34 = vld [vmem:[#allocation7 + $0x1a14] sm:$0xf]  ;;  %v16462_v39 = vor.u32 %v20057_v5, %v16459_v42  ;;  %10366 = vmatpush.bf16.msrb.mxu1 %v17102_v9  ;;  %v19762_v5 = vld [vmem:[#allocation7 + $0x5d4] sm:$0xf0] }
 0x3f2   :  { %v17867_v35 = vld [vmem:[#allocation7 + $0x1a50] sm:$0xf0]  ;;  %10354 = vmatmul.bf16.vlgmr.msrb.gmra.mxu0 %v21157_v37  ;;  %v16017_v9 = vld [vmem:[#allocation7 + $0xb98] sm:$0xf] }
 0x3f3   :  { %v17870_v2 = vor.u32 %v20409_v34, %v17867_v35  ;;  %v20041_v7 = vld [vmem:[#allocation7 + $0xe94] sm:$0xf]  ;;  %10398 = vmatpush.bf16.msra.mxu0 %v14994_v19  ;;  %10334 = vmatpush.bf16.msra.mxu3 %v16462_v39  ;;  %v19954_v19 = vld [vmem:[#allocation7 + $0xbd4] sm:$0xf0]  ;;  %v15250_v39 = vor.u32 %v19762_v5, %v15249_v13  ;;  %v10149_v40 = vpop.f32.mrf.mxu0 }
 0x3f4   :  { %v16395_v28 = vld [vmem:[#allocation7 + $0xed0] sm:$0xf0]  ;;  %10367 = vmatmul.bf16.vlgmr.msrb.gmra.mxu1 %v21159_v11  ;;  %v20210_v13 = vld [vmem:[#allocation7 + $0x13d4] sm:$0xf0] }
 0x3f5   :  { %v20393_v45 = vld [vmem:[#allocation7 + $0x1994] sm:$0xf]  ;;  %10411 = vmatpush.bf16.msra.mxu1 %v15506_v17  ;;  %10375 = vmatpush.bf16.msrb.mxu2 %v17870_v2  ;;  %v16398_v56 = vor.u32 %v20041_v7, %v16395_v28  ;;  %v10082_v17 = vpop.f32.mrf.mxu3  ;;  %v14673_v7 = vld [vmem:[#allocation7 + $0x118] sm:$0xf] }
 0x3f6   :  { %v17803_v41 = vld [vmem:[#allocation7 + $0x19d0] sm:$0xf0]  ;;  %v21294_v2 = vadd.f32 %v10082_v17, %v21280_v57  ;;  %v19618_v28 = vld [vmem:[#allocation7 + $0x154] sm:$0xf0]  ;;  %v10162_v57 = vpop.f32.mrf.mxu1 }
 0x3f7   :  { %v17806_v31 = vor.u32 %v20393_v45, %v17803_v41  ;;  %v20025_v36 = vld [vmem:[#allocation7 + $0xe14] sm:$0xf]  ;;  %10399 = vmatpush.bf16.msra.mxu0 %v14930_v46  ;;  %10335 = vmatpush.bf16.msra.mxu3 %v16398_v56  ;;  %v15185_v45 = vld [vmem:[#allocation7 + $0x518] sm:$0xf]  ;;  %v16018_v41 = vor.u32 %v19954_v19, %v16017_v9 }
 0x3f8   :  { %v16331_v44 = vld [vmem:[#allocation7 + $0xe50] sm:$0xf0]  ;;  %v19746_v46 = vld [vmem:[#allocation7 + $0x554] sm:$0xf0] }
 0x3f9   :  { %v20377_v50 = vld [vmem:[#allocation7 + $0x1914] sm:$0xf]  ;;  %10412 = vmatpush.bf16.msra.mxu1 %v15442_v27  ;;  %10376 = vmatpush.bf16.msrb.mxu2 %v17806_v31  ;;  %v16334_v59 = vor.u32 %v20025_v36, %v16331_v44  ;;  %v19938_v56 = vld [vmem:[#allocation7 + $0xb54] sm:$0xf0]  ;;  %v14674_v31 = vor.u32 %v19618_v28, %v14673_v7  ;;  %v15186_v36 = vor.u32 %v19746_v46, %v15185_v45 }
 0x3fa   :  { %v17739_v51 = vld [vmem:[#allocation7 + $0x1950] sm:$0xf0]  ;;  %v17553_v5 = vld [vmem:[#allocation7 + $0x1798] sm:$0xf] }
 0x3fb   :  { %v17742_v20 = vor.u32 %v20377_v50, %v17739_v51  ;;  %v20009_v12 = vld [vmem:[#allocation7 + $0xd94] sm:$0xf]  ;;  %10400 = vmatpush.bf16.msra.mxu0 %v14866_v52  ;;  %10336 = vmatpush.bf16.msra.mxu3 %v16334_v59  ;;  %v19602_v50 = vld [vmem:[#allocation7 + $0xd4] sm:$0xf0]  ;;  %v15954_v52 = vor.u32 %v19938_v56, %v15953_v47 }
 0x3fc   :  { %v16267_v0 = vld [vmem:[#allocation7 + $0xdd0] sm:$0xf0]  ;;  %v15121_v51 = vld [vmem:[#allocation7 + $0x498] sm:$0xf] }
 0x3fd   :  { %v20361_v43 = vld [vmem:[#allocation7 + $0x1894] sm:$0xf]  ;;  %10413 = vmatpush.bf16.msra.mxu1 %v15378_v54  ;;  %10377 = vmatpush.bf16.msrb.mxu2 %v17742_v20  ;;  %v16270_v38 = vor.u32 %v20009_v12, %v16267_v0  ;;  %v15889_v20 = vld [vmem:[#allocation7 + $0xa98] sm:$0xf]  ;;  %v10084_v48 = vpop.f32.mrf.mxu3  ;;  %v14610_v12 = vor.u32 %v19602_v50, %v14609_v15 }
 0x3fe   :  { %v17675_v3 = vld [vmem:[#allocation7 + $0x18d0] sm:$0xf0]  ;;  %v14545_v0 = vld [vmem:[#allocation7 + $0x18] sm:$0xf] }
 0x3ff   :  { %v17678_v8 = vor.u32 %v20361_v43, %v17675_v3  ;;  %v19993_v53 = vld [vmem:[#allocation7 + $0xd14] sm:$0xf]  ;;  %10401 = vmatpush.bf16.msra.mxu0 %v14802_v49  ;;  %10337 = vmatpush.bf16.msra.mxu3 %v16270_v38  ;;  %v15122_v43 = vor.u32 %v19730_v62, %v15121_v51  ;;  %v19586_v49 = vld [vmem:[#allocation7 + $0x54] sm:$0xf0]  ;;  %v15890_v38 = vor.u32 %v19922_v33, %v15889_v20 }
 0x400   :  { %v16203_v42 = vld [vmem:[#allocation7 + $0xd50] sm:$0xf0]  ;;  %v15825_v9 = vld [vmem:[#allocation7 + $0xa18] sm:$0xf] }
 0x401   :  { %v20345_v34 = vld [vmem:[#allocation7 + $0x1814] sm:$0xf]  ;;  %10414 = vmatpush.bf16.msra.mxu1 %v15314_v4  ;;  %10378 = vmatpush.bf16.msrb.mxu2 %v17678_v8  ;;  %v16206_v60 = vor.u32 %v19993_v53, %v16203_v42  ;;  %v15057_v4 = vld [vmem:[#allocation7 + $0x418] sm:$0xf] }
 0x402   :  { %v17611_v35 = vld [vmem:[#allocation7 + $0x1850] sm:$0xf0]  ;;  %v17041_v8 = vld [vmem:[#allocation7 + $0x1398] sm:$0xf]  ;;  %v15058_v17 = vor.u32 %v19714_v6, %v15057_v4 }
 0x403   :  { %v17614_v23 = vor.u32 %v20345_v34, %v17611_v35  ;;  %v19977_v27 = vld [vmem:[#allocation7 + $0xc94] sm:$0xf]  ;;  %10402 = vmatpush.bf16.msra.mxu0 %v14738_v63  ;;  %10338 = vmatpush.bf16.msra.mxu3 %v16206_v60  ;;  %v20338_v53 = vld [vmem:[#allocation7 + $0x17d4] sm:$0xf0]  ;;  %v14546_v35 = vor.u32 %v19586_v49, %v14545_v0  ;;  %v17042_v25 = vor.u32 %v20210_v13, %v17041_v8 }
 0x404   :  { %v16139_v30 = vld [vmem:[#allocation7 + $0xcd0] sm:$0xf0]  ;;  %v19906_v19 = vld [vmem:[#allocation7 + $0xa54] sm:$0xf0]  ;;  %v17554_v63 = vor.u32 %v20338_v53, %v17553_v5 }
 0x405   :  { %10415 = vmatpush.bf16.msra.mxu1 %v15250_v39  ;;  %10379 = vmatpush.bf16.msrb.mxu2 %v17614_v23  ;;  %v16142_v44 = vor.u32 %v19977_v27, %v16139_v30  ;;  %v19961_v54 = vld [vmem:[#allocation7 + $0xc14] sm:$0xf]  ;;  %v16977_v60 = vld [vmem:[#allocation7 + $0x1318] sm:$0xf]  ;;  %v15826_v28 = vor.u32 %v19906_v19, %v15825_v9 }
 0x406   :  { %v16075_v21 = vld [vmem:[#allocation7 + $0xc50] sm:$0xf0]  ;;  %v20194_v23 = vld [vmem:[#allocation7 + $0x1354] sm:$0xf0] }
 0x407   :  { %v20585_v55 = vld [vmem:[#allocation7 + $0x1f94] sm:$0xf]  ;;  %10403 = vmatpush.bf16.msra.mxu0 %v14674_v31  ;;  %10339 = vmatpush.bf16.msra.mxu3 %v16142_v44  ;;  %v16078_v3 = vor.u32 %v19961_v54, %v16075_v21  ;;  %v17489_v7 = vld [vmem:[#allocation7 + $0x1718] sm:$0xf]  ;;  %v16978_v47 = vor.u32 %v20194_v23, %v16977_v60  ;;  %v21300_v54 = vpop.f32.mrf.mxu2 }
 0x408   :  { %v18571_v59 = vld [vmem:[#allocation7 + $0x1fd0] sm:$0xf0]  ;;  %10380 = vmatmul.bf16.vlgmr.msrb.gmra.mxu2 %v21182_v10  ;;  %v20322_v45 = vld [vmem:[#allocation7 + $0x1754] sm:$0xf0]  ;;  %v10199_v8 = vpop.f32.mrf.mxu0 }
 0x409   :  { %10424 = vmatpush.bf16.msra.mxu2 %v16018_v41  ;;  %10416 = vmatpush.bf16.msra.mxu1 %v15186_v36  ;;  %v18574_v22 = vor.u32 %v20585_v55, %v18571_v59  ;;  %v20569_v42 = vld [vmem:[#allocation7 + $0x1f14] sm:$0xf]  ;;  %v15761_v27 = vld [vmem:[#allocation7 + $0x998] sm:$0xf]  ;;  %v17490_v56 = vor.u32 %v20322_v45, %v17489_v7  ;;  %v21302_v55 = vld [vmem:[#allocation8] sm:$0xff] }
 0x40a   :  { %v18507_v34 = vld [vmem:[#allocation7 + $0x1f50] sm:$0xf0]  ;;  %v19890_v30 = vld [vmem:[#allocation7 + $0x9d4] sm:$0xf0]  ;;  %v4626_v59 = vperm.slane %v21302_v55, 4  ;;  %v10212_v9 = vpop.f32.mrf.mxu1  ;;  %v10134_v7 = vpop.f32.mrf.mxu3 }
 0x40b   :  { %10404 = vmatpush.bf16.msra.mxu0 %v14610_v12  ;;  %10340 = vmatpush.bf16.msra.mxu3 %v16078_v3  ;;  %v18510_v39 = vor.u32 %v20569_v42, %v18507_v34  ;;  %v20553_v41 = vld [vmem:[#allocation7 + $0x1e94] sm:$0xf]  ;;  %v16913_v15 = vld [vmem:[#allocation7 + $0x1298] sm:$0xf]  ;;  %v15762_v36 = vor.u32 %v19890_v30, %v15761_v27  ;;  %v10135_v27 = vadd.f32 %v10134_v7, %v21287_v58 }
 0x40c   :  { %v18443_v46 = vld [vmem:[#allocation7 + $0x1ed0] sm:$0xf0]  ;;  %v20178_v40 = vld [vmem:[#allocation7 + $0x12d4] sm:$0xf0] }
 0x40d   :  { %10425 = vmatpush.bf16.msra.mxu2 %v15954_v52  ;;  %10417 = vmatpush.bf16.msra.mxu1 %v15122_v43  ;;  %v18446_v31 = vor.u32 %v20553_v41, %v18443_v46  ;;  %v17425_v57 = vld [vmem:[#allocation7 + $0x1698] sm:$0xf]  ;;  %v20537_v50 = vld [vmem:[#allocation7 + $0x1e14] sm:$0xf]  ;;  %v16914_v21 = vor.u32 %v20178_v40, %v16913_v15 }
 0x40e   :  { %10341 = vmatmul.bf16.vlgmr.msra.gmra.mxu3 %v21142_v29  ;;  %v20306_v44 = vld [vmem:[#allocation7 + $0x16d4] sm:$0xf0]  ;;  %v18379_v51 = vld [vmem:[#allocation7 + $0x1e50] sm:$0xf0] }
 0x40f   :  { %10385 = vmatpush.bf16.msrb.mxu3 %v18574_v22  ;;  %10405 = vmatpush.bf16.msra.mxu0 %v14546_v35  ;;  %v15697_v62 = vld [vmem:[#allocation7 + $0x918] sm:$0xf]  ;;  %v17426_v20 = vor.u32 %v20306_v44, %v17425_v57  ;;  %v18382_v33 = vor.u32 %v20537_v50, %v18379_v51  ;;  %v20521_v49 = vld [vmem:[#allocation7 + $0x1d94] sm:$0xf]  ;;  %v10200_v35 = vadd.f32 %v10199_v8, %v4626_v59 }
 0x410   :  { %v19874_v52 = vld [vmem:[#allocation7 + $0x954] sm:$0xf0]  ;;  %v18315_v4 = vld [vmem:[#allocation7 + $0x1dd0] sm:$0xf0]  ;;  %v10201_v58 = vpop.f32.mrf.mxu0 }
 0x411   :  { %10426 = vmatpush.bf16.msra.mxu2 %v15890_v38  ;;  %10418 = vmatpush.bf16.msra.mxu1 %v15058_v17  ;;  %v16849_v48 = vld [vmem:[#allocation7 + $0x1218] sm:$0xf]  ;;  %v15698_v43 = vor.u32 %v19874_v52, %v15697_v62  ;;  %v18318_v5 = vor.u32 %v20521_v49, %v18315_v4  ;;  %v21305_v23 = vadd.f32 %v10212_v9, %v10200_v35  ;;  %v20489_v50 = vld [vmem:[#allocation7 + $0x1c94] sm:$0xf]  ;;  %v19658_v58 = vld [vmem:[#allocation7 + $0x29c] sm:$0xf] }
 0x412   :  { %10406 = vmatmul.bf16.vlgmr.msra.gmra.mxu0 %v21135_v24  ;;  %v20162_v12 = vld [vmem:[#allocation7 + $0x1254] sm:$0xf0]  ;;  %v18187_v51 = vld [vmem:[#allocation7 + $0x1cd0] sm:$0xf0] }
 0x413   :  { %10450 = vmatpush.bf16.msrb.mxu0 %v17042_v25  ;;  %10386 = vmatpush.bf16.msrb.mxu3 %v18510_v39  ;;  %v17361_v0 = vld [vmem:[#allocation7 + $0x1618] sm:$0xf]  ;;  %v16850_v38 = vor.u32 %v20162_v12, %v16849_v48  ;;  %v20505_v25 = vld [vmem:[#allocation7 + $0x1d14] sm:$0xf]  ;;  %v10214_v12 = vpop.f32.mrf.mxu1 }
 0x414   :  { %10419 = vmatmul.bf16.vlgmr.msra.gmra.mxu1 %v21137_v1  ;;  %v20290_v3 = vld [vmem:[#allocation7 + $0x1654] sm:$0xf0]  ;;  %v20473_v49 = vld [vmem:[#allocation7 + $0x1c14] sm:$0xf]  ;;  %v15379_v12 = vld [vmem:[#allocation7 + $0x6d8] sm:$0xf0] }
 0x415   :  { %10463 = vmatpush.bf16.msrb.mxu1 %v17554_v63  ;;  %10427 = vmatpush.bf16.msra.mxu2 %v15826_v28  ;;  %v15633_v6 = vld [vmem:[#allocation7 + $0x898] sm:$0xf]  ;;  %v17362_v13 = vor.u32 %v20290_v3, %v17361_v0  ;;  %v18251_v63 = vld [vmem:[#allocation7 + $0x1d50] sm:$0xf0]  ;;  %v10175_v28 = vpop.f32.mrf.mxu2  ;;  %v18190_v0 = vor.u32 %v20489_v50, %v18187_v51 }
 0x416   :  { %v19858_v22 = vld [vmem:[#allocation7 + $0x8d4] sm:$0xf0]  ;;  %v18123_v4 = vld [vmem:[#allocation7 + $0x1c50] sm:$0xf0] }
 0x417   :  { %10451 = vmatpush.bf16.msrb.mxu0 %v16978_v47  ;;  %10387 = vmatpush.bf16.msrb.mxu3 %v18446_v31  ;;  %v16785_v53 = vld [vmem:[#allocation7 + $0x1198] sm:$0xf]  ;;  %v15634_v19 = vor.u32 %v19858_v22, %v15633_v6  ;;  %v18254_v47 = vor.u32 %v20505_v25, %v18251_v63  ;;  %v18126_v9 = vor.u32 %v20473_v49, %v18123_v4  ;;  %v14995_v25 = vld [vmem:[#allocation7 + $0x3d8] sm:$0xf0] }
 0x418   :  { %v20146_v42 = vld [vmem:[#allocation7 + $0x11d4] sm:$0xf0] }
 0x419   :  { %10464 = vmatpush.bf16.msrb.mxu1 %v17490_v56  ;;  %10428 = vmatpush.bf16.msra.mxu2 %v15762_v36  ;;  %v17297_v34 = vld [vmem:[#allocation7 + $0x1598] sm:$0xf]  ;;  %v16786_v45 = vor.u32 %v20146_v42, %v16785_v53  ;;  %v10148_v36 = vadd.f32 %v21289_v32, %v10135_v27 }
 0x41a   :  { %v20274_v17 = vld [vmem:[#allocation7 + $0x15d4] sm:$0xf0] }
 0x41b   :  { %10452 = vmatpush.bf16.msrb.mxu0 %v16914_v21  ;;  %10388 = vmatpush.bf16.msrb.mxu3 %v18382_v33  ;;  %v15569_v39 = vld [vmem:[#allocation7 + $0x818] sm:$0xf]  ;;  %v17298_v30 = vor.u32 %v20274_v17, %v17297_v34  ;;  %v10161_v48 = vadd.f32 %v21291_v14, %v10148_v36  ;;  %v19690_v17 = vld [vmem:[#allocation7 + $0x39c] sm:$0xf] }
 0x41c   :  { %v19842_v60 = vld [vmem:[#allocation7 + $0x854] sm:$0xf0]  ;;  %v15443_v36 = vld [vmem:[#allocation7 + $0x758] sm:$0xf0] }
 0x41d   :  { %10465 = vmatpush.bf16.msrb.mxu1 %v17426_v20  ;;  %10429 = vmatpush.bf16.msra.mxu2 %v15698_v43  ;;  %v18065_v41 = vld [vmem:[#allocation7 + $0x1b98] sm:$0xf]  ;;  %v15570_v15 = vor.u32 %v19842_v60, %v15569_v39  ;;  %v21311_v22 = vadd.f32 %v21300_v54, %v10161_v48  ;;  %v19818_v39 = vld [vmem:[#allocation7 + $0x79c] sm:$0xf] }
 0x41e   :  { %v20466_v46 = vld [vmem:[#allocation7 + $0x1bd4] sm:$0xf0]  ;;  %v15507_v60 = vld [vmem:[#allocation7 + $0x7d8] sm:$0xf0] }
 0x41f   :  { %10453 = vmatpush.bf16.msrb.mxu0 %v16850_v38  ;;  %10389 = vmatpush.bf16.msrb.mxu3 %v18318_v5  ;;  %v16721_v56 = vld [vmem:[#allocation7 + $0x1118] sm:$0xf]  ;;  %v18066_v44 = vor.u32 %v20466_v46, %v18065_v41  ;;  %v10136_v38 = vpop.f32.mrf.mxu3  ;;  %v19786_v48 = vld [vmem:[#allocation7 + $0x69c] sm:$0xf] }
 0x420   :  { %v20130_v31 = vld [vmem:[#allocation7 + $0x1154] sm:$0xf0]  ;;  %v19642_v38 = vld [vmem:[#allocation7 + $0x21c] sm:$0xf] }
 0x421   :  { %10466 = vmatpush.bf16.msrb.mxu1 %v17362_v13  ;;  %10430 = vmatpush.bf16.msra.mxu2 %v15634_v19  ;;  %v17233_v40 = vld [vmem:[#allocation7 + $0x1518] sm:$0xf]  ;;  %v16722_v62 = vor.u32 %v20130_v31, %v16721_v56  ;;  %v19674_v56 = vld [vmem:[#allocation7 + $0x31c] sm:$0xf] }
 0x422   :  { %v20258_v57 = vld [vmem:[#allocation7 + $0x1554] sm:$0xf0]  ;;  %v14931_v31 = vld [vmem:[#allocation7 + $0x358] sm:$0xf0] }
 0x423   :  { %10454 = vmatpush.bf16.msrb.mxu0 %v16786_v45  ;;  %v18001_v52 = vld [vmem:[#allocation7 + $0x1b18] sm:$0xf]  ;;  %10390 = vmatpush.bf16.msrb.mxu3 %v18254_v47  ;;  %v17234_v59 = vor.u32 %v20258_v57, %v17233_v40  ;;  %v15510_v47 = vor.u32 %v19818_v39, %v15507_v60  ;;  %v19802_v57 = vld [vmem:[#allocation7 + $0x71c] sm:$0xf] }
 0x424   :  { %v20450_v21 = vld [vmem:[#allocation7 + $0x1b54] sm:$0xf0]  ;;  %v10225_v49 = vpop.f32.mrf.mxu2 }
 0x425   :  { %10467 = vmatpush.bf16.msrb.mxu1 %v17298_v30  ;;  %v16657_v20 = vld [vmem:[#allocation7 + $0x1098] sm:$0xf]  ;;  %10431 = vmatpush.bf16.msra.mxu2 %v15570_v15  ;;  %v18002_v3 = vor.u32 %v20450_v21, %v18001_v52  ;;  %v14998_v30 = vor.u32 %v19690_v17, %v14995_v25  ;;  %v14934_v52 = vor.u32 %v19674_v56, %v14931_v31  ;;  %v16019_v56 = vld [vmem:[#allocation7 + $0xbd8] sm:$0xf0] }
 0x426   :  { %v20114_v33 = vld [vmem:[#allocation7 + $0x10d4] sm:$0xf0]  ;;  %v15446_v21 = vor.u32 %v19802_v57, %v15443_v36 }
 0x427   :  { %v17169_v43 = vld [vmem:[#allocation7 + $0x1498] sm:$0xf]  ;;  %10455 = vmatpush.bf16.msrb.mxu0 %v16722_v62  ;;  %v16658_v8 = vor.u32 %v20114_v33, %v16657_v20  ;;  %10391 = vmatpush.bf16.msrb.mxu3 %v18190_v0 }
 0x428   :  { %v20242_v32 = vld [vmem:[#allocation7 + $0x14d4] sm:$0xf0]  ;;  %10432 = vmatmul.bf16.vlgmr.msra.gmra.mxu2 %v21139_v26 }
 0x429   :  { %10476 = vmatpush.bf16.msrb.mxu2 %v18066_v44  ;;  %v16529_v6 = vld [vmem:[#allocation7 + $0xf98] sm:$0xf]  ;;  %10468 = vmatpush.bf16.msrb.mxu1 %v17234_v59  ;;  %v17170_v14 = vor.u32 %v20242_v32, %v17169_v43  ;;  %v14867_v59 = vld [vmem:[#allocation7 + $0x2d8] sm:$0xf0] }
 0x42a   :  { %v20082_v13 = vld [vmem:[#allocation7 + $0xfd4] sm:$0xf0]  ;;  %v14870_v4 = vor.u32 %v19658_v58, %v14867_v59  ;;  %v21320_v39 = vpop.f32.mrf.mxu0  ;;  %v10186_v31 = vpop.f32.mrf.mxu3  ;;  %v15187_v58 = vld [vmem:[#allocation7 + $0x558] sm:$0xf0] }
 0x42b   :  { %v17937_v5 = vld [vmem:[#allocation7 + $0x1a98] sm:$0xf]  ;;  %v16530_v54 = vor.u32 %v20082_v13, %v16529_v6  ;;  %10456 = vmatpush.bf16.msrb.mxu0 %v16658_v8  ;;  %10392 = vmatpush.bf16.msrb.mxu3 %v18126_v9  ;;  %v15382_v6 = vor.u32 %v19786_v48, %v15379_v12  ;;  %v14803_v8 = vld [vmem:[#allocation7 + $0x258] sm:$0xf0]  ;;  %v21318_v13 = vadd.f32 %v10225_v49, %v21305_v23 }
 0x42c   :  { %v20434_v53 = vld [vmem:[#allocation7 + $0x1ad4] sm:$0xf0]  ;;  %v14806_v17 = vor.u32 %v19642_v38, %v14803_v8  ;;  %v21322_v23 = vpop.f32.mrf.mxu1  ;;  %v21325_v36 = vadd.f32 %v10186_v31, %v21311_v22  ;;  %v15955_v48 = vld [vmem:[#allocation7 + $0xb58] sm:$0xf0] }
 0x42d   :  { %v16593_v42 = vld [vmem:[#allocation7 + $0x1018] sm:$0xf]  ;;  %10477 = vmatpush.bf16.msrb.mxu2 %v18002_v3  ;;  %v17938_v63 = vor.u32 %v20434_v53, %v17937_v5  ;;  %10469 = vmatpush.bf16.msrb.mxu1 %v17170_v14  ;;  %v19770_v14 = vld [vmem:[#allocation7 + $0x61c] sm:$0xf] }
 0x42e   :  { %v20098_v34 = vld [vmem:[#allocation7 + $0x1054] sm:$0xf0]  ;;  %10393 = vmatmul.bf16.vlgmr.msrb.gmra.mxu3 %v21197_v18  ;;  %v14611_v49 = vld [vmem:[#allocation7 + $0xd8] sm:$0xf0] }
 0x42f   :  { %v17105_v35 = vld [vmem:[#allocation7 + $0x1418] sm:$0xf]  ;;  %v16594_v28 = vor.u32 %v20098_v34, %v16593_v42  ;;  %10437 = vmatpush.bf16.msra.mxu3 %v16530_v54  ;;  %v15315_v42 = vld [vmem:[#allocation7 + $0x658] sm:$0xf0] }
 0x430   :  { %v20226_v19 = vld [vmem:[#allocation7 + $0x1454] sm:$0xf0]  ;;  %v15318_v25 = vor.u32 %v19770_v14, %v15315_v42  ;;  %v19626_v54 = vld [vmem:[#allocation7 + $0x19c] sm:$0xf] }
 0x431   :  { %v16465_v7 = vld [vmem:[#allocation7 + $0xf18] sm:$0xf]  ;;  %v17106_v27 = vor.u32 %v20226_v19, %v17105_v35  ;;  %10478 = vmatpush.bf16.msrb.mxu2 %v17938_v63  ;;  %10457 = vmatpush.bf16.msrb.mxu0 %v16594_v28  ;;  %v14739_v63 = vld [vmem:[#allocation7 + $0x1d8] sm:$0xf0] }
 0x432   :  { %v20066_v45 = vld [vmem:[#allocation7 + $0xf54] sm:$0xf0]  ;;  %v19754_v28 = vld [vmem:[#allocation7 + $0x59c] sm:$0xf] }
 0x433   :  { %v17873_v41 = vld [vmem:[#allocation7 + $0x1a18] sm:$0xf]  ;;  %v16466_v15 = vor.u32 %v20066_v45, %v16465_v7  ;;  %10470 = vmatpush.bf16.msrb.mxu1 %v17106_v27  ;;  %v15251_v45 = vld [vmem:[#allocation7 + $0x5d8] sm:$0xf0] }
 0x434   :  { %v20418_v46 = vld [vmem:[#allocation7 + $0x1a54] sm:$0xf0]  ;;  %10458 = vmatmul.bf16.vlgmr.msrb.gmra.mxu0 %v21157_v37  ;;  %v15254_v57 = vor.u32 %v19754_v28, %v15251_v45  ;;  %v10266_v22 = vpop.f32.mrf.mxu1  ;;  %v19914_v42 = vld [vmem:[#allocation7 + $0xa9c] sm:$0xf] }
 0x435   :  { %v17874_v40 = vor.u32 %v20418_v46, %v17873_v41  ;;  %v16401_v44 = vld [vmem:[#allocation7 + $0xe98] sm:$0xf]  ;;  %10502 = vmatpush.bf16.msra.mxu0 %v14998_v30  ;;  %10438 = vmatpush.bf16.msra.mxu3 %v16466_v15  ;;  %v10227_v15 = vpop.f32.mrf.mxu2  ;;  %v20202_v45 = vld [vmem:[#allocation7 + $0x139c] sm:$0xf] }
 0x436   :  { %v20050_v50 = vld [vmem:[#allocation7 + $0xed4] sm:$0xf0]  ;;  %10471 = vmatmul.bf16.vlgmr.msrb.gmra.mxu1 %v21159_v11  ;;  %v19898_v31 = vld [vmem:[#allocation7 + $0xa1c] sm:$0xf] }
 0x437   :  { %v17809_v51 = vld [vmem:[#allocation7 + $0x1998] sm:$0xf]  ;;  %10515 = vmatpush.bf16.msra.mxu1 %v15510_v47  ;;  %10479 = vmatpush.bf16.msrb.mxu2 %v17874_v40  ;;  %v16402_v20 = vor.u32 %v20050_v50, %v16401_v44  ;;  %v19946_v47 = vld [vmem:[#allocation7 + $0xb9c] sm:$0xf]  ;;  %v14742_v40 = vor.u32 %v19626_v54, %v14739_v63 }
 0x438   :  { %v20402_v62 = vld [vmem:[#allocation7 + $0x19d4] sm:$0xf0]  ;;  %v14547_v54 = vld [vmem:[#allocation7 + $0x58] sm:$0xf0] }
 0x439   :  { %v17810_v33 = vor.u32 %v20402_v62, %v17809_v51  ;;  %v16337_v0 = vld [vmem:[#allocation7 + $0xe18] sm:$0xf]  ;;  %10503 = vmatpush.bf16.msra.mxu0 %v14934_v52  ;;  %10439 = vmatpush.bf16.msra.mxu3 %v16402_v20  ;;  %v19610_v51 = vld [vmem:[#allocation7 + $0x11c] sm:$0xf] }
 0x43a   :  { %v20034_v43 = vld [vmem:[#allocation7 + $0xe54] sm:$0xf0]  ;;  %v14675_v62 = vld [vmem:[#allocation7 + $0x158] sm:$0xf0] }
 0x43b   :  { %v17745_v32 = vld [vmem:[#allocation7 + $0x1918] sm:$0xf]  ;;  %10516 = vmatpush.bf16.msra.mxu1 %v15446_v21  ;;  %10480 = vmatpush.bf16.msrb.mxu2 %v17810_v33  ;;  %v16338_v5 = vor.u32 %v20034_v43, %v16337_v0  ;;  %v19738_v52 = vld [vmem:[#allocation7 + $0x51c] sm:$0xf]  ;;  %v16022_v21 = vor.u32 %v19946_v47, %v16019_v56  ;;  %v14678_v12 = vor.u32 %v19610_v51, %v14675_v62  ;;  %v10253_v43 = vpop.f32.mrf.mxu0 }
 0x43c   :  { %v20386_v3 = vld [vmem:[#allocation7 + $0x1954] sm:$0xf0]  ;;  %v19930_v33 = vld [vmem:[#allocation7 + $0xb1c] sm:$0xf] }
 0x43d   :  { %v17746_v53 = vor.u32 %v20386_v3, %v17745_v32  ;;  %v16273_v34 = vld [vmem:[#allocation7 + $0xd98] sm:$0xf]  ;;  %10504 = vmatpush.bf16.msra.mxu0 %v14870_v4  ;;  %10440 = vmatpush.bf16.msra.mxu3 %v16338_v5  ;;  %v19594_v0 = vld [vmem:[#allocation7 + $0x9c] sm:$0xf]  ;;  %v15190_v32 = vor.u32 %v19738_v52, %v15187_v58  ;;  %v15958_v38 = vor.u32 %v19930_v33, %v15955_v48 }
 0x43e   :  { %v20018_v35 = vld [vmem:[#allocation7 + $0xdd4] sm:$0xf0]  ;;  %v19722_v4 = vld [vmem:[#allocation7 + $0x49c] sm:$0xf] }
 0x43f   :  { %v17681_v9 = vld [vmem:[#allocation7 + $0x1898] sm:$0xf]  ;;  %10517 = vmatpush.bf16.msra.mxu1 %v15382_v6  ;;  %10481 = vmatpush.bf16.msrb.mxu2 %v17746_v53  ;;  %v16274_v60 = vor.u32 %v20018_v35, %v16273_v34  ;;  %v15123_v6 = vld [vmem:[#allocation7 + $0x4d8] sm:$0xf0]  ;;  %v10188_v35 = vpop.f32.mrf.mxu3 }
 0x440   :  { %v20370_v19 = vld [vmem:[#allocation7 + $0x18d4] sm:$0xf0]  ;;  %v15891_v34 = vld [vmem:[#allocation7 + $0xad8] sm:$0xf0] }
 0x441   :  { %v17682_v7 = vor.u32 %v20370_v19, %v17681_v9  ;;  %v16209_v41 = vld [vmem:[#allocation7 + $0xd18] sm:$0xf]  ;;  %10505 = vmatpush.bf16.msra.mxu0 %v14806_v17  ;;  %10441 = vmatpush.bf16.msra.mxu3 %v16274_v60  ;;  %v14614_v9 = vor.u32 %v19594_v0, %v14611_v49  ;;  %v19578_v19 = vld [vmem:[#allocation7 + $0x1c] sm:$0xf]  ;;  %v15126_v17 = vor.u32 %v19722_v4, %v15123_v6 }
 0x442   :  { %v20002_v46 = vld [vmem:[#allocation7 + $0xd54] sm:$0xf0]  ;;  %v19706_v63 = vld [vmem:[#allocation7 + $0x41c] sm:$0xf]  ;;  %v15894_v28 = vor.u32 %v19914_v42, %v15891_v34  ;;  %v14550_v56 = vor.u32 %v19578_v19, %v14547_v54  ;;  %v4627_v42 = vperm.slane %v21302_v55, 5 }
 0x443   :  { %v17617_v27 = vld [vmem:[#allocation7 + $0x1818] sm:$0xf]  ;;  %10518 = vmatpush.bf16.msra.mxu1 %v15318_v25  ;;  %10482 = vmatpush.bf16.msrb.mxu2 %v17682_v7  ;;  %v16210_v44 = vor.u32 %v20002_v46, %v16209_v41  ;;  %v15059_v60 = vld [vmem:[#allocation7 + $0x458] sm:$0xf0] }
 0x444   :  { %v20354_v30 = vld [vmem:[#allocation7 + $0x1854] sm:$0xf0]  ;;  %v17043_v41 = vld [vmem:[#allocation7 + $0x13d8] sm:$0xf0] }
 0x445   :  { %v17618_v50 = vor.u32 %v20354_v30, %v17617_v27  ;;  %v16145_v59 = vld [vmem:[#allocation7 + $0xc98] sm:$0xf]  ;;  %10506 = vmatpush.bf16.msra.mxu0 %v14742_v40  ;;  %10442 = vmatpush.bf16.msra.mxu3 %v16210_v44  ;;  %v20330_v46 = vld [vmem:[#allocation7 + $0x179c] sm:$0xf]  ;;  %v15062_v40 = vor.u32 %v19706_v63, %v15059_v60 }
 0x446   :  { %v19986_v20 = vld [vmem:[#allocation7 + $0xcd4] sm:$0xf0]  ;;  %v17555_v27 = vld [vmem:[#allocation7 + $0x17d8] sm:$0xf0] }
 0x447   :  { %10519 = vmatpush.bf16.msra.mxu1 %v15254_v57  ;;  %10483 = vmatpush.bf16.msrb.mxu2 %v17618_v50  ;;  %v16146_v3 = vor.u32 %v19986_v20, %v16145_v59  ;;  %v16081_v8 = vld [vmem:[#allocation7 + $0xc18] sm:$0xf]  ;;  %v15827_v15 = vld [vmem:[#allocation7 + $0xa58] sm:$0xf0]  ;;  %v17046_v57 = vor.u32 %v20202_v45, %v17043_v41  ;;  %v17558_v44 = vor.u32 %v20330_v46, %v17555_v27 }
 0x448   :  { %v19970_v5 = vld [vmem:[#allocation7 + $0xc54] sm:$0xf0]  ;;  %v20186_v51 = vld [vmem:[#allocation7 + $0x131c] sm:$0xf] }
 0x449   :  { %v18577_v53 = vld [vmem:[#allocation7 + $0x1f98] sm:$0xf]  ;;  %10507 = vmatpush.bf16.msra.mxu0 %v14678_v12  ;;  %10443 = vmatpush.bf16.msra.mxu3 %v16146_v3  ;;  %v16082_v25 = vor.u32 %v19970_v5, %v16081_v8  ;;  %v16979_v62 = vld [vmem:[#allocation7 + $0x1358] sm:$0xf0] }
 0x44a   :  { %v20594_v14 = vld [vmem:[#allocation7 + $0x1fd4] sm:$0xf0]  ;;  %10484 = vmatmul.bf16.vlgmr.msrb.gmra.mxu2 %v21182_v10  ;;  %v20314_v52 = vld [vmem:[#allocation7 + $0x171c] sm:$0xf]  ;;  %v16982_v12 = vor.u32 %v20186_v51, %v16979_v62  ;;  %v10303_v41 = vpop.f32.mrf.mxu0 }
 0x44b   :  { %10528 = vmatpush.bf16.msra.mxu2 %v16022_v21  ;;  %10520 = vmatpush.bf16.msra.mxu1 %v15190_v32  ;;  %v18578_v7 = vor.u32 %v20594_v14, %v18577_v53  ;;  %v18513_v30 = vld [vmem:[#allocation7 + $0x1f18] sm:$0xf]  ;;  %v15830_v21 = vor.u32 %v19898_v31, %v15827_v15  ;;  %v17491_v58 = vld [vmem:[#allocation7 + $0x1758] sm:$0xf0]  ;;  %v21331_v53 = vpop.f32.mrf.mxu2 }
 0x44c   :  { %v20578_v47 = vld [vmem:[#allocation7 + $0x1f54] sm:$0xf0]  ;;  %v19882_v33 = vld [vmem:[#allocation7 + $0x99c] sm:$0xf]  ;;  %v17494_v0 = vor.u32 %v20314_v52, %v17491_v58  ;;  %v10316_v31 = vpop.f32.mrf.mxu1  ;;  %v10238_v52 = vpop.f32.mrf.mxu3 }
 0x44d   :  { %10508 = vmatpush.bf16.msra.mxu0 %v14614_v9  ;;  %10444 = vmatpush.bf16.msra.mxu3 %v16082_v25  ;;  %v18514_v50 = vor.u32 %v20578_v47, %v18513_v30  ;;  %v18449_v59 = vld [vmem:[#allocation7 + $0x1e98] sm:$0xf]  ;;  %v15763_v48 = vld [vmem:[#allocation7 + $0x9d8] sm:$0xf0] }
 0x44e   :  { %v20562_v20 = vld [vmem:[#allocation7 + $0x1ed4] sm:$0xf0]  ;;  %v20170_v22 = vld [vmem:[#allocation7 + $0x129c] sm:$0xf]  ;;  %v15766_v49 = vor.u32 %v19882_v33, %v15763_v48  ;;  %v10239_v33 = vadd.f32 %v10238_v52, %v21318_v13 }
 0x44f   :  { %10529 = vmatpush.bf16.msra.mxu2 %v15958_v38  ;;  %10521 = vmatpush.bf16.msra.mxu1 %v15126_v17  ;;  %v18450_v43 = vor.u32 %v20562_v20, %v18449_v59  ;;  %v16915_v32 = vld [vmem:[#allocation7 + $0x12d8] sm:$0xf0]  ;;  %v18385_v6 = vld [vmem:[#allocation7 + $0x1e18] sm:$0xf] }
 0x450   :  { %10445 = vmatmul.bf16.vlgmr.msra.gmra.mxu3 %v21142_v29  ;;  %v20298_v3 = vld [vmem:[#allocation7 + $0x169c] sm:$0xf]  ;;  %v20546_v38 = vld [vmem:[#allocation7 + $0x1e54] sm:$0xf0]  ;;  %v16918_v14 = vor.u32 %v20170_v22, %v16915_v32 }
 0x451   :  { %10489 = vmatpush.bf16.msrb.mxu3 %v18578_v7  ;;  %10509 = vmatpush.bf16.msra.mxu0 %v14550_v56  ;;  %v17427_v4 = vld [vmem:[#allocation7 + $0x16d8] sm:$0xf0]  ;;  %v18386_v35 = vor.u32 %v20546_v38, %v18385_v6  ;;  %v18321_v63 = vld [vmem:[#allocation7 + $0x1d98] sm:$0xf]  ;;  %v10304_v56 = vadd.f32 %v10303_v41, %v4627_v42 }
 0x452   :  { %v19866_v8 = vld [vmem:[#allocation7 + $0x91c] sm:$0xf]  ;;  %v17430_v34 = vor.u32 %v20298_v3, %v17427_v4  ;;  %v20530_v60 = vld [vmem:[#allocation7 + $0x1dd4] sm:$0xf0]  ;;  %v10305_v13 = vpop.f32.mrf.mxu0 }
 0x453   :  { %10530 = vmatpush.bf16.msra.mxu2 %v15894_v28  ;;  %10522 = vmatpush.bf16.msra.mxu1 %v15062_v40  ;;  %v15699_v5 = vld [vmem:[#allocation7 + $0x958] sm:$0xf0]  ;;  %v18322_v46 = vor.u32 %v20530_v60, %v18321_v63  ;;  %v21334_v62 = vadd.f32 %v10316_v31, %v10304_v56  ;;  %v18193_v6 = vld [vmem:[#allocation7 + $0x1c98] sm:$0xf]  ;;  %v14873_v13 = vld [vmem:[#allocation7 + $0x2a0] sm:$0xf] }
 0x454   :  { %10510 = vmatmul.bf16.vlgmr.msra.gmra.mxu0 %v21135_v24  ;;  %v20154_v9 = vld [vmem:[#allocation7 + $0x121c] sm:$0xf]  ;;  %v15702_v25 = vor.u32 %v19866_v8, %v15699_v5  ;;  %v20498_v38 = vld [vmem:[#allocation7 + $0x1cd4] sm:$0xf0] }
 0x455   :  { %10554 = vmatpush.bf16.msrb.mxu0 %v17046_v57  ;;  %10490 = vmatpush.bf16.msrb.mxu3 %v18514_v50  ;;  %v16851_v19 = vld [vmem:[#allocation7 + $0x1258] sm:$0xf0]  ;;  %v18257_v57 = vld [vmem:[#allocation7 + $0x1d18] sm:$0xf] }
 0x456   :  { %10523 = vmatmul.bf16.vlgmr.msra.gmra.mxu1 %v21137_v1  ;;  %v20282_v17 = vld [vmem:[#allocation7 + $0x161c] sm:$0xf]  ;;  %v16854_v45 = vor.u32 %v20154_v9, %v16851_v19  ;;  %v10318_v19 = vpop.f32.mrf.mxu1  ;;  %v18129_v63 = vld [vmem:[#allocation7 + $0x1c18] sm:$0xf] }
 0x457   :  { %10567 = vmatpush.bf16.msrb.mxu1 %v17558_v44  ;;  %10531 = vmatpush.bf16.msra.mxu2 %v15830_v21  ;;  %v17363_v54 = vld [vmem:[#allocation7 + $0x1658] sm:$0xf0]  ;;  %v20514_v44 = vld [vmem:[#allocation7 + $0x1d54] sm:$0xf0]  ;;  %v10279_v21 = vpop.f32.mrf.mxu2  ;;  %v19795_v19 = vld [vmem:[#allocation7 + $0x6dc] sm:$0xf0] }
 0x458   :  { %v19850_v7 = vld [vmem:[#allocation7 + $0x89c] sm:$0xf]  ;;  %v17366_v55 = vor.u32 %v20282_v17, %v17363_v54  ;;  %v18194_v17 = vor.u32 %v20498_v38, %v18193_v6  ;;  %v20482_v60 = vld [vmem:[#allocation7 + $0x1c54] sm:$0xf0] }
 0x459   :  { %10555 = vmatpush.bf16.msrb.mxu0 %v16982_v12  ;;  %10491 = vmatpush.bf16.msrb.mxu3 %v18450_v43  ;;  %v15635_v28 = vld [vmem:[#allocation7 + $0x8d8] sm:$0xf0]  ;;  %v18258_v12 = vor.u32 %v20514_v44, %v18257_v57  ;;  %v18130_v31 = vor.u32 %v20482_v60, %v18129_v63  ;;  %v19699_v57 = vld [vmem:[#allocation7 + $0x3dc] sm:$0xf0] }
 0x45a   :  { %v20138_v27 = vld [vmem:[#allocation7 + $0x119c] sm:$0xf]  ;;  %v15638_v15 = vor.u32 %v19850_v7, %v15635_v28 }
 0x45b   :  { %10568 = vmatpush.bf16.msrb.mxu1 %v17494_v0  ;;  %10532 = vmatpush.bf16.msra.mxu2 %v15766_v49  ;;  %v16787_v30 = vld [vmem:[#allocation7 + $0x11d8] sm:$0xf0]  ;;  %v10252_v49 = vadd.f32 %v21320_v39, %v10239_v33 }
 0x45c   :  { %v20266_v47 = vld [vmem:[#allocation7 + $0x159c] sm:$0xf]  ;;  %v16790_v58 = vor.u32 %v20138_v27, %v16787_v30 }
 0x45d   :  { %10556 = vmatpush.bf16.msrb.mxu0 %v16918_v14  ;;  %10492 = vmatpush.bf16.msrb.mxu3 %v18386_v35  ;;  %v17299_v40 = vld [vmem:[#allocation7 + $0x15d8] sm:$0xf0]  ;;  %v10265_v9 = vadd.f32 %v21322_v23, %v10252_v49  ;;  %v19811_v49 = vld [vmem:[#allocation7 + $0x75c] sm:$0xf0] }
 0x45e   :  { %v19834_v50 = vld [vmem:[#allocation7 + $0x81c] sm:$0xf]  ;;  %v17302_v48 = vor.u32 %v20266_v47, %v17299_v40  ;;  %v15001_v40 = vld [vmem:[#allocation7 + $0x3a0] sm:$0xf] }
 0x45f   :  { %10569 = vmatpush.bf16.msrb.mxu1 %v17430_v34  ;;  %10533 = vmatpush.bf16.msra.mxu2 %v15702_v25  ;;  %v15571_v51 = vld [vmem:[#allocation7 + $0x858] sm:$0xf0]  ;;  %v21340_v28 = vadd.f32 %v21331_v53, %v10265_v9  ;;  %v15385_v9 = vld [vmem:[#allocation7 + $0x6a0] sm:$0xf] }
 0x460   :  { %v20458_v59 = vld [vmem:[#allocation7 + $0x1b9c] sm:$0xf]  ;;  %v15574_v22 = vor.u32 %v19834_v50, %v15571_v51  ;;  %v15513_v50 = vld [vmem:[#allocation7 + $0x7a0] sm:$0xf] }
 0x461   :  { %10557 = vmatpush.bf16.msrb.mxu0 %v16854_v45  ;;  %v18067_v20 = vld [vmem:[#allocation7 + $0x1bd8] sm:$0xf0]  ;;  %10493 = vmatpush.bf16.msrb.mxu3 %v18322_v46  ;;  %v10240_v45 = vpop.f32.mrf.mxu3  ;;  %v19827_v51 = vld [vmem:[#allocation7 + $0x7dc] sm:$0xf0] }
 0x462   :  { %v20122_v0 = vld [vmem:[#allocation7 + $0x111c] sm:$0xf]  ;;  %v18070_v4 = vor.u32 %v20458_v59, %v18067_v20  ;;  %v14809_v45 = vld [vmem:[#allocation7 + $0x220] sm:$0xf] }
 0x463   :  { %10570 = vmatpush.bf16.msrb.mxu1 %v17366_v55  ;;  %v16723_v43 = vld [vmem:[#allocation7 + $0x1158] sm:$0xf0]  ;;  %10534 = vmatpush.bf16.msra.mxu2 %v15638_v15 }
 0x464   :  { %v20250_v32 = vld [vmem:[#allocation7 + $0x151c] sm:$0xf]  ;;  %v16726_v8 = vor.u32 %v20122_v0, %v16723_v43  ;;  %v14937_v0 = vld [vmem:[#allocation7 + $0x320] sm:$0xf] }
 0x465   :  { %v17235_v3 = vld [vmem:[#allocation7 + $0x1558] sm:$0xf0]  ;;  %10558 = vmatpush.bf16.msrb.mxu0 %v16790_v58  ;;  %10494 = vmatpush.bf16.msrb.mxu3 %v18258_v12  ;;  %v15514_v12 = vor.u32 %v19827_v51, %v15513_v50  ;;  %v19683_v43 = vld [vmem:[#allocation7 + $0x35c] sm:$0xf0] }
 0x466   :  { %v20442_v5 = vld [vmem:[#allocation7 + $0x1b1c] sm:$0xf]  ;;  %v17238_v42 = vor.u32 %v20250_v32, %v17235_v3  ;;  %v15449_v3 = vld [vmem:[#allocation7 + $0x720] sm:$0xf]  ;;  %v10329_v63 = vpop.f32.mrf.mxu2 }
 0x467   :  { %v18003_v14 = vld [vmem:[#allocation7 + $0x1b58] sm:$0xf0]  ;;  %10571 = vmatpush.bf16.msrb.mxu1 %v17302_v48  ;;  %10535 = vmatpush.bf16.msra.mxu2 %v15574_v22  ;;  %v15002_v48 = vor.u32 %v19699_v57, %v15001_v40 }
 0x468   :  { %v20106_v34 = vld [vmem:[#allocation7 + $0x109c] sm:$0xf]  ;;  %v18006_v54 = vor.u32 %v20442_v5, %v18003_v14  ;;  %v14938_v5 = vor.u32 %v19683_v43, %v14937_v0  ;;  %v15450_v14 = vor.u32 %v19811_v49, %v15449_v3  ;;  %v19955_v0 = vld [vmem:[#allocation7 + $0xbdc] sm:$0xf0] }
 0x469   :  { %v16659_v35 = vld [vmem:[#allocation7 + $0x10d8] sm:$0xf0]  ;;  %10559 = vmatpush.bf16.msrb.mxu0 %v16726_v8  ;;  %10495 = vmatpush.bf16.msrb.mxu3 %v18194_v17 }
 0x46a   :  { %v20234_v25 = vld [vmem:[#allocation7 + $0x149c] sm:$0xf]  ;;  %v16662_v41 = vor.u32 %v20106_v34, %v16659_v35  ;;  %10536 = vmatmul.bf16.vlgmr.msra.gmra.mxu2 %v21139_v26 }
 0x46b   :  { %v17171_v39 = vld [vmem:[#allocation7 + $0x14d8] sm:$0xf0]  ;;  %10580 = vmatpush.bf16.msrb.mxu2 %v18070_v4  ;;  %10572 = vmatpush.bf16.msrb.mxu1 %v17238_v42  ;;  %v19667_v42 = vld [vmem:[#allocation7 + $0x2dc] sm:$0xf0] }
 0x46c   :  { %v20074_v7 = vld [vmem:[#allocation7 + $0xf9c] sm:$0xf]  ;;  %v17174_v23 = vor.u32 %v20234_v25, %v17171_v39  ;;  %v14874_v60 = vor.u32 %v19667_v42, %v14873_v13  ;;  %v10290_v43 = vpop.f32.mrf.mxu3  ;;  %v19747_v13 = vld [vmem:[#allocation7 + $0x55c] sm:$0xf0] }
 0x46d   :  { %v16531_v55 = vld [vmem:[#allocation7 + $0xfd8] sm:$0xf0]  ;;  %10560 = vmatpush.bf16.msrb.mxu0 %v16662_v41  ;;  %10496 = vmatpush.bf16.msrb.mxu3 %v18130_v31  ;;  %v19651_v41 = vld [vmem:[#allocation7 + $0x25c] sm:$0xf0]  ;;  %v21354_v49 = vadd.f32 %v10290_v43, %v21340_v28 }
 0x46e   :  { %v20426_v46 = vld [vmem:[#allocation7 + $0x1a9c] sm:$0xf]  ;;  %v16534_v53 = vor.u32 %v20074_v7, %v16531_v55  ;;  %v15386_v7 = vor.u32 %v19795_v19, %v15385_v9  ;;  %v21347_v55 = vadd.f32 %v10329_v63, %v21334_v62  ;;  %v14810_v40 = vor.u32 %v19651_v41, %v14809_v45  ;;  %v19939_v9 = vld [vmem:[#allocation7 + $0xb5c] sm:$0xf0] }
 0x46f   :  { %v17939_v27 = vld [vmem:[#allocation7 + $0x1ad8] sm:$0xf0]  ;;  %10581 = vmatpush.bf16.msrb.mxu2 %v18006_v54  ;;  %10573 = vmatpush.bf16.msrb.mxu1 %v17174_v23  ;;  %v15321_v23 = vld [vmem:[#allocation7 + $0x620] sm:$0xf]  ;;  %v21349_v50 = vpop.f32.mrf.mxu0 }
 0x470   :  { %v20090_v30 = vld [vmem:[#allocation7 + $0x101c] sm:$0xf]  ;;  %v17942_v44 = vor.u32 %v20426_v46, %v17939_v27  ;;  %10497 = vmatmul.bf16.vlgmr.msrb.gmra.mxu3 %v21197_v18  ;;  %v19603_v63 = vld [vmem:[#allocation7 + $0xdc] sm:$0xf0] }
 0x471   :  { %v16595_v47 = vld [vmem:[#allocation7 + $0x1058] sm:$0xf0]  ;;  %10541 = vmatpush.bf16.msra.mxu3 %v16534_v53  ;;  %v14745_v53 = vld [vmem:[#allocation7 + $0x1a0] sm:$0xf]  ;;  %v21351_v62 = vpop.f32.mrf.mxu1 }
 0x472   :  { %v20218_v56 = vld [vmem:[#allocation7 + $0x141c] sm:$0xf]  ;;  %v16598_v21 = vor.u32 %v20090_v30, %v16595_v47  ;;  %v19779_v30 = vld [vmem:[#allocation7 + $0x65c] sm:$0xf0] }
 0x473   :  { %v17107_v15 = vld [vmem:[#allocation7 + $0x1458] sm:$0xf0]  ;;  %10582 = vmatpush.bf16.msrb.mxu2 %v17942_v44  ;;  %v15322_v57 = vor.u32 %v19779_v30, %v15321_v23  ;;  %v19635_v44 = vld [vmem:[#allocation7 + $0x1dc] sm:$0xf0] }
 0x474   :  { %v20058_v52 = vld [vmem:[#allocation7 + $0xf1c] sm:$0xf]  ;;  %v17110_v33 = vor.u32 %v20218_v56, %v17107_v15  ;;  %10561 = vmatpush.bf16.msrb.mxu0 %v16598_v21  ;;  %v15257_v21 = vld [vmem:[#allocation7 + $0x5a0] sm:$0xf] }
 0x475   :  { %v16467_v58 = vld [vmem:[#allocation7 + $0xf58] sm:$0xf0]  ;;  %v15897_v30 = vld [vmem:[#allocation7 + $0xaa0] sm:$0xf] }
 0x476   :  { %v20410_v59 = vld [vmem:[#allocation7 + $0x1a1c] sm:$0xf]  ;;  %v16470_v22 = vor.u32 %v20058_v52, %v16467_v58  ;;  %10574 = vmatpush.bf16.msrb.mxu1 %v17110_v33  ;;  %v19763_v58 = vld [vmem:[#allocation7 + $0x5dc] sm:$0xf0] }
 0x477   :  { %v17875_v20 = vld [vmem:[#allocation7 + $0x1a58] sm:$0xf0]  ;;  %10562 = vmatmul.bf16.vlgmr.msrb.gmra.mxu0 %v21157_v37  ;;  %v15258_v3 = vor.u32 %v19763_v58, %v15257_v21  ;;  %v17049_v58 = vld [vmem:[#allocation7 + $0x13a0] sm:$0xf] }
 0x478   :  { %v17878_v32 = vor.u32 %v20410_v59, %v17875_v20  ;;  %v20042_v4 = vld [vmem:[#allocation7 + $0xe9c] sm:$0xf]  ;;  %10606 = vmatpush.bf16.msra.mxu0 %v15002_v48  ;;  %10542 = vmatpush.bf16.msra.mxu3 %v16470_v22  ;;  %v10331_v22 = vpop.f32.mrf.mxu2  ;;  %v15833_v43 = vld [vmem:[#allocation7 + $0xa20] sm:$0xf] }
 0x479   :  { %v16403_v6 = vld [vmem:[#allocation7 + $0xed8] sm:$0xf0]  ;;  %10575 = vmatmul.bf16.vlgmr.msrb.gmra.mxu1 %v21159_v11  ;;  %v10370_v28 = vpop.f32.mrf.mxu1  ;;  %v19907_v22 = vld [vmem:[#allocation7 + $0xa5c] sm:$0xf0] }
 0x47a   :  { %v20394_v38 = vld [vmem:[#allocation7 + $0x199c] sm:$0xf]  ;;  %10619 = vmatpush.bf16.msra.mxu1 %v15514_v12  ;;  %10583 = vmatpush.bf16.msrb.mxu2 %v17878_v32  ;;  %v16406_v34 = vor.u32 %v20042_v4, %v16403_v6  ;;  %v16025_v12 = vld [vmem:[#allocation7 + $0xba0] sm:$0xf]  ;;  %v14746_v32 = vor.u32 %v19635_v44, %v14745_v53 }
 0x47b   :  { %v17811_v8 = vld [vmem:[#allocation7 + $0x19d8] sm:$0xf0]  ;;  %v19587_v53 = vld [vmem:[#allocation7 + $0x5c] sm:$0xf0] }
 0x47c   :  { %v17814_v35 = vor.u32 %v20394_v38, %v17811_v8  ;;  %v20026_v17 = vld [vmem:[#allocation7 + $0xe1c] sm:$0xf]  ;;  %10607 = vmatpush.bf16.msra.mxu0 %v14938_v5  ;;  %10543 = vmatpush.bf16.msra.mxu3 %v16406_v34  ;;  %v14681_v38 = vld [vmem:[#allocation7 + $0x120] sm:$0xf] }
 0x47d   :  { %v16339_v25 = vld [vmem:[#allocation7 + $0xe58] sm:$0xf0]  ;;  %v19619_v8 = vld [vmem:[#allocation7 + $0x15c] sm:$0xf0] }
 0x47e   :  { %v20378_v39 = vld [vmem:[#allocation7 + $0x191c] sm:$0xf]  ;;  %10620 = vmatpush.bf16.msra.mxu1 %v15450_v14  ;;  %10584 = vmatpush.bf16.msrb.mxu2 %v17814_v35  ;;  %v16342_v46 = vor.u32 %v20026_v17, %v16339_v25  ;;  %v15193_v5 = vld [vmem:[#allocation7 + $0x520] sm:$0xf]  ;;  %v16026_v14 = vor.u32 %v19955_v0, %v16025_v12  ;;  %v14682_v19 = vor.u32 %v19619_v8, %v14681_v38  ;;  %v10357_v25 = vpop.f32.mrf.mxu0 }
 0x47f   :  { %v17747_v54 = vld [vmem:[#allocation7 + $0x1958] sm:$0xf0]  ;;  %v15961_v35 = vld [vmem:[#allocation7 + $0xb20] sm:$0xf] }
 0x480   :  { %v17750_v27 = vor.u32 %v20378_v39, %v17747_v54  ;;  %v20010_v47 = vld [vmem:[#allocation7 + $0xd9c] sm:$0xf]  ;;  %10608 = vmatpush.bf16.msra.mxu0 %v14874_v60  ;;  %10544 = vmatpush.bf16.msra.mxu3 %v16342_v46  ;;  %v14617_v17 = vld [vmem:[#allocation7 + $0xa0] sm:$0xf]  ;;  %v15194_v39 = vor.u32 %v19747_v13, %v15193_v5  ;;  %v15962_v45 = vor.u32 %v19939_v9, %v15961_v35 }
 0x481   :  { %v16275_v56 = vld [vmem:[#allocation7 + $0xdd8] sm:$0xf0]  ;;  %v15129_v60 = vld [vmem:[#allocation7 + $0x4a0] sm:$0xf] }
 0x482   :  { %v20362_v31 = vld [vmem:[#allocation7 + $0x189c] sm:$0xf]  ;;  %10621 = vmatpush.bf16.msra.mxu1 %v15386_v7  ;;  %10585 = vmatpush.bf16.msrb.mxu2 %v17750_v27  ;;  %v16278_v51 = vor.u32 %v20010_v47, %v16275_v56  ;;  %v19731_v7 = vld [vmem:[#allocation7 + $0x4dc] sm:$0xf0]  ;;  %v10292_v56 = vpop.f32.mrf.mxu3 }
 0x483   :  { %v17683_v15 = vld [vmem:[#allocation7 + $0x18d8] sm:$0xf0]  ;;  %v19923_v47 = vld [vmem:[#allocation7 + $0xadc] sm:$0xf0] }
 0x484   :  { %v17686_v52 = vor.u32 %v20362_v31, %v17683_v15  ;;  %v19994_v59 = vld [vmem:[#allocation7 + $0xd1c] sm:$0xf]  ;;  %10609 = vmatpush.bf16.msra.mxu0 %v14810_v40  ;;  %10545 = vmatpush.bf16.msra.mxu3 %v16278_v51  ;;  %v14618_v31 = vor.u32 %v19603_v63, %v14617_v17  ;;  %v14553_v15 = vld [vmem:[#allocation7 + $0x20] sm:$0xf]  ;;  %v15130_v40 = vor.u32 %v19731_v7, %v15129_v60 }
 0x485   :  { %v16211_v20 = vld [vmem:[#allocation7 + $0xd58] sm:$0xf0]  ;;  %v15065_v44 = vld [vmem:[#allocation7 + $0x420] sm:$0xf]  ;;  %v15898_v21 = vor.u32 %v19923_v47, %v15897_v30  ;;  %v14554_v0 = vor.u32 %v19587_v53, %v14553_v15 }
 0x486   :  { %v20346_v33 = vld [vmem:[#allocation7 + $0x181c] sm:$0xf]  ;;  %10622 = vmatpush.bf16.msra.mxu1 %v15322_v57  ;;  %10586 = vmatpush.bf16.msrb.mxu2 %v17686_v52  ;;  %v16214_v4 = vor.u32 %v19994_v59, %v16211_v20  ;;  %v19715_v51 = vld [vmem:[#allocation7 + $0x45c] sm:$0xf0] }
 0x487   :  { %v17619_v48 = vld [vmem:[#allocation7 + $0x1858] sm:$0xf0]  ;;  %v20211_v59 = vld [vmem:[#allocation7 + $0x13dc] sm:$0xf0] }
 0x488   :  { %v17622_v6 = vor.u32 %v20346_v33, %v17619_v48  ;;  %v19978_v42 = vld [vmem:[#allocation7 + $0xc9c] sm:$0xf]  ;;  %10610 = vmatpush.bf16.msra.mxu0 %v14746_v32  ;;  %10546 = vmatpush.bf16.msra.mxu3 %v16214_v4  ;;  %v17561_v20 = vld [vmem:[#allocation7 + $0x17a0] sm:$0xf]  ;;  %v15066_v32 = vor.u32 %v19715_v51, %v15065_v44 }
 0x489   :  { %v16147_v34 = vld [vmem:[#allocation7 + $0xcd8] sm:$0xf0]  ;;  %v20339_v33 = vld [vmem:[#allocation7 + $0x17dc] sm:$0xf0] }
 0x48a   :  { %10623 = vmatpush.bf16.msra.mxu1 %v15258_v3  ;;  %10587 = vmatpush.bf16.msrb.mxu2 %v17622_v6  ;;  %v16150_v54 = vor.u32 %v19978_v42, %v16147_v34  ;;  %v19962_v41 = vld [vmem:[#allocation7 + $0xc1c] sm:$0xf]  ;;  %v17050_v3 = vor.u32 %v20211_v59, %v17049_v58  ;;  %v17562_v4 = vor.u32 %v20339_v33, %v17561_v20  ;;  %v16985_v38 = vld [vmem:[#allocation7 + $0x1320] sm:$0xf] }
 0x48b   :  { %v16083_v46 = vld [vmem:[#allocation7 + $0xc58] sm:$0xf0]  ;;  %v20195_v8 = vld [vmem:[#allocation7 + $0x135c] sm:$0xf0] }
 0x48c   :  { %v20586_v27 = vld [vmem:[#allocation7 + $0x1f9c] sm:$0xf]  ;;  %10611 = vmatpush.bf16.msra.mxu0 %v14682_v19  ;;  %10547 = vmatpush.bf16.msra.mxu3 %v16150_v54  ;;  %v16086_v57 = vor.u32 %v19962_v41, %v16083_v46  ;;  %v17497_v5 = vld [vmem:[#allocation7 + $0x1720] sm:$0xf]  ;;  %v16986_v19 = vor.u32 %v20195_v8, %v16985_v38 }
 0x48d   :  { %v18579_v23 = vld [vmem:[#allocation7 + $0x1fd8] sm:$0xf0]  ;;  %10588 = vmatmul.bf16.vlgmr.msrb.gmra.mxu2 %v21182_v10  ;;  %v20323_v13 = vld [vmem:[#allocation7 + $0x175c] sm:$0xf0] }
 0x48e   :  { %10632 = vmatpush.bf16.msra.mxu2 %v16026_v14  ;;  %10624 = vmatpush.bf16.msra.mxu1 %v15194_v39  ;;  %v18582_v52 = vor.u32 %v20586_v27, %v18579_v23  ;;  %v20570_v48 = vld [vmem:[#allocation7 + $0x1f1c] sm:$0xf]  ;;  %v15834_v14 = vor.u32 %v19907_v22, %v15833_v43  ;;  %v15769_v35 = vld [vmem:[#allocation7 + $0x9a0] sm:$0xf]  ;;  %v17498_v17 = vor.u32 %v20323_v13, %v17497_v5  ;;  %v21360_v27 = vpop.f32.mrf.mxu2 }
 0x48f   :  { %v18515_v12 = vld [vmem:[#allocation7 + $0x1f58] sm:$0xf0]  ;;  %v19891_v9 = vld [vmem:[#allocation7 + $0x9dc] sm:$0xf0]  ;;  %v10407_v20 = vpop.f32.mrf.mxu0 }
 0x490   :  { %10612 = vmatpush.bf16.msra.mxu0 %v14618_v31  ;;  %10548 = vmatpush.bf16.msra.mxu3 %v16086_v57  ;;  %v18518_v6 = vor.u32 %v20570_v48, %v18515_v12  ;;  %v20554_v42 = vld [vmem:[#allocation7 + $0x1e9c] sm:$0xf]  ;;  %v16921_v28 = vld [vmem:[#allocation7 + $0x12a0] sm:$0xf]  ;;  %v15770_v63 = vor.u32 %v19891_v9, %v15769_v35 }
 0x491   :  { %v18451_v34 = vld [vmem:[#allocation7 + $0x1ed8] sm:$0xf0]  ;;  %v20179_v39 = vld [vmem:[#allocation7 + $0x12dc] sm:$0xf0]  ;;  %v10342_v13 = vpop.f32.mrf.mxu3 }
 0x492   :  { %10633 = vmatpush.bf16.msra.mxu2 %v15962_v45  ;;  %10625 = vmatpush.bf16.msra.mxu1 %v15130_v40  ;;  %v18454_v25 = vor.u32 %v20554_v42, %v18451_v34  ;;  %v17433_v54 = vld [vmem:[#allocation7 + $0x16a0] sm:$0xf]  ;;  %v20538_v7 = vld [vmem:[#allocation7 + $0x1e1c] sm:$0xf]  ;;  %v16922_v23 = vor.u32 %v20179_v39, %v16921_v28 }
 0x493   :  { %10549 = vmatmul.bf16.vlgmr.msra.gmra.mxu3 %v21142_v29  ;;  %v20307_v60 = vld [vmem:[#allocation7 + $0x16dc] sm:$0xf0]  ;;  %v18387_v45 = vld [vmem:[#allocation7 + $0x1e58] sm:$0xf0] }
 0x494   :  { %10593 = vmatpush.bf16.msrb.mxu3 %v18582_v52  ;;  %10613 = vmatpush.bf16.msra.mxu0 %v14554_v0  ;;  %v15705_v41 = vld [vmem:[#allocation7 + $0x920] sm:$0xf]  ;;  %v17434_v56 = vor.u32 %v20307_v60, %v17433_v54  ;;  %v18390_v31 = vor.u32 %v20538_v7, %v18387_v45  ;;  %v20522_v51 = vld [vmem:[#allocation7 + $0x1d9c] sm:$0xf] }
 0x495   :  { %v19875_v46 = vld [vmem:[#allocation7 + $0x95c] sm:$0xf0]  ;;  %v18323_v52 = vld [vmem:[#allocation7 + $0x1dd8] sm:$0xf0] }
 0x496   :  { %10634 = vmatpush.bf16.msra.mxu2 %v15898_v21  ;;  %10626 = vmatpush.bf16.msra.mxu1 %v15066_v32  ;;  %v21362_v30 = vld [vmem:[#allocation8] sm:$0xff]  ;;  %v15706_v53 = vor.u32 %v19875_v46, %v15705_v41  ;;  %v18326_v48 = vor.u32 %v20522_v51, %v18323_v52  ;;  %v10420_v32 = vpop.f32.mrf.mxu1  ;;  %v18259_v38 = vld [vmem:[#allocation7 + $0x1d58] sm:$0xf0]  ;;  %v10383_v42 = vpop.f32.mrf.mxu2 }
 0x497   :  { %10614 = vmatmul.bf16.vlgmr.msra.gmra.mxu0 %v21135_v24  ;;  %v4628_v47 = vperm.slane %v21362_v30, 6  ;;  %v16857_v15 = vld [vmem:[#allocation7 + $0x1220] sm:$0xf]  ;;  %v20490_v41 = vld [vmem:[#allocation7 + $0x1c9c] sm:$0xf] }
 0x498   :  { %10658 = vmatpush.bf16.msrb.mxu0 %v17050_v3  ;;  %10594 = vmatpush.bf16.msrb.mxu3 %v18518_v6  ;;  %v20163_v40 = vld [vmem:[#allocation7 + $0x125c] sm:$0xf0]  ;;  %v20506_v6 = vld [vmem:[#allocation7 + $0x1d1c] sm:$0xf]  ;;  %v15515_v42 = vld [vmem:[#allocation7 + $0x7e0] sm:$0xf0] }
 0x499   :  { %10627 = vmatmul.bf16.vlgmr.msra.gmra.mxu1 %v21137_v1  ;;  %v17369_v57 = vld [vmem:[#allocation7 + $0x1620] sm:$0xf]  ;;  %v16858_v59 = vor.u32 %v20163_v40, %v16857_v15  ;;  %v10408_v22 = vadd.f32 %v10407_v20, %v4628_v47  ;;  %v18195_v46 = vld [vmem:[#allocation7 + $0x1cd8] sm:$0xf0] }
 0x49a   :  { %10671 = vmatpush.bf16.msrb.mxu1 %v17562_v4  ;;  %10635 = vmatpush.bf16.msra.mxu2 %v15834_v14  ;;  %v20291_v44 = vld [vmem:[#allocation7 + $0x165c] sm:$0xf0] }
 0x49b   :  { %v15641_v21 = vld [vmem:[#allocation7 + $0x8a0] sm:$0xf]  ;;  %v17370_v33 = vor.u32 %v20291_v44, %v17369_v57  ;;  %v21365_v14 = vadd.f32 %v10420_v32, %v10408_v22  ;;  %v18198_v44 = vor.u32 %v20490_v41, %v18195_v46  ;;  %v15451_v41 = vld [vmem:[#allocation7 + $0x760] sm:$0xf0] }
 0x49c   :  { %10659 = vmatpush.bf16.msrb.mxu0 %v16986_v19  ;;  %10595 = vmatpush.bf16.msrb.mxu3 %v18454_v25  ;;  %v19859_v58 = vld [vmem:[#allocation7 + $0x8dc] sm:$0xf0]  ;;  %v10343_v19 = vadd.f32 %v10342_v13, %v21347_v55  ;;  %v18262_v25 = vor.u32 %v20506_v6, %v18259_v38  ;;  %v10409_v55 = vpop.f32.mrf.mxu0  ;;  %v19691_v38 = vld [vmem:[#allocation7 + $0x3a4] sm:$0xf] }
 0x49d   :  { %v16793_v12 = vld [vmem:[#allocation7 + $0x11a0] sm:$0xf]  ;;  %v15642_v3 = vor.u32 %v19859_v58, %v15641_v21  ;;  %v20474_v21 = vld [vmem:[#allocation7 + $0x1c1c] sm:$0xf]  ;;  %v19819_v13 = vld [vmem:[#allocation7 + $0x7a4] sm:$0xf] }
 0x49e   :  { %10672 = vmatpush.bf16.msrb.mxu1 %v17498_v17  ;;  %10636 = vmatpush.bf16.msra.mxu2 %v15770_v63  ;;  %v20147_v0 = vld [vmem:[#allocation7 + $0x11dc] sm:$0xf0]  ;;  %v10356_v7 = vadd.f32 %v21349_v50, %v10343_v19  ;;  %v18131_v58 = vld [vmem:[#allocation7 + $0x1c58] sm:$0xf0] }
 0x49f   :  { %v17305_v43 = vld [vmem:[#allocation7 + $0x15a0] sm:$0xf]  ;;  %v16794_v34 = vor.u32 %v20147_v0, %v16793_v12 }
 0x4a0   :  { %10660 = vmatpush.bf16.msrb.mxu0 %v16922_v23  ;;  %10596 = vmatpush.bf16.msrb.mxu3 %v18390_v31  ;;  %v20275_v4 = vld [vmem:[#allocation7 + $0x15dc] sm:$0xf0]  ;;  %v10369_v57 = vadd.f32 %v21351_v62, %v10356_v7 }
 0x4a1   :  { %v15577_v8 = vld [vmem:[#allocation7 + $0x820] sm:$0xf]  ;;  %v17306_v17 = vor.u32 %v20275_v4, %v17305_v43  ;;  %v18134_v4 = vor.u32 %v20474_v21, %v18131_v58 }
 0x4a2   :  { %10673 = vmatpush.bf16.msrb.mxu1 %v17434_v56  ;;  %10637 = vmatpush.bf16.msra.mxu2 %v15706_v53  ;;  %v19843_v5 = vld [vmem:[#allocation7 + $0x85c] sm:$0xf0]  ;;  %v10422_v53 = vpop.f32.mrf.mxu1  ;;  %v21371_v20 = vadd.f32 %v21360_v27, %v10369_v57 }
 0x4a3   :  { %v18073_v35 = vld [vmem:[#allocation7 + $0x1ba0] sm:$0xf]  ;;  %v15578_v54 = vor.u32 %v19843_v5, %v15577_v8  ;;  %v15003_v8 = vld [vmem:[#allocation7 + $0x3e0] sm:$0xf0] }
 0x4a4   :  { %10661 = vmatpush.bf16.msrb.mxu0 %v16858_v59  ;;  %v20467_v9 = vld [vmem:[#allocation7 + $0x1bdc] sm:$0xf0]  ;;  %10597 = vmatpush.bf16.msrb.mxu3 %v18326_v48 }
 0x4a5   :  { %v16729_v28 = vld [vmem:[#allocation7 + $0x1120] sm:$0xf]  ;;  %v18074_v45 = vor.u32 %v20467_v9, %v18073_v35 }
 0x4a6   :  { %10674 = vmatpush.bf16.msrb.mxu1 %v17370_v33  ;;  %v20131_v39 = vld [vmem:[#allocation7 + $0x115c] sm:$0xf0]  ;;  %10638 = vmatpush.bf16.msra.mxu2 %v15642_v3  ;;  %v10344_v33 = vpop.f32.mrf.mxu3 }
 0x4a7   :  { %v17241_v63 = vld [vmem:[#allocation7 + $0x1520] sm:$0xf]  ;;  %v16730_v23 = vor.u32 %v20131_v39, %v16729_v28  ;;  %v15006_v28 = vor.u32 %v19691_v38, %v15003_v8  ;;  %v15518_v39 = vor.u32 %v19819_v13, %v15515_v42  ;;  %v19627_v13 = vld [vmem:[#allocation7 + $0x1a4] sm:$0xf] }
 0x4a8   :  { %v20259_v60 = vld [vmem:[#allocation7 + $0x155c] sm:$0xf0]  ;;  %10662 = vmatpush.bf16.msrb.mxu0 %v16794_v34  ;;  %10598 = vmatpush.bf16.msrb.mxu3 %v18262_v25  ;;  %v14747_v42 = vld [vmem:[#allocation7 + $0x1e0] sm:$0xf0] }
 0x4a9   :  { %v18009_v47 = vld [vmem:[#allocation7 + $0x1b20] sm:$0xf]  ;;  %v17242_v31 = vor.u32 %v20259_v60, %v17241_v63  ;;  %v14939_v63 = vld [vmem:[#allocation7 + $0x360] sm:$0xf0] }
 0x4aa   :  { %v20451_v56 = vld [vmem:[#allocation7 + $0x1b5c] sm:$0xf0]  ;;  %10675 = vmatpush.bf16.msrb.mxu1 %v17306_v17  ;;  %10639 = vmatpush.bf16.msra.mxu2 %v15578_v54  ;;  %v19675_v54 = vld [vmem:[#allocation7 + $0x324] sm:$0xf] }
 0x4ab   :  { %v16665_v15 = vld [vmem:[#allocation7 + $0x10a0] sm:$0xf]  ;;  %v18010_v52 = vor.u32 %v20451_v56, %v18009_v47  ;;  %v14942_v55 = vor.u32 %v19675_v54, %v14939_v63  ;;  %v19947_v63 = vld [vmem:[#allocation7 + $0xba4] sm:$0xf] }
 0x4ac   :  { %v20115_v40 = vld [vmem:[#allocation7 + $0x10dc] sm:$0xf0]  ;;  %10663 = vmatpush.bf16.msrb.mxu0 %v16730_v23  ;;  %10599 = vmatpush.bf16.msrb.mxu3 %v18198_v44  ;;  %v19787_v44 = vld [vmem:[#allocation7 + $0x6a4] sm:$0xf] }
 0x4ad   :  { %v17177_v51 = vld [vmem:[#allocation7 + $0x14a0] sm:$0xf]  ;;  %v16666_v48 = vor.u32 %v20115_v40, %v16665_v15  ;;  %10640 = vmatmul.bf16.vlgmr.msra.gmra.mxu2 %v21139_v26  ;;  %v19659_v15 = vld [vmem:[#allocation7 + $0x2a4] sm:$0xf] }
 0x4ae   :  { %v20243_v50 = vld [vmem:[#allocation7 + $0x14dc] sm:$0xf0]  ;;  %10684 = vmatpush.bf16.msrb.mxu2 %v18074_v45  ;;  %10676 = vmatpush.bf16.msrb.mxu1 %v17242_v31  ;;  %v19803_v45 = vld [vmem:[#allocation7 + $0x724] sm:$0xf] }
 0x4af   :  { %v16537_v59 = vld [vmem:[#allocation7 + $0xfa0] sm:$0xf]  ;;  %v17178_v62 = vor.u32 %v20243_v50, %v17177_v51  ;;  %v15454_v31 = vor.u32 %v19803_v45, %v15451_v41  ;;  %v14875_v40 = vld [vmem:[#allocation7 + $0x2e0] sm:$0xf0]  ;;  %v14750_v41 = vor.u32 %v19627_v13, %v14747_v42 }
 0x4b0   :  { %v20083_v12 = vld [vmem:[#allocation7 + $0xfdc] sm:$0xf0]  ;;  %10664 = vmatpush.bf16.msrb.mxu0 %v16666_v48  ;;  %10600 = vmatpush.bf16.msrb.mxu3 %v18134_v4  ;;  %v15387_v51 = vld [vmem:[#allocation7 + $0x6e0] sm:$0xf0]  ;;  %v14878_v33 = vor.u32 %v19659_v15, %v14875_v40 }
 0x4b1   :  { %v17945_v0 = vld [vmem:[#allocation7 + $0x1aa0] sm:$0xf]  ;;  %v16538_v27 = vor.u32 %v20083_v12, %v16537_v59  ;;  %v10433_v59 = vpop.f32.mrf.mxu2  ;;  %v15390_v48 = vor.u32 %v19787_v44, %v15387_v51  ;;  %v19643_v12 = vld [vmem:[#allocation7 + $0x224] sm:$0xf] }
 0x4b2   :  { %v20435_v43 = vld [vmem:[#allocation7 + $0x1adc] sm:$0xf0]  ;;  %10685 = vmatpush.bf16.msrb.mxu2 %v18010_v52  ;;  %10677 = vmatpush.bf16.msrb.mxu1 %v17178_v62  ;;  %v19739_v15 = vld [vmem:[#allocation7 + $0x524] sm:$0xf] }
 0x4b3   :  { %v16601_v22 = vld [vmem:[#allocation7 + $0x1020] sm:$0xf]  ;;  %v17946_v5 = vor.u32 %v20435_v43, %v17945_v0  ;;  %10601 = vmatmul.bf16.vlgmr.msrb.gmra.mxu3 %v21197_v18  ;;  %v14811_v0 = vld [vmem:[#allocation7 + $0x260] sm:$0xf0]  ;;  %v21378_v43 = vadd.f32 %v10433_v59, %v21365_v14  ;;  %v21382_v14 = vpop.f32.mrf.mxu1 }
 0x4b4   :  { %v20099_v32 = vld [vmem:[#allocation7 + $0x105c] sm:$0xf0]  ;;  %10645 = vmatpush.bf16.msra.mxu3 %v16538_v27  ;;  %v14814_v27 = vor.u32 %v19643_v12, %v14811_v0  ;;  %v19931_v51 = vld [vmem:[#allocation7 + $0xb24] sm:$0xf] }
 0x4b5   :  { %v17113_v3 = vld [vmem:[#allocation7 + $0x1420] sm:$0xf]  ;;  %v16602_v35 = vor.u32 %v20099_v32, %v16601_v22  ;;  %v19771_v32 = vld [vmem:[#allocation7 + $0x624] sm:$0xf] }
 0x4b6   :  { %v20227_v6 = vld [vmem:[#allocation7 + $0x145c] sm:$0xf0]  ;;  %10686 = vmatpush.bf16.msrb.mxu2 %v17946_v5  ;;  %v19723_v12 = vld [vmem:[#allocation7 + $0x4a4] sm:$0xf] }
 0x4b7   :  { %v16473_v34 = vld [vmem:[#allocation7 + $0xf20] sm:$0xf]  ;;  %v17114_v25 = vor.u32 %v20227_v6, %v17113_v3  ;;  %10665 = vmatpush.bf16.msrb.mxu0 %v16602_v35  ;;  %v15323_v3 = vld [vmem:[#allocation7 + $0x660] sm:$0xf0] }
 0x4b8   :  { %v20067_v9 = vld [vmem:[#allocation7 + $0xf5c] sm:$0xf0]  ;;  %v15326_v5 = vor.u32 %v19771_v32, %v15323_v3  ;;  %v15131_v0 = vld [vmem:[#allocation7 + $0x4e0] sm:$0xf0] }
 0x4b9   :  { %v17881_v19 = vld [vmem:[#allocation7 + $0x1a20] sm:$0xf]  ;;  %v16474_v60 = vor.u32 %v20067_v9, %v16473_v34  ;;  %10678 = vmatpush.bf16.msrb.mxu1 %v17114_v25  ;;  %v21380_v34 = vpop.f32.mrf.mxu0  ;;  %v10435_v45 = vpop.f32.mrf.mxu2  ;;  %v15134_v13 = vor.u32 %v19723_v12, %v15131_v0  ;;  %v20299_v12 = vld [vmem:[#allocation7 + $0x16a4] sm:$0xf] }
 0x4ba   :  { %v20419_v17 = vld [vmem:[#allocation7 + $0x1a5c] sm:$0xf0]  ;;  %10666 = vmatmul.bf16.vlgmr.msrb.gmra.mxu0 %v21157_v37 }
 0x4bb   :  { %v17882_v7 = vor.u32 %v20419_v17, %v17881_v19  ;;  %v16409_v46 = vld [vmem:[#allocation7 + $0xea0] sm:$0xf]  ;;  %10710 = vmatpush.bf16.msra.mxu0 %v15006_v28  ;;  %10646 = vmatpush.bf16.msra.mxu3 %v16474_v60  ;;  %v19755_v19 = vld [vmem:[#allocation7 + $0x5a4] sm:$0xf] }
 0x4bc   :  { %v20051_v23 = vld [vmem:[#allocation7 + $0xedc] sm:$0xf0]  ;;  %10679 = vmatmul.bf16.vlgmr.msrb.gmra.mxu1 %v21159_v11  ;;  %v15259_v17 = vld [vmem:[#allocation7 + $0x5e0] sm:$0xf0] }
 0x4bd   :  { %v17817_v47 = vld [vmem:[#allocation7 + $0x19a0] sm:$0xf]  ;;  %10723 = vmatpush.bf16.msra.mxu1 %v15518_v39  ;;  %10687 = vmatpush.bf16.msrb.mxu2 %v17882_v7  ;;  %v16410_v57 = vor.u32 %v20051_v23, %v16409_v46  ;;  %v16027_v60 = vld [vmem:[#allocation7 + $0xbe0] sm:$0xf0]  ;;  %v10394_v7 = vpop.f32.mrf.mxu3  ;;  %v15262_v46 = vor.u32 %v19755_v19, %v15259_v17 }
 0x4be   :  { %v20403_v56 = vld [vmem:[#allocation7 + $0x19dc] sm:$0xf0]  ;;  %v21385_v23 = vadd.f32 %v10394_v7, %v21371_v20  ;;  %v16030_v40 = vor.u32 %v19947_v63, %v16027_v60  ;;  %v10474_v20 = vpop.f32.mrf.mxu1  ;;  %v15067_v19 = vld [vmem:[#allocation7 + $0x460] sm:$0xf0] }
 0x4bf   :  { %v17818_v53 = vor.u32 %v20403_v56, %v17817_v47  ;;  %v16345_v50 = vld [vmem:[#allocation7 + $0xe20] sm:$0xf]  ;;  %10711 = vmatpush.bf16.msra.mxu0 %v14942_v55  ;;  %10647 = vmatpush.bf16.msra.mxu3 %v16410_v57  ;;  %v19611_v55 = vld [vmem:[#allocation7 + $0x124] sm:$0xf] }
 0x4c0   :  { %v20035_v52 = vld [vmem:[#allocation7 + $0xe5c] sm:$0xf0]  ;;  %v15195_v57 = vld [vmem:[#allocation7 + $0x560] sm:$0xf0] }
 0x4c1   :  { %v17753_v21 = vld [vmem:[#allocation7 + $0x1920] sm:$0xf]  ;;  %10724 = vmatpush.bf16.msra.mxu1 %v15454_v31  ;;  %10688 = vmatpush.bf16.msrb.mxu2 %v17818_v53  ;;  %v16346_v62 = vor.u32 %v20035_v52, %v16345_v50  ;;  %v14683_v31 = vld [vmem:[#allocation7 + $0x160] sm:$0xf0]  ;;  %v15198_v59 = vor.u32 %v19739_v15, %v15195_v57 }
 0x4c2   :  { %v20387_v58 = vld [vmem:[#allocation7 + $0x195c] sm:$0xf0]  ;;  %v15963_v50 = vld [vmem:[#allocation7 + $0xb60] sm:$0xf0]  ;;  %v14686_v52 = vor.u32 %v19611_v55, %v14683_v31 }
 0x4c3   :  { %v17754_v22 = vor.u32 %v20387_v58, %v17753_v21  ;;  %v16281_v4 = vld [vmem:[#allocation7 + $0xda0] sm:$0xf]  ;;  %10712 = vmatpush.bf16.msra.mxu0 %v14878_v33  ;;  %10648 = vmatpush.bf16.msra.mxu3 %v16346_v62  ;;  %v19595_v21 = vld [vmem:[#allocation7 + $0xa4] sm:$0xf]  ;;  %v10461_v58 = vpop.f32.mrf.mxu0  ;;  %v15966_v62 = vor.u32 %v19931_v51, %v15963_v50 }
 0x4c4   :  { %v20019_v6 = vld [vmem:[#allocation7 + $0xddc] sm:$0xf0]  ;;  %v17563_v63 = vld [vmem:[#allocation7 + $0x17e0] sm:$0xf0] }
 0x4c5   :  { %v17689_v38 = vld [vmem:[#allocation7 + $0x18a0] sm:$0xf]  ;;  %10725 = vmatpush.bf16.msra.mxu1 %v15390_v48  ;;  %10689 = vmatpush.bf16.msrb.mxu2 %v17754_v22  ;;  %v16282_v35 = vor.u32 %v20019_v6, %v16281_v4  ;;  %v14619_v48 = vld [vmem:[#allocation7 + $0xe0] sm:$0xf0] }
 0x4c6   :  { %v20371_v8 = vld [vmem:[#allocation7 + $0x18dc] sm:$0xf0]  ;;  %v19915_v6 = vld [vmem:[#allocation7 + $0xaa4] sm:$0xf] }
 0x4c7   :  { %v17690_v9 = vor.u32 %v20371_v8, %v17689_v38  ;;  %v16217_v25 = vld [vmem:[#allocation7 + $0xd20] sm:$0xf]  ;;  %10713 = vmatpush.bf16.msra.mxu0 %v14814_v27  ;;  %10649 = vmatpush.bf16.msra.mxu3 %v16282_v35  ;;  %v15899_v38 = vld [vmem:[#allocation7 + $0xae0] sm:$0xf0]  ;;  %v10396_v8 = vpop.f32.mrf.mxu3  ;;  %v14622_v27 = vor.u32 %v19595_v21, %v14619_v48 }
 0x4c8   :  { %v20003_v28 = vld [vmem:[#allocation7 + $0xd5c] sm:$0xf0]  ;;  %v14555_v35 = vld [vmem:[#allocation7 + $0x60] sm:$0xf0]  ;;  %v4629_v8 = vperm.slane %v21362_v30, 7 }
 0x4c9   :  { %v17625_v39 = vld [vmem:[#allocation7 + $0x1820] sm:$0xf]  ;;  %10726 = vmatpush.bf16.msra.mxu1 %v15326_v5  ;;  %10690 = vmatpush.bf16.msrb.mxu2 %v17690_v9  ;;  %v16218_v47 = vor.u32 %v20003_v28, %v16217_v25  ;;  %v19579_v5 = vld [vmem:[#allocation7 + $0x24] sm:$0xf]  ;;  %v15902_v25 = vor.u32 %v19915_v6, %v15899_v38 }
 0x4ca   :  { %v20355_v54 = vld [vmem:[#allocation7 + $0x185c] sm:$0xf0]  ;;  %v19707_v9 = vld [vmem:[#allocation7 + $0x424] sm:$0xf]  ;;  %v14558_v45 = vor.u32 %v19579_v5, %v14555_v35 }
 0x4cb   :  { %v17626_v56 = vor.u32 %v20355_v54, %v17625_v39  ;;  %v16153_v53 = vld [vmem:[#allocation7 + $0xca0] sm:$0xf]  ;;  %10714 = vmatpush.bf16.msra.mxu0 %v14750_v41  ;;  %10650 = vmatpush.bf16.msra.mxu3 %v16218_v47  ;;  %v20203_v28 = vld [vmem:[#allocation7 + $0x13a4] sm:$0xf]  ;;  %v15070_v47 = vor.u32 %v19707_v9, %v15067_v19 }
 0x4cc   :  { %v19987_v44 = vld [vmem:[#allocation7 + $0xcdc] sm:$0xf0]  ;;  %v17051_v39 = vld [vmem:[#allocation7 + $0x13e0] sm:$0xf0] }
 0x4cd   :  { %10727 = vmatpush.bf16.msra.mxu1 %v15262_v46  ;;  %10691 = vmatpush.bf16.msrb.mxu2 %v17626_v56  ;;  %v16154_v33 = vor.u32 %v19987_v44, %v16153_v53  ;;  %v16089_v22 = vld [vmem:[#allocation7 + $0xc20] sm:$0xf]  ;;  %v20331_v54 = vld [vmem:[#allocation7 + $0x17a4] sm:$0xf]  ;;  %v17054_v56 = vor.u32 %v20203_v28, %v17051_v39  ;;  %v21391_v6 = vpop.f32.mrf.mxu2 }
 0x4ce   :  { %v19971_v32 = vld [vmem:[#allocation7 + $0xc5c] sm:$0xf0]  ;;  %v19899_v41 = vld [vmem:[#allocation7 + $0xa24] sm:$0xf]  ;;  %v17566_v55 = vor.u32 %v20331_v54, %v17563_v63 }
 0x4cf   :  { %v18585_v3 = vld [vmem:[#allocation7 + $0x1fa0] sm:$0xf]  ;;  %10715 = vmatpush.bf16.msra.mxu0 %v14686_v52  ;;  %10651 = vmatpush.bf16.msra.mxu3 %v16154_v33  ;;  %v16090_v42 = vor.u32 %v19971_v32, %v16089_v22  ;;  %v15835_v46 = vld [vmem:[#allocation7 + $0xa60] sm:$0xf0] }
 0x4d0   :  { %v20595_v4 = vld [vmem:[#allocation7 + $0x1fdc] sm:$0xf0]  ;;  %10692 = vmatmul.bf16.vlgmr.msrb.gmra.mxu2 %v21182_v10  ;;  %v20187_v15 = vld [vmem:[#allocation7 + $0x1324] sm:$0xf]  ;;  %v15838_v53 = vor.u32 %v19899_v41, %v15835_v46 }
 0x4d1   :  { %10736 = vmatpush.bf16.msra.mxu2 %v16030_v40  ;;  %10728 = vmatpush.bf16.msra.mxu1 %v15198_v59  ;;  %v18586_v17 = vor.u32 %v20595_v4, %v18585_v3  ;;  %v18521_v60 = vld [vmem:[#allocation7 + $0x1f20] sm:$0xf]  ;;  %v16987_v40 = vld [vmem:[#allocation7 + $0x1360] sm:$0xf0]  ;;  %v10511_v63 = vpop.f32.mrf.mxu0 }
 0x4d2   :  { %v20579_v7 = vld [vmem:[#allocation7 + $0x1f5c] sm:$0xf0]  ;;  %v20315_v57 = vld [vmem:[#allocation7 + $0x1724] sm:$0xf]  ;;  %v16990_v58 = vor.u32 %v20187_v15, %v16987_v40  ;;  %v10512_v46 = vadd.f32 %v10511_v63, %v4629_v8 }
 0x4d3   :  { %10716 = vmatpush.bf16.msra.mxu0 %v14622_v27  ;;  %10652 = vmatpush.bf16.msra.mxu3 %v16090_v42  ;;  %v18522_v31 = vor.u32 %v20579_v7, %v18521_v60  ;;  %v17499_v44 = vld [vmem:[#allocation7 + $0x1760] sm:$0xf0]  ;;  %v18457_v51 = vld [vmem:[#allocation7 + $0x1ea0] sm:$0xf] }
 0x4d4   :  { %v20563_v50 = vld [vmem:[#allocation7 + $0x1edc] sm:$0xf0]  ;;  %v19883_v52 = vld [vmem:[#allocation7 + $0x9a4] sm:$0xf]  ;;  %v17502_v20 = vor.u32 %v20315_v57, %v17499_v44  ;;  %v10446_v44 = vpop.f32.mrf.mxu3 }
 0x4d5   :  { %10737 = vmatpush.bf16.msra.mxu2 %v15966_v62  ;;  %10729 = vmatpush.bf16.msra.mxu1 %v15134_v13  ;;  %v15771_v21 = vld [vmem:[#allocation7 + $0x9e0] sm:$0xf0]  ;;  %v18458_v59 = vor.u32 %v20563_v50, %v18457_v51  ;;  %v18393_v22 = vld [vmem:[#allocation7 + $0x1e20] sm:$0xf]  ;;  %v10487_v51 = vpop.f32.mrf.mxu2 }
 0x4d6   :  { %10653 = vmatmul.bf16.vlgmr.msra.gmra.mxu3 %v21142_v29  ;;  %v20171_v33 = vld [vmem:[#allocation7 + $0x12a4] sm:$0xf]  ;;  %v15774_v0 = vor.u32 %v19883_v52, %v15771_v21  ;;  %v20547_v32 = vld [vmem:[#allocation7 + $0x1e5c] sm:$0xf0]  ;;  %v19828_v51 = vld [vmem:[#allocation7 + $0x7e4] sm:$0xf0] }
 0x4d7   :  { %10697 = vmatpush.bf16.msrb.mxu3 %v18586_v17  ;;  %10717 = vmatpush.bf16.msra.mxu0 %v14558_v45  ;;  %v16923_v48 = vld [vmem:[#allocation7 + $0x12e0] sm:$0xf0]  ;;  %v18394_v5 = vor.u32 %v20547_v32, %v18393_v22  ;;  %v18329_v17 = vld [vmem:[#allocation7 + $0x1da0] sm:$0xf] }
 0x4d8   :  { %v17435_v62 = vld [vmem:[#allocation7 + $0x16e0] sm:$0xf0]  ;;  %v16926_v38 = vor.u32 %v20171_v33, %v16923_v48  ;;  %v20515_v15 = vld [vmem:[#allocation7 + $0x1d5c] sm:$0xf0] }
 0x4d9   :  { %10738 = vmatpush.bf16.msra.mxu2 %v15902_v25  ;;  %10730 = vmatpush.bf16.msra.mxu1 %v15070_v47  ;;  %v19867_v3 = vld [vmem:[#allocation7 + $0x924] sm:$0xf]  ;;  %v17438_v27 = vor.u32 %v20299_v12, %v17435_v62  ;;  %v20531_v25 = vld [vmem:[#allocation7 + $0x1ddc] sm:$0xf0]  ;;  %v10524_v47 = vpop.f32.mrf.mxu1 }
 0x4da   :  { %10718 = vmatmul.bf16.vlgmr.msra.gmra.mxu0 %v21135_v24  ;;  %v15707_v4 = vld [vmem:[#allocation7 + $0x960] sm:$0xf0]  ;;  %v18330_v60 = vor.u32 %v20531_v25, %v18329_v17 }
 0x4db   :  { %10762 = vmatpush.bf16.msrb.mxu0 %v17054_v56  ;;  %10698 = vmatpush.bf16.msrb.mxu3 %v18522_v31  ;;  %v20155_v13 = vld [vmem:[#allocation7 + $0x1224] sm:$0xf]  ;;  %v15710_v9 = vor.u32 %v19867_v3, %v15707_v4  ;;  %v18265_v31 = vld [vmem:[#allocation7 + $0x1d20] sm:$0xf] }
 0x4dc   :  { %10731 = vmatmul.bf16.vlgmr.msra.gmra.mxu1 %v21137_v1  ;;  %v16859_v42 = vld [vmem:[#allocation7 + $0x1260] sm:$0xf0]  ;;  %v18201_v3 = vld [vmem:[#allocation7 + $0x1ca0] sm:$0xf] }
 0x4dd   :  { %10775 = vmatpush.bf16.msrb.mxu1 %v17566_v55  ;;  %10739 = vmatpush.bf16.msra.mxu2 %v15838_v53  ;;  %v20283_v35 = vld [vmem:[#allocation7 + $0x1624] sm:$0xf]  ;;  %v16862_v54 = vor.u32 %v20155_v13, %v16859_v42  ;;  %v21394_v53 = vadd.f32 %v10524_v47, %v10512_v46  ;;  %v20499_v4 = vld [vmem:[#allocation7 + $0x1cdc] sm:$0xf0] }
 0x4de   :  { %v17371_v19 = vld [vmem:[#allocation7 + $0x1660] sm:$0xf0] }
 0x4df   :  { %10763 = vmatpush.bf16.msrb.mxu0 %v16990_v58  ;;  %10699 = vmatpush.bf16.msrb.mxu3 %v18458_v59  ;;  %v19851_v28 = vld [vmem:[#allocation7 + $0x8a4] sm:$0xf]  ;;  %v17374_v30 = vor.u32 %v20283_v35, %v17371_v19  ;;  %v10447_v58 = vadd.f32 %v10446_v44, %v21378_v43  ;;  %v18266_v59 = vor.u32 %v20515_v15, %v18265_v31  ;;  %v10513_v43 = vpop.f32.mrf.mxu0  ;;  %v15009_v15 = vld [vmem:[#allocation7 + $0x3a8] sm:$0xf] }
 0x4e0   :  { %v15643_v39 = vld [vmem:[#allocation7 + $0x8e0] sm:$0xf0]  ;;  %v18202_v19 = vor.u32 %v20499_v4, %v18201_v3  ;;  %v15521_v44 = vld [vmem:[#allocation7 + $0x7a8] sm:$0xf] }
 0x4e1   :  { %10776 = vmatpush.bf16.msrb.mxu1 %v17502_v20  ;;  %10740 = vmatpush.bf16.msra.mxu2 %v15774_v0  ;;  %v20139_v7 = vld [vmem:[#allocation7 + $0x11a4] sm:$0xf]  ;;  %v15646_v56 = vor.u32 %v19851_v28, %v15643_v39  ;;  %v10460_v22 = vadd.f32 %v21380_v34, %v10447_v58  ;;  %v18137_v28 = vld [vmem:[#allocation7 + $0x1c20] sm:$0xf]  ;;  %v19812_v3 = vld [vmem:[#allocation7 + $0x764] sm:$0xf0] }
 0x4e2   :  { %v16795_v45 = vld [vmem:[#allocation7 + $0x11e0] sm:$0xf0]  ;;  %v20483_v39 = vld [vmem:[#allocation7 + $0x1c5c] sm:$0xf0] }
 0x4e3   :  { %10764 = vmatpush.bf16.msrb.mxu0 %v16926_v38  ;;  %10700 = vmatpush.bf16.msrb.mxu3 %v18394_v5  ;;  %v20267_v41 = vld [vmem:[#allocation7 + $0x15a4] sm:$0xf]  ;;  %v16798_v50 = vor.u32 %v20139_v7, %v16795_v45  ;;  %v10473_v35 = vadd.f32 %v21382_v14, %v10460_v22 }
 0x4e4   :  { %v17307_v55 = vld [vmem:[#allocation7 + $0x15e0] sm:$0xf0] }
 0x4e5   :  { %10777 = vmatpush.bf16.msrb.mxu1 %v17438_v27  ;;  %10741 = vmatpush.bf16.msra.mxu2 %v15710_v9  ;;  %v19835_v40 = vld [vmem:[#allocation7 + $0x824] sm:$0xf]  ;;  %v17310_v20 = vor.u32 %v20267_v41, %v17307_v55  ;;  %v10526_v9 = vpop.f32.mrf.mxu1  ;;  %v21400_v63 = vadd.f32 %v21391_v6, %v10473_v35  ;;  %v18138_v55 = vor.u32 %v20483_v39, %v18137_v28 }
 0x4e6   :  { %v15579_v57 = vld [vmem:[#allocation7 + $0x860] sm:$0xf0] }
 0x4e7   :  { %10765 = vmatpush.bf16.msrb.mxu0 %v16862_v54  ;;  %v20459_v52 = vld [vmem:[#allocation7 + $0x1ba4] sm:$0xf]  ;;  %10701 = vmatpush.bf16.msrb.mxu3 %v18330_v60  ;;  %v15582_v12 = vor.u32 %v19835_v40, %v15579_v57  ;;  %v19700_v40 = vld [vmem:[#allocation7 + $0x3e4] sm:$0xf0] }
 0x4e8   :  { %v18075_v21 = vld [vmem:[#allocation7 + $0x1be0] sm:$0xf0] }
 0x4e9   :  { %10778 = vmatpush.bf16.msrb.mxu1 %v17374_v30  ;;  %v20123_v33 = vld [vmem:[#allocation7 + $0x1124] sm:$0xf]  ;;  %10742 = vmatpush.bf16.msra.mxu2 %v15646_v56  ;;  %v18078_v32 = vor.u32 %v20459_v52, %v18075_v21  ;;  %v10448_v30 = vpop.f32.mrf.mxu3 }
 0x4ea   :  { %v16731_v48 = vld [vmem:[#allocation7 + $0x1160] sm:$0xf0] }
 0x4eb   :  { %v20251_v0 = vld [vmem:[#allocation7 + $0x1524] sm:$0xf]  ;;  %10766 = vmatpush.bf16.msrb.mxu0 %v16798_v50  ;;  %v16734_v38 = vor.u32 %v20123_v33, %v16731_v48  ;;  %10702 = vmatpush.bf16.msrb.mxu3 %v18266_v59  ;;  %v15010_v33 = vor.u32 %v19700_v40, %v15009_v15  ;;  %v15522_v48 = vor.u32 %v19828_v51, %v15521_v44  ;;  %v14753_v44 = vld [vmem:[#allocation7 + $0x1a8] sm:$0xf] }
 0x4ec   :  { %v17243_v62 = vld [vmem:[#allocation7 + $0x1560] sm:$0xf0]  ;;  %v19636_v51 = vld [vmem:[#allocation7 + $0x1e4] sm:$0xf0] }
 0x4ed   :  { %v20443_v8 = vld [vmem:[#allocation7 + $0x1b24] sm:$0xf]  ;;  %10779 = vmatpush.bf16.msrb.mxu1 %v17310_v20  ;;  %v17246_v5 = vor.u32 %v20251_v0, %v17243_v62  ;;  %10743 = vmatpush.bf16.msra.mxu2 %v15582_v12  ;;  %v14945_v12 = vld [vmem:[#allocation7 + $0x328] sm:$0xf] }
 0x4ee   :  { %v18011_v27 = vld [vmem:[#allocation7 + $0x1b60] sm:$0xf0]  ;;  %v19684_v0 = vld [vmem:[#allocation7 + $0x364] sm:$0xf0] }
 0x4ef   :  { %v20107_v13 = vld [vmem:[#allocation7 + $0x10a4] sm:$0xf]  ;;  %v18014_v25 = vor.u32 %v20443_v8, %v18011_v27  ;;  %10767 = vmatpush.bf16.msrb.mxu0 %v16734_v38  ;;  %10703 = vmatpush.bf16.msrb.mxu3 %v18202_v19  ;;  %v14946_v43 = vor.u32 %v19684_v0, %v14945_v12  ;;  %v15393_v19 = vld [vmem:[#allocation7 + $0x6a8] sm:$0xf] }
 0x4f0   :  { %v16667_v42 = vld [vmem:[#allocation7 + $0x10e0] sm:$0xf0]  ;;  %10744 = vmatmul.bf16.vlgmr.msra.gmra.mxu2 %v21139_v26  ;;  %v16033_v0 = vld [vmem:[#allocation7 + $0xba8] sm:$0xf] }
 0x4f1   :  { %v20235_v17 = vld [vmem:[#allocation7 + $0x14a4] sm:$0xf]  ;;  %10788 = vmatpush.bf16.msrb.mxu2 %v18078_v32  ;;  %v16670_v60 = vor.u32 %v20107_v13, %v16667_v42  ;;  %10780 = vmatpush.bf16.msrb.mxu1 %v17246_v5  ;;  %v15457_v32 = vld [vmem:[#allocation7 + $0x728] sm:$0xf] }
 0x4f2   :  { %v17179_v34 = vld [vmem:[#allocation7 + $0x14e0] sm:$0xf0]  ;;  %v15458_v5 = vor.u32 %v19812_v3, %v15457_v32  ;;  %v14881_v13 = vld [vmem:[#allocation7 + $0x2a8] sm:$0xf]  ;;  %v14754_v3 = vor.u32 %v19636_v51, %v14753_v44 }
 0x4f3   :  { %v20075_v54 = vld [vmem:[#allocation7 + $0xfa4] sm:$0xf]  ;;  %v17182_v14 = vor.u32 %v20235_v17, %v17179_v34  ;;  %10768 = vmatpush.bf16.msrb.mxu0 %v16670_v60  ;;  %10704 = vmatpush.bf16.msrb.mxu3 %v18138_v55  ;;  %v19668_v42 = vld [vmem:[#allocation7 + $0x2e4] sm:$0xf0] }
 0x4f4   :  { %v16539_v7 = vld [vmem:[#allocation7 + $0xfe0] sm:$0xf0]  ;;  %v19796_v17 = vld [vmem:[#allocation7 + $0x6e4] sm:$0xf0]  ;;  %v14882_v30 = vor.u32 %v19668_v42, %v14881_v13 }
 0x4f5   :  { %v20427_v45 = vld [vmem:[#allocation7 + $0x1aa4] sm:$0xf]  ;;  %10789 = vmatpush.bf16.msrb.mxu2 %v18014_v25  ;;  %v16542_v6 = vor.u32 %v20075_v54, %v16539_v7  ;;  %10781 = vmatpush.bf16.msrb.mxu1 %v17182_v14  ;;  %v10537_v54 = vpop.f32.mrf.mxu2  ;;  %v15394_v60 = vor.u32 %v19796_v17, %v15393_v19  ;;  %v14817_v7 = vld [vmem:[#allocation7 + $0x228] sm:$0xf] }
 0x4f6   :  { %v17947_v41 = vld [vmem:[#allocation7 + $0x1ae0] sm:$0xf0]  ;;  %10705 = vmatmul.bf16.vlgmr.msrb.gmra.mxu3 %v21197_v18  ;;  %v15201_v13 = vld [vmem:[#allocation7 + $0x528] sm:$0xf] }
 0x4f7   :  { %v20091_v46 = vld [vmem:[#allocation7 + $0x1024] sm:$0xf]  ;;  %v17950_v57 = vor.u32 %v20427_v45, %v17947_v41  ;;  %10749 = vmatpush.bf16.msra.mxu3 %v16542_v6  ;;  %v19652_v45 = vld [vmem:[#allocation7 + $0x264] sm:$0xf0]  ;;  %v21407_v41 = vadd.f32 %v10537_v54, %v21394_v53  ;;  %v21411_v53 = vpop.f32.mrf.mxu1 }
 0x4f8   :  { %v16603_v47 = vld [vmem:[#allocation7 + $0x1060] sm:$0xf0]  ;;  %v14818_v6 = vor.u32 %v19652_v45, %v14817_v7  ;;  %v15969_v17 = vld [vmem:[#allocation7 + $0xb28] sm:$0xf] }
 0x4f9   :  { %v20219_v56 = vld [vmem:[#allocation7 + $0x1424] sm:$0xf]  ;;  %v16606_v52 = vor.u32 %v20091_v46, %v16603_v47  ;;  %10790 = vmatpush.bf16.msrb.mxu2 %v17950_v57  ;;  %v15329_v47 = vld [vmem:[#allocation7 + $0x628] sm:$0xf] }
 0x4fa   :  { %v17115_v31 = vld [vmem:[#allocation7 + $0x1460] sm:$0xf0]  ;;  %v15137_v7 = vld [vmem:[#allocation7 + $0x4a8] sm:$0xf] }
 0x4fb   :  { %v20059_v50 = vld [vmem:[#allocation7 + $0xf24] sm:$0xf]  ;;  %v17118_v59 = vor.u32 %v20219_v56, %v17115_v31  ;;  %10769 = vmatpush.bf16.msrb.mxu0 %v16606_v52  ;;  %v19780_v56 = vld [vmem:[#allocation7 + $0x664] sm:$0xf0] }
 0x4fc   :  { %v16475_v21 = vld [vmem:[#allocation7 + $0xf60] sm:$0xf0]  ;;  %v15330_v57 = vor.u32 %v19780_v56, %v15329_v47  ;;  %v19732_v45 = vld [vmem:[#allocation7 + $0x4e4] sm:$0xf0] }
 0x4fd   :  { %v20411_v58 = vld [vmem:[#allocation7 + $0x1a24] sm:$0xf]  ;;  %v16478_v62 = vor.u32 %v20059_v50, %v16475_v21  ;;  %10782 = vmatpush.bf16.msrb.mxu1 %v17118_v59  ;;  %v21409_v50 = vpop.f32.mrf.mxu0  ;;  %v10539_v32 = vpop.f32.mrf.mxu2  ;;  %v15138_v44 = vor.u32 %v19732_v45, %v15137_v7  ;;  %v17441_v7 = vld [vmem:[#allocation7 + $0x16a8] sm:$0xf] }
 0x4fe   :  { %v17883_v20 = vld [vmem:[#allocation7 + $0x1a60] sm:$0xf0]  ;;  %10770 = vmatmul.bf16.vlgmr.msrb.gmra.mxu0 %v21157_v37  ;;  %v20308_v45 = vld [vmem:[#allocation7 + $0x16e4] sm:$0xf0] }
 0x4ff   :  { %v17886_v22 = vor.u32 %v20411_v58, %v17883_v20  ;;  %v20043_v4 = vld [vmem:[#allocation7 + $0xea4] sm:$0xf]  ;;  %10814 = vmatpush.bf16.msra.mxu0 %v15010_v33  ;;  %10750 = vmatpush.bf16.msra.mxu3 %v16478_v62  ;;  %v15265_v58 = vld [vmem:[#allocation7 + $0x5a8] sm:$0xf] }
 0x500   :  { %v16411_v38 = vld [vmem:[#allocation7 + $0xee0] sm:$0xf0]  ;;  %10783 = vmatmul.bf16.vlgmr.msrb.gmra.mxu1 %v21159_v11  ;;  %v19764_v20 = vld [vmem:[#allocation7 + $0x5e4] sm:$0xf0] }
 0x501   :  { %v20395_v8 = vld [vmem:[#allocation7 + $0x19a4] sm:$0xf]  ;;  %10827 = vmatpush.bf16.msra.mxu1 %v15522_v48  ;;  %10791 = vmatpush.bf16.msrb.mxu2 %v17886_v22  ;;  %v16414_v35 = vor.u32 %v20043_v4, %v16411_v38  ;;  %v19956_v62 = vld [vmem:[#allocation7 + $0xbe4] sm:$0xf0]  ;;  %v10498_v22 = vpop.f32.mrf.mxu3  ;;  %v15266_v4 = vor.u32 %v19764_v20, %v15265_v58 }
 0x502   :  { %v17819_v27 = vld [vmem:[#allocation7 + $0x19e0] sm:$0xf0]  ;;  %v21414_v38 = vadd.f32 %v10498_v22, %v21400_v63  ;;  %v16034_v42 = vor.u32 %v19956_v62, %v16033_v0  ;;  %v10578_v63 = vpop.f32.mrf.mxu1  ;;  %v19716_v58 = vld [vmem:[#allocation7 + $0x464] sm:$0xf0] }
 0x503   :  { %v17822_v9 = vor.u32 %v20395_v8, %v17819_v27  ;;  %v20027_v34 = vld [vmem:[#allocation7 + $0xe24] sm:$0xf]  ;;  %10815 = vmatpush.bf16.msra.mxu0 %v14946_v43  ;;  %10751 = vmatpush.bf16.msra.mxu3 %v16414_v35  ;;  %v14689_v43 = vld [vmem:[#allocation7 + $0x128] sm:$0xf] }
 0x504   :  { %v16347_v25 = vld [vmem:[#allocation7 + $0xe60] sm:$0xf0]  ;;  %v19748_v35 = vld [vmem:[#allocation7 + $0x564] sm:$0xf0] }
 0x505   :  { %v20379_v28 = vld [vmem:[#allocation7 + $0x1924] sm:$0xf]  ;;  %10828 = vmatpush.bf16.msra.mxu1 %v15458_v5  ;;  %10792 = vmatpush.bf16.msrb.mxu2 %v17822_v9  ;;  %v16350_v14 = vor.u32 %v20027_v34, %v16347_v25  ;;  %v19620_v5 = vld [vmem:[#allocation7 + $0x164] sm:$0xf0]  ;;  %v15202_v54 = vor.u32 %v19748_v35, %v15201_v13 }
 0x506   :  { %v17755_v39 = vld [vmem:[#allocation7 + $0x1960] sm:$0xf0]  ;;  %v19940_v34 = vld [vmem:[#allocation7 + $0xb64] sm:$0xf0]  ;;  %v14690_v25 = vor.u32 %v19620_v5, %v14689_v43 }
 0x507   :  { %v17758_v46 = vor.u32 %v20379_v28, %v17755_v39  ;;  %v20011_v55 = vld [vmem:[#allocation7 + $0xda4] sm:$0xf]  ;;  %10816 = vmatpush.bf16.msra.mxu0 %v14882_v30  ;;  %10752 = vmatpush.bf16.msra.mxu3 %v16350_v14  ;;  %v14625_v28 = vld [vmem:[#allocation7 + $0xa8] sm:$0xf]  ;;  %v10565_v39 = vpop.f32.mrf.mxu0  ;;  %v15970_v14 = vor.u32 %v19940_v34, %v15969_v17 }
 0x508   :  { %v16283_v31 = vld [vmem:[#allocation7 + $0xde0] sm:$0xf0]  ;;  %v20340_v0 = vld [vmem:[#allocation7 + $0x17e4] sm:$0xf0] }
 0x509   :  { %v20363_v15 = vld [vmem:[#allocation7 + $0x18a4] sm:$0xf]  ;;  %10829 = vmatpush.bf16.msra.mxu1 %v15394_v60  ;;  %10793 = vmatpush.bf16.msrb.mxu2 %v17758_v46  ;;  %v16286_v52 = vor.u32 %v20011_v55, %v16283_v31  ;;  %v19604_v60 = vld [vmem:[#allocation7 + $0xe4] sm:$0xf0] }
 0x50a   :  { %v17691_v40 = vld [vmem:[#allocation7 + $0x18e0] sm:$0xf0]  ;;  %v15905_v31 = vld [vmem:[#allocation7 + $0xaa8] sm:$0xf] }
 0x50b   :  { %v17694_v21 = vor.u32 %v20363_v15, %v17691_v40  ;;  %v19995_v59 = vld [vmem:[#allocation7 + $0xd24] sm:$0xf]  ;;  %10817 = vmatpush.bf16.msra.mxu0 %v14818_v6  ;;  %10753 = vmatpush.bf16.msra.mxu3 %v16286_v52  ;;  %v19924_v15 = vld [vmem:[#allocation7 + $0xae4] sm:$0xf0]  ;;  %v10500_v40 = vpop.f32.mrf.mxu3  ;;  %v14626_v6 = vor.u32 %v19604_v60, %v14625_v28 }
 0x50c   :  { %v16219_v33 = vld [vmem:[#allocation7 + $0xd60] sm:$0xf0]  ;;  %v19588_v52 = vld [vmem:[#allocation7 + $0x64] sm:$0xf0] }
 0x50d   :  { %v20347_v48 = vld [vmem:[#allocation7 + $0x1824] sm:$0xf]  ;;  %10830 = vmatpush.bf16.msra.mxu1 %v15330_v57  ;;  %10794 = vmatpush.bf16.msrb.mxu2 %v17694_v21  ;;  %v16222_v8 = vor.u32 %v19995_v59, %v16219_v33  ;;  %v14561_v57 = vld [vmem:[#allocation7 + $0x28] sm:$0xf]  ;;  %v15906_v59 = vor.u32 %v19924_v15, %v15905_v31 }
 0x50e   :  { %v17627_v12 = vld [vmem:[#allocation7 + $0x1860] sm:$0xf0]  ;;  %v15073_v21 = vld [vmem:[#allocation7 + $0x428] sm:$0xf]  ;;  %v14562_v32 = vor.u32 %v19588_v52, %v14561_v57  ;;  %v17442_v57 = vor.u32 %v20308_v45, %v17441_v7 }
 0x50f   :  { %v17630_v27 = vor.u32 %v20347_v48, %v17627_v12  ;;  %v19979_v9 = vld [vmem:[#allocation7 + $0xca4] sm:$0xf]  ;;  %10818 = vmatpush.bf16.msra.mxu0 %v14754_v3  ;;  %10754 = vmatpush.bf16.msra.mxu3 %v16222_v8  ;;  %v17057_v33 = vld [vmem:[#allocation7 + $0x13a8] sm:$0xf]  ;;  %v15074_v8 = vor.u32 %v19716_v58, %v15073_v21 }
 0x510   :  { %v16155_v19 = vld [vmem:[#allocation7 + $0xce0] sm:$0xf0]  ;;  %v20212_v48 = vld [vmem:[#allocation7 + $0x13e4] sm:$0xf0]  ;;  %v21422_v15 = vpop.f32.mrf.mxu2 }
 0x511   :  { %10831 = vmatpush.bf16.msra.mxu1 %v15266_v4  ;;  %10795 = vmatpush.bf16.msrb.mxu2 %v17630_v27  ;;  %v16158_v30 = vor.u32 %v19979_v9, %v16155_v19  ;;  %v19963_v46 = vld [vmem:[#allocation7 + $0xc24] sm:$0xf]  ;;  %v17569_v12 = vld [vmem:[#allocation7 + $0x17a8] sm:$0xf]  ;;  %v17058_v27 = vor.u32 %v20212_v48, %v17057_v33 }
 0x512   :  { %v16091_v47 = vld [vmem:[#allocation7 + $0xc60] sm:$0xf0]  ;;  %v15841_v3 = vld [vmem:[#allocation7 + $0xa28] sm:$0xf]  ;;  %v17570_v43 = vor.u32 %v20340_v0, %v17569_v12 }
 0x513   :  { %v20587_v56 = vld [vmem:[#allocation7 + $0x1fa4] sm:$0xf]  ;;  %10819 = vmatpush.bf16.msra.mxu0 %v14690_v25  ;;  %10755 = vmatpush.bf16.msra.mxu3 %v16158_v30  ;;  %v16094_v51 = vor.u32 %v19963_v46, %v16091_v47  ;;  %v19908_v4 = vld [vmem:[#allocation7 + $0xa64] sm:$0xf0] }
 0x514   :  { %v18587_v55 = vld [vmem:[#allocation7 + $0x1fe0] sm:$0xf0]  ;;  %10796 = vmatmul.bf16.vlgmr.msrb.gmra.mxu2 %v21182_v10  ;;  %v16993_v13 = vld [vmem:[#allocation7 + $0x1328] sm:$0xf]  ;;  %v15842_v9 = vor.u32 %v19908_v4, %v15841_v3 }
 0x515   :  { %10840 = vmatpush.bf16.msra.mxu2 %v16034_v42  ;;  %10832 = vmatpush.bf16.msra.mxu1 %v15202_v54  ;;  %v18590_v20 = vor.u32 %v20587_v56, %v18587_v55  ;;  %v20571_v62 = vld [vmem:[#allocation7 + $0x1f24] sm:$0xf]  ;;  %v20196_v42 = vld [vmem:[#allocation7 + $0x1364] sm:$0xf0] }
 0x516   :  { %v18523_v22 = vld [vmem:[#allocation7 + $0x1f60] sm:$0xf0]  ;;  %v17505_v35 = vld [vmem:[#allocation7 + $0x1728] sm:$0xf]  ;;  %v16994_v39 = vor.u32 %v20196_v42, %v16993_v13 }
 0x517   :  { %10820 = vmatpush.bf16.msra.mxu0 %v14626_v6  ;;  %10756 = vmatpush.bf16.msra.mxu3 %v16094_v51  ;;  %v18526_v5 = vor.u32 %v20571_v62, %v18523_v22  ;;  %v20324_v19 = vld [vmem:[#allocation7 + $0x1764] sm:$0xf0]  ;;  %v20555_v17 = vld [vmem:[#allocation7 + $0x1ea4] sm:$0xf]  ;;  %v10615_v62 = vpop.f32.mrf.mxu0 }
 0x518   :  { %v18459_v34 = vld [vmem:[#allocation7 + $0x1ee0] sm:$0xf0]  ;;  %v15777_v25 = vld [vmem:[#allocation7 + $0x9a8] sm:$0xf]  ;;  %v17506_v54 = vor.u32 %v20324_v19, %v17505_v35 }
 0x519   :  { %10841 = vmatpush.bf16.msra.mxu2 %v15970_v14  ;;  %10833 = vmatpush.bf16.msra.mxu1 %v15138_v44  ;;  %v19892_v28 = vld [vmem:[#allocation7 + $0x9e4] sm:$0xf0]  ;;  %v18462_v30 = vor.u32 %v20555_v17, %v18459_v34  ;;  %v20539_v46 = vld [vmem:[#allocation7 + $0x1e24] sm:$0xf]  ;;  %v10550_v34 = vpop.f32.mrf.mxu3 }
 0x51a   :  { %10757 = vmatmul.bf16.vlgmr.msra.gmra.mxu3 %v21142_v29  ;;  %v16929_v63 = vld [vmem:[#allocation7 + $0x12a8] sm:$0xf]  ;;  %v15778_v14 = vor.u32 %v19892_v28, %v15777_v25  ;;  %v18395_v47 = vld [vmem:[#allocation7 + $0x1e60] sm:$0xf0]  ;;  %v10591_v25 = vpop.f32.mrf.mxu2 }
 0x51b   :  { %10801 = vmatpush.bf16.msrb.mxu3 %v18590_v20  ;;  %10821 = vmatpush.bf16.msra.mxu0 %v14562_v32  ;;  %v20180_v60 = vld [vmem:[#allocation7 + $0x12e4] sm:$0xf0]  ;;  %v18398_v44 = vor.u32 %v20539_v46, %v18395_v47  ;;  %v18331_v33 = vld [vmem:[#allocation7 + $0x1de0] sm:$0xf0] }
 0x51c   :  { %v21419_v56 = vld [vmem:[#allocation8 + $0x8] sm:$0xff]  ;;  %v16930_v40 = vor.u32 %v20180_v60, %v16929_v63  ;;  %v20507_v42 = vld [vmem:[#allocation7 + $0x1d24] sm:$0xf] }
 0x51d   :  { %10842 = vmatpush.bf16.msra.mxu2 %v15906_v59  ;;  %10834 = vmatpush.bf16.msra.mxu1 %v15074_v8  ;;  %v15713_v55 = vld [vmem:[#allocation7 + $0x928] sm:$0xf]  ;;  %v4630_v51 = vperm.slane %v21419_v56, 0  ;;  %v20523_v59 = vld [vmem:[#allocation7 + $0x1da4] sm:$0xf] }
 0x51e   :  { %10822 = vmatmul.bf16.vlgmr.msra.gmra.mxu0 %v21135_v24  ;;  %v19876_v31 = vld [vmem:[#allocation7 + $0x964] sm:$0xf0]  ;;  %v18334_v32 = vor.u32 %v20523_v59, %v18331_v33  ;;  %v18267_v35 = vld [vmem:[#allocation7 + $0x1d60] sm:$0xf0] }
 0x51f   :  { %10866 = vmatpush.bf16.msrb.mxu0 %v17058_v27  ;;  %10802 = vmatpush.bf16.msrb.mxu3 %v18526_v5  ;;  %v16865_v6 = vld [vmem:[#allocation7 + $0x1228] sm:$0xf]  ;;  %v15714_v58 = vor.u32 %v19876_v31, %v15713_v55  ;;  %v10616_v27 = vadd.f32 %v10615_v62, %v4630_v51  ;;  %v18270_v60 = vor.u32 %v20507_v42, %v18267_v35  ;;  %v18139_v62 = vld [vmem:[#allocation7 + $0x1c60] sm:$0xf0] }
 0x520   :  { %10835 = vmatmul.bf16.vlgmr.msra.gmra.mxu1 %v21137_v1  ;;  %v20164_v52 = vld [vmem:[#allocation7 + $0x1264] sm:$0xf0] }
 0x521   :  { %10879 = vmatpush.bf16.msrb.mxu1 %v17570_v43  ;;  %10843 = vmatpush.bf16.msra.mxu2 %v15842_v9  ;;  %v17377_v21 = vld [vmem:[#allocation7 + $0x1628] sm:$0xf]  ;;  %v16866_v0 = vor.u32 %v20164_v52, %v16865_v6  ;;  %v10628_v43 = vpop.f32.mrf.mxu1  ;;  %v18203_v6 = vld [vmem:[#allocation7 + $0x1ce0] sm:$0xf0] }
 0x522   :  { %v20292_v20 = vld [vmem:[#allocation7 + $0x1664] sm:$0xf0]  ;;  %v21425_v17 = vadd.f32 %v10628_v43, %v10616_v27 }
 0x523   :  { %10867 = vmatpush.bf16.msrb.mxu0 %v16994_v39  ;;  %10803 = vmatpush.bf16.msrb.mxu3 %v18462_v30  ;;  %v15649_v48 = vld [vmem:[#allocation7 + $0x8a8] sm:$0xf]  ;;  %v17378_v22 = vor.u32 %v20292_v20, %v17377_v21 }
 0x524   :  { %v19860_v12 = vld [vmem:[#allocation7 + $0x8e4] sm:$0xf0] }
 0x525   :  { %10880 = vmatpush.bf16.msrb.mxu1 %v17506_v54  ;;  %10844 = vmatpush.bf16.msra.mxu2 %v15778_v14  ;;  %v16801_v3 = vld [vmem:[#allocation7 + $0x11a8] sm:$0xf]  ;;  %v15650_v5 = vor.u32 %v19860_v12, %v15649_v48  ;;  %v10551_v54 = vadd.f32 %v10550_v34, %v21407_v41  ;;  %v10617_v41 = vpop.f32.mrf.mxu0  ;;  %v15011_v34 = vld [vmem:[#allocation7 + $0x3e8] sm:$0xf0] }
 0x526   :  { %v20148_v4 = vld [vmem:[#allocation7 + $0x11e4] sm:$0xf0] }
 0x527   :  { %10868 = vmatpush.bf16.msrb.mxu0 %v16930_v40  ;;  %10804 = vmatpush.bf16.msrb.mxu3 %v18398_v44  ;;  %v17313_v8 = vld [vmem:[#allocation7 + $0x15a8] sm:$0xf]  ;;  %v16802_v28 = vor.u32 %v20148_v4, %v16801_v3  ;;  %v10564_v55 = vadd.f32 %v21409_v50, %v10551_v54  ;;  %v20491_v40 = vld [vmem:[#allocation7 + $0x1ca4] sm:$0xf]  ;;  %v10552_v3 = vpop.f32.mrf.mxu3 }
 0x528   :  { %v20276_v13 = vld [vmem:[#allocation7 + $0x15e4] sm:$0xf0]  ;;  %v18206_v33 = vor.u32 %v20491_v40, %v18203_v6  ;;  %v19804_v6 = vld [vmem:[#allocation7 + $0x72c] sm:$0xf] }
 0x529   :  { %10881 = vmatpush.bf16.msrb.mxu1 %v17442_v57  ;;  %10845 = vmatpush.bf16.msra.mxu2 %v15714_v58  ;;  %v15585_v9 = vld [vmem:[#allocation7 + $0x828] sm:$0xf]  ;;  %v17314_v30 = vor.u32 %v20276_v13, %v17313_v8  ;;  %v10577_v20 = vadd.f32 %v21411_v53, %v10564_v55  ;;  %v10630_v59 = vpop.f32.mrf.mxu1  ;;  %v14947_v55 = vld [vmem:[#allocation7 + $0x368] sm:$0xf0] }
 0x52a   :  { %v19844_v19 = vld [vmem:[#allocation7 + $0x864] sm:$0xf0]  ;;  %v14883_v59 = vld [vmem:[#allocation7 + $0x2e8] sm:$0xf0] }
 0x52b   :  { %10869 = vmatpush.bf16.msrb.mxu0 %v16866_v0  ;;  %v18081_v39 = vld [vmem:[#allocation7 + $0x1ba8] sm:$0xf]  ;;  %10805 = vmatpush.bf16.msrb.mxu3 %v18334_v32  ;;  %v15586_v14 = vor.u32 %v19844_v19, %v15585_v9  ;;  %v20475_v0 = vld [vmem:[#allocation7 + $0x1c24] sm:$0xf]  ;;  %v21431_v32 = vadd.f32 %v21422_v15, %v10577_v20  ;;  %v19692_v19 = vld [vmem:[#allocation7 + $0x3ac] sm:$0xf] }
 0x52c   :  { %v20468_v63 = vld [vmem:[#allocation7 + $0x1be4] sm:$0xf0]  ;;  %v18142_v35 = vor.u32 %v20475_v0, %v18139_v62  ;;  %v19660_v20 = vld [vmem:[#allocation7 + $0x2ac] sm:$0xf] }
 0x52d   :  { %10882 = vmatpush.bf16.msrb.mxu1 %v17378_v22  ;;  %v16737_v7 = vld [vmem:[#allocation7 + $0x1128] sm:$0xf]  ;;  %10846 = vmatpush.bf16.msra.mxu2 %v15650_v5  ;;  %v18082_v31 = vor.u32 %v20468_v63, %v18081_v39  ;;  %v15523_v39 = vld [vmem:[#allocation7 + $0x7e8] sm:$0xf0] }
 0x52e   :  { %v20132_v45 = vld [vmem:[#allocation7 + $0x1164] sm:$0xf0] }
 0x52f   :  { %v17249_v46 = vld [vmem:[#allocation7 + $0x1528] sm:$0xf]  ;;  %10870 = vmatpush.bf16.msrb.mxu0 %v16802_v28  ;;  %v16738_v57 = vor.u32 %v20132_v45, %v16737_v7  ;;  %10806 = vmatpush.bf16.msrb.mxu3 %v18270_v60  ;;  %v19820_v28 = vld [vmem:[#allocation7 + $0x7ac] sm:$0xf] }
 0x530   :  { %v20260_v47 = vld [vmem:[#allocation7 + $0x1564] sm:$0xf0] }
 0x531   :  { %v18017_v44 = vld [vmem:[#allocation7 + $0x1b28] sm:$0xf]  ;;  %10883 = vmatpush.bf16.msrb.mxu1 %v17314_v30  ;;  %v17250_v52 = vor.u32 %v20260_v47, %v17249_v46  ;;  %10847 = vmatpush.bf16.msra.mxu2 %v15586_v14  ;;  %v15014_v14 = vor.u32 %v19692_v19, %v15011_v34  ;;  %v15526_v46 = vor.u32 %v19820_v28, %v15523_v39  ;;  %v19676_v47 = vld [vmem:[#allocation7 + $0x32c] sm:$0xf] }
 0x532   :  { %v20452_v51 = vld [vmem:[#allocation7 + $0x1b64] sm:$0xf0] }
 0x533   :  { %v16673_v21 = vld [vmem:[#allocation7 + $0x10a8] sm:$0xf]  ;;  %v18018_v12 = vor.u32 %v20452_v51, %v18017_v44  ;;  %10871 = vmatpush.bf16.msrb.mxu0 %v16738_v57  ;;  %10807 = vmatpush.bf16.msrb.mxu3 %v18206_v33  ;;  %v15459_v57 = vld [vmem:[#allocation7 + $0x768] sm:$0xf0] }
 0x534   :  { %v20116_v58 = vld [vmem:[#allocation7 + $0x10e4] sm:$0xf0]  ;;  %10848 = vmatmul.bf16.vlgmr.msra.gmra.mxu2 %v21139_v26 }
 0x535   :  { %v17185_v48 = vld [vmem:[#allocation7 + $0x14a8] sm:$0xf]  ;;  %10892 = vmatpush.bf16.msrb.mxu2 %v18082_v31  ;;  %v16674_v4 = vor.u32 %v20116_v58, %v16673_v21  ;;  %10884 = vmatpush.bf16.msrb.mxu1 %v17250_v52  ;;  %v14950_v21 = vor.u32 %v19676_v47, %v14947_v55  ;;  %v15462_v58 = vor.u32 %v19804_v6, %v15459_v57  ;;  %v16035_v6 = vld [vmem:[#allocation7 + $0xbe8] sm:$0xf0] }
 0x536   :  { %v20244_v50 = vld [vmem:[#allocation7 + $0x14e4] sm:$0xf0]  ;;  %v10602_v57 = vpop.f32.mrf.mxu3 }
 0x537   :  { %v16545_v22 = vld [vmem:[#allocation7 + $0xfa8] sm:$0xf]  ;;  %v17186_v53 = vor.u32 %v20244_v50, %v17185_v48  ;;  %10872 = vmatpush.bf16.msrb.mxu0 %v16674_v4  ;;  %10808 = vmatpush.bf16.msrb.mxu3 %v18142_v35  ;;  %v19788_v50 = vld [vmem:[#allocation7 + $0x6ac] sm:$0xf]  ;;  %v10641_v4 = vpop.f32.mrf.mxu2 }
 0x538   :  { %v20084_v8 = vld [vmem:[#allocation7 + $0xfe4] sm:$0xf0]  ;;  %v19772_v35 = vld [vmem:[#allocation7 + $0x62c] sm:$0xf] }
 0x539   :  { %v17953_v27 = vld [vmem:[#allocation7 + $0x1aa8] sm:$0xf]  ;;  %10893 = vmatpush.bf16.msrb.mxu2 %v18018_v12  ;;  %v16546_v15 = vor.u32 %v20084_v8, %v16545_v22  ;;  %10885 = vmatpush.bf16.msrb.mxu1 %v17186_v53  ;;  %v15395_v12 = vld [vmem:[#allocation7 + $0x6e8] sm:$0xf0]  ;;  %v14886_v8 = vor.u32 %v19660_v20, %v14883_v59 }
 0x53a   :  { %v20436_v43 = vld [vmem:[#allocation7 + $0x1ae4] sm:$0xf0]  ;;  %10809 = vmatmul.bf16.vlgmr.msrb.gmra.mxu3 %v21197_v18  ;;  %v14819_v53 = vld [vmem:[#allocation7 + $0x268] sm:$0xf0] }
 0x53b   :  { %v16609_v5 = vld [vmem:[#allocation7 + $0x1028] sm:$0xf]  ;;  %v17954_v25 = vor.u32 %v20436_v43, %v17953_v27  ;;  %10853 = vmatpush.bf16.msra.mxu3 %v16546_v15  ;;  %v15398_v27 = vor.u32 %v19788_v50, %v15395_v12  ;;  %v19644_v43 = vld [vmem:[#allocation7 + $0x22c] sm:$0xf] }
 0x53c   :  { %v20100_v13 = vld [vmem:[#allocation7 + $0x1064] sm:$0xf0]  ;;  %v14822_v28 = vor.u32 %v19644_v43, %v14819_v53  ;;  %v19612_v20 = vld [vmem:[#allocation7 + $0x12c] sm:$0xf] }
 0x53d   :  { %v17121_v42 = vld [vmem:[#allocation7 + $0x1428] sm:$0xf]  ;;  %v16610_v54 = vor.u32 %v20100_v13, %v16609_v5  ;;  %10894 = vmatpush.bf16.msrb.mxu2 %v17954_v25  ;;  %v21438_v5 = vadd.f32 %v10641_v4, %v21425_v17  ;;  %v21442_v17 = vpop.f32.mrf.mxu1  ;;  %v14691_v59 = vld [vmem:[#allocation7 + $0x168] sm:$0xf0] }
 0x53e   :  { %v20228_v9 = vld [vmem:[#allocation7 + $0x1464] sm:$0xf0]  ;;  %v15203_v50 = vld [vmem:[#allocation7 + $0x568] sm:$0xf0] }
 0x53f   :  { %v16481_v63 = vld [vmem:[#allocation7 + $0xf28] sm:$0xf]  ;;  %v17122_v45 = vor.u32 %v20228_v9, %v17121_v42  ;;  %10873 = vmatpush.bf16.msrb.mxu0 %v16610_v54  ;;  %v15331_v9 = vld [vmem:[#allocation7 + $0x668] sm:$0xf0] }
 0x540   :  { %v20068_v30 = vld [vmem:[#allocation7 + $0xf64] sm:$0xf0]  ;;  %v15334_v39 = vor.u32 %v19772_v35, %v15331_v9  ;;  %v14755_v54 = vld [vmem:[#allocation7 + $0x1e8] sm:$0xf0] }
 0x541   :  { %v17889_v60 = vld [vmem:[#allocation7 + $0x1a28] sm:$0xf]  ;;  %v16482_v31 = vor.u32 %v20068_v30, %v16481_v63  ;;  %10886 = vmatpush.bf16.msrb.mxu1 %v17122_v45  ;;  %v19628_v63 = vld [vmem:[#allocation7 + $0x1ac] sm:$0xf]  ;;  %v21440_v30 = vpop.f32.mrf.mxu0 }
 0x542   :  { %v20420_v7 = vld [vmem:[#allocation7 + $0x1a64] sm:$0xf0]  ;;  %10874 = vmatmul.bf16.vlgmr.msrb.gmra.mxu0 %v21157_v37  ;;  %v19756_v45 = vld [vmem:[#allocation7 + $0x5ac] sm:$0xf] }
 0x543   :  { %v17890_v40 = vor.u32 %v20420_v7, %v17889_v60  ;;  %v16417_v44 = vld [vmem:[#allocation7 + $0xea8] sm:$0xf]  ;;  %10918 = vmatpush.bf16.msra.mxu0 %v15014_v14  ;;  %10854 = vmatpush.bf16.msra.mxu3 %v16482_v31  ;;  %v15267_v14 = vld [vmem:[#allocation7 + $0x5e8] sm:$0xf0] }
 0x544   :  { %v20052_v51 = vld [vmem:[#allocation7 + $0xee4] sm:$0xf0]  ;;  %10887 = vmatmul.bf16.vlgmr.msrb.gmra.mxu1 %v21159_v11  ;;  %v19596_v4 = vld [vmem:[#allocation7 + $0xac] sm:$0xf] }
 0x545   :  { %v17825_v41 = vld [vmem:[#allocation7 + $0x19a8] sm:$0xf]  ;;  %10931 = vmatpush.bf16.msra.mxu1 %v15526_v46  ;;  %10895 = vmatpush.bf16.msrb.mxu2 %v17890_v40  ;;  %v16418_v33 = vor.u32 %v20052_v51, %v16417_v44  ;;  %v19948_v40 = vld [vmem:[#allocation7 + $0xbac] sm:$0xf]  ;;  %v10643_v44 = vpop.f32.mrf.mxu2  ;;  %v14758_v51 = vor.u32 %v19628_v63, %v14755_v54 }
 0x546   :  { %v20404_v52 = vld [vmem:[#allocation7 + $0x19e4] sm:$0xf0]  ;;  %v14627_v53 = vld [vmem:[#allocation7 + $0xe8] sm:$0xf0] }
 0x547   :  { %v17826_v48 = vor.u32 %v20404_v52, %v17825_v41  ;;  %v16353_v0 = vld [vmem:[#allocation7 + $0xe28] sm:$0xf]  ;;  %10919 = vmatpush.bf16.msra.mxu0 %v14950_v21  ;;  %10855 = vmatpush.bf16.msra.mxu3 %v16418_v33  ;;  %v15270_v41 = vor.u32 %v19756_v45, %v15267_v14  ;;  %v21445_v52 = vadd.f32 %v10602_v57, %v21431_v32  ;;  %v19740_v33 = vld [vmem:[#allocation7 + $0x52c] sm:$0xf]  ;;  %v10682_v32 = vpop.f32.mrf.mxu1 }
 0x548   :  { %v20036_v62 = vld [vmem:[#allocation7 + $0xe64] sm:$0xf0]  ;;  %v14630_v63 = vor.u32 %v19596_v4, %v14627_v53  ;;  %v19580_v54 = vld [vmem:[#allocation7 + $0x2c] sm:$0xf] }
 0x549   :  { %v17761_v22 = vld [vmem:[#allocation7 + $0x1928] sm:$0xf]  ;;  %10932 = vmatpush.bf16.msra.mxu1 %v15462_v58  ;;  %10896 = vmatpush.bf16.msrb.mxu2 %v17826_v48  ;;  %v16354_v13 = vor.u32 %v20036_v62, %v16353_v0  ;;  %v16038_v48 = vor.u32 %v19948_v40, %v16035_v6  ;;  %v19932_v62 = vld [vmem:[#allocation7 + $0xb2c] sm:$0xf] }
 0x54a   :  { %v20388_v3 = vld [vmem:[#allocation7 + $0x1964] sm:$0xf0]  ;;  %v14563_v45 = vld [vmem:[#allocation7 + $0x68] sm:$0xf0] }
 0x54b   :  { %v17762_v42 = vor.u32 %v20388_v3, %v17761_v22  ;;  %v16289_v19 = vld [vmem:[#allocation7 + $0xda8] sm:$0xf]  ;;  %10920 = vmatpush.bf16.msra.mxu0 %v14886_v8  ;;  %10856 = vmatpush.bf16.msra.mxu3 %v16354_v13  ;;  %v15971_v22 = vld [vmem:[#allocation7 + $0xb68] sm:$0xf0]  ;;  %v14694_v3 = vor.u32 %v19612_v20, %v14691_v59  ;;  %v10669_v8 = vpop.f32.mrf.mxu0 }
 0x54c   :  { %v20020_v34 = vld [vmem:[#allocation7 + $0xde4] sm:$0xf0]  ;;  %v19724_v13 = vld [vmem:[#allocation7 + $0x4ac] sm:$0xf]  ;;  %v15974_v35 = vor.u32 %v19932_v62, %v15971_v22 }
 0x54d   :  { %v17697_v15 = vld [vmem:[#allocation7 + $0x18a8] sm:$0xf]  ;;  %10933 = vmatpush.bf16.msra.mxu1 %v15398_v27  ;;  %10897 = vmatpush.bf16.msrb.mxu2 %v17762_v42  ;;  %v16290_v60 = vor.u32 %v20020_v34, %v16289_v19  ;;  %v15206_v27 = vor.u32 %v19740_v33, %v15203_v50  ;;  %v15139_v42 = vld [vmem:[#allocation7 + $0x4e8] sm:$0xf0] }
 0x54e   :  { %v20372_v25 = vld [vmem:[#allocation7 + $0x18e4] sm:$0xf0]  ;;  %v19708_v14 = vld [vmem:[#allocation7 + $0x42c] sm:$0xf] }
 0x54f   :  { %v17698_v7 = vor.u32 %v20372_v25, %v17697_v15  ;;  %v16225_v46 = vld [vmem:[#allocation7 + $0xd28] sm:$0xf]  ;;  %10921 = vmatpush.bf16.msra.mxu0 %v14822_v28  ;;  %10857 = vmatpush.bf16.msra.mxu3 %v16290_v60  ;;  %v19916_v25 = vld [vmem:[#allocation7 + $0xaac] sm:$0xf]  ;;  %v15142_v60 = vor.u32 %v19724_v13, %v15139_v42 }
 0x550   :  { %v20004_v47 = vld [vmem:[#allocation7 + $0xd64] sm:$0xf0]  ;;  %v15907_v28 = vld [vmem:[#allocation7 + $0xae8] sm:$0xf0] }
 0x551   :  { %v17633_v55 = vld [vmem:[#allocation7 + $0x1828] sm:$0xf]  ;;  %10934 = vmatpush.bf16.msra.mxu1 %v15334_v39  ;;  %10898 = vmatpush.bf16.msrb.mxu2 %v17698_v7  ;;  %v16226_v21 = vor.u32 %v20004_v47, %v16225_v46  ;;  %v10604_v39 = vpop.f32.mrf.mxu3  ;;  %v15075_v46 = vld [vmem:[#allocation7 + $0x468] sm:$0xf0] }
 0x552   :  { %v20356_v31 = vld [vmem:[#allocation7 + $0x1864] sm:$0xf0]  ;;  %v17059_v40 = vld [vmem:[#allocation7 + $0x13e8] sm:$0xf0]  ;;  %v15078_v20 = vor.u32 %v19708_v14, %v15075_v46 }
 0x553   :  { %v17634_v58 = vor.u32 %v20356_v31, %v17633_v55  ;;  %v16161_v12 = vld [vmem:[#allocation7 + $0xca8] sm:$0xf]  ;;  %10922 = vmatpush.bf16.msra.mxu0 %v14758_v51  ;;  %10858 = vmatpush.bf16.msra.mxu3 %v16226_v21  ;;  %v15910_v55 = vor.u32 %v19916_v25, %v15907_v28  ;;  %v20204_v31 = vld [vmem:[#allocation7 + $0x13ac] sm:$0xf]  ;;  %v21451_v39 = vpop.f32.mrf.mxu2 }
 0x554   :  { %v19988_v0 = vld [vmem:[#allocation7 + $0xce4] sm:$0xf0]  ;;  %v20332_v6 = vld [vmem:[#allocation7 + $0x17ac] sm:$0xf]  ;;  %v17062_v59 = vor.u32 %v20204_v31, %v17059_v40 }
 0x555   :  { %10935 = vmatpush.bf16.msra.mxu1 %v15270_v41  ;;  %10899 = vmatpush.bf16.msrb.mxu2 %v17634_v58  ;;  %v16162_v43 = vor.u32 %v19988_v0, %v16161_v12  ;;  %v16097_v9 = vld [vmem:[#allocation7 + $0xc28] sm:$0xf]  ;;  %v17571_v57 = vld [vmem:[#allocation7 + $0x17e8] sm:$0xf0]  ;;  %v14566_v41 = vor.u32 %v19580_v54, %v14563_v45  ;;  %v4631_v54 = vperm.slane %v21419_v56, 1 }
 0x556   :  { %v19972_v19 = vld [vmem:[#allocation7 + $0xc64] sm:$0xf0]  ;;  %v19900_v21 = vld [vmem:[#allocation7 + $0xa2c] sm:$0xf]  ;;  %v17574_v33 = vor.u32 %v20332_v6, %v17571_v57 }
 0x557   :  { %v18593_v34 = vld [vmem:[#allocation7 + $0x1fa8] sm:$0xf]  ;;  %10923 = vmatpush.bf16.msra.mxu0 %v14694_v3  ;;  %10859 = vmatpush.bf16.msra.mxu3 %v16162_v43  ;;  %v16098_v7 = vor.u32 %v19972_v19, %v16097_v9  ;;  %v15843_v58 = vld [vmem:[#allocation7 + $0xa68] sm:$0xf0] }
 0x558   :  { %v20596_v15 = vld [vmem:[#allocation7 + $0x1fe4] sm:$0xf0]  ;;  %10900 = vmatmul.bf16.vlgmr.msrb.gmra.mxu2 %v21182_v10  ;;  %v20188_v50 = vld [vmem:[#allocation7 + $0x132c] sm:$0xf]  ;;  %v15846_v62 = vor.u32 %v19900_v21, %v15843_v58 }
 0x559   :  { %10944 = vmatpush.bf16.msra.mxu2 %v16038_v48  ;;  %10936 = vmatpush.bf16.msra.mxu1 %v15206_v27  ;;  %v18594_v47 = vor.u32 %v20596_v15, %v18593_v34  ;;  %v18529_v44 = vld [vmem:[#allocation7 + $0x1f28] sm:$0xf]  ;;  %v16995_v12 = vld [vmem:[#allocation7 + $0x1368] sm:$0xf0] }
 0x55a   :  { %v20580_v51 = vld [vmem:[#allocation7 + $0x1f64] sm:$0xf0]  ;;  %v20316_v0 = vld [vmem:[#allocation7 + $0x172c] sm:$0xf]  ;;  %v16998_v27 = vor.u32 %v20188_v50, %v16995_v12 }
 0x55b   :  { %10924 = vmatpush.bf16.msra.mxu0 %v14630_v63  ;;  %10860 = vmatpush.bf16.msra.mxu3 %v16098_v7  ;;  %v18530_v48 = vor.u32 %v20580_v51, %v18529_v44  ;;  %v17507_v22 = vld [vmem:[#allocation7 + $0x1768] sm:$0xf0]  ;;  %v18465_v3 = vld [vmem:[#allocation7 + $0x1ea8] sm:$0xf]  ;;  %v10719_v51 = vpop.f32.mrf.mxu0 }
 0x55c   :  { %v20564_v4 = vld [vmem:[#allocation7 + $0x1ee4] sm:$0xf0]  ;;  %v19884_v8 = vld [vmem:[#allocation7 + $0x9ac] sm:$0xf]  ;;  %v17510_v43 = vor.u32 %v20316_v0, %v17507_v22 }
 0x55d   :  { %10945 = vmatpush.bf16.msra.mxu2 %v15974_v35  ;;  %10937 = vmatpush.bf16.msra.mxu1 %v15142_v60  ;;  %v15779_v32 = vld [vmem:[#allocation7 + $0x9e8] sm:$0xf0]  ;;  %v18466_v53 = vor.u32 %v20564_v4, %v18465_v3  ;;  %v18401_v34 = vld [vmem:[#allocation7 + $0x1e28] sm:$0xf]  ;;  %v10654_v4 = vpop.f32.mrf.mxu3 }
 0x55e   :  { %10861 = vmatmul.bf16.vlgmr.msra.gmra.mxu3 %v21142_v29  ;;  %v20172_v13 = vld [vmem:[#allocation7 + $0x12ac] sm:$0xf]  ;;  %v15782_v9 = vor.u32 %v19884_v8, %v15779_v32  ;;  %v20548_v15 = vld [vmem:[#allocation7 + $0x1e64] sm:$0xf0]  ;;  %v10695_v8 = vpop.f32.mrf.mxu2 }
 0x55f   :  { %10905 = vmatpush.bf16.msrb.mxu3 %v18594_v47  ;;  %10925 = vmatpush.bf16.msra.mxu0 %v14566_v41  ;;  %v16931_v42 = vld [vmem:[#allocation7 + $0x12e8] sm:$0xf0]  ;;  %v18402_v7 = vor.u32 %v20548_v15, %v18401_v34  ;;  %v18337_v31 = vld [vmem:[#allocation7 + $0x1da8] sm:$0xf] }
 0x560   :  { %v20300_v35 = vld [vmem:[#allocation7 + $0x16ac] sm:$0xf]  ;;  %v16934_v63 = vor.u32 %v20172_v13, %v16931_v42  ;;  %v20532_v40 = vld [vmem:[#allocation7 + $0x1de4] sm:$0xf0] }
 0x561   :  { %10946 = vmatpush.bf16.msra.mxu2 %v15910_v55  ;;  %10938 = vmatpush.bf16.msra.mxu1 %v15078_v20  ;;  %v17443_v19 = vld [vmem:[#allocation7 + $0x16e8] sm:$0xf0]  ;;  %v18338_v41 = vor.u32 %v20532_v40, %v18337_v31  ;;  %v18273_v12 = vld [vmem:[#allocation7 + $0x1d28] sm:$0xf] }
 0x562   :  { %10926 = vmatmul.bf16.vlgmr.msra.gmra.mxu0 %v21135_v24  ;;  %v19868_v25 = vld [vmem:[#allocation7 + $0x92c] sm:$0xf]  ;;  %v17446_v60 = vor.u32 %v20300_v35, %v17443_v19  ;;  %v20516_v0 = vld [vmem:[#allocation7 + $0x1d64] sm:$0xf0] }
 0x563   :  { %10970 = vmatpush.bf16.msrb.mxu0 %v17062_v59  ;;  %10906 = vmatpush.bf16.msrb.mxu3 %v18530_v48  ;;  %v15715_v28 = vld [vmem:[#allocation7 + $0x968] sm:$0xf0]  ;;  %v10720_v59 = vadd.f32 %v10719_v51, %v4631_v54  ;;  %v18274_v42 = vor.u32 %v20516_v0, %v18273_v12  ;;  %v20500_v54 = vld [vmem:[#allocation7 + $0x1ce4] sm:$0xf0] }
 0x564   :  { %10939 = vmatmul.bf16.vlgmr.msra.gmra.mxu1 %v21137_v1  ;;  %v20156_v45 = vld [vmem:[#allocation7 + $0x122c] sm:$0xf]  ;;  %v15718_v47 = vor.u32 %v19868_v25, %v15715_v28  ;;  %v20484_v51 = vld [vmem:[#allocation7 + $0x1c64] sm:$0xf0] }
 0x565   :  { %10983 = vmatpush.bf16.msrb.mxu1 %v17574_v33  ;;  %10947 = vmatpush.bf16.msra.mxu2 %v15846_v62  ;;  %v16867_v14 = vld [vmem:[#allocation7 + $0x1268] sm:$0xf0]  ;;  %v10732_v33 = vpop.f32.mrf.mxu1 }
 0x566   :  { %v20284_v46 = vld [vmem:[#allocation7 + $0x162c] sm:$0xf]  ;;  %v16870_v44 = vor.u32 %v20156_v45, %v16867_v14  ;;  %v21454_v3 = vadd.f32 %v10732_v33, %v10720_v59 }
 0x567   :  { %10971 = vmatpush.bf16.msrb.mxu0 %v16998_v27  ;;  %10907 = vmatpush.bf16.msrb.mxu3 %v18466_v53  ;;  %v17379_v55 = vld [vmem:[#allocation7 + $0x1668] sm:$0xf0]  ;;  %v10655_v53 = vadd.f32 %v10654_v4, %v21438_v5  ;;  %v10721_v5 = vpop.f32.mrf.mxu0  ;;  %v19701_v4 = vld [vmem:[#allocation7 + $0x3ec] sm:$0xf0] }
 0x568   :  { %v19852_v6 = vld [vmem:[#allocation7 + $0x8ac] sm:$0xf]  ;;  %v17382_v56 = vor.u32 %v20284_v46, %v17379_v55 }
 0x569   :  { %10984 = vmatpush.bf16.msrb.mxu1 %v17510_v43  ;;  %10948 = vmatpush.bf16.msra.mxu2 %v15782_v9  ;;  %v15651_v57 = vld [vmem:[#allocation7 + $0x8e8] sm:$0xf0]  ;;  %v10668_v25 = vadd.f32 %v21440_v30, %v10655_v53 }
 0x56a   :  { %v20140_v21 = vld [vmem:[#allocation7 + $0x11ac] sm:$0xf]  ;;  %v15654_v48 = vor.u32 %v19852_v6, %v15651_v57 }
 0x56b   :  { %10972 = vmatpush.bf16.msrb.mxu0 %v16934_v63  ;;  %10908 = vmatpush.bf16.msrb.mxu3 %v18402_v7  ;;  %v16803_v58 = vld [vmem:[#allocation7 + $0x11e8] sm:$0xf0]  ;;  %v18209_v63 = vld [vmem:[#allocation7 + $0x1ca8] sm:$0xf]  ;;  %v10681_v55 = vadd.f32 %v21442_v17, %v10668_v25  ;;  %v19685_v25 = vld [vmem:[#allocation7 + $0x36c] sm:$0xf0] }
 0x56c   :  { %v20268_v20 = vld [vmem:[#allocation7 + $0x15ac] sm:$0xf]  ;;  %v16806_v32 = vor.u32 %v20140_v21, %v16803_v58  ;;  %v18210_v40 = vor.u32 %v20500_v54, %v18209_v63  ;;  %v10656_v21 = vpop.f32.mrf.mxu3  ;;  %v15465_v54 = vld [vmem:[#allocation7 + $0x730] sm:$0xf] }
 0x56d   :  { %10985 = vmatpush.bf16.msrb.mxu1 %v17446_v60  ;;  %10949 = vmatpush.bf16.msra.mxu2 %v15718_v47  ;;  %v17315_v50 = vld [vmem:[#allocation7 + $0x15e8] sm:$0xf0]  ;;  %v10734_v31 = vpop.f32.mrf.mxu1 }
 0x56e   :  { %v19836_v62 = vld [vmem:[#allocation7 + $0x82c] sm:$0xf]  ;;  %v17318_v13 = vor.u32 %v20268_v20, %v17315_v50  ;;  %v19669_v31 = vld [vmem:[#allocation7 + $0x2ec] sm:$0xf0] }
 0x56f   :  { %v15587_v22 = vld [vmem:[#allocation7 + $0x868] sm:$0xf0]  ;;  %10973 = vmatpush.bf16.msrb.mxu0 %v16870_v44  ;;  %10909 = vmatpush.bf16.msrb.mxu3 %v18338_v41  ;;  %v18145_v44 = vld [vmem:[#allocation7 + $0x1c28] sm:$0xf]  ;;  %v21460_v41 = vadd.f32 %v21451_v39, %v10681_v55  ;;  %v14889_v55 = vld [vmem:[#allocation7 + $0x2b0] sm:$0xf] }
 0x570   :  { %v20460_v27 = vld [vmem:[#allocation7 + $0x1bac] sm:$0xf]  ;;  %v15590_v19 = vor.u32 %v19836_v62, %v15587_v22  ;;  %v18146_v0 = vor.u32 %v20484_v51, %v18145_v44  ;;  %v15017_v22 = vld [vmem:[#allocation7 + $0x3b0] sm:$0xf] }
 0x571   :  { %v18083_v43 = vld [vmem:[#allocation7 + $0x1be8] sm:$0xf0]  ;;  %10986 = vmatpush.bf16.msrb.mxu1 %v17382_v56  ;;  %10950 = vmatpush.bf16.msra.mxu2 %v15654_v48 }
 0x572   :  { %v20124_v35 = vld [vmem:[#allocation7 + $0x112c] sm:$0xf]  ;;  %v18086_v28 = vor.u32 %v20460_v27, %v18083_v43  ;;  %v19829_v27 = vld [vmem:[#allocation7 + $0x7ec] sm:$0xf0] }
 0x573   :  { %v16739_v9 = vld [vmem:[#allocation7 + $0x1168] sm:$0xf0]  ;;  %10974 = vmatpush.bf16.msrb.mxu0 %v16806_v32  ;;  %10910 = vmatpush.bf16.msrb.mxu3 %v18274_v42  ;;  %v15529_v32 = vld [vmem:[#allocation7 + $0x7b0] sm:$0xf] }
 0x574   :  { %v20252_v34 = vld [vmem:[#allocation7 + $0x152c] sm:$0xf]  ;;  %v16742_v60 = vor.u32 %v20124_v35, %v16739_v9 }
 0x575   :  { %v17251_v15 = vld [vmem:[#allocation7 + $0x1568] sm:$0xf0]  ;;  %10987 = vmatpush.bf16.msrb.mxu1 %v17318_v13  ;;  %10951 = vmatpush.bf16.msra.mxu2 %v15590_v19  ;;  %v15018_v19 = vor.u32 %v19701_v4, %v15017_v22 }
 0x576   :  { %v20444_v7 = vld [vmem:[#allocation7 + $0x1b2c] sm:$0xf]  ;;  %v17254_v14 = vor.u32 %v20252_v34, %v17251_v15  ;;  %v15530_v34 = vor.u32 %v19829_v27, %v15529_v32  ;;  %v14953_v15 = vld [vmem:[#allocation7 + $0x330] sm:$0xf] }
 0x577   :  { %v18019_v45 = vld [vmem:[#allocation7 + $0x1b68] sm:$0xf0]  ;;  %10975 = vmatpush.bf16.msrb.mxu0 %v16742_v60  ;;  %10911 = vmatpush.bf16.msrb.mxu3 %v18210_v40  ;;  %v19813_v60 = vld [vmem:[#allocation7 + $0x76c] sm:$0xf0] }
 0x578   :  { %v20108_v46 = vld [vmem:[#allocation7 + $0x10ac] sm:$0xf]  ;;  %v18022_v57 = vor.u32 %v20444_v7, %v18019_v45  ;;  %10952 = vmatmul.bf16.vlgmr.msra.gmra.mxu2 %v21139_v26 }
 0x579   :  { %v16675_v47 = vld [vmem:[#allocation7 + $0x10e8] sm:$0xf0]  ;;  %10996 = vmatpush.bf16.msrb.mxu2 %v18086_v28  ;;  %10988 = vmatpush.bf16.msrb.mxu1 %v17254_v14 }
 0x57a   :  { %v20236_v6 = vld [vmem:[#allocation7 + $0x14ac] sm:$0xf]  ;;  %v16678_v58 = vor.u32 %v20108_v46, %v16675_v47  ;;  %v14954_v46 = vor.u32 %v19685_v25, %v14953_v15  ;;  %v15466_v47 = vor.u32 %v19813_v60, %v15465_v54  ;;  %v19957_v54 = vld [vmem:[#allocation7 + $0xbec] sm:$0xf0]  ;;  %v10706_v60 = vpop.f32.mrf.mxu3 }
 0x57b   :  { %v17187_v30 = vld [vmem:[#allocation7 + $0x14e8] sm:$0xf0]  ;;  %10912 = vmatpush.bf16.msrb.mxu3 %v18146_v0  ;;  %v15337_v0 = vld [vmem:[#allocation7 + $0x630] sm:$0xf] }
 0x57c   :  { %v20076_v56 = vld [vmem:[#allocation7 + $0xfac] sm:$0xf]  ;;  %v17190_v17 = vor.u32 %v20236_v6, %v17187_v30  ;;  %10976 = vmatpush.bf16.msrb.mxu0 %v16678_v58  ;;  %v15401_v30 = vld [vmem:[#allocation7 + $0x6b0] sm:$0xf]  ;;  %v10745_v58 = vpop.f32.mrf.mxu2 }
 0x57d   :  { %v16547_v20 = vld [vmem:[#allocation7 + $0xfe8] sm:$0xf0]  ;;  %10997 = vmatpush.bf16.msrb.mxu2 %v18022_v57  ;;  %v19797_v57 = vld [vmem:[#allocation7 + $0x6ec] sm:$0xf0] }
 0x57e   :  { %v20428_v59 = vld [vmem:[#allocation7 + $0x1aac] sm:$0xf]  ;;  %v16550_v39 = vor.u32 %v20076_v56, %v16547_v20  ;;  %10989 = vmatpush.bf16.msrb.mxu1 %v17190_v17  ;;  %10913 = vmatmul.bf16.vlgmr.msrb.gmra.mxu3 %v21197_v18  ;;  %v14890_v20 = vor.u32 %v19669_v31, %v14889_v55  ;;  %v19653_v17 = vld [vmem:[#allocation7 + $0x26c] sm:$0xf0] }
 0x57f   :  { %v17955_v33 = vld [vmem:[#allocation7 + $0x1ae8] sm:$0xf0]  ;;  %v14697_v55 = vld [vmem:[#allocation7 + $0x130] sm:$0xf] }
 0x580   :  { %v20092_v48 = vld [vmem:[#allocation7 + $0x102c] sm:$0xf]  ;;  %v17958_v8 = vor.u32 %v20428_v59, %v17955_v33  ;;  %10957 = vmatpush.bf16.msra.mxu3 %v16550_v39  ;;  %v15402_v59 = vor.u32 %v19797_v57, %v15401_v30  ;;  %v14825_v33 = vld [vmem:[#allocation7 + $0x230] sm:$0xf] }
 0x581   :  { %v16611_v50 = vld [vmem:[#allocation7 + $0x1068] sm:$0xf0]  ;;  %v14826_v32 = vor.u32 %v19653_v17, %v14825_v33  ;;  %v19621_v31 = vld [vmem:[#allocation7 + $0x16c] sm:$0xf0] }
 0x582   :  { %v20220_v12 = vld [vmem:[#allocation7 + $0x142c] sm:$0xf]  ;;  %v16614_v53 = vor.u32 %v20092_v48, %v16611_v50  ;;  %10998 = vmatpush.bf16.msrb.mxu2 %v17958_v8  ;;  %v21467_v48 = vadd.f32 %v10745_v58, %v21454_v3  ;;  %v21471_v3 = vpop.f32.mrf.mxu1  ;;  %v19749_v30 = vld [vmem:[#allocation7 + $0x56c] sm:$0xf0] }
 0x583   :  { %v17123_v62 = vld [vmem:[#allocation7 + $0x1468] sm:$0xf0]  ;;  %v14633_v58 = vld [vmem:[#allocation7 + $0xb0] sm:$0xf] }
 0x584   :  { %v20060_v43 = vld [vmem:[#allocation7 + $0xf2c] sm:$0xf]  ;;  %v17126_v9 = vor.u32 %v20220_v12, %v17123_v62  ;;  %10977 = vmatpush.bf16.msrb.mxu0 %v16614_v53  ;;  %v19781_v62 = vld [vmem:[#allocation7 + $0x66c] sm:$0xf0] }
 0x585   :  { %v16483_v13 = vld [vmem:[#allocation7 + $0xf68] sm:$0xf0]  ;;  %v15338_v27 = vor.u32 %v19781_v62, %v15337_v0  ;;  %v19637_v53 = vld [vmem:[#allocation7 + $0x1ec] sm:$0xf0] }
 0x586   :  { %v20412_v42 = vld [vmem:[#allocation7 + $0x1a2c] sm:$0xf]  ;;  %v16486_v28 = vor.u32 %v20060_v43, %v16483_v13  ;;  %10990 = vmatpush.bf16.msrb.mxu1 %v17126_v9  ;;  %v14761_v43 = vld [vmem:[#allocation7 + $0x1b0] sm:$0xf]  ;;  %v21469_v13 = vpop.f32.mrf.mxu0 }
 0x587   :  { %v17891_v35 = vld [vmem:[#allocation7 + $0x1a68] sm:$0xf0]  ;;  %10978 = vmatmul.bf16.vlgmr.msrb.gmra.mxu0 %v21157_v37  ;;  %v15273_v9 = vld [vmem:[#allocation7 + $0x5b0] sm:$0xf] }
 0x588   :  { %v17894_v63 = vor.u32 %v20412_v42, %v17891_v35  ;;  %v20044_v7 = vld [vmem:[#allocation7 + $0xeac] sm:$0xf]  ;;  %11022 = vmatpush.bf16.msra.mxu0 %v15018_v19  ;;  %10958 = vmatpush.bf16.msra.mxu3 %v16486_v28  ;;  %v19765_v19 = vld [vmem:[#allocation7 + $0x5ec] sm:$0xf0] }
 0x589   :  { %v16419_v45 = vld [vmem:[#allocation7 + $0xee8] sm:$0xf0]  ;;  %10991 = vmatmul.bf16.vlgmr.msrb.gmra.mxu1 %v21159_v11  ;;  %v19605_v17 = vld [vmem:[#allocation7 + $0xec] sm:$0xf0] }
 0x58a   :  { %v20396_v5 = vld [vmem:[#allocation7 + $0x19ac] sm:$0xf]  ;;  %11035 = vmatpush.bf16.msra.mxu1 %v15530_v34  ;;  %10999 = vmatpush.bf16.msrb.mxu2 %v17894_v63  ;;  %v16422_v40 = vor.u32 %v20044_v7, %v16419_v45  ;;  %v16041_v63 = vld [vmem:[#allocation7 + $0xbb0] sm:$0xf]  ;;  %v10747_v7 = vpop.f32.mrf.mxu2  ;;  %v14762_v45 = vor.u32 %v19637_v53, %v14761_v43  ;;  %v14634_v43 = vor.u32 %v19605_v17, %v14633_v58 }
 0x58b   :  { %v17827_v14 = vld [vmem:[#allocation7 + $0x19e8] sm:$0xf0]  ;;  %v14569_v53 = vld [vmem:[#allocation7 + $0x30] sm:$0xf] }
 0x58c   :  { %v17830_v6 = vor.u32 %v20396_v5, %v17827_v14  ;;  %v20028_v44 = vld [vmem:[#allocation7 + $0xe2c] sm:$0xf]  ;;  %11023 = vmatpush.bf16.msra.mxu0 %v14954_v46  ;;  %10959 = vmatpush.bf16.msra.mxu3 %v16422_v40  ;;  %v15274_v5 = vor.u32 %v19765_v19, %v15273_v9  ;;  %v21474_v14 = vadd.f32 %v10706_v60, %v21460_v41  ;;  %v15209_v40 = vld [vmem:[#allocation7 + $0x530] sm:$0xf]  ;;  %v10786_v41 = vpop.f32.mrf.mxu1 }
 0x58d   :  { %v16355_v51 = vld [vmem:[#allocation7 + $0xe68] sm:$0xf0]  ;;  %v19589_v9 = vld [vmem:[#allocation7 + $0x6c] sm:$0xf0] }
 0x58e   :  { %v20380_v56 = vld [vmem:[#allocation7 + $0x192c] sm:$0xf]  ;;  %11036 = vmatpush.bf16.msra.mxu1 %v15466_v47  ;;  %11000 = vmatpush.bf16.msrb.mxu2 %v17830_v6  ;;  %v16358_v50 = vor.u32 %v20028_v44, %v16355_v51  ;;  %v16042_v6 = vor.u32 %v19957_v54, %v16041_v63  ;;  %v15977_v51 = vld [vmem:[#allocation7 + $0xb30] sm:$0xf] }
 0x58f   :  { %v17763_v21 = vld [vmem:[#allocation7 + $0x1968] sm:$0xf0]  ;;  %v15081_v19 = vld [vmem:[#allocation7 + $0x430] sm:$0xf] }
 0x590   :  { %v17766_v12 = vor.u32 %v20380_v56, %v17763_v21  ;;  %v20012_v22 = vld [vmem:[#allocation7 + $0xdac] sm:$0xf]  ;;  %11024 = vmatpush.bf16.msra.mxu0 %v14890_v20  ;;  %10960 = vmatpush.bf16.msra.mxu3 %v16358_v50  ;;  %v19941_v56 = vld [vmem:[#allocation7 + $0xb6c] sm:$0xf0]  ;;  %v14698_v21 = vor.u32 %v19621_v31, %v14697_v55  ;;  %v10773_v20 = vpop.f32.mrf.mxu0 }
 0x591   :  { %v16291_v4 = vld [vmem:[#allocation7 + $0xde8] sm:$0xf0]  ;;  %v15145_v50 = vld [vmem:[#allocation7 + $0x4b0] sm:$0xf]  ;;  %v15978_v0 = vor.u32 %v19941_v56, %v15977_v51 }
 0x592   :  { %v20364_v39 = vld [vmem:[#allocation7 + $0x18ac] sm:$0xf]  ;;  %11037 = vmatpush.bf16.msra.mxu1 %v15402_v59  ;;  %11001 = vmatpush.bf16.msrb.mxu2 %v17766_v12  ;;  %v16294_v42 = vor.u32 %v20012_v22, %v16291_v4  ;;  %v15210_v59 = vor.u32 %v19749_v30, %v15209_v40  ;;  %v19733_v12 = vld [vmem:[#allocation7 + $0x4ec] sm:$0xf0] }
 0x593   :  { %v17699_v8 = vld [vmem:[#allocation7 + $0x18e8] sm:$0xf0]  ;;  %v20213_v63 = vld [vmem:[#allocation7 + $0x13ec] sm:$0xf0] }
 0x594   :  { %v17702_v35 = vor.u32 %v20364_v39, %v17699_v8  ;;  %v19996_v34 = vld [vmem:[#allocation7 + $0xd2c] sm:$0xf]  ;;  %11025 = vmatpush.bf16.msra.mxu0 %v14826_v32  ;;  %10961 = vmatpush.bf16.msra.mxu3 %v16294_v42  ;;  %v15913_v8 = vld [vmem:[#allocation7 + $0xab0] sm:$0xf]  ;;  %v15146_v42 = vor.u32 %v19733_v12, %v15145_v50 }
 0x595   :  { %v16227_v15 = vld [vmem:[#allocation7 + $0xd68] sm:$0xf0]  ;;  %v19925_v32 = vld [vmem:[#allocation7 + $0xaec] sm:$0xf0] }
 0x596   :  { %v20348_v25 = vld [vmem:[#allocation7 + $0x182c] sm:$0xf]  ;;  %11038 = vmatpush.bf16.msra.mxu1 %v15338_v27  ;;  %11002 = vmatpush.bf16.msrb.mxu2 %v17702_v35  ;;  %v16230_v46 = vor.u32 %v19996_v34, %v16227_v15  ;;  %v10708_v27 = vpop.f32.mrf.mxu3  ;;  %v19717_v34 = vld [vmem:[#allocation7 + $0x46c] sm:$0xf0] }
 0x597   :  { %v17635_v28 = vld [vmem:[#allocation7 + $0x1868] sm:$0xf0]  ;;  %v17577_v54 = vld [vmem:[#allocation7 + $0x17b0] sm:$0xf]  ;;  %v15082_v55 = vor.u32 %v19717_v34, %v15081_v19  ;;  %v21480_v27 = vpop.f32.mrf.mxu2 }
 0x598   :  { %v17638_v47 = vor.u32 %v20348_v25, %v17635_v28  ;;  %v19980_v57 = vld [vmem:[#allocation7 + $0xcac] sm:$0xf]  ;;  %11026 = vmatpush.bf16.msra.mxu0 %v14762_v45  ;;  %10962 = vmatpush.bf16.msra.mxu3 %v16230_v46  ;;  %v15914_v25 = vor.u32 %v19925_v32, %v15913_v8  ;;  %v17065_v28 = vld [vmem:[#allocation7 + $0x13b0] sm:$0xf] }
 0x599   :  { %v16163_v44 = vld [vmem:[#allocation7 + $0xce8] sm:$0xf0]  ;;  %v20341_v60 = vld [vmem:[#allocation7 + $0x17ec] sm:$0xf0]  ;;  %v17066_v31 = vor.u32 %v20213_v63, %v17065_v28 }
 0x59a   :  { %11039 = vmatpush.bf16.msra.mxu1 %v15274_v5  ;;  %11003 = vmatpush.bf16.msrb.mxu2 %v17638_v47  ;;  %v16166_v33 = vor.u32 %v19980_v57, %v16163_v44  ;;  %v19964_v62 = vld [vmem:[#allocation7 + $0xc2c] sm:$0xf]  ;;  %v14570_v5 = vor.u32 %v19589_v9, %v14569_v53  ;;  %v15849_v46 = vld [vmem:[#allocation7 + $0xa30] sm:$0xf]  ;;  %v17578_v40 = vor.u32 %v20341_v60, %v17577_v54 }
 0x59b   :  { %v16099_v22 = vld [vmem:[#allocation7 + $0xc68] sm:$0xf0]  ;;  %v19909_v47 = vld [vmem:[#allocation7 + $0xa6c] sm:$0xf0] }
 0x59c   :  { %v20588_v4 = vld [vmem:[#allocation7 + $0x1fac] sm:$0xf]  ;;  %11027 = vmatpush.bf16.msra.mxu0 %v14698_v21  ;;  %10963 = vmatpush.bf16.msra.mxu3 %v16166_v33  ;;  %v16102_v35 = vor.u32 %v19964_v62, %v16099_v22  ;;  %v17001_v30 = vld [vmem:[#allocation7 + $0x1330] sm:$0xf]  ;;  %v15850_v51 = vor.u32 %v19909_v47, %v15849_v46 }
 0x59d   :  { %v18595_v39 = vld [vmem:[#allocation7 + $0x1fe8] sm:$0xf0]  ;;  %11004 = vmatmul.bf16.vlgmr.msrb.gmra.mxu2 %v21182_v10  ;;  %v20197_v57 = vld [vmem:[#allocation7 + $0x136c] sm:$0xf0] }
 0x59e   :  { %11048 = vmatpush.bf16.msra.mxu2 %v16042_v6  ;;  %11040 = vmatpush.bf16.msra.mxu1 %v15210_v59  ;;  %v18598_v15 = vor.u32 %v20588_v4, %v18595_v39  ;;  %v20572_v7 = vld [vmem:[#allocation7 + $0x1f2c] sm:$0xf]  ;;  %v17513_v44 = vld [vmem:[#allocation7 + $0x1730] sm:$0xf]  ;;  %v17002_v59 = vor.u32 %v20197_v57, %v17001_v30  ;;  %v10836_v30 = vpop.f32.mrf.mxu1 }
 0x59f   :  { %v18531_v45 = vld [vmem:[#allocation7 + $0x1f68] sm:$0xf0]  ;;  %v20325_v56 = vld [vmem:[#allocation7 + $0x176c] sm:$0xf0] }
 0x5a0   :  { %11028 = vmatpush.bf16.msra.mxu0 %v14634_v43  ;;  %10964 = vmatpush.bf16.msra.mxu3 %v16102_v35  ;;  %v18534_v6 = vor.u32 %v20572_v7, %v18531_v45  ;;  %v20556_v21 = vld [vmem:[#allocation7 + $0x1eac] sm:$0xf]  ;;  %v15785_v20 = vld [vmem:[#allocation7 + $0x9b0] sm:$0xf]  ;;  %v17514_v33 = vor.u32 %v20325_v56, %v17513_v44 }
 0x5a1   :  { %v18467_v58 = vld [vmem:[#allocation7 + $0x1ee8] sm:$0xf0]  ;;  %v19893_v41 = vld [vmem:[#allocation7 + $0x9ec] sm:$0xf0] }
 0x5a2   :  { %11049 = vmatpush.bf16.msra.mxu2 %v15978_v0  ;;  %11041 = vmatpush.bf16.msra.mxu1 %v15146_v42  ;;  %v18470_v17 = vor.u32 %v20556_v21, %v18467_v58  ;;  %v16937_v50 = vld [vmem:[#allocation7 + $0x12b0] sm:$0xf]  ;;  %v15786_v62 = vor.u32 %v19893_v41, %v15785_v20  ;;  %v20540_v4 = vld [vmem:[#allocation7 + $0x1e2c] sm:$0xf]  ;;  %v10758_v41 = vpop.f32.mrf.mxu3 }
 0x5a3   :  { %10965 = vmatmul.bf16.vlgmr.msra.gmra.mxu3 %v21142_v29  ;;  %v20181_v12 = vld [vmem:[#allocation7 + $0x12ec] sm:$0xf0]  ;;  %v18403_v39 = vld [vmem:[#allocation7 + $0x1e68] sm:$0xf0] }
 0x5a4   :  { %11009 = vmatpush.bf16.msrb.mxu3 %v18598_v15  ;;  %11029 = vmatpush.bf16.msra.mxu0 %v14570_v5  ;;  %v17449_v0 = vld [vmem:[#allocation7 + $0x16b0] sm:$0xf]  ;;  %v16938_v43 = vor.u32 %v20181_v12, %v16937_v50  ;;  %v21482_v53 = vld [vmem:[#allocation8 + $0x8] sm:$0xff]  ;;  %v18406_v9 = vor.u32 %v20540_v4, %v18403_v39  ;;  %v10823_v5 = vpop.f32.mrf.mxu0  ;;  %v10759_v12 = vadd.f32 %v10758_v41, %v21467_v48 }
 0x5a5   :  { %v20309_v22 = vld [vmem:[#allocation7 + $0x16ec] sm:$0xf0]  ;;  %v4632_v42 = vperm.slane %v21482_v53, 2  ;;  %v20524_v63 = vld [vmem:[#allocation7 + $0x1dac] sm:$0xf] }
 0x5a6   :  { %11050 = vmatpush.bf16.msra.mxu2 %v15914_v25  ;;  %11042 = vmatpush.bf16.msra.mxu1 %v15082_v55  ;;  %v15721_v8 = vld [vmem:[#allocation7 + $0x930] sm:$0xf]  ;;  %v17450_v35 = vor.u32 %v20309_v22, %v17449_v0  ;;  %v18339_v54 = vld [vmem:[#allocation7 + $0x1de8] sm:$0xf0] }
 0x5a7   :  { %11030 = vmatmul.bf16.vlgmr.msra.gmra.mxu0 %v21135_v24  ;;  %v19877_v32 = vld [vmem:[#allocation7 + $0x96c] sm:$0xf0]  ;;  %v18342_v47 = vor.u32 %v20524_v63, %v18339_v54  ;;  %v18275_v56 = vld [vmem:[#allocation7 + $0x1d68] sm:$0xf0] }
 0x5a8   :  { %11074 = vmatpush.bf16.msrb.mxu0 %v17066_v31  ;;  %11010 = vmatpush.bf16.msrb.mxu3 %v18534_v6  ;;  %v16873_v19 = vld [vmem:[#allocation7 + $0x1230] sm:$0xf]  ;;  %v15722_v25 = vor.u32 %v19877_v32, %v15721_v8  ;;  %v10824_v6 = vadd.f32 %v10823_v5, %v4632_v42 }
 0x5a9   :  { %11043 = vmatmul.bf16.vlgmr.msra.gmra.mxu1 %v21137_v1  ;;  %v20165_v34 = vld [vmem:[#allocation7 + $0x126c] sm:$0xf0] }
 0x5aa   :  { %11087 = vmatpush.bf16.msrb.mxu1 %v17578_v40  ;;  %11051 = vmatpush.bf16.msra.mxu2 %v15850_v51  ;;  %v17385_v15 = vld [vmem:[#allocation7 + $0x1630] sm:$0xf]  ;;  %v16874_v45 = vor.u32 %v20165_v34, %v16873_v19  ;;  %v20508_v51 = vld [vmem:[#allocation7 + $0x1d2c] sm:$0xf]  ;;  %v21485_v20 = vadd.f32 %v10836_v30, %v10824_v6 }
 0x5ab   :  { %v20293_v28 = vld [vmem:[#allocation7 + $0x166c] sm:$0xf0] }
 0x5ac   :  { %11075 = vmatpush.bf16.msrb.mxu0 %v17002_v59  ;;  %11011 = vmatpush.bf16.msrb.mxu3 %v18470_v17  ;;  %v15657_v60 = vld [vmem:[#allocation7 + $0x8b0] sm:$0xf]  ;;  %v17386_v46 = vor.u32 %v20293_v28, %v17385_v15  ;;  %v10799_v59 = vpop.f32.mrf.mxu2  ;;  %v10825_v48 = vpop.f32.mrf.mxu0 }
 0x5ad   :  { %v19861_v7 = vld [vmem:[#allocation7 + $0x8ec] sm:$0xf0]  ;;  %v19693_v59 = vld [vmem:[#allocation7 + $0x3b4] sm:$0xf] }
 0x5ae   :  { %11088 = vmatpush.bf16.msrb.mxu1 %v17514_v33  ;;  %11052 = vmatpush.bf16.msra.mxu2 %v15786_v62  ;;  %v16809_v55 = vld [vmem:[#allocation7 + $0x11b0] sm:$0xf]  ;;  %v15658_v57 = vor.u32 %v19861_v7, %v15657_v60  ;;  %v18278_v62 = vor.u32 %v20508_v51, %v18275_v56  ;;  %v10838_v60 = vpop.f32.mrf.mxu1 }
 0x5af   :  { %v20149_v31 = vld [vmem:[#allocation7 + $0x11ec] sm:$0xf0] }
 0x5b0   :  { %11076 = vmatpush.bf16.msrb.mxu0 %v16938_v43  ;;  %11012 = vmatpush.bf16.msrb.mxu3 %v18406_v9  ;;  %v17321_v40 = vld [vmem:[#allocation7 + $0x15b0] sm:$0xf]  ;;  %v16810_v33 = vor.u32 %v20149_v31, %v16809_v55  ;;  %v10772_v43 = vadd.f32 %v21469_v13, %v10759_v12  ;;  %v18211_v9 = vld [vmem:[#allocation7 + $0x1ce8] sm:$0xf0]  ;;  %v15531_v12 = vld [vmem:[#allocation7 + $0x7f0] sm:$0xf0] }
 0x5b1   :  { %v20277_v44 = vld [vmem:[#allocation7 + $0x15ec] sm:$0xf0] }
 0x5b2   :  { %11089 = vmatpush.bf16.msrb.mxu1 %v17450_v35  ;;  %11053 = vmatpush.bf16.msra.mxu2 %v15722_v25  ;;  %v15593_v21 = vld [vmem:[#allocation7 + $0x830] sm:$0xf]  ;;  %v17322_v0 = vor.u32 %v20277_v44, %v17321_v40  ;;  %v20492_v35 = vld [vmem:[#allocation7 + $0x1cac] sm:$0xf]  ;;  %v10785_v54 = vadd.f32 %v21471_v3, %v10772_v43  ;;  %v10760_v40 = vpop.f32.mrf.mxu3 }
 0x5b3   :  { %v19845_v58 = vld [vmem:[#allocation7 + $0x86c] sm:$0xf0]  ;;  %v18214_v7 = vor.u32 %v20492_v35, %v18211_v9  ;;  %v14955_v35 = vld [vmem:[#allocation7 + $0x370] sm:$0xf0] }
 0x5b4   :  { %11077 = vmatpush.bf16.msrb.mxu0 %v16874_v45  ;;  %v18089_v17 = vld [vmem:[#allocation7 + $0x1bb0] sm:$0xf]  ;;  %11013 = vmatpush.bf16.msrb.mxu3 %v18342_v47  ;;  %v15594_v39 = vor.u32 %v19845_v58, %v15593_v21  ;;  %v18147_v47 = vld [vmem:[#allocation7 + $0x1c68] sm:$0xf0]  ;;  %v21491_v31 = vadd.f32 %v21480_v27, %v10785_v54 }
 0x5b5   :  { %v20469_v50 = vld [vmem:[#allocation7 + $0x1bec] sm:$0xf0] }
 0x5b6   :  { %11090 = vmatpush.bf16.msrb.mxu1 %v17386_v46  ;;  %v16745_v22 = vld [vmem:[#allocation7 + $0x1130] sm:$0xf]  ;;  %11054 = vmatpush.bf16.msra.mxu2 %v15658_v57  ;;  %v18090_v42 = vor.u32 %v20469_v50, %v18089_v17  ;;  %v20476_v46 = vld [vmem:[#allocation7 + $0x1c2c] sm:$0xf]  ;;  %v19821_v50 = vld [vmem:[#allocation7 + $0x7b4] sm:$0xf] }
 0x5b7   :  { %v20133_v4 = vld [vmem:[#allocation7 + $0x116c] sm:$0xf0]  ;;  %v18150_v58 = vor.u32 %v20476_v46, %v18147_v47  ;;  %v15534_v43 = vor.u32 %v19821_v50, %v15531_v12  ;;  %v19789_v46 = vld [vmem:[#allocation7 + $0x6b4] sm:$0xf] }
 0x5b8   :  { %v17257_v8 = vld [vmem:[#allocation7 + $0x1530] sm:$0xf]  ;;  %11078 = vmatpush.bf16.msrb.mxu0 %v16810_v33  ;;  %v16746_v19 = vor.u32 %v20133_v4, %v16745_v22  ;;  %11014 = vmatpush.bf16.msrb.mxu3 %v18278_v62  ;;  %v15019_v33 = vld [vmem:[#allocation7 + $0x3f0] sm:$0xf0] }
 0x5b9   :  { %v20261_v32 = vld [vmem:[#allocation7 + $0x156c] sm:$0xf0]  ;;  %v15403_v47 = vld [vmem:[#allocation7 + $0x6f0] sm:$0xf0] }
 0x5ba   :  { %v18025_v34 = vld [vmem:[#allocation7 + $0x1b30] sm:$0xf]  ;;  %11091 = vmatpush.bf16.msrb.mxu1 %v17322_v0  ;;  %v17258_v25 = vor.u32 %v20261_v32, %v17257_v8  ;;  %11055 = vmatpush.bf16.msra.mxu2 %v15594_v39  ;;  %v15022_v32 = vor.u32 %v19693_v59, %v15019_v33  ;;  %v19773_v59 = vld [vmem:[#allocation7 + $0x634] sm:$0xf] }
 0x5bb   :  { %v20453_v15 = vld [vmem:[#allocation7 + $0x1b6c] sm:$0xf0]  ;;  %v15339_v33 = vld [vmem:[#allocation7 + $0x670] sm:$0xf0] }
 0x5bc   :  { %v16681_v28 = vld [vmem:[#allocation7 + $0x10b0] sm:$0xf]  ;;  %v18026_v5 = vor.u32 %v20453_v15, %v18025_v34  ;;  %11079 = vmatpush.bf16.msrb.mxu0 %v16746_v19  ;;  %11015 = vmatpush.bf16.msrb.mxu3 %v18214_v7  ;;  %v19805_v34 = vld [vmem:[#allocation7 + $0x734] sm:$0xf] }
 0x5bd   :  { %v20117_v63 = vld [vmem:[#allocation7 + $0x10ec] sm:$0xf0]  ;;  %11056 = vmatmul.bf16.vlgmr.msra.gmra.mxu2 %v21139_v26  ;;  %v15467_v15 = vld [vmem:[#allocation7 + $0x770] sm:$0xf0] }
 0x5be   :  { %v17193_v45 = vld [vmem:[#allocation7 + $0x14b0] sm:$0xf]  ;;  %11100 = vmatpush.bf16.msrb.mxu2 %v18090_v42  ;;  %v16682_v6 = vor.u32 %v20117_v63, %v16681_v28  ;;  %11092 = vmatpush.bf16.msrb.mxu1 %v17258_v25  ;;  %v19677_v42 = vld [vmem:[#allocation7 + $0x334] sm:$0xf]  ;;  %v15470_v60 = vor.u32 %v19805_v34, %v15467_v15 }
 0x5bf   :  { %v20245_v13 = vld [vmem:[#allocation7 + $0x14ec] sm:$0xf0]  ;;  %v14958_v54 = vor.u32 %v19677_v42, %v14955_v35  ;;  %v19661_v7 = vld [vmem:[#allocation7 + $0x2b4] sm:$0xf] }
 0x5c0   :  { %v16553_v55 = vld [vmem:[#allocation7 + $0xfb0] sm:$0xf]  ;;  %v17194_v3 = vor.u32 %v20245_v13, %v17193_v45  ;;  %11080 = vmatpush.bf16.msrb.mxu0 %v16682_v6  ;;  %11016 = vmatpush.bf16.msrb.mxu3 %v18150_v58  ;;  %v14891_v45 = vld [vmem:[#allocation7 + $0x2f0] sm:$0xf0] }
 0x5c1   :  { %v20085_v30 = vld [vmem:[#allocation7 + $0xfec] sm:$0xf0]  ;;  %v15275_v42 = vld [vmem:[#allocation7 + $0x5f0] sm:$0xf0] }
 0x5c2   :  { %v17961_v57 = vld [vmem:[#allocation7 + $0x1ab0] sm:$0xf]  ;;  %11101 = vmatpush.bf16.msrb.mxu2 %v18026_v5  ;;  %v16554_v27 = vor.u32 %v20085_v30, %v16553_v55  ;;  %11093 = vmatpush.bf16.msrb.mxu1 %v17194_v3  ;;  %v15406_v3 = vor.u32 %v19789_v46, %v15403_v47  ;;  %v19949_v15 = vld [vmem:[#allocation7 + $0xbb4] sm:$0xf] }
 0x5c3   :  { %v20437_v44 = vld [vmem:[#allocation7 + $0x1aec] sm:$0xf0]  ;;  %11017 = vmatmul.bf16.vlgmr.msrb.gmra.mxu3 %v21197_v18  ;;  %v19741_v46 = vld [vmem:[#allocation7 + $0x534] sm:$0xf] }
 0x5c4   :  { %v16617_v51 = vld [vmem:[#allocation7 + $0x1030] sm:$0xf]  ;;  %v17962_v17 = vor.u32 %v20437_v44, %v17961_v57  ;;  %11061 = vmatpush.bf16.msra.mxu3 %v16554_v27  ;;  %v10849_v57 = vpop.f32.mrf.mxu2  ;;  %v14894_v44 = vor.u32 %v19661_v7, %v14891_v45 }
 0x5c5   :  { %v20101_v56 = vld [vmem:[#allocation7 + $0x106c] sm:$0xf0] }
 0x5c6   :  { %v17129_v21 = vld [vmem:[#allocation7 + $0x1430] sm:$0xf]  ;;  %v16618_v62 = vor.u32 %v20101_v56, %v16617_v51  ;;  %11102 = vmatpush.bf16.msrb.mxu2 %v17962_v17  ;;  %v19645_v51 = vld [vmem:[#allocation7 + $0x234] sm:$0xf] }
 0x5c7   :  { %v20229_v41 = vld [vmem:[#allocation7 + $0x146c] sm:$0xf0]  ;;  %v14827_v56 = vld [vmem:[#allocation7 + $0x270] sm:$0xf0] }
 0x5c8   :  { %v16489_v0 = vld [vmem:[#allocation7 + $0xf30] sm:$0xf]  ;;  %v17130_v8 = vor.u32 %v20229_v41, %v17129_v21  ;;  %11081 = vmatpush.bf16.msrb.mxu0 %v16618_v62  ;;  %v21498_v21 = vadd.f32 %v10849_v57, %v21485_v20  ;;  %v15342_v62 = vor.u32 %v19773_v59, %v15339_v33  ;;  %v21502_v20 = vpop.f32.mrf.mxu1  ;;  %v15979_v57 = vld [vmem:[#allocation7 + $0xb70] sm:$0xf0] }
 0x5c9   :  { %v20069_v22 = vld [vmem:[#allocation7 + $0xf6c] sm:$0xf0]  ;;  %v19725_v59 = vld [vmem:[#allocation7 + $0x4b4] sm:$0xf] }
 0x5ca   :  { %v17897_v4 = vld [vmem:[#allocation7 + $0x1a30] sm:$0xf]  ;;  %v16490_v9 = vor.u32 %v20069_v22, %v16489_v0  ;;  %11094 = vmatpush.bf16.msrb.mxu1 %v17130_v8  ;;  %v14830_v0 = vor.u32 %v19645_v51, %v14827_v56  ;;  %v19629_v22 = vld [vmem:[#allocation7 + $0x1b4] sm:$0xf] }
 0x5cb   :  { %v20421_v39 = vld [vmem:[#allocation7 + $0x1a6c] sm:$0xf0]  ;;  %11082 = vmatmul.bf16.vlgmr.msrb.gmra.mxu0 %v21157_v37  ;;  %v15147_v33 = vld [vmem:[#allocation7 + $0x4f0] sm:$0xf0] }
 0x5cc   :  { %v17898_v19 = vor.u32 %v20421_v39, %v17897_v4  ;;  %v16425_v48 = vld [vmem:[#allocation7 + $0xeb0] sm:$0xf]  ;;  %11126 = vmatpush.bf16.msra.mxu0 %v15022_v32  ;;  %11062 = vmatpush.bf16.msra.mxu3 %v16490_v9  ;;  %v14763_v4 = vld [vmem:[#allocation7 + $0x1f0] sm:$0xf0]  ;;  %v21500_v39 = vpop.f32.mrf.mxu0 }
 0x5cd   :  { %v20053_v25 = vld [vmem:[#allocation7 + $0xeec] sm:$0xf0]  ;;  %11095 = vmatmul.bf16.vlgmr.msrb.gmra.mxu1 %v21159_v11 }
 0x5ce   :  { %v17833_v28 = vld [vmem:[#allocation7 + $0x19b0] sm:$0xf]  ;;  %11139 = vmatpush.bf16.msra.mxu1 %v15534_v43  ;;  %11103 = vmatpush.bf16.msrb.mxu2 %v17898_v19  ;;  %v16426_v13 = vor.u32 %v20053_v25, %v16425_v48  ;;  %v19757_v43 = vld [vmem:[#allocation7 + $0x5b4] sm:$0xf]  ;;  %v10810_v25 = vpop.f32.mrf.mxu3 }
 0x5cf   :  { %v20405_v63 = vld [vmem:[#allocation7 + $0x19ec] sm:$0xf0]  ;;  %v16043_v48 = vld [vmem:[#allocation7 + $0xbf0] sm:$0xf0] }
 0x5d0   :  { %v17834_v5 = vor.u32 %v20405_v63, %v17833_v28  ;;  %v16361_v55 = vld [vmem:[#allocation7 + $0xe30] sm:$0xf]  ;;  %11127 = vmatpush.bf16.msra.mxu0 %v14958_v54  ;;  %11063 = vmatpush.bf16.msra.mxu3 %v16426_v13  ;;  %v10851_v28 = vpop.f32.mrf.mxu2  ;;  %v14766_v63 = vor.u32 %v19629_v22, %v14763_v4  ;;  %v15278_v54 = vor.u32 %v19757_v43, %v15275_v42  ;;  %v19613_v13 = vld [vmem:[#allocation7 + $0x134] sm:$0xf] }
 0x5d1   :  { %v20037_v40 = vld [vmem:[#allocation7 + $0xe6c] sm:$0xf0]  ;;  %v16046_v47 = vor.u32 %v19949_v15, %v16043_v48  ;;  %v15915_v22 = vld [vmem:[#allocation7 + $0xaf0] sm:$0xf0]  ;;  %v15150_v43 = vor.u32 %v19725_v59, %v15147_v33 }
 0x5d2   :  { %v17769_v6 = vld [vmem:[#allocation7 + $0x1930] sm:$0xf]  ;;  %11140 = vmatpush.bf16.msra.mxu1 %v15470_v60  ;;  %11104 = vmatpush.bf16.msrb.mxu2 %v17834_v5  ;;  %v16362_v58 = vor.u32 %v20037_v40, %v16361_v55  ;;  %v21505_v60 = vadd.f32 %v10810_v25, %v21491_v31  ;;  %v14699_v5 = vld [vmem:[#allocation7 + $0x170] sm:$0xf0]  ;;  %v10890_v31 = vpop.f32.mrf.mxu1 }
 0x5d3   :  { %v20389_v30 = vld [vmem:[#allocation7 + $0x196c] sm:$0xf0]  ;;  %v15211_v55 = vld [vmem:[#allocation7 + $0x570] sm:$0xf0] }
 0x5d4   :  { %v17770_v41 = vor.u32 %v20389_v30, %v17769_v6  ;;  %v16297_v27 = vld [vmem:[#allocation7 + $0xdb0] sm:$0xf]  ;;  %11128 = vmatpush.bf16.msra.mxu0 %v14894_v44  ;;  %11064 = vmatpush.bf16.msra.mxu3 %v16362_v58  ;;  %v19933_v30 = vld [vmem:[#allocation7 + $0xb34] sm:$0xf]  ;;  %v14702_v44 = vor.u32 %v19613_v13, %v14699_v5  ;;  %v10877_v51 = vpop.f32.mrf.mxu0  ;;  %v15214_v56 = vor.u32 %v19741_v46, %v15211_v55 }
 0x5d5   :  { %v20021_v17 = vld [vmem:[#allocation7 + $0xdec] sm:$0xf0]  ;;  %v20205_v48 = vld [vmem:[#allocation7 + $0x13b4] sm:$0xf] }
 0x5d6   :  { %v17705_v50 = vld [vmem:[#allocation7 + $0x18b0] sm:$0xf]  ;;  %11141 = vmatpush.bf16.msra.mxu1 %v15406_v3  ;;  %11105 = vmatpush.bf16.msrb.mxu2 %v17770_v41  ;;  %v16298_v8 = vor.u32 %v20021_v17, %v16297_v27  ;;  %v19597_v3 = vld [vmem:[#allocation7 + $0xb4] sm:$0xf]  ;;  %v15982_v27 = vor.u32 %v19933_v30, %v15979_v57  ;;  %v10812_v4 = vpop.f32.mrf.mxu3 }
 0x5d7   :  { %v20373_v12 = vld [vmem:[#allocation7 + $0x18ec] sm:$0xf0]  ;;  %v14635_v41 = vld [vmem:[#allocation7 + $0xf0] sm:$0xf0] }
 0x5d8   :  { %v17706_v32 = vor.u32 %v20373_v12, %v17705_v50  ;;  %v16233_v35 = vld [vmem:[#allocation7 + $0xd30] sm:$0xf]  ;;  %11129 = vmatpush.bf16.msra.mxu0 %v14830_v0  ;;  %11065 = vmatpush.bf16.msra.mxu3 %v16298_v8  ;;  %v14638_v8 = vor.u32 %v19597_v3, %v14635_v41  ;;  %v17067_v25 = vld [vmem:[#allocation7 + $0x13f0] sm:$0xf0] }
 0x5d9   :  { %v20005_v9 = vld [vmem:[#allocation7 + $0xd6c] sm:$0xf0]  ;;  %v20333_v28 = vld [vmem:[#allocation7 + $0x17b4] sm:$0xf] }
 0x5da   :  { %v17641_v19 = vld [vmem:[#allocation7 + $0x1830] sm:$0xf]  ;;  %11142 = vmatpush.bf16.msra.mxu1 %v15342_v62  ;;  %11106 = vmatpush.bf16.msrb.mxu2 %v17706_v32  ;;  %v16234_v7 = vor.u32 %v20005_v9, %v16233_v35  ;;  %v19917_v62 = vld [vmem:[#allocation7 + $0xab4] sm:$0xf] }
 0x5db   :  { %v20357_v34 = vld [vmem:[#allocation7 + $0x186c] sm:$0xf0]  ;;  %v19581_v32 = vld [vmem:[#allocation7 + $0x34] sm:$0xf]  ;;  %v15918_v15 = vor.u32 %v19917_v62, %v15915_v22 }
 0x5dc   :  { %v17642_v45 = vor.u32 %v20357_v34, %v17641_v19  ;;  %v16169_v40 = vld [vmem:[#allocation7 + $0xcb0] sm:$0xf]  ;;  %11130 = vmatpush.bf16.msra.mxu0 %v14766_v63  ;;  %11066 = vmatpush.bf16.msra.mxu3 %v16234_v7  ;;  %v14571_v35 = vld [vmem:[#allocation7 + $0x70] sm:$0xf0] }
 0x5dd   :  { %v19989_v6 = vld [vmem:[#allocation7 + $0xcec] sm:$0xf0]  ;;  %v19709_v9 = vld [vmem:[#allocation7 + $0x434] sm:$0xf] }
 0x5de   :  { %11143 = vmatpush.bf16.msra.mxu1 %v15278_v54  ;;  %11107 = vmatpush.bf16.msrb.mxu2 %v17642_v45  ;;  %v16170_v58 = vor.u32 %v19989_v6, %v16169_v40  ;;  %v16105_v17 = vld [vmem:[#allocation7 + $0xc30] sm:$0xf]  ;;  %v15083_v19 = vld [vmem:[#allocation7 + $0x470] sm:$0xf0]  ;;  %v14574_v45 = vor.u32 %v19581_v32, %v14571_v35  ;;  %v21511_v32 = vpop.f32.mrf.mxu2 }
 0x5df   :  { %v19973_v50 = vld [vmem:[#allocation7 + $0xc6c] sm:$0xf0]  ;;  %v17579_v63 = vld [vmem:[#allocation7 + $0x17f0] sm:$0xf0]  ;;  %v15086_v46 = vor.u32 %v19709_v9, %v15083_v19 }
 0x5e0   :  { %v18601_v12 = vld [vmem:[#allocation7 + $0x1fb0] sm:$0xf]  ;;  %11131 = vmatpush.bf16.msra.mxu0 %v14702_v44  ;;  %11067 = vmatpush.bf16.msra.mxu3 %v16170_v58  ;;  %v16106_v42 = vor.u32 %v19973_v50, %v16105_v17  ;;  %v19901_v13 = vld [vmem:[#allocation7 + $0xa34] sm:$0xf]  ;;  %v17582_v55 = vor.u32 %v20333_v28, %v17579_v63 }
 0x5e1   :  { %v20597_v0 = vld [vmem:[#allocation7 + $0x1fec] sm:$0xf0]  ;;  %11108 = vmatmul.bf16.vlgmr.msrb.gmra.mxu2 %v21182_v10  ;;  %v15851_v5 = vld [vmem:[#allocation7 + $0xa70] sm:$0xf0] }
 0x5e2   :  { %11152 = vmatpush.bf16.msra.mxu2 %v16046_v47  ;;  %11144 = vmatpush.bf16.msra.mxu1 %v15214_v56  ;;  %v18602_v34 = vor.u32 %v20597_v0, %v18601_v12  ;;  %v18537_v54 = vld [vmem:[#allocation7 + $0x1f30] sm:$0xf]  ;;  %v17070_v47 = vor.u32 %v20205_v48, %v17067_v25  ;;  %v20189_v6 = vld [vmem:[#allocation7 + $0x1334] sm:$0xf]  ;;  %v15854_v44 = vor.u32 %v19901_v13, %v15851_v5  ;;  %v10927_v13 = vpop.f32.mrf.mxu0 }
 0x5e3   :  { %v20581_v7 = vld [vmem:[#allocation7 + $0x1f6c] sm:$0xf0]  ;;  %v17003_v30 = vld [vmem:[#allocation7 + $0x1370] sm:$0xf0] }
 0x5e4   :  { %11132 = vmatpush.bf16.msra.mxu0 %v14638_v8  ;;  %11068 = vmatpush.bf16.msra.mxu3 %v16106_v42  ;;  %v18538_v40 = vor.u32 %v20581_v7, %v18537_v54  ;;  %v20317_v57 = vld [vmem:[#allocation7 + $0x1734] sm:$0xf]  ;;  %v18473_v51 = vld [vmem:[#allocation7 + $0x1eb0] sm:$0xf]  ;;  %v17006_v41 = vor.u32 %v20189_v6, %v17003_v30  ;;  %v4633_v42 = vperm.slane %v21482_v53, 3  ;;  %v10940_v6 = vpop.f32.mrf.mxu1 }
 0x5e5   :  { %v17515_v3 = vld [vmem:[#allocation7 + $0x1770] sm:$0xf0]  ;;  %v20565_v31 = vld [vmem:[#allocation7 + $0x1eec] sm:$0xf0] }
 0x5e6   :  { %11153 = vmatpush.bf16.msra.mxu2 %v15982_v27  ;;  %11145 = vmatpush.bf16.msra.mxu1 %v15150_v43  ;;  %v19885_v56 = vld [vmem:[#allocation7 + $0x9b4] sm:$0xf]  ;;  %v17518_v59 = vor.u32 %v20317_v57, %v17515_v3  ;;  %v18474_v33 = vor.u32 %v20565_v31, %v18473_v51  ;;  %v18409_v62 = vld [vmem:[#allocation7 + $0x1e30] sm:$0xf] }
 0x5e7   :  { %11069 = vmatmul.bf16.vlgmr.msra.gmra.mxu3 %v21142_v29  ;;  %v15787_v58 = vld [vmem:[#allocation7 + $0x9f0] sm:$0xf0]  ;;  %v20549_v22 = vld [vmem:[#allocation7 + $0x1e6c] sm:$0xf0] }
 0x5e8   :  { %11113 = vmatpush.bf16.msrb.mxu3 %v18602_v34  ;;  %11133 = vmatpush.bf16.msra.mxu0 %v14574_v45  ;;  %v20173_v27 = vld [vmem:[#allocation7 + $0x12b4] sm:$0xf]  ;;  %v15790_v12 = vor.u32 %v19885_v56, %v15787_v58  ;;  %v18410_v9 = vor.u32 %v20549_v22, %v18409_v62  ;;  %v18345_v28 = vld [vmem:[#allocation7 + $0x1db0] sm:$0xf]  ;;  %v10862_v58 = vpop.f32.mrf.mxu3 }
 0x5e9   :  { %v16939_v17 = vld [vmem:[#allocation7 + $0x12f0] sm:$0xf0]  ;;  %v20533_v63 = vld [vmem:[#allocation7 + $0x1dec] sm:$0xf0] }
 0x5ea   :  { %11154 = vmatpush.bf16.msra.mxu2 %v15918_v15  ;;  %11146 = vmatpush.bf16.msra.mxu1 %v15086_v46  ;;  %v20301_v50 = vld [vmem:[#allocation7 + $0x16b4] sm:$0xf]  ;;  %v16942_v43 = vor.u32 %v20173_v27, %v16939_v17  ;;  %v18346_v5 = vor.u32 %v20533_v63, %v18345_v28  ;;  %v20517_v3 = vld [vmem:[#allocation7 + $0x1d6c] sm:$0xf0]  ;;  %v10863_v17 = vadd.f32 %v10862_v58, %v21498_v21  ;;  %v10929_v21 = vpop.f32.mrf.mxu0 }
 0x5eb   :  { %11134 = vmatmul.bf16.vlgmr.msra.gmra.mxu0 %v21135_v24  ;;  %v17451_v0 = vld [vmem:[#allocation7 + $0x16f0] sm:$0xf0] }
 0x5ec   :  { %11178 = vmatpush.bf16.msrb.mxu0 %v17070_v47  ;;  %11114 = vmatpush.bf16.msrb.mxu3 %v18538_v40  ;;  %v19869_v4 = vld [vmem:[#allocation7 + $0x934] sm:$0xf]  ;;  %v17454_v35 = vor.u32 %v20301_v50, %v17451_v0  ;;  %v10928_v40 = vadd.f32 %v10927_v13, %v4633_v42 }
 0x5ed   :  { %11147 = vmatmul.bf16.vlgmr.msra.gmra.mxu1 %v21137_v1  ;;  %v15723_v8 = vld [vmem:[#allocation7 + $0x970] sm:$0xf0] }
 0x5ee   :  { %11191 = vmatpush.bf16.msrb.mxu1 %v17582_v55  ;;  %11155 = vmatpush.bf16.msra.mxu2 %v15854_v44  ;;  %v20157_v19 = vld [vmem:[#allocation7 + $0x1234] sm:$0xf]  ;;  %v15726_v48 = vor.u32 %v19869_v4, %v15723_v8  ;;  %v18281_v44 = vld [vmem:[#allocation7 + $0x1d30] sm:$0xf]  ;;  %v21514_v56 = vadd.f32 %v10940_v6, %v10928_v40 }
 0x5ef   :  { %v16875_v34 = vld [vmem:[#allocation7 + $0x1270] sm:$0xf0] }
 0x5f0   :  { %11179 = vmatpush.bf16.msrb.mxu0 %v17006_v41  ;;  %11115 = vmatpush.bf16.msrb.mxu3 %v18474_v33  ;;  %v20285_v15 = vld [vmem:[#allocation7 + $0x1634] sm:$0xf]  ;;  %v16878_v45 = vor.u32 %v20157_v19, %v16875_v34  ;;  %v10903_v41 = vpop.f32.mrf.mxu2 }
 0x5f1   :  { %v17387_v25 = vld [vmem:[#allocation7 + $0x1670] sm:$0xf0]  ;;  %v15025_v41 = vld [vmem:[#allocation7 + $0x3b8] sm:$0xf] }
 0x5f2   :  { %11192 = vmatpush.bf16.msrb.mxu1 %v17518_v59  ;;  %11156 = vmatpush.bf16.msra.mxu2 %v15790_v12  ;;  %v19853_v54 = vld [vmem:[#allocation7 + $0x8b4] sm:$0xf]  ;;  %v17390_v53 = vor.u32 %v20285_v15, %v17387_v25  ;;  %v18282_v12 = vor.u32 %v20517_v3, %v18281_v44 }
 0x5f3   :  { %v15659_v7 = vld [vmem:[#allocation7 + $0x8f0] sm:$0xf0] }
 0x5f4   :  { %11180 = vmatpush.bf16.msrb.mxu0 %v16942_v43  ;;  %11116 = vmatpush.bf16.msrb.mxu3 %v18410_v9  ;;  %v20141_v46 = vld [vmem:[#allocation7 + $0x11b4] sm:$0xf]  ;;  %v15662_v30 = vor.u32 %v19853_v54, %v15659_v7  ;;  %v10876_v43 = vadd.f32 %v21500_v39, %v10863_v17  ;;  %v20501_v9 = vld [vmem:[#allocation7 + $0x1cec] sm:$0xf0]  ;;  %v10942_v54 = vpop.f32.mrf.mxu1  ;;  %v19830_v17 = vld [vmem:[#allocation7 + $0x7f4] sm:$0xf0] }
 0x5f5   :  { %v16811_v47 = vld [vmem:[#allocation7 + $0x11f0] sm:$0xf0] }
 0x5f6   :  { %11193 = vmatpush.bf16.msrb.mxu1 %v17454_v35  ;;  %v20269_v55 = vld [vmem:[#allocation7 + $0x15b4] sm:$0xf]  ;;  %11157 = vmatpush.bf16.msra.mxu2 %v15726_v48  ;;  %v16814_v59 = vor.u32 %v20141_v46, %v16811_v47  ;;  %v18217_v35 = vld [vmem:[#allocation7 + $0x1cb0] sm:$0xf]  ;;  %v10889_v63 = vadd.f32 %v21502_v20, %v10876_v43 }
 0x5f7   :  { %v17323_v57 = vld [vmem:[#allocation7 + $0x15f0] sm:$0xf0]  ;;  %v18218_v7 = vor.u32 %v20501_v9, %v18217_v35  ;;  %v19686_v35 = vld [vmem:[#allocation7 + $0x374] sm:$0xf0] }
 0x5f8   :  { %v19837_v51 = vld [vmem:[#allocation7 + $0x834] sm:$0xf]  ;;  %11181 = vmatpush.bf16.msrb.mxu0 %v16878_v45  ;;  %11117 = vmatpush.bf16.msrb.mxu3 %v18346_v5  ;;  %v17326_v50 = vor.u32 %v20269_v55, %v17323_v57  ;;  %v20485_v5 = vld [vmem:[#allocation7 + $0x1c6c] sm:$0xf0]  ;;  %v21520_v47 = vadd.f32 %v21511_v32, %v10889_v63  ;;  %v10864_v55 = vpop.f32.mrf.mxu3 }
 0x5f9   :  { %v15595_v31 = vld [vmem:[#allocation7 + $0x870] sm:$0xf0] }
 0x5fa   :  { %v20461_v33 = vld [vmem:[#allocation7 + $0x1bb4] sm:$0xf]  ;;  %11194 = vmatpush.bf16.msrb.mxu1 %v17390_v53  ;;  %11158 = vmatpush.bf16.msra.mxu2 %v15662_v30  ;;  %v15598_v22 = vor.u32 %v19837_v51, %v15595_v31  ;;  %v18153_v53 = vld [vmem:[#allocation7 + $0x1c30] sm:$0xf] }
 0x5fb   :  { %v18091_v27 = vld [vmem:[#allocation7 + $0x1bf0] sm:$0xf0]  ;;  %v18154_v31 = vor.u32 %v20485_v5, %v18153_v53  ;;  %v15409_v53 = vld [vmem:[#allocation7 + $0x6b8] sm:$0xf] }
 0x5fc   :  { %v20125_v0 = vld [vmem:[#allocation7 + $0x1134] sm:$0xf]  ;;  %v18094_v42 = vor.u32 %v20461_v33, %v18091_v27  ;;  %11182 = vmatpush.bf16.msrb.mxu0 %v16814_v59  ;;  %11118 = vmatpush.bf16.msrb.mxu3 %v18282_v12  ;;  %v19702_v59 = vld [vmem:[#allocation7 + $0x3f4] sm:$0xf0] }
 0x5fd   :  { %v16747_v62 = vld [vmem:[#allocation7 + $0x1170] sm:$0xf0]  ;;  %v15537_v27 = vld [vmem:[#allocation7 + $0x7b8] sm:$0xf] }
 0x5fe   :  { %v20253_v4 = vld [vmem:[#allocation7 + $0x1534] sm:$0xf]  ;;  %v16750_v19 = vor.u32 %v20125_v0, %v16747_v62  ;;  %11195 = vmatpush.bf16.msrb.mxu1 %v17326_v50  ;;  %11159 = vmatpush.bf16.msra.mxu2 %v15598_v22  ;;  %v15538_v43 = vor.u32 %v19830_v17, %v15537_v27  ;;  %v19798_v5 = vld [vmem:[#allocation7 + $0x6f4] sm:$0xf0] }
 0x5ff   :  { %v17259_v8 = vld [vmem:[#allocation7 + $0x1570] sm:$0xf0] }
 0x600   :  { %v20445_v34 = vld [vmem:[#allocation7 + $0x1b34] sm:$0xf]  ;;  %v17262_v48 = vor.u32 %v20253_v4, %v17259_v8  ;;  %11183 = vmatpush.bf16.msrb.mxu0 %v16750_v19  ;;  %11119 = vmatpush.bf16.msrb.mxu3 %v18218_v7  ;;  %v15026_v8 = vor.u32 %v19702_v59, %v15025_v41  ;;  %v14897_v7 = vld [vmem:[#allocation7 + $0x2b8] sm:$0xf] }
 0x601   :  { %v18027_v15 = vld [vmem:[#allocation7 + $0x1b70] sm:$0xf0]  ;;  %11160 = vmatmul.bf16.vlgmr.msra.gmra.mxu2 %v21139_v26  ;;  %v15345_v41 = vld [vmem:[#allocation7 + $0x638] sm:$0xf] }
 0x602   :  { %v20109_v25 = vld [vmem:[#allocation7 + $0x10b4] sm:$0xf]  ;;  %11204 = vmatpush.bf16.msrb.mxu2 %v18094_v42  ;;  %v18030_v13 = vor.u32 %v20445_v34, %v18027_v15  ;;  %11196 = vmatpush.bf16.msrb.mxu1 %v17262_v48  ;;  %v14961_v42 = vld [vmem:[#allocation7 + $0x338] sm:$0xf] }
 0x603   :  { %v16683_v28 = vld [vmem:[#allocation7 + $0x10f0] sm:$0xf0]  ;;  %v15473_v34 = vld [vmem:[#allocation7 + $0x738] sm:$0xf]  ;;  %v14962_v63 = vor.u32 %v19686_v35, %v14961_v42 }
 0x604   :  { %v20237_v45 = vld [vmem:[#allocation7 + $0x14b4] sm:$0xf]  ;;  %v16686_v40 = vor.u32 %v20109_v25, %v16683_v28  ;;  %11120 = vmatpush.bf16.msrb.mxu3 %v18154_v31  ;;  %v19814_v15 = vld [vmem:[#allocation7 + $0x774] sm:$0xf0] }
 0x605   :  { %v17195_v39 = vld [vmem:[#allocation7 + $0x14f0] sm:$0xf0]  ;;  %v15474_v54 = vor.u32 %v19814_v15, %v15473_v34  ;;  %v19782_v59 = vld [vmem:[#allocation7 + $0x674] sm:$0xf0] }
 0x606   :  { %v20077_v46 = vld [vmem:[#allocation7 + $0xfb4] sm:$0xf]  ;;  %v17198_v20 = vor.u32 %v20237_v45, %v17195_v39  ;;  %11205 = vmatpush.bf16.msrb.mxu2 %v18030_v13  ;;  %11184 = vmatpush.bf16.msrb.mxu0 %v16686_v40  ;;  %v19670_v45 = vld [vmem:[#allocation7 + $0x2f4] sm:$0xf0] }
 0x607   :  { %v16555_v6 = vld [vmem:[#allocation7 + $0xff0] sm:$0xf0]  ;;  %11121 = vmatmul.bf16.vlgmr.msrb.gmra.mxu3 %v21197_v18  ;;  %v19766_v42 = vld [vmem:[#allocation7 + $0x5f4] sm:$0xf0] }
 0x608   :  { %v20429_v30 = vld [vmem:[#allocation7 + $0x1ab4] sm:$0xf]  ;;  %v16558_v32 = vor.u32 %v20077_v46, %v16555_v6  ;;  %11197 = vmatpush.bf16.msrb.mxu1 %v17198_v20  ;;  %v15410_v20 = vor.u32 %v19798_v5, %v15409_v53  ;;  %v16049_v15 = vld [vmem:[#allocation7 + $0xbb8] sm:$0xf] }
 0x609   :  { %v17963_v57 = vld [vmem:[#allocation7 + $0x1af0] sm:$0xf0]  ;;  %v15217_v53 = vld [vmem:[#allocation7 + $0x538] sm:$0xf] }
 0x60a   :  { %v20093_v44 = vld [vmem:[#allocation7 + $0x1034] sm:$0xf]  ;;  %v17966_v33 = vor.u32 %v20429_v30, %v17963_v57  ;;  %11165 = vmatpush.bf16.msra.mxu3 %v16558_v32  ;;  %v10953_v30 = vpop.f32.mrf.mxu2  ;;  %v14898_v57 = vor.u32 %v19670_v45, %v14897_v7 }
 0x60b   :  { %v16619_v3 = vld [vmem:[#allocation7 + $0x1070] sm:$0xf0] }
 0x60c   :  { %v20221_v51 = vld [vmem:[#allocation7 + $0x1434] sm:$0xf]  ;;  %v16622_v12 = vor.u32 %v20093_v44, %v16619_v3  ;;  %11206 = vmatpush.bf16.msrb.mxu2 %v17966_v33  ;;  %v14833_v44 = vld [vmem:[#allocation7 + $0x238] sm:$0xf] }
 0x60d   :  { %v17131_v58 = vld [vmem:[#allocation7 + $0x1470] sm:$0xf0]  ;;  %v19654_v3 = vld [vmem:[#allocation7 + $0x274] sm:$0xf0] }
 0x60e   :  { %v20061_v50 = vld [vmem:[#allocation7 + $0xf34] sm:$0xf]  ;;  %v17134_v4 = vor.u32 %v20221_v51, %v17131_v58  ;;  %11185 = vmatpush.bf16.msrb.mxu0 %v16622_v12  ;;  %v21527_v51 = vadd.f32 %v10953_v30, %v21514_v56  ;;  %v15346_v12 = vor.u32 %v19782_v59, %v15345_v41  ;;  %v21531_v56 = vpop.f32.mrf.mxu1  ;;  %v19942_v30 = vld [vmem:[#allocation7 + $0xb74] sm:$0xf0] }
 0x60f   :  { %v16491_v0 = vld [vmem:[#allocation7 + $0xf70] sm:$0xf0]  ;;  %v15153_v41 = vld [vmem:[#allocation7 + $0x4b8] sm:$0xf] }
 0x610   :  { %v20413_v62 = vld [vmem:[#allocation7 + $0x1a34] sm:$0xf]  ;;  %v16494_v9 = vor.u32 %v20061_v50, %v16491_v0  ;;  %11198 = vmatpush.bf16.msrb.mxu1 %v17134_v4  ;;  %v14834_v50 = vor.u32 %v19654_v3, %v14833_v44  ;;  %v14769_v0 = vld [vmem:[#allocation7 + $0x1b8] sm:$0xf] }
 0x611   :  { %v17899_v22 = vld [vmem:[#allocation7 + $0x1a70] sm:$0xf0]  ;;  %11186 = vmatmul.bf16.vlgmr.msrb.gmra.mxu0 %v21157_v37  ;;  %v19734_v59 = vld [vmem:[#allocation7 + $0x4f4] sm:$0xf0] }
 0x612   :  { %v17902_v19 = vor.u32 %v20413_v62, %v17899_v22  ;;  %v20045_v21 = vld [vmem:[#allocation7 + $0xeb4] sm:$0xf]  ;;  %11230 = vmatpush.bf16.msra.mxu0 %v15026_v8  ;;  %11166 = vmatpush.bf16.msra.mxu3 %v16494_v9  ;;  %v19638_v62 = vld [vmem:[#allocation7 + $0x1f4] sm:$0xf0]  ;;  %v21529_v22 = vpop.f32.mrf.mxu0 }
 0x613   :  { %v16427_v48 = vld [vmem:[#allocation7 + $0xef0] sm:$0xf0]  ;;  %11199 = vmatmul.bf16.vlgmr.msrb.gmra.mxu1 %v21159_v11 }
 0x614   :  { %v20397_v25 = vld [vmem:[#allocation7 + $0x19b4] sm:$0xf]  ;;  %11243 = vmatpush.bf16.msra.mxu1 %v15538_v43  ;;  %11207 = vmatpush.bf16.msrb.mxu2 %v17902_v19  ;;  %v16430_v39 = vor.u32 %v20045_v21, %v16427_v48  ;;  %v15281_v43 = vld [vmem:[#allocation7 + $0x5b8] sm:$0xf]  ;;  %v10914_v48 = vpop.f32.mrf.mxu3 }
 0x615   :  { %v17835_v28 = vld [vmem:[#allocation7 + $0x19f0] sm:$0xf0]  ;;  %v19958_v21 = vld [vmem:[#allocation7 + $0xbf4] sm:$0xf0] }
 0x616   :  { %v17838_v13 = vor.u32 %v20397_v25, %v17835_v28  ;;  %v20029_v46 = vld [vmem:[#allocation7 + $0xe34] sm:$0xf]  ;;  %11231 = vmatpush.bf16.msra.mxu0 %v14962_v63  ;;  %11167 = vmatpush.bf16.msra.mxu3 %v16430_v39  ;;  %v10955_v25 = vpop.f32.mrf.mxu2  ;;  %v14770_v28 = vor.u32 %v19638_v62, %v14769_v0  ;;  %v15282_v63 = vor.u32 %v19766_v42, %v15281_v43  ;;  %v14705_v39 = vld [vmem:[#allocation7 + $0x138] sm:$0xf] }
 0x617   :  { %v16363_v55 = vld [vmem:[#allocation7 + $0xe70] sm:$0xf0]  ;;  %v16050_v5 = vor.u32 %v19958_v21, %v16049_v15  ;;  %v19926_v0 = vld [vmem:[#allocation7 + $0xaf4] sm:$0xf0]  ;;  %v15154_v43 = vor.u32 %v19734_v59, %v15153_v41 }
 0x618   :  { %v20381_v40 = vld [vmem:[#allocation7 + $0x1934] sm:$0xf]  ;;  %11244 = vmatpush.bf16.msra.mxu1 %v15474_v54  ;;  %11208 = vmatpush.bf16.msrb.mxu2 %v17838_v13  ;;  %v16366_v31 = vor.u32 %v20029_v46, %v16363_v55  ;;  %v21534_v54 = vadd.f32 %v10914_v48, %v21520_v47  ;;  %v19622_v13 = vld [vmem:[#allocation7 + $0x174] sm:$0xf0]  ;;  %v10994_v47 = vpop.f32.mrf.mxu1 }
 0x619   :  { %v17771_v6 = vld [vmem:[#allocation7 + $0x1970] sm:$0xf0]  ;;  %v19750_v46 = vld [vmem:[#allocation7 + $0x574] sm:$0xf0] }
 0x61a   :  { %v17774_v58 = vor.u32 %v20381_v40, %v17771_v6  ;;  %v20013_v32 = vld [vmem:[#allocation7 + $0xdb4] sm:$0xf]  ;;  %11232 = vmatpush.bf16.msra.mxu0 %v14898_v57  ;;  %11168 = vmatpush.bf16.msra.mxu3 %v16366_v31  ;;  %v15985_v6 = vld [vmem:[#allocation7 + $0xb38] sm:$0xf]  ;;  %v14706_v57 = vor.u32 %v19622_v13, %v14705_v39  ;;  %v10981_v44 = vpop.f32.mrf.mxu0  ;;  %v15218_v3 = vor.u32 %v19750_v46, %v15217_v53 }
 0x61b   :  { %v16299_v33 = vld [vmem:[#allocation7 + $0xdf0] sm:$0xf0]  ;;  %v17073_v21 = vld [vmem:[#allocation7 + $0x13b8] sm:$0xf] }
 0x61c   :  { %v20365_v27 = vld [vmem:[#allocation7 + $0x18b4] sm:$0xf]  ;;  %11245 = vmatpush.bf16.msra.mxu1 %v15410_v20  ;;  %11209 = vmatpush.bf16.msrb.mxu2 %v17774_v58  ;;  %v16302_v4 = vor.u32 %v20013_v32, %v16299_v33  ;;  %v14641_v20 = vld [vmem:[#allocation7 + $0xb8] sm:$0xf]  ;;  %v15986_v32 = vor.u32 %v19942_v30, %v15985_v6  ;;  %v10916_v62 = vpop.f32.mrf.mxu3 }
 0x61d   :  { %v17707_v17 = vld [vmem:[#allocation7 + $0x18f0] sm:$0xf0]  ;;  %v19606_v58 = vld [vmem:[#allocation7 + $0xf4] sm:$0xf0] }
 0x61e   :  { %v17710_v8 = vor.u32 %v20365_v27, %v17707_v17  ;;  %v19997_v35 = vld [vmem:[#allocation7 + $0xd34] sm:$0xf]  ;;  %11233 = vmatpush.bf16.msra.mxu0 %v14834_v50  ;;  %11169 = vmatpush.bf16.msra.mxu3 %v16302_v4  ;;  %v14642_v4 = vor.u32 %v19606_v58, %v14641_v20  ;;  %v20214_v48 = vld [vmem:[#allocation7 + $0x13f4] sm:$0xf0] }
 0x61f   :  { %v16235_v9 = vld [vmem:[#allocation7 + $0xd70] sm:$0xf0]  ;;  %v17585_v25 = vld [vmem:[#allocation7 + $0x17b8] sm:$0xf] }
 0x620   :  { %v20349_v19 = vld [vmem:[#allocation7 + $0x1834] sm:$0xf]  ;;  %11246 = vmatpush.bf16.msra.mxu1 %v15346_v12  ;;  %11210 = vmatpush.bf16.msrb.mxu2 %v17710_v8  ;;  %v16238_v7 = vor.u32 %v19997_v35, %v16235_v9  ;;  %v15921_v12 = vld [vmem:[#allocation7 + $0xab8] sm:$0xf] }
 0x621   :  { %v17643_v34 = vld [vmem:[#allocation7 + $0x1870] sm:$0xf0]  ;;  %v14577_v8 = vld [vmem:[#allocation7 + $0x38] sm:$0xf]  ;;  %v15922_v15 = vor.u32 %v19926_v0, %v15921_v12 }
 0x622   :  { %v17646_v45 = vor.u32 %v20349_v19, %v17643_v34  ;;  %v19981_v55 = vld [vmem:[#allocation7 + $0xcb4] sm:$0xf]  ;;  %11234 = vmatpush.bf16.msra.mxu0 %v14770_v28  ;;  %11170 = vmatpush.bf16.msra.mxu3 %v16238_v7  ;;  %v19590_v35 = vld [vmem:[#allocation7 + $0x74] sm:$0xf0] }
 0x623   :  { %v16171_v40 = vld [vmem:[#allocation7 + $0xcf0] sm:$0xf0]  ;;  %v15089_v9 = vld [vmem:[#allocation7 + $0x438] sm:$0xf] }
 0x624   :  { %11247 = vmatpush.bf16.msra.mxu1 %v15282_v63  ;;  %11211 = vmatpush.bf16.msrb.mxu2 %v17646_v45  ;;  %v16174_v31 = vor.u32 %v19981_v55, %v16171_v40  ;;  %v19965_v33 = vld [vmem:[#allocation7 + $0xc34] sm:$0xf]  ;;  %v19718_v19 = vld [vmem:[#allocation7 + $0x474] sm:$0xf0]  ;;  %v14578_v45 = vor.u32 %v19590_v35, %v14577_v8  ;;  %v21540_v8 = vpop.f32.mrf.mxu2 }
 0x625   :  { %v16107_v27 = vld [vmem:[#allocation7 + $0xc70] sm:$0xf0]  ;;  %v20342_v28 = vld [vmem:[#allocation7 + $0x17f4] sm:$0xf0]  ;;  %v15090_v53 = vor.u32 %v19718_v19, %v15089_v9 }
 0x626   :  { %v20589_v17 = vld [vmem:[#allocation7 + $0x1fb4] sm:$0xf]  ;;  %11235 = vmatpush.bf16.msra.mxu0 %v14706_v57  ;;  %11171 = vmatpush.bf16.msra.mxu3 %v16174_v31  ;;  %v16110_v42 = vor.u32 %v19965_v33, %v16107_v27  ;;  %v15857_v39 = vld [vmem:[#allocation7 + $0xa38] sm:$0xf]  ;;  %v17586_v46 = vor.u32 %v20342_v28, %v17585_v25 }
 0x627   :  { %v18603_v50 = vld [vmem:[#allocation7 + $0x1ff0] sm:$0xf0]  ;;  %11212 = vmatmul.bf16.vlgmr.msrb.gmra.mxu2 %v21182_v10  ;;  %v19910_v13 = vld [vmem:[#allocation7 + $0xa74] sm:$0xf0] }
 0x628   :  { %11256 = vmatpush.bf16.msra.mxu2 %v16050_v5  ;;  %11248 = vmatpush.bf16.msra.mxu1 %v15218_v3  ;;  %v18606_v34 = vor.u32 %v20589_v17, %v18603_v50  ;;  %v20573_v63 = vld [vmem:[#allocation7 + $0x1f34] sm:$0xf]  ;;  %v17074_v5 = vor.u32 %v20214_v48, %v17073_v21  ;;  %v17009_v40 = vld [vmem:[#allocation7 + $0x1338] sm:$0xf]  ;;  %v15858_v57 = vor.u32 %v19910_v13, %v15857_v39  ;;  %v11031_v13 = vpop.f32.mrf.mxu0 }
 0x629   :  { %v18539_v7 = vld [vmem:[#allocation7 + $0x1f70] sm:$0xf0]  ;;  %v20198_v6 = vld [vmem:[#allocation7 + $0x1374] sm:$0xf0] }
 0x62a   :  { %11236 = vmatpush.bf16.msra.mxu0 %v14642_v4  ;;  %11172 = vmatpush.bf16.msra.mxu3 %v16110_v42  ;;  %v18542_v55 = vor.u32 %v20573_v63, %v18539_v7  ;;  %v17521_v30 = vld [vmem:[#allocation7 + $0x1738] sm:$0xf]  ;;  %v20557_v44 = vld [vmem:[#allocation7 + $0x1eb4] sm:$0xf]  ;;  %v17010_v58 = vor.u32 %v20198_v6, %v17009_v40  ;;  %v21542_v42 = vld [vmem:[#allocation8 + $0x8] sm:$0xff] }
 0x62b   :  { %v20326_v20 = vld [vmem:[#allocation7 + $0x1774] sm:$0xf0]  ;;  %v18475_v47 = vld [vmem:[#allocation7 + $0x1ef0] sm:$0xf0]  ;;  %v4634_v35 = vperm.slane %v21542_v42, 4 }
 0x62c   :  { %11257 = vmatpush.bf16.msra.mxu2 %v15986_v32  ;;  %11249 = vmatpush.bf16.msra.mxu1 %v15154_v43  ;;  %v15793_v3 = vld [vmem:[#allocation7 + $0x9b8] sm:$0xf]  ;;  %v17522_v41 = vor.u32 %v20326_v20, %v17521_v30  ;;  %v18478_v59 = vor.u32 %v20557_v44, %v18475_v47  ;;  %v20541_v12 = vld [vmem:[#allocation7 + $0x1e34] sm:$0xf]  ;;  %v11044_v30 = vpop.f32.mrf.mxu1 }
 0x62d   :  { %11173 = vmatmul.bf16.vlgmr.msra.gmra.mxu3 %v21142_v29  ;;  %v19894_v31 = vld [vmem:[#allocation7 + $0x9f4] sm:$0xf0]  ;;  %v18411_v0 = vld [vmem:[#allocation7 + $0x1e70] sm:$0xf0]  ;;  %v11032_v6 = vadd.f32 %v11031_v13, %v4634_v35 }
 0x62e   :  { %11217 = vmatpush.bf16.msrb.mxu3 %v18606_v34  ;;  %11237 = vmatpush.bf16.msra.mxu0 %v14578_v45  ;;  %v16945_v32 = vld [vmem:[#allocation7 + $0x12b8] sm:$0xf]  ;;  %v15794_v17 = vor.u32 %v19894_v31, %v15793_v3  ;;  %v18414_v19 = vor.u32 %v20541_v12, %v18411_v0  ;;  %v20525_v28 = vld [vmem:[#allocation7 + $0x1db4] sm:$0xf] }
 0x62f   :  { %v20182_v33 = vld [vmem:[#allocation7 + $0x12f4] sm:$0xf0]  ;;  %v18347_v63 = vld [vmem:[#allocation7 + $0x1df0] sm:$0xf0] }
 0x630   :  { %11258 = vmatpush.bf16.msra.mxu2 %v15922_v15  ;;  %11250 = vmatpush.bf16.msra.mxu1 %v15090_v53  ;;  %v17457_v27 = vld [vmem:[#allocation7 + $0x16b8] sm:$0xf]  ;;  %v16946_v43 = vor.u32 %v20182_v33, %v16945_v32  ;;  %v20509_v44 = vld [vmem:[#allocation7 + $0x1d34] sm:$0xf] }
 0x631   :  { %11238 = vmatmul.bf16.vlgmr.msra.gmra.mxu0 %v21135_v24  ;;  %v20310_v50 = vld [vmem:[#allocation7 + $0x16f4] sm:$0xf0]  ;;  %v18283_v47 = vld [vmem:[#allocation7 + $0x1d70] sm:$0xf0] }
 0x632   :  { %11282 = vmatpush.bf16.msrb.mxu0 %v17074_v5  ;;  %11218 = vmatpush.bf16.msrb.mxu3 %v18542_v55  ;;  %v15729_v62 = vld [vmem:[#allocation7 + $0x938] sm:$0xf]  ;;  %v17458_v9 = vor.u32 %v20310_v50, %v17457_v27  ;;  %v18350_v5 = vor.u32 %v20525_v28, %v18347_v63  ;;  %v18286_v12 = vor.u32 %v20509_v44, %v18283_v47 }
 0x633   :  { %11251 = vmatmul.bf16.vlgmr.msra.gmra.mxu1 %v21137_v1  ;;  %v19878_v4 = vld [vmem:[#allocation7 + $0x974] sm:$0xf0] }
 0x634   :  { %11295 = vmatpush.bf16.msrb.mxu1 %v17586_v46  ;;  %11259 = vmatpush.bf16.msra.mxu2 %v15858_v57  ;;  %v16881_v34 = vld [vmem:[#allocation7 + $0x1238] sm:$0xf]  ;;  %v15730_v48 = vor.u32 %v19878_v4, %v15729_v62 }
 0x635   :  { %v20166_v15 = vld [vmem:[#allocation7 + $0x1274] sm:$0xf0] }
 0x636   :  { %11283 = vmatpush.bf16.msrb.mxu0 %v17010_v58  ;;  %11219 = vmatpush.bf16.msrb.mxu3 %v18478_v59  ;;  %v17393_v21 = vld [vmem:[#allocation7 + $0x1638] sm:$0xf]  ;;  %v16882_v39 = vor.u32 %v20166_v15, %v16881_v34  ;;  %v21545_v58 = vadd.f32 %v11044_v30, %v11032_v6  ;;  %v11007_v59 = vpop.f32.mrf.mxu2  ;;  %v20493_v34 = vld [vmem:[#allocation7 + $0x1cb4] sm:$0xf] }
 0x637   :  { %v20294_v25 = vld [vmem:[#allocation7 + $0x1674] sm:$0xf0]  ;;  %v18219_v15 = vld [vmem:[#allocation7 + $0x1cf0] sm:$0xf0] }
 0x638   :  { %11296 = vmatpush.bf16.msrb.mxu1 %v17522_v41  ;;  %11260 = vmatpush.bf16.msra.mxu2 %v15794_v17  ;;  %v15665_v7 = vld [vmem:[#allocation7 + $0x8b8] sm:$0xf]  ;;  %v17394_v53 = vor.u32 %v20294_v25, %v17393_v21  ;;  %v10966_v41 = vpop.f32.mrf.mxu3  ;;  %v18222_v13 = vor.u32 %v20493_v34, %v18219_v15  ;;  %v19678_v15 = vld [vmem:[#allocation7 + $0x33c] sm:$0xf] }
 0x639   :  { %v19862_v45 = vld [vmem:[#allocation7 + $0x8f4] sm:$0xf0]  ;;  %v10967_v17 = vadd.f32 %v10966_v41, %v21527_v51  ;;  %v11033_v51 = vpop.f32.mrf.mxu0 }
 0x63a   :  { %11284 = vmatpush.bf16.msrb.mxu0 %v16946_v43  ;;  %11220 = vmatpush.bf16.msrb.mxu3 %v18414_v19  ;;  %v16817_v46 = vld [vmem:[#allocation7 + $0x11b8] sm:$0xf]  ;;  %v15666_v57 = vor.u32 %v19862_v45, %v15665_v7  ;;  %v19806_v51 = vld [vmem:[#allocation7 + $0x73c] sm:$0xf] }
 0x63b   :  { %v20150_v55 = vld [vmem:[#allocation7 + $0x11f4] sm:$0xf0] }
 0x63c   :  { %11297 = vmatpush.bf16.msrb.mxu1 %v17458_v9  ;;  %v17329_v40 = vld [vmem:[#allocation7 + $0x15b8] sm:$0xf]  ;;  %11261 = vmatpush.bf16.msra.mxu2 %v15730_v48  ;;  %v16818_v32 = vor.u32 %v20150_v55, %v16817_v46  ;;  %v10980_v9 = vadd.f32 %v21529_v22, %v10967_v17  ;;  %v20477_v46 = vld [vmem:[#allocation7 + $0x1c34] sm:$0xf] }
 0x63d   :  { %v20278_v20 = vld [vmem:[#allocation7 + $0x15f4] sm:$0xf0]  ;;  %v18155_v55 = vld [vmem:[#allocation7 + $0x1c70] sm:$0xf0] }
 0x63e   :  { %v15601_v3 = vld [vmem:[#allocation7 + $0x838] sm:$0xf]  ;;  %11285 = vmatpush.bf16.msrb.mxu0 %v16882_v39  ;;  %11221 = vmatpush.bf16.msrb.mxu3 %v18350_v5  ;;  %v17330_v50 = vor.u32 %v20278_v20, %v17329_v40  ;;  %v10993_v45 = vadd.f32 %v21531_v56, %v10980_v9  ;;  %v11046_v39 = vpop.f32.mrf.mxu1  ;;  %v18158_v59 = vor.u32 %v20477_v46, %v18155_v55 }
 0x63f   :  { %v19846_v31 = vld [vmem:[#allocation7 + $0x874] sm:$0xf0] }
 0x640   :  { %v18097_v33 = vld [vmem:[#allocation7 + $0x1bb8] sm:$0xf]  ;;  %11298 = vmatpush.bf16.msrb.mxu1 %v17394_v53  ;;  %11262 = vmatpush.bf16.msra.mxu2 %v15666_v57  ;;  %v15602_v4 = vor.u32 %v19846_v31, %v15601_v3  ;;  %v21551_v6 = vadd.f32 %v21540_v8, %v10993_v45  ;;  %v10968_v30 = vpop.f32.mrf.mxu3 }
 0x641   :  { %v20470_v27 = vld [vmem:[#allocation7 + $0x1bf4] sm:$0xf0]  ;;  %v15411_v30 = vld [vmem:[#allocation7 + $0x6f8] sm:$0xf0] }
 0x642   :  { %v16753_v0 = vld [vmem:[#allocation7 + $0x1138] sm:$0xf]  ;;  %v18098_v19 = vor.u32 %v20470_v27, %v18097_v33  ;;  %11286 = vmatpush.bf16.msrb.mxu0 %v16818_v32  ;;  %11222 = vmatpush.bf16.msrb.mxu3 %v18286_v12  ;;  %v19694_v33 = vld [vmem:[#allocation7 + $0x3bc] sm:$0xf] }
 0x643   :  { %v20134_v62 = vld [vmem:[#allocation7 + $0x1174] sm:$0xf0]  ;;  %v15027_v27 = vld [vmem:[#allocation7 + $0x3f8] sm:$0xf0] }
 0x644   :  { %v17265_v43 = vld [vmem:[#allocation7 + $0x1538] sm:$0xf]  ;;  %v16754_v21 = vor.u32 %v20134_v62, %v16753_v0  ;;  %11299 = vmatpush.bf16.msrb.mxu1 %v17330_v50  ;;  %11263 = vmatpush.bf16.msra.mxu2 %v15602_v4  ;;  %v19822_v50 = vld [vmem:[#allocation7 + $0x7bc] sm:$0xf] }
 0x645   :  { %v20262_v35 = vld [vmem:[#allocation7 + $0x1574] sm:$0xf0]  ;;  %v15539_v12 = vld [vmem:[#allocation7 + $0x7f8] sm:$0xf0] }
 0x646   :  { %v18033_v48 = vld [vmem:[#allocation7 + $0x1b38] sm:$0xf]  ;;  %v17266_v28 = vor.u32 %v20262_v35, %v17265_v43  ;;  %11287 = vmatpush.bf16.msrb.mxu0 %v16754_v21  ;;  %11223 = vmatpush.bf16.msrb.mxu3 %v18222_v13  ;;  %v15542_v34 = vor.u32 %v19822_v50, %v15539_v12  ;;  %v14963_v21 = vld [vmem:[#allocation7 + $0x378] sm:$0xf0] }
 0x647   :  { %v20454_v25 = vld [vmem:[#allocation7 + $0x1b74] sm:$0xf0]  ;;  %11264 = vmatmul.bf16.vlgmr.msra.gmra.mxu2 %v21139_v26  ;;  %v14966_v13 = vor.u32 %v19678_v15, %v14963_v21  ;;  %v19758_v21 = vld [vmem:[#allocation7 + $0x5bc] sm:$0xf] }
 0x648   :  { %v16689_v63 = vld [vmem:[#allocation7 + $0x10b8] sm:$0xf]  ;;  %11308 = vmatpush.bf16.msrb.mxu2 %v18098_v19  ;;  %v18034_v5 = vor.u32 %v20454_v25, %v18033_v48  ;;  %11300 = vmatpush.bf16.msrb.mxu1 %v17266_v28  ;;  %v15030_v19 = vor.u32 %v19694_v33, %v15027_v27  ;;  %v15475_v28 = vld [vmem:[#allocation7 + $0x778] sm:$0xf0] }
 0x649   :  { %v20118_v7 = vld [vmem:[#allocation7 + $0x10f4] sm:$0xf0] }
 0x64a   :  { %v17201_v53 = vld [vmem:[#allocation7 + $0x14b8] sm:$0xf]  ;;  %v16690_v57 = vor.u32 %v20118_v7, %v16689_v63  ;;  %11224 = vmatpush.bf16.msrb.mxu3 %v18158_v59  ;;  %v14835_v59 = vld [vmem:[#allocation7 + $0x278] sm:$0xf0] }
 0x64b   :  { %v20246_v22 = vld [vmem:[#allocation7 + $0x14f4] sm:$0xf0] }
 0x64c   :  { %v16561_v40 = vld [vmem:[#allocation7 + $0xfb8] sm:$0xf]  ;;  %v17202_v56 = vor.u32 %v20246_v22, %v17201_v53  ;;  %11309 = vmatpush.bf16.msrb.mxu2 %v18034_v5  ;;  %11288 = vmatpush.bf16.msrb.mxu0 %v16690_v57  ;;  %v15478_v53 = vor.u32 %v19806_v51, %v15475_v28  ;;  %v19662_v22 = vld [vmem:[#allocation7 + $0x2bc] sm:$0xf] }
 0x64d   :  { %v20086_v20 = vld [vmem:[#allocation7 + $0xff4] sm:$0xf0]  ;;  %11225 = vmatmul.bf16.vlgmr.msrb.gmra.mxu3 %v21197_v18  ;;  %v14899_v5 = vld [vmem:[#allocation7 + $0x2f8] sm:$0xf0] }
 0x64e   :  { %v17969_v44 = vld [vmem:[#allocation7 + $0x1ab8] sm:$0xf]  ;;  %v16562_v8 = vor.u32 %v20086_v20, %v16561_v40  ;;  %11301 = vmatpush.bf16.msrb.mxu1 %v17202_v56  ;;  %v19790_v40 = vld [vmem:[#allocation7 + $0x6bc] sm:$0xf]  ;;  %v11057_v56 = vpop.f32.mrf.mxu2 }
 0x64f   :  { %v20438_v47 = vld [vmem:[#allocation7 + $0x1af4] sm:$0xf0] }
 0x650   :  { %v16625_v3 = vld [vmem:[#allocation7 + $0x1038] sm:$0xf]  ;;  %v17970_v17 = vor.u32 %v20438_v47, %v17969_v44  ;;  %11269 = vmatpush.bf16.msra.mxu3 %v16562_v8  ;;  %v19774_v8 = vld [vmem:[#allocation7 + $0x63c] sm:$0xf] }
 0x651   :  { %v20102_v31 = vld [vmem:[#allocation7 + $0x1074] sm:$0xf0] }
 0x652   :  { %v17137_v41 = vld [vmem:[#allocation7 + $0x1438] sm:$0xf]  ;;  %v16626_v62 = vor.u32 %v20102_v31, %v16625_v3  ;;  %11310 = vmatpush.bf16.msrb.mxu2 %v17970_v17  ;;  %v14902_v3 = vor.u32 %v19662_v22, %v14899_v5  ;;  %v15414_v31 = vor.u32 %v19790_v40, %v15411_v30  ;;  %v15347_v17 = vld [vmem:[#allocation7 + $0x678] sm:$0xf0] }
 0x653   :  { %v20230_v32 = vld [vmem:[#allocation7 + $0x1474] sm:$0xf0]  ;;  %v19614_v40 = vld [vmem:[#allocation7 + $0x13c] sm:$0xf] }
 0x654   :  { %v16497_v0 = vld [vmem:[#allocation7 + $0xf38] sm:$0xf]  ;;  %v17138_v9 = vor.u32 %v20230_v32, %v17137_v41  ;;  %11289 = vmatpush.bf16.msrb.mxu0 %v16626_v62  ;;  %v19646_v41 = vld [vmem:[#allocation7 + $0x23c] sm:$0xf]  ;;  %v21558_v32 = vadd.f32 %v11057_v56, %v21545_v58  ;;  %v21562_v58 = vpop.f32.mrf.mxu1 }
 0x655   :  { %v20070_v4 = vld [vmem:[#allocation7 + $0xf74] sm:$0xf0]  ;;  %v14707_v30 = vld [vmem:[#allocation7 + $0x178] sm:$0xf0] }
 0x656   :  { %v17905_v43 = vld [vmem:[#allocation7 + $0x1a38] sm:$0xf]  ;;  %v16498_v48 = vor.u32 %v20070_v4, %v16497_v0  ;;  %11302 = vmatpush.bf16.msrb.mxu1 %v17138_v9  ;;  %v14838_v4 = vor.u32 %v19646_v41, %v14835_v59  ;;  %v14771_v9 = vld [vmem:[#allocation7 + $0x1f8] sm:$0xf0]  ;;  %v14710_v41 = vor.u32 %v19614_v40, %v14707_v30 }
 0x657   :  { %v20422_v35 = vld [vmem:[#allocation7 + $0x1a74] sm:$0xf0]  ;;  %11290 = vmatmul.bf16.vlgmr.msrb.gmra.mxu0 %v21157_v37  ;;  %v19598_v59 = vld [vmem:[#allocation7 + $0xbc] sm:$0xf] }
 0x658   :  { %v17906_v25 = vor.u32 %v20422_v35, %v17905_v43  ;;  %v16433_v63 = vld [vmem:[#allocation7 + $0xeb8] sm:$0xf]  ;;  %11334 = vmatpush.bf16.msra.mxu0 %v15030_v19  ;;  %11270 = vmatpush.bf16.msra.mxu3 %v16498_v48  ;;  %v15350_v43 = vor.u32 %v19774_v8, %v15347_v17  ;;  %v19630_v35 = vld [vmem:[#allocation7 + $0x1bc] sm:$0xf]  ;;  %v21560_v19 = vpop.f32.mrf.mxu0 }
 0x659   :  { %v20054_v7 = vld [vmem:[#allocation7 + $0xef4] sm:$0xf0]  ;;  %11303 = vmatmul.bf16.vlgmr.msrb.gmra.mxu1 %v21159_v11  ;;  %v15283_v48 = vld [vmem:[#allocation7 + $0x5f8] sm:$0xf0] }
 0x65a   :  { %v17841_v45 = vld [vmem:[#allocation7 + $0x19b8] sm:$0xf]  ;;  %11347 = vmatpush.bf16.msra.mxu1 %v15542_v34  ;;  %11311 = vmatpush.bf16.msrb.mxu2 %v17906_v25  ;;  %v16434_v46 = vor.u32 %v20054_v7, %v16433_v63  ;;  %v19950_v7 = vld [vmem:[#allocation7 + $0xbbc] sm:$0xf]  ;;  %v15286_v22 = vor.u32 %v19758_v21, %v15283_v48 }
 0x65b   :  { %v20406_v39 = vld [vmem:[#allocation7 + $0x19f4] sm:$0xf0]  ;;  %v14643_v17 = vld [vmem:[#allocation7 + $0xf8] sm:$0xf0] }
 0x65c   :  { %v17842_v55 = vor.u32 %v20406_v39, %v17841_v45  ;;  %v16369_v57 = vld [vmem:[#allocation7 + $0xe38] sm:$0xf]  ;;  %11335 = vmatpush.bf16.msra.mxu0 %v14966_v13  ;;  %11271 = vmatpush.bf16.msra.mxu3 %v16434_v46  ;;  %v16051_v45 = vld [vmem:[#allocation7 + $0xbf8] sm:$0xf0]  ;;  %v11018_v39 = vpop.f32.mrf.mxu3  ;;  %v11059_v13 = vpop.f32.mrf.mxu2  ;;  %v14646_v21 = vor.u32 %v19598_v59, %v14643_v17 }
 0x65d   :  { %v20038_v20 = vld [vmem:[#allocation7 + $0xe74] sm:$0xf0]  ;;  %v21565_v5 = vadd.f32 %v11018_v39, %v21551_v6  ;;  %v11098_v6 = vpop.f32.mrf.mxu1  ;;  %v19582_v48 = vld [vmem:[#allocation7 + $0x3c] sm:$0xf] }
 0x65e   :  { %v17777_v44 = vld [vmem:[#allocation7 + $0x1938] sm:$0xf]  ;;  %11348 = vmatpush.bf16.msra.mxu1 %v15478_v53  ;;  %11312 = vmatpush.bf16.msrb.mxu2 %v17842_v55  ;;  %v16370_v33 = vor.u32 %v20038_v20, %v16369_v57  ;;  %v14774_v53 = vor.u32 %v19630_v35, %v14771_v9  ;;  %v19742_v57 = vld [vmem:[#allocation7 + $0x53c] sm:$0xf]  ;;  %v16054_v20 = vor.u32 %v19950_v7, %v16051_v45 }
 0x65f   :  { %v20390_v47 = vld [vmem:[#allocation7 + $0x1974] sm:$0xf0]  ;;  %v19918_v9 = vld [vmem:[#allocation7 + $0xabc] sm:$0xf] }
 0x660   :  { %v17778_v27 = vor.u32 %v20390_v47, %v17777_v44  ;;  %v16305_v50 = vld [vmem:[#allocation7 + $0xdb8] sm:$0xf]  ;;  %11336 = vmatpush.bf16.msra.mxu0 %v14902_v3  ;;  %11272 = vmatpush.bf16.msra.mxu3 %v16370_v33  ;;  %v15219_v44 = vld [vmem:[#allocation7 + $0x578] sm:$0xf0]  ;;  %v11085_v33 = vpop.f32.mrf.mxu0 }
 0x661   :  { %v20022_v12 = vld [vmem:[#allocation7 + $0xdf4] sm:$0xf0]  ;;  %v19934_v3 = vld [vmem:[#allocation7 + $0xb3c] sm:$0xf] }
 0x662   :  { %v17713_v0 = vld [vmem:[#allocation7 + $0x18b8] sm:$0xf]  ;;  %11349 = vmatpush.bf16.msra.mxu1 %v15414_v31  ;;  %11313 = vmatpush.bf16.msrb.mxu2 %v17778_v27  ;;  %v16306_v34 = vor.u32 %v20022_v12, %v16305_v50  ;;  %v15987_v31 = vld [vmem:[#allocation7 + $0xb78] sm:$0xf0]  ;;  %v15222_v27 = vor.u32 %v19742_v57, %v15219_v44 }
 0x663   :  { %v20374_v62 = vld [vmem:[#allocation7 + $0x18f4] sm:$0xf0]  ;;  %v19726_v50 = vld [vmem:[#allocation7 + $0x4bc] sm:$0xf] }
 0x664   :  { %v17714_v15 = vor.u32 %v20374_v62, %v17713_v0  ;;  %v16241_v25 = vld [vmem:[#allocation7 + $0xd38] sm:$0xf]  ;;  %11337 = vmatpush.bf16.msra.mxu0 %v14838_v4  ;;  %11273 = vmatpush.bf16.msra.mxu3 %v16306_v34  ;;  %v15155_v12 = vld [vmem:[#allocation7 + $0x4f8] sm:$0xf0]  ;;  %v15990_v0 = vor.u32 %v19934_v3, %v15987_v31 }
 0x665   :  { %v20006_v51 = vld [vmem:[#allocation7 + $0xd74] sm:$0xf0]  ;;  %v15923_v34 = vld [vmem:[#allocation7 + $0xaf8] sm:$0xf0] }
 0x666   :  { %v17649_v28 = vld [vmem:[#allocation7 + $0x1838] sm:$0xf]  ;;  %11350 = vmatpush.bf16.msra.mxu1 %v15350_v43  ;;  %11314 = vmatpush.bf16.msrb.mxu2 %v17714_v15  ;;  %v16242_v46 = vor.u32 %v20006_v51, %v16241_v25  ;;  %v11020_v15 = vpop.f32.mrf.mxu3  ;;  %v15158_v25 = vor.u32 %v19726_v50, %v15155_v12  ;;  %v15091_v7 = vld [vmem:[#allocation7 + $0x478] sm:$0xf0]  ;;  %v15926_v39 = vor.u32 %v19918_v9, %v15923_v34 }
 0x667   :  { %v20358_v63 = vld [vmem:[#allocation7 + $0x1874] sm:$0xf0]  ;;  %v20206_v13 = vld [vmem:[#allocation7 + $0x13bc] sm:$0xf] }
 0x668   :  { %v17650_v55 = vor.u32 %v20358_v63, %v17649_v28  ;;  %v16177_v47 = vld [vmem:[#allocation7 + $0xcb8] sm:$0xf]  ;;  %11338 = vmatpush.bf16.msra.mxu0 %v14774_v53  ;;  %11274 = vmatpush.bf16.msra.mxu3 %v16242_v46  ;;  %v14579_v28 = vld [vmem:[#allocation7 + $0x78] sm:$0xf0] }
 0x669   :  { %v19990_v56 = vld [vmem:[#allocation7 + $0xcf4] sm:$0xf0]  ;;  %v19710_v63 = vld [vmem:[#allocation7 + $0x43c] sm:$0xf]  ;;  %v14582_v30 = vor.u32 %v19582_v48, %v14579_v28 }
 0x66a   :  { %11351 = vmatpush.bf16.msra.mxu1 %v15286_v22  ;;  %11315 = vmatpush.bf16.msrb.mxu2 %v17650_v55  ;;  %v16178_v8 = vor.u32 %v19990_v56, %v16177_v47  ;;  %v16113_v62 = vld [vmem:[#allocation7 + $0xc38] sm:$0xf]  ;;  %v17075_v53 = vld [vmem:[#allocation7 + $0x13f8] sm:$0xf0]  ;;  %v15094_v44 = vor.u32 %v19710_v63, %v15091_v7  ;;  %v4635_v63 = vperm.slane %v21542_v42, 5 }
 0x66b   :  { %v19974_v4 = vld [vmem:[#allocation7 + $0xc74] sm:$0xf0]  ;;  %v20334_v22 = vld [vmem:[#allocation7 + $0x17bc] sm:$0xf]  ;;  %v17078_v47 = vor.u32 %v20206_v13, %v17075_v53 }
 0x66c   :  { %v18609_v43 = vld [vmem:[#allocation7 + $0x1fb8] sm:$0xf]  ;;  %11339 = vmatpush.bf16.msra.mxu0 %v14710_v41  ;;  %11275 = vmatpush.bf16.msra.mxu3 %v16178_v8  ;;  %v16114_v51 = vor.u32 %v19974_v4, %v16113_v62  ;;  %v17587_v46 = vld [vmem:[#allocation7 + $0x17f8] sm:$0xf0] }
 0x66d   :  { %v20598_v35 = vld [vmem:[#allocation7 + $0x1ff4] sm:$0xf0]  ;;  %11316 = vmatmul.bf16.vlgmr.msrb.gmra.mxu2 %v21182_v10  ;;  %v19902_v57 = vld [vmem:[#allocation7 + $0xa3c] sm:$0xf]  ;;  %v17590_v56 = vor.u32 %v20334_v22, %v17587_v46 }
 0x66e   :  { %11360 = vmatpush.bf16.msra.mxu2 %v16054_v20  ;;  %11352 = vmatpush.bf16.msra.mxu1 %v15222_v27  ;;  %v18610_v45 = vor.u32 %v20598_v35, %v18609_v43  ;;  %v18545_v55 = vld [vmem:[#allocation7 + $0x1f38] sm:$0xf]  ;;  %v15859_v20 = vld [vmem:[#allocation7 + $0xa78] sm:$0xf0] }
 0x66f   :  { %v20582_v40 = vld [vmem:[#allocation7 + $0x1f74] sm:$0xf0]  ;;  %v20190_v31 = vld [vmem:[#allocation7 + $0x133c] sm:$0xf]  ;;  %v15862_v33 = vor.u32 %v19902_v57, %v15859_v20  ;;  %v11135_v57 = vpop.f32.mrf.mxu0 }
 0x670   :  { %11340 = vmatpush.bf16.msra.mxu0 %v14646_v21  ;;  %11276 = vmatpush.bf16.msra.mxu3 %v16114_v51  ;;  %v18546_v3 = vor.u32 %v20582_v40, %v18545_v55  ;;  %v17011_v41 = vld [vmem:[#allocation7 + $0x1378] sm:$0xf0]  ;;  %v18481_v27 = vld [vmem:[#allocation7 + $0x1eb8] sm:$0xf]  ;;  %v21571_v51 = vpop.f32.mrf.mxu2 }
 0x671   :  { %v20318_v59 = vld [vmem:[#allocation7 + $0x173c] sm:$0xf]  ;;  %v20566_v8 = vld [vmem:[#allocation7 + $0x1ef4] sm:$0xf0]  ;;  %v17014_v12 = vor.u32 %v20190_v31, %v17011_v41  ;;  %v11148_v31 = vpop.f32.mrf.mxu1 }
 0x672   :  { %11361 = vmatpush.bf16.msra.mxu2 %v15990_v0  ;;  %11353 = vmatpush.bf16.msra.mxu1 %v15158_v25  ;;  %v17523_v6 = vld [vmem:[#allocation7 + $0x1778] sm:$0xf0]  ;;  %v18482_v62 = vor.u32 %v20566_v8, %v18481_v27  ;;  %v18417_v15 = vld [vmem:[#allocation7 + $0x1e38] sm:$0xf] }
 0x673   :  { %11277 = vmatmul.bf16.vlgmr.msra.gmra.mxu3 %v21142_v29  ;;  %v19886_v17 = vld [vmem:[#allocation7 + $0x9bc] sm:$0xf]  ;;  %v17526_v0 = vor.u32 %v20318_v59, %v17523_v6  ;;  %v20550_v21 = vld [vmem:[#allocation7 + $0x1e74] sm:$0xf0] }
 0x674   :  { %11321 = vmatpush.bf16.msrb.mxu3 %v18610_v45  ;;  %11341 = vmatpush.bf16.msra.mxu0 %v14582_v30  ;;  %v15795_v50 = vld [vmem:[#allocation7 + $0x9f8] sm:$0xf0]  ;;  %v18418_v45 = vor.u32 %v20550_v21, %v18417_v15  ;;  %v18353_v46 = vld [vmem:[#allocation7 + $0x1db8] sm:$0xf] }
 0x675   :  { %v20174_v4 = vld [vmem:[#allocation7 + $0x12bc] sm:$0xf]  ;;  %v15798_v9 = vor.u32 %v19886_v17, %v15795_v50  ;;  %v20518_v6 = vld [vmem:[#allocation7 + $0x1d74] sm:$0xf0]  ;;  %v11070_v50 = vpop.f32.mrf.mxu3 }
 0x676   :  { %11362 = vmatpush.bf16.msra.mxu2 %v15926_v39  ;;  %11354 = vmatpush.bf16.msra.mxu1 %v15094_v44  ;;  %v16947_v43 = vld [vmem:[#allocation7 + $0x12f8] sm:$0xf0] }
 0x677   :  { %v20302_v35 = vld [vmem:[#allocation7 + $0x16bc] sm:$0xf]  ;;  %11342 = vmatmul.bf16.vlgmr.msra.gmra.mxu0 %v21135_v24  ;;  %v16950_v28 = vor.u32 %v20174_v4, %v16947_v43  ;;  %v11071_v43 = vadd.f32 %v11070_v50, %v21558_v32  ;;  %v11137_v32 = vpop.f32.mrf.mxu0 }
 0x678   :  { %11386 = vmatpush.bf16.msrb.mxu0 %v17078_v47  ;;  %11322 = vmatpush.bf16.msrb.mxu3 %v18546_v3  ;;  %v17459_v34 = vld [vmem:[#allocation7 + $0x16f8] sm:$0xf0]  ;;  %v11136_v3 = vadd.f32 %v11135_v57, %v4635_v63 }
 0x679   :  { %11355 = vmatmul.bf16.vlgmr.msra.gmra.mxu1 %v21137_v1  ;;  %v19870_v48 = vld [vmem:[#allocation7 + $0x93c] sm:$0xf]  ;;  %v17462_v7 = vor.u32 %v20302_v35, %v17459_v34  ;;  %v20534_v1 = vld [vmem:[#allocation7 + $0x1df4] sm:$0xf0] }
 0x67a   :  { %11399 = vmatpush.bf16.msrb.mxu1 %v17590_v56  ;;  %11363 = vmatpush.bf16.msra.mxu2 %v15862_v33  ;;  %v15731_v25 = vld [vmem:[#allocation7 + $0x978] sm:$0xf0]  ;;  %v18354_v20 = vor.u32 %v20534_v1, %v18353_v46  ;;  %v18289_v33 = vld [vmem:[#allocation7 + $0x1d38] sm:$0xf]  ;;  %v21574_v17 = vadd.f32 %v11148_v31, %v11136_v3 }
 0x67b   :  { %v20158_v39 = vld [vmem:[#allocation7 + $0x123c] sm:$0xf]  ;;  %v15734_v53 = vor.u32 %v19870_v48, %v15731_v25 }
 0x67c   :  { %11387 = vmatpush.bf16.msrb.mxu0 %v17014_v12  ;;  %11323 = vmatpush.bf16.msrb.mxu3 %v18482_v62  ;;  %v16883_v24 = vld [vmem:[#allocation7 + $0x1278] sm:$0xf0]  ;;  %v11111_v12 = vpop.f32.mrf.mxu2 }
 0x67d   :  { %v20286_v13 = vld [vmem:[#allocation7 + $0x163c] sm:$0xf]  ;;  %v16886_v30 = vor.u32 %v20158_v39, %v16883_v24 }
 0x67e   :  { %11400 = vmatpush.bf16.msrb.mxu1 %v17526_v0  ;;  %11364 = vmatpush.bf16.msra.mxu2 %v15798_v9  ;;  %v17395_v22 = vld [vmem:[#allocation7 + $0x1678] sm:$0xf0]  ;;  %v18290_v9 = vor.u32 %v20518_v6, %v18289_v33 }
 0x67f   :  { %v19854_v55 = vld [vmem:[#allocation7 + $0x8bc] sm:$0xf]  ;;  %v17398_v42 = vor.u32 %v20286_v13, %v17395_v22 }
 0x680   :  { %v15667_v40 = vld [vmem:[#allocation7 + $0x8f8] sm:$0xf0]  ;;  %11388 = vmatpush.bf16.msrb.mxu0 %v16950_v28  ;;  %11324 = vmatpush.bf16.msrb.mxu3 %v18418_v45  ;;  %v11084_v28 = vadd.f32 %v21560_v19, %v11071_v43  ;;  %v20502_v45 = vld [vmem:[#allocation7 + $0x1cf4] sm:$0xf0] }
 0x681   :  { %v20142_v44 = vld [vmem:[#allocation7 + $0x11bc] sm:$0xf]  ;;  %v15670_v41 = vor.u32 %v19854_v55, %v15667_v40  ;;  %v11150_v55 = vpop.f32.mrf.mxu1 }
 0x682   :  { %11401 = vmatpush.bf16.msrb.mxu1 %v17462_v7  ;;  %v16819_v47 = vld [vmem:[#allocation7 + $0x11f8] sm:$0xf0]  ;;  %11365 = vmatpush.bf16.msra.mxu2 %v15734_v53  ;;  %v18225_v7 = vld [vmem:[#allocation7 + $0x1cb8] sm:$0xf]  ;;  %v11097_v1 = vadd.f32 %v21562_v58, %v11084_v28 }
 0x683   :  { %v20270_v56 = vld [vmem:[#allocation7 + $0x15bc] sm:$0xf]  ;;  %v16822_v0 = vor.u32 %v20142_v44, %v16819_v47  ;;  %v18226_v40 = vor.u32 %v20502_v45, %v18225_v7  ;;  %v20605_v7 = vld [vmem:[#allocation10 + $0x30] sm:$0xff] }
 0x684   :  { %v17331_v59 = vld [vmem:[#allocation7 + $0x15f8] sm:$0xf0]  ;;  %11389 = vmatpush.bf16.msrb.mxu0 %v16886_v30  ;;  %11325 = vmatpush.bf16.msrb.mxu3 %v18354_v20  ;;  %v20486_v20 = vld [vmem:[#allocation7 + $0x1c74] sm:$0xf0]  ;;  %v21580_v47 = vadd.f32 %v21571_v51, %v11097_v1  ;;  %v20613_v45 = vld [vmem:[#allocation10 + $0x70] sm:$0xff] }
 0x685   :  { %v19838_v27 = vld [vmem:[#allocation7 + $0x83c] sm:$0xf]  ;;  %v17334_v35 = vor.u32 %v20270_v56, %v17331_v59  ;;  %v11072_v56 = vpop.f32.mrf.mxu3 }
 0x686   :  { %v15603_v8 = vld [vmem:[#allocation7 + $0x878] sm:$0xf0]  ;;  %11402 = vmatpush.bf16.msrb.mxu1 %v17398_v42  ;;  %11366 = vmatpush.bf16.msra.mxu2 %v15670_v41  ;;  %v18161_v42 = vld [vmem:[#allocation7 + $0x1c38] sm:$0xf] }
 0x687   :  { %v20462_v62 = vld [vmem:[#allocation7 + $0x1bbc] sm:$0xf]  ;;  %v15606_v21 = vor.u32 %v19838_v27, %v15603_v8  ;;  %v18162_v27 = vor.u32 %v20486_v20, %v18161_v42 }
 0x688   :  { %v18099_v4 = vld [vmem:[#allocation7 + $0x1bf8] sm:$0xf0]  ;;  %11390 = vmatpush.bf16.msrb.mxu0 %v16822_v0  ;;  %11326 = vmatpush.bf16.msrb.mxu3 %v18290_v9 }
 0x689   :  { %v20126_v34 = vld [vmem:[#allocation7 + $0x113c] sm:$0xf]  ;;  %v18102_v63 = vor.u32 %v20462_v62, %v18099_v4 }
 0x68a   :  { %v16755_v15 = vld [vmem:[#allocation7 + $0x1178] sm:$0xf0]  ;;  %11403 = vmatpush.bf16.msrb.mxu1 %v17334_v35  ;;  %11367 = vmatpush.bf16.msra.mxu2 %v15606_v21 }
 0x68b   :  { %v20254_v48 = vld [vmem:[#allocation7 + $0x153c] sm:$0xf]  ;;  %v16758_v39 = vor.u32 %v20126_v34, %v16755_v15  ;;  %v20614_v34 = vld [vmem:[#allocation10 + $0x78] sm:$0xff] }
 0x68c   :  { %v17267_v25 = vld [vmem:[#allocation7 + $0x1578] sm:$0xf0]  ;;  %11327 = vmatpush.bf16.msrb.mxu3 %v18226_v40 }
 0x68d   :  { %v20446_v24 = vld [vmem:[#allocation7 + $0x1b3c] sm:$0xf]  ;;  %v17270_v53 = vor.u32 %v20254_v48, %v17267_v25  ;;  %11391 = vmatpush.bf16.msrb.mxu0 %v16758_v39  ;;  %11368 = vmatmul.bf16.vlgmr.msra.gmra.mxu2 %v21139_v26  ;;  %v20606_v26 = vld [vmem:[#allocation10 + $0x38] sm:$0xff] }
 0x68e   :  { %v18035_v13 = vld [vmem:[#allocation7 + $0x1b78] sm:$0xf0]  ;;  %11412 = vmatpush.bf16.msrb.mxu2 %v18102_v63  ;;  %v21589_v56 = vpop.f32.mrf.mxu0 }
 0x68f   :  { %v20110_v22 = vld [vmem:[#allocation7 + $0x10bc] sm:$0xf]  ;;  %v18038_v57 = vor.u32 %v20446_v24, %v18035_v13  ;;  %11404 = vmatpush.bf16.msrb.mxu1 %v17270_v53 }
 0x690   :  { %v16691_v46 = vld [vmem:[#allocation7 + $0x10f8] sm:$0xf0]  ;;  %11328 = vmatpush.bf16.msrb.mxu3 %v18162_v27 }
 0x691   :  { %v20238_v30 = vld [vmem:[#allocation7 + $0x14bc] sm:$0xf]  ;;  %v16694_v3 = vor.u32 %v20110_v22, %v16691_v46  ;;  %v11161_v46 = vpop.f32.mrf.mxu2 }
 0x692   :  { %v17203_v19 = vld [vmem:[#allocation7 + $0x14f8] sm:$0xf0]  ;;  %11413 = vmatpush.bf16.msrb.mxu2 %v18038_v57  ;;  %v21587_v40 = vadd.f32 %v11161_v46, %v21574_v17  ;;  %v11438_v46 = vmax.f32 %v21246_v61, 0.0  ;;  %v20637_v61 = vld [vmem:[#allocation10 + $0x130] sm:$0xff] }
 0x693   :  { %v20078_v44 = vld [vmem:[#allocation7 + $0xfbc] sm:$0xf]  ;;  %v17206_v58 = vor.u32 %v20238_v30, %v17203_v19  ;;  %11392 = vmatpush.bf16.msrb.mxu0 %v16694_v3  ;;  %11329 = vmatmul.bf16.vlgmr.msrb.gmra.mxu3 %v21197_v18  ;;  %v21591_v3 = vpop.f32.mrf.mxu1 }
 0x694   :  { %v16563_v31 = vld [vmem:[#allocation7 + $0xff8] sm:$0xf0] }
 0x695   :  { %v20430_v41 = vld [vmem:[#allocation7 + $0x1abc] sm:$0xf]  ;;  %v16566_v12 = vor.u32 %v20078_v44, %v16563_v31  ;;  %11405 = vmatpush.bf16.msrb.mxu1 %v17206_v58  ;;  %v20611_v44 = vld [vmem:[#allocation10 + $0x60] sm:$0xff] }
 0x696   :  { %v17971_v59 = vld [vmem:[#allocation7 + $0x1af8] sm:$0xf0] }
 0x697   :  { %v20094_v33 = vld [vmem:[#allocation7 + $0x103c] sm:$0xf]  ;;  %v17974_v51 = vor.u32 %v20430_v41, %v17971_v59  ;;  %11373 = vmatpush.bf16.msra.mxu3 %v16566_v12 }
 0x698   :  { %v16627_v6 = vld [vmem:[#allocation7 + $0x1078] sm:$0xf0] }
 0x699   :  { %v20222_v8 = vld [vmem:[#allocation7 + $0x143c] sm:$0xf]  ;;  %v16630_v62 = vor.u32 %v20094_v33, %v16627_v6  ;;  %11414 = vmatpush.bf16.msrb.mxu2 %v17974_v51  ;;  %v11122_v6 = vpop.f32.mrf.mxu3  ;;  %v11163_v27 = vpop.f32.mrf.mxu2 }
 0x69a   :  { %v17139_v50 = vld [vmem:[#allocation7 + $0x1478] sm:$0xf0]  ;;  %v21594_v12 = vadd.f32 %v11122_v6, %v21580_v47  ;;  %v20617_v6 = vld [vmem:[#allocation10 + $0x90] sm:$0xff]  ;;  %v21600_v27 = vld [vmem:[#allocation8 + $0x8] sm:$0xff] }
 0x69b   :  { %v20062_v0 = vld [vmem:[#allocation7 + $0xf3c] sm:$0xf]  ;;  %v17142_v9 = vor.u32 %v20222_v8, %v17139_v50  ;;  %11393 = vmatpush.bf16.msrb.mxu0 %v16630_v62  ;;  %v20602_v8 = vld [vmem:[#allocation10 + $0x18] sm:$0xff] }
 0x69c   :  { %v16499_v4 = vld [vmem:[#allocation7 + $0xf78] sm:$0xf0]  ;;  %v20610_v50 = vld [vmem:[#allocation10 + $0x58] sm:$0xff] }
 0x69d   :  { %v20414_v43 = vld [vmem:[#allocation7 + $0x1a3c] sm:$0xf]  ;;  %v16502_v15 = vor.u32 %v20062_v0, %v16499_v4  ;;  %11406 = vmatpush.bf16.msrb.mxu1 %v17142_v9  ;;  %v20622_v62 = vld [vmem:[#allocation10 + $0xb8] sm:$0xff]  ;;  %v11189_v9 = vpop.f32.mrf.mxu0 }
 0x69e   :  { %v17907_v35 = vld [vmem:[#allocation7 + $0x1a78] sm:$0xf0]  ;;  %11394 = vmatmul.bf16.vlgmr.msrb.gmra.mxu0 %v21157_v37 }
 0x69f   :  { %v17910_v21 = vor.u32 %v20414_v43, %v17907_v35  ;;  %v20046_v48 = vld [vmem:[#allocation7 + $0xebc] sm:$0xf]  ;;  %12498 = vmatpush.bf16.msra.mxu0 %v20606_v26  ;;  %11374 = vmatpush.bf16.msra.mxu3 %v16502_v15  ;;  %v20601_v35 = vld [vmem:[#allocation10 + $0x10] sm:$0xff]  ;;  %v11202_v26 = vpop.f32.mrf.mxu1 }
 0x6a0   :  { %v16435_v25 = vld [vmem:[#allocation7 + $0xef8] sm:$0xf0]  ;;  %11407 = vmatmul.bf16.vlgmr.msrb.gmra.mxu1 %v21159_v11  ;;  %v20603_v11 = vld [vmem:[#allocation10 + $0x20] sm:$0xff] }
 0x6a1   :  { %v20398_v28 = vld [vmem:[#allocation7 + $0x19bc] sm:$0xf]  ;;  %12511 = vmatpush.bf16.msra.mxu1 %v20614_v34  ;;  %11415 = vmatpush.bf16.msrb.mxu2 %v17910_v21  ;;  %v16438_v39 = vor.u32 %v20046_v48, %v16435_v25  ;;  %v20609_v34 = vld [vmem:[#allocation10 + $0x50] sm:$0xff] }
 0x6a2   :  { %v17843_v63 = vld [vmem:[#allocation7 + $0x19f8] sm:$0xf0]  ;;  %v20621_v21 = vld [vmem:[#allocation10 + $0xb0] sm:$0xff] }
 0x6a3   :  { %v17846_v24 = vor.u32 %v20398_v28, %v17843_v63  ;;  %v20030_v13 = vld [vmem:[#allocation7 + $0xe3c] sm:$0xf]  ;;  %12499 = vmatpush.bf16.msra.mxu0 %v20605_v7  ;;  %11375 = vmatpush.bf16.msra.mxu3 %v16438_v39  ;;  %v11124_v63 = vpop.f32.mrf.mxu3 }
 0x6a4   :  { %v16371_v32 = vld [vmem:[#allocation7 + $0xe78] sm:$0xf0]  ;;  %v20642_v63 = vld [vmem:[#allocation10 + $0x158] sm:$0xff] }
 0x6a5   :  { %v20382_v53 = vld [vmem:[#allocation7 + $0x193c] sm:$0xf]  ;;  %12512 = vmatpush.bf16.msra.mxu1 %v20613_v45  ;;  %11416 = vmatpush.bf16.msrb.mxu2 %v17846_v24  ;;  %v16374_v30 = vor.u32 %v20030_v13, %v16371_v32 }
 0x6a6   :  { %v17779_v22 = vld [vmem:[#allocation7 + $0x1978] sm:$0xf0] }
 0x6a7   :  { %v20604_v1 = vld [vmem:[#allocation10 + $0x28] sm:$0xff]  ;;  %v17782_v19 = vor.u32 %v20382_v53, %v17779_v22  ;;  %11376 = vmatpush.bf16.msra.mxu3 %v16374_v30  ;;  %v20599_v22 = vld [vmem:[#allocation10] sm:$0xff]  ;;  %v20646_v30 = vld [vmem:[#allocation10 + $0x178] sm:$0xff] }
 0x6a8   :  { %v20612_v55 = vld [vmem:[#allocation10 + $0x68] sm:$0xff]  ;;  %12500 = vmatpush.bf16.msra.mxu0 %v20604_v1  ;;  %v20607_v1 = vld [vmem:[#allocation10 + $0x40] sm:$0xff] }
 0x6a9   :  { %v20014_v57 = vld [vmem:[#allocation7 + $0xdbc] sm:$0xf]  ;;  %12513 = vmatpush.bf16.msra.mxu1 %v20612_v55  ;;  %11417 = vmatpush.bf16.msrb.mxu2 %v17782_v19  ;;  %v11439_v55 = vmax.f32 %v21265_v16, 0.0  ;;  %v20618_v16 = vld [vmem:[#allocation10 + $0x98] sm:$0xff] }
 0x6aa   :  { %v16307_v42 = vld [vmem:[#allocation7 + $0xdf8] sm:$0xf0] }
 0x6ab   :  { %v20366_v37 = vld [vmem:[#allocation7 + $0x18bc] sm:$0xf]  ;;  %v16310_v31 = vor.u32 %v20014_v57, %v16307_v42  ;;  %v20619_v57 = vld [vmem:[#allocation10 + $0xa0] sm:$0xff] }
 0x6ac   :  { %v17715_v20 = vld [vmem:[#allocation7 + $0x18f8] sm:$0xf0]  ;;  %12501 = vmatpush.bf16.msra.mxu0 %v20603_v11  ;;  %v11455_v11 = vpack.c.bf16 %v11439_v55, %v11439_v55 }
 0x6ad   :  { %v17718_v41 = vor.u32 %v20366_v37, %v17715_v20  ;;  %v19998_v17 = vld [vmem:[#allocation7 + $0xd3c] sm:$0xf]  ;;  %12514 = vmatpush.bf16.msra.mxu1 %v20611_v44  ;;  %11377 = vmatpush.bf16.msra.mxu3 %v16310_v31  ;;  %v11454_v20 = vpack.c.bf16 %v11438_v46, %v11438_v46  ;;  %v20645_v44 = vld [vmem:[#allocation10 + $0x170] sm:$0xff] }
 0x6ae   :  { %v16243_v59 = vld [vmem:[#allocation7 + $0xd78] sm:$0xf0] }
 0x6af   :  { %v20350_v58 = vld [vmem:[#allocation7 + $0x183c] sm:$0xf]  ;;  %11418 = vmatpush.bf16.msrb.mxu2 %v17718_v41  ;;  %v16246_v51 = vor.u32 %v19998_v17, %v16243_v59  ;;  %v11213_v59 = vpop.f32.mrf.mxu2 }
 0x6b0   :  { %v17651_v33 = vld [vmem:[#allocation7 + $0x1878] sm:$0xf0]  ;;  %12502 = vmatpush.bf16.msra.mxu0 %v20602_v8  ;;  %v4636_v8 = vperm.slane %v21600_v27, 6  ;;  %v11252_v9 = vpop.f32.mrf.mxu1 }
 0x6b1   :  { %v17654_v0 = vor.u32 %v20350_v58, %v17651_v33  ;;  %v19982_v4 = vld [vmem:[#allocation7 + $0xcbc] sm:$0xf]  ;;  %12515 = vmatpush.bf16.msra.mxu1 %v20610_v50  ;;  %11378 = vmatpush.bf16.msra.mxu3 %v16246_v51 }
 0x6b2   :  { %v16179_v43 = vld [vmem:[#allocation7 + $0xcf8] sm:$0xf0] }
 0x6b3   :  { %11419 = vmatpush.bf16.msrb.mxu2 %v17654_v0  ;;  %v16182_v15 = vor.u32 %v19982_v4, %v16179_v43  ;;  %v19966_v48 = vld [vmem:[#allocation7 + $0xc3c] sm:$0xf]  ;;  %v20635_v0 = vld [vmem:[#allocation10 + $0x120] sm:$0xff] }
 0x6b4   :  { %v16115_v25 = vld [vmem:[#allocation7 + $0xc78] sm:$0xf0]  ;;  %12503 = vmatpush.bf16.msra.mxu0 %v20601_v35  ;;  %v20643_v4 = vld [vmem:[#allocation10 + $0x160] sm:$0xff] }
 0x6b5   :  { %v20590_v47 = vld [vmem:[#allocation7 + $0x1fbc] sm:$0xf]  ;;  %12516 = vmatpush.bf16.msra.mxu1 %v20609_v34  ;;  %11379 = vmatpush.bf16.msra.mxu3 %v16182_v15  ;;  %v16118_v39 = vor.u32 %v19966_v48, %v16115_v25  ;;  %v11174_v48 = vpop.f32.mrf.mxu3 }
 0x6b6   :  { %v18611_v28 = vld [vmem:[#allocation7 + $0x1ff8] sm:$0xf0]  ;;  %11420 = vmatmul.bf16.vlgmr.msrb.gmra.mxu2 %v21182_v10  ;;  %v20638_v10 = vld [vmem:[#allocation10 + $0x138] sm:$0xff] }
 0x6b7   :  { %12524 = vmatpush.bf16.msra.mxu2 %v20622_v62  ;;  %v20600_v7 = vld [vmem:[#allocation10 + $0x8] sm:$0xff]  ;;  %v18614_v24 = vor.u32 %v20590_v47, %v18611_v28  ;;  %v11239_v62 = vpop.f32.mrf.mxu0  ;;  %v11215_v25 = vpop.f32.mrf.mxu2  ;;  %v20634_v47 = vld [vmem:[#allocation10 + $0x118] sm:$0xff]  ;;  %v11175_v28 = vadd.f32 %v11174_v48, %v21587_v40 }
 0x6b8   :  { %v20608_v45 = vld [vmem:[#allocation10 + $0x48] sm:$0xff]  ;;  %12504 = vmatpush.bf16.msra.mxu0 %v20600_v7  ;;  %v11240_v35 = vadd.f32 %v11239_v62, %v4636_v8  ;;  %v11254_v40 = vpop.f32.mrf.mxu1  ;;  %v20669_v8 = vld [vmem:[#allocation10 + $0x230] sm:$0xff] }
 0x6b9   :  { %v20620_v13 = vld [vmem:[#allocation10 + $0xa8] sm:$0xff]  ;;  %12517 = vmatpush.bf16.msra.mxu1 %v20608_v45  ;;  %11380 = vmatpush.bf16.msra.mxu3 %v16118_v39  ;;  %v20615_v45 = vld [vmem:[#allocation10 + $0x80] sm:$0xff]  ;;  %v11440_v39 = vmax.f32 %v21294_v2, 0.0 }
 0x6ba   :  { %v20574_v32 = vld [vmem:[#allocation7 + $0x1f3c] sm:$0xf] }
 0x6bb   :  { %12525 = vmatpush.bf16.msra.mxu2 %v20621_v21  ;;  %v18547_v53 = vld [vmem:[#allocation7 + $0x1f78] sm:$0xf0]  ;;  %v21603_v21 = vadd.f32 %v11252_v9, %v11240_v35  ;;  %v20675_v35 = vld [vmem:[#allocation10 + $0x260] sm:$0xff] }
 0x6bc   :  { %v18550_v19 = vor.u32 %v20574_v32, %v18547_v53  ;;  %v20558_v42 = vld [vmem:[#allocation7 + $0x1ebc] sm:$0xf]  ;;  %11381 = vmatmul.bf16.vlgmr.msra.gmra.mxu3 %v21142_v29  ;;  %12505 = vmatpush.bf16.msra.mxu0 %v20599_v22  ;;  %v20633_v22 = vld [vmem:[#allocation10 + $0x110] sm:$0xff] }
 0x6bd   :  { %11425 = vmatpush.bf16.msrb.mxu3 %v18614_v24  ;;  %v18483_v37 = vld [vmem:[#allocation7 + $0x1ef8] sm:$0xf0]  ;;  %12518 = vmatpush.bf16.msra.mxu1 %v20607_v1  ;;  %v11188_v24 = vadd.f32 %v21589_v56, %v11175_v28  ;;  %v20641_v1 = vld [vmem:[#allocation10 + $0x150] sm:$0xff]  ;;  %v20674_v28 = vld [vmem:[#allocation10 + $0x258] sm:$0xff] }
 0x6be   :  { %v18486_v31 = vor.u32 %v20558_v42, %v18483_v37  ;;  %v20542_v41 = vld [vmem:[#allocation7 + $0x1e3c] sm:$0xf]  ;;  %v11176_v42 = vpop.f32.mrf.mxu3 }
 0x6bf   :  { %12526 = vmatpush.bf16.msra.mxu2 %v20620_v13  ;;  %12506 = vmatmul.bf16.vlgmr.msra.gmra.mxu0 %v11454_v20  ;;  %v18419_v17 = vld [vmem:[#allocation7 + $0x1e78] sm:$0xf0]  ;;  %v20654_v13 = vld [vmem:[#allocation10 + $0x1b8] sm:$0xff]  ;;  %v11241_v46 = vpop.f32.mrf.mxu0  ;;  %v11446_v42 = vmax.f32 %v21474_v14, 0.0  ;;  %v20709_v14 = vld [vmem:[#allocation10 + $0x370] sm:$0xff] }
 0x6c0   :  { %12550 = vmatpush.bf16.msrb.mxu0 %v20638_v10  ;;  %12519 = vmatmul.bf16.vlgmr.msra.gmra.mxu1 %v11455_v11  ;;  %v20636_v58 = vld [vmem:[#allocation10 + $0x128] sm:$0xff]  ;;  %v18422_v33 = vor.u32 %v20542_v41, %v18419_v17  ;;  %v11201_v10 = vadd.f32 %v21591_v3, %v11188_v24  ;;  %v20630_v3 = vld [vmem:[#allocation10 + $0xf8] sm:$0xff]  ;;  %v11443_v41 = vmax.f32 %v21385_v23, 0.0  ;;  %v20665_v24 = vld [vmem:[#allocation10 + $0x210] sm:$0xff] }
 0x6c1   :  { %12563 = vmatpush.bf16.msrb.mxu1 %v20646_v30  ;;  %11426 = vmatpush.bf16.msrb.mxu3 %v18550_v19  ;;  %v20644_v29 = vld [vmem:[#allocation10 + $0x168] sm:$0xff]  ;;  %v11456_v30 = vpack.c.bf16 %v11440_v39, %v11440_v39  ;;  %v20653_v19 = vld [vmem:[#allocation10 + $0x1b0] sm:$0xff]  ;;  %v20670_v17 = vld [vmem:[#allocation10 + $0x238] sm:$0xff] }
 0x6c2   :  { %v20526_v50 = vld [vmem:[#allocation7 + $0x1dbc] sm:$0xf]  ;;  %v21609_v56 = vadd.f32 %v11213_v59, %v11201_v10  ;;  %v20678_v59 = vld [vmem:[#allocation10 + $0x278] sm:$0xff] }
 0x6c3   :  { %12527 = vmatpush.bf16.msra.mxu2 %v20619_v57  ;;  %v18355_v51 = vld [vmem:[#allocation7 + $0x1df8] sm:$0xf0]  ;;  %v20650_v23 = vld [vmem:[#allocation10 + $0x198] sm:$0xff] }
 0x6c4   :  { %12551 = vmatpush.bf16.msrb.mxu0 %v20637_v61  ;;  %v18358_v43 = vor.u32 %v20526_v50, %v18355_v51  ;;  %v20616_v26 = vld [vmem:[#allocation10 + $0x88] sm:$0xff]  ;;  %v20677_v50 = vld [vmem:[#allocation10 + $0x270] sm:$0xff]  ;;  %v20686_v39 = vld [vmem:[#allocation10 + $0x2b8] sm:$0xff] }
 0x6c5   :  { %12564 = vmatpush.bf16.msrb.mxu1 %v20645_v44  ;;  %11427 = vmatpush.bf16.msrb.mxu3 %v18486_v31  ;;  %v20510_v34 = vld [vmem:[#allocation7 + $0x1d3c] sm:$0xf]  ;;  %v20631_v44 = vld [vmem:[#allocation10 + $0x100] sm:$0xff] }
 0x6c6   :  { %v18291_v15 = vld [vmem:[#allocation7 + $0x1d78] sm:$0xf0]  ;;  %v20639_v31 = vld [vmem:[#allocation10 + $0x140] sm:$0xff] }
 0x6c7   :  { %12528 = vmatpush.bf16.msra.mxu2 %v20618_v16  ;;  %v18294_v7 = vor.u32 %v20510_v34, %v18291_v15  ;;  %v20494_v32 = vld [vmem:[#allocation7 + $0x1cbc] sm:$0xf]  ;;  %v11442_v16 = vmax.f32 %v21354_v49, 0.0  ;;  %v20626_v34 = vld [vmem:[#allocation10 + $0xd8] sm:$0xff] }
 0x6c8   :  { %12552 = vmatpush.bf16.msrb.mxu0 %v20636_v58  ;;  %v18227_v53 = vld [vmem:[#allocation7 + $0x1cf8] sm:$0xf0]  ;;  %v20629_v58 = vld [vmem:[#allocation10 + $0xf0] sm:$0xff] }
 0x6c9   :  { %12565 = vmatpush.bf16.msrb.mxu1 %v20644_v29  ;;  %11428 = vmatpush.bf16.msrb.mxu3 %v18422_v33  ;;  %v18230_v55 = vor.u32 %v20494_v32, %v18227_v53  ;;  %v20478_v2 = vld [vmem:[#allocation7 + $0x1c3c] sm:$0xf]  ;;  %v20651_v29 = vld [vmem:[#allocation10 + $0x1a0] sm:$0xff]  ;;  %v11458_v33 = vpack.c.bf16 %v11442_v16, %v11442_v16  ;;  %v20673_v53 = vld [vmem:[#allocation10 + $0x250] sm:$0xff] }
 0x6ca   :  { %v18163_v57 = vld [vmem:[#allocation7 + $0x1c78] sm:$0xf0]  ;;  %v21614_v51 = vpop.f32.mrf.mxu2  ;;  %v20701_v16 = vld [vmem:[#allocation10 + $0x330] sm:$0xff] }
 0x6cb   :  { %12529 = vmatpush.bf16.msra.mxu2 %v20617_v6  ;;  %v20632_v37 = vld [vmem:[#allocation10 + $0x108] sm:$0xff]  ;;  %v18166_v61 = vor.u32 %v20478_v2, %v18163_v57  ;;  %v11459_v6 = vpack.c.bf16 %v11443_v41, %v11443_v41  ;;  %v20663_v57 = vld [vmem:[#allocation10 + $0x200] sm:$0xff] }
 0x6cc   :  { %12553 = vmatpush.bf16.msrb.mxu0 %v20635_v0  ;;  %v20640_v20 = vld [vmem:[#allocation10 + $0x148] sm:$0xff] }
 0x6cd   :  { %12566 = vmatpush.bf16.msrb.mxu1 %v20643_v4  ;;  %11429 = vmatpush.bf16.msrb.mxu3 %v18358_v43  ;;  %v20652_v11 = vld [vmem:[#allocation10 + $0x1a8] sm:$0xff]  ;;  %v20649_v4 = vld [vmem:[#allocation10 + $0x190] sm:$0xff]  ;;  %v20667_v43 = vld [vmem:[#allocation10 + $0x220] sm:$0xff] }
 0x6ce   :  { %v20628_v49 = vld [vmem:[#allocation10 + $0xe8] sm:$0xff] }
 0x6cf   :  { %12530 = vmatpush.bf16.msra.mxu2 %v20616_v26  ;;  %v20668_v0 = vld [vmem:[#allocation10 + $0x228] sm:$0xff] }
 0x6d0   :  { %12554 = vmatpush.bf16.msrb.mxu0 %v20634_v47  ;;  %v20676_v62 = vld [vmem:[#allocation10 + $0x268] sm:$0xff]  ;;  %v21620_v48 = vpop.f32.mrf.mxu3  ;;  %v20666_v47 = vld [vmem:[#allocation10 + $0x218] sm:$0xff] }
 0x6d1   :  { %12567 = vmatpush.bf16.msrb.mxu1 %v20642_v63  ;;  %11430 = vmatpush.bf16.msrb.mxu3 %v18294_v7  ;;  %v20648_v15 = vld [vmem:[#allocation10 + $0x188] sm:$0xff]  ;;  %v20625_v63 = vld [vmem:[#allocation10 + $0xd0] sm:$0xff]  ;;  %v20647_v7 = vld [vmem:[#allocation10 + $0x180] sm:$0xff] }
 0x6d2   :  { %v11267_v25 = vpop.f32.mrf.mxu2  ;;  %v20664_v40 = vld [vmem:[#allocation10 + $0x208] sm:$0xff] }
 0x6d3   :  { %12531 = vmatpush.bf16.msra.mxu2 %v20615_v45  ;;  %v11444_v45 = vmax.f32 %v21414_v38, 0.0  ;;  %v20672_v38 = vld [vmem:[#allocation10 + $0x248] sm:$0xff]  ;;  %v20657_v25 = vld [vmem:[#allocation10 + $0x1d0] sm:$0xff] }
 0x6d4   :  { %12555 = vmatpush.bf16.msrb.mxu0 %v20633_v22  ;;  %v21616_v9 = vpop.f32.mrf.mxu0  ;;  %v20624_v22 = vld [vmem:[#allocation10 + $0xc8] sm:$0xff] }
 0x6d5   :  { %12568 = vmatpush.bf16.msrb.mxu1 %v20641_v1  ;;  %11431 = vmatpush.bf16.msrb.mxu3 %v18230_v55  ;;  %v11460_v46 = vpack.c.bf16 %v11444_v45, %v11444_v45  ;;  %v20685_v1 = vld [vmem:[#allocation10 + $0x2b0] sm:$0xff]  ;;  %v20623_v55 = vld [vmem:[#allocation10 + $0xc0] sm:$0xff]  ;;  %v20684_v2 = vld [vmem:[#allocation10 + $0x2a8] sm:$0xff] }
 0x6d6   :  { %12532 = vmatmul.bf16.vlgmr.msra.gmra.mxu2 %v11456_v30  ;;  %v21618_v26 = vpop.f32.mrf.mxu1  ;;  %v11441_v30 = vmax.f32 %v21325_v36, 0.0  ;;  %v11462_v36 = vpack.c.bf16 %v11446_v42, %v11446_v42 }
 0x6d7   :  { %12576 = vmatpush.bf16.msrb.mxu2 %v20654_v13 }
 0x6d8   :  { %12556 = vmatpush.bf16.msrb.mxu0 %v20632_v37  ;;  %v11228_v10 = vpop.f32.mrf.mxu3  ;;  %v20671_v37 = vld [vmem:[#allocation10 + $0x240] sm:$0xff] }
 0x6d9   :  { %12569 = vmatpush.bf16.msrb.mxu1 %v20640_v20  ;;  %11432 = vmatpush.bf16.msrb.mxu3 %v18166_v61  ;;  %v20702_v20 = vld [vmem:[#allocation10 + $0x338] sm:$0xff]  ;;  %v11457_v61 = vpack.c.bf16 %v11441_v30, %v11441_v30  ;;  %v20655_v10 = vld [vmem:[#allocation10 + $0x1c0] sm:$0xff] }
 0x6da   :  { %v20695_v30 = vld [vmem:[#allocation10 + $0x300] sm:$0xff] }
 0x6db   :  { %12577 = vmatpush.bf16.msrb.mxu2 %v20653_v19  ;;  %v20662_v19 = vld [vmem:[#allocation10 + $0x1f8] sm:$0xff] }
 0x6dc   :  { %12557 = vmatpush.bf16.msrb.mxu0 %v20631_v44  ;;  %11433 = vmatmul.bf16.vlgmr.msrb.gmra.mxu3 %v21197_v18  ;;  %v20627_v18 = vld [vmem:[#allocation10 + $0xe0] sm:$0xff]  ;;  %v11293_v13 = vpop.f32.mrf.mxu0  ;;  %v20661_v44 = vld [vmem:[#allocation10 + $0x1f0] sm:$0xff] }
 0x6dd   :  { %12537 = vmatpush.bf16.msra.mxu3 %v20630_v3  ;;  %12570 = vmatpush.bf16.msrb.mxu1 %v20639_v31  ;;  %v11447_v3 = vmax.f32 %v21505_v60, 0.0  ;;  %v20683_v31 = vld [vmem:[#allocation10 + $0x2a0] sm:$0xff]  ;;  %v20656_v13 = vld [vmem:[#allocation10 + $0x1c8] sm:$0xff] }
 0x6de   :  { %v11306_v32 = vpop.f32.mrf.mxu1 }
 0x6df   :  { %12578 = vmatpush.bf16.msrb.mxu2 %v20652_v11  ;;  %12558 = vmatmul.bf16.vlgmr.msrb.gmra.mxu0 %v11458_v33  ;;  %v20710_v11 = vld [vmem:[#allocation10 + $0x378] sm:$0xff]  ;;  %v11463_v41 = vpack.c.bf16 %v11447_v3, %v11447_v3  ;;  %v20659_v33 = vld [vmem:[#allocation10 + $0x1e0] sm:$0xff] }
 0x6e0   :  { %12602 = vmatpush.bf16.msra.mxu0 %v20670_v17  ;;  %12571 = vmatmul.bf16.vlgmr.msrb.gmra.mxu1 %v11459_v6  ;;  %v20660_v17 = vld [vmem:[#allocation10 + $0x1e8] sm:$0xff]  ;;  %v20681_v6 = vld [vmem:[#allocation10 + $0x290] sm:$0xff]  ;;  %v20714_v3 = vld [vmem:[#allocation10 + $0x398] sm:$0xff] }
 0x6e1   :  { %12615 = vmatpush.bf16.msra.mxu1 %v20678_v59  ;;  %12538 = vmatpush.bf16.msra.mxu3 %v20629_v58  ;;  %v20682_v59 = vld [vmem:[#allocation10 + $0x298] sm:$0xff]  ;;  %v20700_v58 = vld [vmem:[#allocation10 + $0x328] sm:$0xff] }
 0x6e3   :  { %12579 = vmatpush.bf16.msrb.mxu2 %v20651_v29  ;;  %v20708_v29 = vld [vmem:[#allocation10 + $0x368] sm:$0xff] }
 0x6e4   :  { %12603 = vmatpush.bf16.msra.mxu0 %v20669_v8  ;;  %v4637_v8 = vperm.slane %v21600_v27, 7  ;;  %v20706_v27 = vld [vmem:[#allocation10 + $0x358] sm:$0xff] }
 0x6e5   :  { %12616 = vmatpush.bf16.msra.mxu1 %v20677_v50  ;;  %12539 = vmatpush.bf16.msra.mxu3 %v20628_v49  ;;  %v20699_v50 = vld [vmem:[#allocation10 + $0x320] sm:$0xff] }
 0x6e7   :  { %12580 = vmatpush.bf16.msrb.mxu2 %v20650_v23  ;;  %v20707_v23 = vld [vmem:[#allocation10 + $0x360] sm:$0xff] }
 0x6e8   :  { %12604 = vmatpush.bf16.msra.mxu0 %v20668_v0  ;;  %v20658_v0 = vld [vmem:[#allocation10 + $0x1d8] sm:$0xff] }
 0x6e9   :  { %12617 = vmatpush.bf16.msra.mxu1 %v20676_v62  ;;  %12540 = vmatpush.bf16.msra.mxu3 %v20627_v18 }
 0x6eb   :  { %12581 = vmatpush.bf16.msrb.mxu2 %v20649_v4  ;;  %v20680_v4 = vld [vmem:[#allocation10 + $0x288] sm:$0xff] }
 0x6ec   :  { %12605 = vmatpush.bf16.msra.mxu0 %v20667_v43 }
 0x6ed   :  { %12618 = vmatpush.bf16.msra.mxu1 %v20675_v35  ;;  %12541 = vmatpush.bf16.msra.mxu3 %v20626_v34 }
 0x6ef   :  { %12582 = vmatpush.bf16.msrb.mxu2 %v20648_v15  ;;  %v20698_v15 = vld [vmem:[#allocation10 + $0x318] sm:$0xff] }
 0x6f0   :  { %12606 = vmatpush.bf16.msra.mxu0 %v20666_v47  ;;  %v21626_v60 = vpop.f32.mrf.mxu2  ;;  %v20679_v47 = vld [vmem:[#allocation10 + $0x280] sm:$0xff] }
 0x6f1   :  { %12619 = vmatpush.bf16.msra.mxu1 %v20674_v28  ;;  %12542 = vmatpush.bf16.msra.mxu3 %v20625_v63  ;;  %v11448_v28 = vmax.f32 %v21534_v54, 0.0  ;;  %v20718_v63 = vld [vmem:[#allocation10 + $0x3b8] sm:$0xff]  ;;  %v11227_v54 = vadd.f32 %v21620_v48, %v21609_v56  ;;  %v20693_v56 = vld [vmem:[#allocation10 + $0x2f0] sm:$0xff] }
 0x6f3   :  { %12583 = vmatpush.bf16.msrb.mxu2 %v20647_v7  ;;  %v20697_v7 = vld [vmem:[#allocation10 + $0x310] sm:$0xff]  ;;  %v11464_v32 = vpack.c.bf16 %v11448_v28, %v11448_v28 }
 0x6f4   :  { %12607 = vmatpush.bf16.msra.mxu0 %v20665_v24  ;;  %v11343_v49 = vpop.f32.mrf.mxu0 }
 0x6f5   :  { %12620 = vmatpush.bf16.msra.mxu1 %v20673_v53  ;;  %12543 = vmatpush.bf16.msra.mxu3 %v20624_v22  ;;  %v11344_v62 = vadd.f32 %v11343_v49, %v4637_v8  ;;  %v20717_v53 = vld [vmem:[#allocation10 + $0x3b0] sm:$0xff]  ;;  %v20688_v49 = vld [vmem:[#allocation10 + $0x2c8] sm:$0xff] }
 0x6f6   :  { %12584 = vmatmul.bf16.vlgmr.msrb.gmra.mxu2 %v11460_v46  ;;  %v11356_v18 = vpop.f32.mrf.mxu1  ;;  %v11278_v35 = vpop.f32.mrf.mxu3  ;;  %v20696_v46 = vld [vmem:[#allocation10 + $0x308] sm:$0xff] }
 0x6f7   :  { %12628 = vmatpush.bf16.msra.mxu2 %v20686_v39  ;;  %v21629_v43 = vadd.f32 %v11356_v18, %v11344_v62  ;;  %v20705_v39 = vld [vmem:[#allocation10 + $0x350] sm:$0xff]  ;;  %v20726_v62 = vld [vmem:[#allocation10 + $0x3f8] sm:$0xff] }
 0x6f8   :  { %12608 = vmatpush.bf16.msra.mxu0 %v20664_v40  ;;  %v11319_v34 = vpop.f32.mrf.mxu2  ;;  %v11445_v40 = vmax.f32 %v21445_v52, 0.0  ;;  %v20715_v52 = vld [vmem:[#allocation10 + $0x3a0] sm:$0xff] }
 0x6f9   :  { %12621 = vmatpush.bf16.msra.mxu1 %v20672_v38  ;;  %12544 = vmatpush.bf16.msra.mxu3 %v20623_v55  ;;  %v20694_v38 = vld [vmem:[#allocation10 + $0x2f8] sm:$0xff]  ;;  %v20716_v55 = vld [vmem:[#allocation10 + $0x3a8] sm:$0xff] }
 0x6fa   :  { %v11461_v42 = vpack.c.bf16 %v11445_v40, %v11445_v40 }
 0x6fb   :  { %12629 = vmatpush.bf16.msra.mxu2 %v20685_v1  ;;  %v20704_v1 = vld [vmem:[#allocation10 + $0x348] sm:$0xff] }
 0x6fc   :  { %12545 = vmatmul.bf16.vlgmr.msra.gmra.mxu3 %v11457_v61  ;;  %12609 = vmatpush.bf16.msra.mxu0 %v20663_v57  ;;  %v11345_v45 = vpop.f32.mrf.mxu0  ;;  %v11451_v57 = vmax.f32 %v11227_v54, 0.0 }
 0x6fd   :  { %12589 = vmatpush.bf16.msrb.mxu3 %v20662_v19  ;;  %12622 = vmatpush.bf16.msra.mxu1 %v20671_v37  ;;  %v11450_v19 = vmax.f32 %v21594_v12, 0.0  ;;  %v11266_v37 = vadd.f32 %v21614_v51, %v21603_v21  ;;  %v20692_v12 = vld [vmem:[#allocation10 + $0x2e8] sm:$0xff]  ;;  %v20691_v21 = vld [vmem:[#allocation10 + $0x2e0] sm:$0xff]  ;;  %v20713_v51 = vld [vmem:[#allocation10 + $0x390] sm:$0xff] }
 0x6fe   :  { %v11358_v24 = vpop.f32.mrf.mxu1  ;;  %v11280_v22 = vpop.f32.mrf.mxu3  ;;  %v11467_v61 = vpack.c.bf16 %v11451_v57, %v11451_v57 }
 0x6ff   :  { %12630 = vmatpush.bf16.msra.mxu2 %v20684_v2  ;;  %12610 = vmatmul.bf16.vlgmr.msra.gmra.mxu0 %v11462_v36  ;;  %v20703_v2 = vld [vmem:[#allocation10 + $0x340] sm:$0xff]  ;;  %v11466_v48 = vpack.c.bf16 %v11450_v19, %v11450_v19 }
 0x700   :  { %12654 = vmatpush.bf16.msrb.mxu0 %v20702_v20  ;;  %12623 = vmatmul.bf16.vlgmr.msra.gmra.mxu1 %v11463_v41  ;;  %v11279_v20 = vadd.f32 %v11278_v35, %v11266_v37  ;;  %v20690_v41 = vld [vmem:[#allocation10 + $0x2d8] sm:$0xff]  ;;  %v20724_v35 = vld [vmem:[#allocation10 + $0x3e8] sm:$0xff]  ;;  %v20719_v22 = vld [vmem:[#allocation10 + $0x3c0] sm:$0xff] }
 0x701   :  { %12667 = vmatpush.bf16.msrb.mxu1 %v20710_v11  ;;  %12590 = vmatpush.bf16.msrb.mxu3 %v20661_v44 }
 0x702   :  { %v11292_v11 = vadd.f32 %v21616_v9, %v11279_v20  ;;  %v20689_v9 = vld [vmem:[#allocation10 + $0x2d0] sm:$0xff] }
 0x703   :  { %12631 = vmatpush.bf16.msra.mxu2 %v20683_v31 }
 0x704   :  { %12655 = vmatpush.bf16.msrb.mxu0 %v20701_v16  ;;  %v11305_v31 = vadd.f32 %v21618_v26, %v11292_v11 }
 0x705   :  { %12668 = vmatpush.bf16.msrb.mxu1 %v20709_v14  ;;  %12591 = vmatpush.bf16.msrb.mxu3 %v20660_v17  ;;  %v20712_v14 = vld [vmem:[#allocation10 + $0x388] sm:$0xff] }
 0x706   :  { %v11318_v17 = vadd.f32 %v21626_v60, %v11305_v31  ;;  %v11449_v60 = vmax.f32 %v21565_v5, 0.0 }
 0x707   :  { %12632 = vmatpush.bf16.msra.mxu2 %v20682_v59 }
 0x708   :  { %12656 = vmatpush.bf16.msrb.mxu0 %v20700_v58  ;;  %v11465_v18 = vpack.c.bf16 %v11449_v60, %v11449_v60 }
 0x709   :  { %12669 = vmatpush.bf16.msrb.mxu1 %v20708_v29  ;;  %12592 = vmatpush.bf16.msrb.mxu3 %v20659_v33  ;;  %v20711_v33 = vld [vmem:[#allocation10 + $0x380] sm:$0xff] }
 0x70b   :  { %12633 = vmatpush.bf16.msra.mxu2 %v20681_v6 }
 0x70c   :  { %12657 = vmatpush.bf16.msrb.mxu0 %v20699_v50 }
 0x70d   :  { %12670 = vmatpush.bf16.msrb.mxu1 %v20707_v23  ;;  %12593 = vmatpush.bf16.msrb.mxu3 %v20658_v0  ;;  %v20687_v0 = vld [vmem:[#allocation10 + $0x2c0] sm:$0xff] }
 0x70f   :  { %12634 = vmatpush.bf16.msra.mxu2 %v20680_v4  ;;  %v20725_v4 = vld [vmem:[#allocation10 + $0x3f0] sm:$0xff] }
 0x710   :  { %12658 = vmatpush.bf16.msrb.mxu0 %v20698_v15  ;;  %v11369_v44 = vpop.f32.mrf.mxu2  ;;  %v20723_v15 = vld [vmem:[#allocation10 + $0x3e0] sm:$0xff] }
 0x711   :  { %12671 = vmatpush.bf16.msrb.mxu1 %v20706_v27  ;;  %12594 = vmatpush.bf16.msrb.mxu3 %v20657_v25  ;;  %v20739_v27 = vld [vmem:[#allocation11] ss:$0 sm:$0xff] }
 0x713   :  { %12635 = vmatpush.bf16.msra.mxu2 %v20679_v47  ;;  %v20722_v47 = vld [vmem:[#allocation10 + $0x3d8] sm:$0xff] }
 0x714   :  { %12659 = vmatpush.bf16.msrb.mxu0 %v20697_v7 }
 0x715   :  { %12672 = vmatpush.bf16.msrb.mxu1 %v20705_v39  ;;  %12595 = vmatpush.bf16.msrb.mxu3 %v20656_v13  ;;  %v20721_v39 = vld [vmem:[#allocation10 + $0x3d0] sm:$0xff]  ;;  %v20720_v13 = vld [vmem:[#allocation10 + $0x3c8] sm:$0xff] }
 0x716   :  { %12636 = vmatmul.bf16.vlgmr.msra.gmra.mxu2 %v11464_v32  ;;  %v11330_v59 = vpop.f32.mrf.mxu3 }
 0x717   :  { %12680 = vmatpush.bf16.msrb.mxu2 %v20718_v63  ;;  %v11331_v29 = vadd.f32 %v11330_v59, %v11318_v17 }
 0x718   :  { %12660 = vmatpush.bf16.msrb.mxu0 %v20696_v46  ;;  %v11371_v58 = vpop.f32.mrf.mxu2  ;;  %v11370_v46 = vadd.f32 %v11369_v44, %v21629_v43 }
 0x719   :  { %12673 = vmatpush.bf16.msrb.mxu1 %v20704_v1  ;;  %12596 = vmatpush.bf16.msrb.mxu3 %v20655_v10  ;;  %v11452_v6 = vmax.f32 %v11331_v29, 0.0 }
 0x71b   :  { %12681 = vmatpush.bf16.msrb.mxu2 %v20717_v53  ;;  %v11395_v36 = vpop.f32.mrf.mxu0  ;;  %v11468_v8 = vpack.c.bf16 %v11452_v6, %v11452_v6 }
 0x71c   :  { %12661 = vmatpush.bf16.msrb.mxu0 %v20695_v30  ;;  %12597 = vmatmul.bf16.vlgmr.msrb.gmra.mxu3 %v11461_v42 }
 0x71d   :  { %12641 = vmatpush.bf16.msra.mxu3 %v20694_v38  ;;  %12674 = vmatpush.bf16.msrb.mxu1 %v20703_v2  ;;  %v11408_v16 = vpop.f32.mrf.mxu1 }
 0x71e   :  { %v11332_v23 = vpop.f32.mrf.mxu3 }
 0x71f   :  { %12682 = vmatpush.bf16.msrb.mxu2 %v20716_v55  ;;  %12662 = vmatmul.bf16.vlgmr.msrb.gmra.mxu0 %v11466_v48 }
 0x720   :  { %12675 = vmatmul.bf16.vlgmr.msrb.gmra.mxu1 %v11467_v61 }
 0x721   :  { %12642 = vmatpush.bf16.msra.mxu3 %v20693_v56 }
 0x723   :  { %12683 = vmatpush.bf16.msrb.mxu2 %v20715_v52  ;;  %v11397_v50 = vpop.f32.mrf.mxu0 }
 0x725   :  { %12643 = vmatpush.bf16.msra.mxu3 %v20692_v12  ;;  %v11410_v26 = vpop.f32.mrf.mxu1 }
 0x727   :  { %12684 = vmatpush.bf16.msrb.mxu2 %v20714_v3 }
 0x729   :  { %12644 = vmatpush.bf16.msra.mxu3 %v20691_v21 }
 0x72b   :  { %12685 = vmatpush.bf16.msrb.mxu2 %v20713_v51 }
 0x72d   :  { %12645 = vmatpush.bf16.msra.mxu3 %v20690_v41 }
 0x72f   :  { %12686 = vmatpush.bf16.msrb.mxu2 %v20712_v14 }
 0x731   :  { %12646 = vmatpush.bf16.msra.mxu3 %v20689_v9 }
 0x733   :  { %12687 = vmatpush.bf16.msrb.mxu2 %v20711_v33 }
 0x735   :  { %12647 = vmatpush.bf16.msra.mxu3 %v20688_v49 }
 0x736   :  { %12688 = vmatmul.bf16.vlgmr.msrb.gmra.mxu2 %v11468_v8 }
 0x739   :  { %12648 = vmatpush.bf16.msra.mxu3 %v20687_v0  ;;  %v11421_v34 = vpop.f32.mrf.mxu2 }
 0x73c   :  { %12649 = vmatmul.bf16.vlgmr.msra.gmra.mxu3 %v11465_v18  ;;  %v12507_v25 = vpop.f32.mrf.mxu0 }
 0x73d   :  { %12693 = vmatpush.bf16.msrb.mxu3 %v20726_v62  ;;  %v12508_v28 = vadd.f32 %v20739_v27, %v12507_v25  ;;  %v12520_v63 = vpop.f32.mrf.mxu1 }
 0x73f   :  { %v12521_v7 = vadd.f32 %v12520_v63, %v12508_v28  ;;  %v11382_v45 = vpop.f32.mrf.mxu3 }
 0x740   :  { %v11383_v1 = vadd.f32 %v11382_v45, %v11370_v46 }
 0x741   :  { %12694 = vmatpush.bf16.msrb.mxu3 %v20725_v4  ;;  %v11423_v5 = vpop.f32.mrf.mxu2 }
 0x742   :  { %v11396_v54 = vadd.f32 %v11395_v36, %v11383_v1 }
 0x744   :  { %v12509_v24 = vpop.f32.mrf.mxu0  ;;  %v11409_v38 = vadd.f32 %v11408_v16, %v11396_v54 }
 0x745   :  { %12695 = vmatpush.bf16.msrb.mxu3 %v20724_v35  ;;  %v12522_v32 = vpop.f32.mrf.mxu1 }
 0x746   :  { %v11422_v19 = vadd.f32 %v11421_v34, %v11409_v38 }
 0x747   :  { %v11384_v53 = vpop.f32.mrf.mxu3 }
 0x749   :  { %12696 = vmatpush.bf16.msrb.mxu3 %v20723_v15 }
 0x74d   :  { %12697 = vmatpush.bf16.msrb.mxu3 %v20722_v47 }
 0x751   :  { %12698 = vmatpush.bf16.msrb.mxu3 %v20721_v39 }
 0x755   :  { %12699 = vmatpush.bf16.msrb.mxu3 %v20720_v13 }
 0x759   :  { %12700 = vmatpush.bf16.msrb.mxu3 %v20719_v22  ;;  %v12533_v10 = vpop.f32.mrf.mxu2 }
 0x75a   :  { %v12534_v40 = vadd.f32 %v12533_v10, %v12521_v7 }
 0x75c   :  { %v12559_v55 = vpop.f32.mrf.mxu0 }
 0x75d   :  { %v12572_v30 = vpop.f32.mrf.mxu1 }
 0x75f   :  { %v11434_v2 = vpop.f32.mrf.mxu3 }
 0x760   :  { %v11435_v42 = vadd.f32 %v11434_v2, %v11422_v19 }
 0x761   :  { %v12535_v57 = vpop.f32.mrf.mxu2 }
 0x762   :  { %v11453_v37 = vmax.f32 %v11435_v42, 0.0 }
 0x764   :  { %v11469_v56 = vpack.c.bf16 %v11453_v37, %v11453_v37  ;;  %v12561_v52 = vpop.f32.mrf.mxu0 }
 0x765   :  { %v12574_v48 = vpop.f32.mrf.mxu1 }
 0x766   :  { %12701 = vmatmul.bf16.vlgmr.msrb.gmra.mxu3 %v11469_v56 }
 0x767   :  { %v11436_v20 = vpop.f32.mrf.mxu3 }
 0x779   :  { %v12585_v61 = vpop.f32.mrf.mxu2 }
 0x77c   :  { %v12611_v12 = vpop.f32.mrf.mxu0 }
 0x77d   :  { %v12624_v43 = vpop.f32.mrf.mxu1 }
 0x77f   :  { %v12546_v3 = vpop.f32.mrf.mxu3 }
 0x780   :  { %v12547_v44 = vadd.f32 %v12546_v3, %v12534_v40 }
 0x781   :  { %v12587_v11 = vpop.f32.mrf.mxu2 }
 0x782   :  { %v12560_v21 = vadd.f32 %v12559_v55, %v12547_v44 }
 0x784   :  { %v12613_v51 = vpop.f32.mrf.mxu0  ;;  %v12573_v31 = vadd.f32 %v12572_v30, %v12560_v21 }
 0x785   :  { %v12626_v36 = vpop.f32.mrf.mxu1 }
 0x786   :  { %v12586_v16 = vadd.f32 %v12585_v61, %v12573_v31 }
 0x787   :  { %v12548_v41 = vpop.f32.mrf.mxu3 }
 0x799   :  { %v12637_v14 = vpop.f32.mrf.mxu2 }
 0x79c   :  { %v12663_v17 = vpop.f32.mrf.mxu0 }
 0x79d   :  { %v12676_v59 = vpop.f32.mrf.mxu1 }
 0x79f   :  { %v12598_v58 = vpop.f32.mrf.mxu3 }
 0x7a0   :  { %v12599_v9 = vadd.f32 %v12598_v58, %v12586_v16 }
 0x7a1   :  { %v12639_v29 = vpop.f32.mrf.mxu2 }
 0x7a2   :  { %v12612_v33 = vadd.f32 %v12611_v12, %v12599_v9 }
 0x7a4   :  { %v12665_v6 = vpop.f32.mrf.mxu0  ;;  %v12625_v50 = vadd.f32 %v12624_v43, %v12612_v33 }
 0x7a5   :  { %v12678_v8 = vpop.f32.mrf.mxu1 }
 0x7a6   :  { %v12638_v26 = vadd.f32 %v12637_v14, %v12625_v50 }
 0x7a7   :  { %v12600_v49 = vpop.f32.mrf.mxu3 }
 0x7b9   :  { %v12689_v23 = vpop.f32.mrf.mxu2 }
 0x7bf   :  { %v12650_v0 = vpop.f32.mrf.mxu3 }
 0x7c0   :  { %v12651_v60 = vadd.f32 %v12650_v0, %v12638_v26 }
 0x7c1   :  { %v12691_v62 = vpop.f32.mrf.mxu2 }
 0x7c2   :  { %v12664_v18 = vadd.f32 %v12663_v17, %v12651_v60 }
 0x7c4   :  { %v12677_v4 = vadd.f32 %v12676_v59, %v12664_v18 }
 0x7c6   :  { %v12690_v34 = vadd.f32 %v12689_v23, %v12677_v4 }
 0x7c7   :  { %v12652_v35 = vpop.f32.mrf.mxu3 }
 0x7e9   :  { %v12702_v15 = vpop.f32.mrf.mxu3 }
 0x7ea   :  { %v12703_v27 = vadd.f32 %v12702_v15, %v12690_v34 }
 0x7ec   :  { %12706 = vst [vmem:[#allocation13] sm:$0xff] %v12703_v27 }
 0x7ed   :  { %12717 = dma.vmem_to_hbm [thread:$0]  %s12713_s14, 128, %s12715_s17, [#allocation4]  }
 0x7f1   :  { %v12704_v25 = vpop.f32.mrf.mxu3 }
 0x7f2   :  { %20924 = dma.done.wait [#allocation4], 128  }
 0x7f3   :  { %20925 = vsyncadd [#allocation4], 4294967168 }
 0x7f4   :  { %12722 = vsyncpa [#allocation3], 1 }
 0x7f5   :  { %12723 = vsyncpa [#allocation6], 1 }
 0x7f6   :  { %12724 = vsyncpa [#allocation9], 1 }
 0x7f7   :  { %12725 = vsyncpa [#allocation12], 1 }
 0x7f8   :  { %12726 = vsyncpa [#allocation4], 1 }

</bundles_post_ra>
